<compile_context>
chip_gen: v5e
topology: v5e:2x2
jax: 0.10.0
libtpu: 0.0.40
codegen_flags: <defaults>
</compile_context>

<pallas_src>
import math
from functools import partial

import jax
import jax.numpy as jnp
from jax.experimental import pallas as pl
from jax.experimental.pallas import tpu as pltpu

LANE = 128   # TPU lane width; every channel dim is zero-padded to this.


# ----------------------------------------------------------------------------
# host-side helpers (run once at parameter-preparation time)
# ----------------------------------------------------------------------------

def _pad_axis(a, axis, target):
    if a.shape[axis] >= target:
        return a
    cfg = [(0, 0)] * a.ndim
    cfg[axis] = (0, target - a.shape[axis])
    return jnp.pad(a, cfg)


def _row(v):            # (c,) -> (1, LANE) f32
    return _pad_axis(v.reshape(1, -1), 1, LANE).astype(jnp.float32)


def _mat(w):            # (cin, cout) -> (LANE, LANE)
    return _pad_axis(_pad_axis(w, 0, LANE), 1, LANE)


def _same_pads(h, w, k, s):
    """TF-'SAME' padding (top, bottom, left, right) as in get_same_padding_conv2d."""
    ph = max((math.ceil(h / s) - 1) * s + k - h, 0)
    pw = max((math.ceil(w / s) - 1) * s + k - w, 0)
    return ph // 2, ph - ph // 2, pw // 2, pw - pw // 2


def _bn_fold(bn):
    scale = bn["gamma"] / jnp.sqrt(bn["var"] + bn["eps"])
    return scale, bn["beta"] - bn["mean"] * scale


# ----------------------------------------------------------------------------
# in-kernel helpers
# ----------------------------------------------------------------------------

def _swish(y):
    return y * jax.nn.sigmoid(y)


def _subsample(t, s):
    """(n, s*ho, s*wo, c) -> (n, ho, wo, c): keep every s-th row/col (offset 0).
    Only minor-dim(=lane)-preserving reshapes + static slices are used."""
    if s == 1:
        return t
    n, sh, sw, c = t.shape
    ho, wo = sh // s, sw // s
    t = t.reshape(n, ho, s, sw, c)[:, :, 0, :, :]
    t = t.reshape(n, ho, wo, s, c)[:, :, :, 0, :]
    return t


# ----------------------------------------------------------------------------
# The single fused kernel: stem + all MBConv blocks + head + pool + FC.
# Runs once per image (grid over batch, "parallel" for v7x's two TensorCores).
# ----------------------------------------------------------------------------

def _efficientnet_kernel(*refs, stem_cfg, block_cfgs):
    it = iter(refs)
    # ---- inputs -------------------------------------------------------------
    x_ref = next(it)                                            # (1, hp, wp, LANE) f32
    stem_w_ref, stem_s_ref, stem_b_ref = next(it), next(it), next(it)
    block_refs = []
    for cfg in block_cfgs:
        bp = {}
        if cfg["has_expand"]:
            bp["ew"], bp["es"], bp["eb"] = next(it), next(it), next(it)
        bp["dw"], bp["ds"], bp["db"] = next(it), next(it), next(it)
        if cfg["has_se"]:
            bp["srw"], bp["srb"] = next(it), next(it)
            bp["sew"], bp["seb"] = next(it), next(it)
        bp["pw"], bp["ps"], bp["pb"] = next(it), next(it), next(it)
        block_refs.append(bp)
    head_w_ref, head_s_ref, head_b_ref = next(it), next(it), next(it)
    fc_w_ref, fc_b_ref = next(it), next(it)
    # ---- outputs ------------------------------------------------------------
    b0_ref = next(it)
    tap_refs = [next(it) for cfg in block_cfgs if cfg["emit_tap"]]
    final_ref = next(it)
    logits_ref = next(it)
    # ---- scratch ------------------------------------------------------------
    xp_sc = next(it)                                            # (1, hp_max, wp_max, LANE) f32

    C = x_ref.shape[-1]

    # ====== stem: merged-K im2col matmul with pre-subsampled taps + BN + swish ======
    k, s = stem_cfg["k"], stem_cfg["s"]
    ho, wo = stem_cfg["ho"], stem_cfg["wo"]
    sh, sw = s * ho, s * wo
    xp = x_ref[...]                                             # (1, hp, wp, C) f32
    cols = [
        _subsample(xp[:, kh:kh + sh, kw:kw + sw, :], s).reshape(ho * wo, C)
        for kh in range(k) for kw in range(k)
    ]
    patch = jnp.concatenate(cols, axis=-1).astype(jnp.bfloat16)  # (M, k*k*C), lane-aligned
    y = jnp.dot(patch, stem_w_ref[...], preferred_element_type=jnp.float32)
    y = _swish(y * stem_s_ref[...] + stem_b_ref[...])
    b0_ref[...] = y.reshape(1, ho, wo, C).astype(b0_ref.dtype)

    x = y                       # current activation, flattened (h*w, C) f32
    h, w = ho, wo

    # ====== MBConv blocks (fully fused; activations stay in VMEM) ======
    ti = 0
    for cfg, bp in zip(block_cfgs, block_refs):
        k, s = cfg["k"], cfg["s"]
        ho, wo = cfg["ho"], cfg["wo"]
        pad_t, pad_l = cfg["pad_t"], cfg["pad_l"]
        hp_u = (k - 1) + s * ho
        wp_u = (k - 1) + s * wo

        # -- expansion 1x1 conv + folded BN + swish (bf16 operands, f32 acc) --
        if cfg["has_expand"]:
            y = jnp.dot(x.astype(jnp.bfloat16), bp["ew"][...],
                        preferred_element_type=jnp.float32)
            y = _swish(y * bp["es"][...] + bp["eb"][...])
        else:
            y = x

        # -- TF-SAME zero padding into the reused VMEM scratch: zero ONLY the halo
        #    frame, store the interior once (no full scratch double-write). --
        pb = hp_u - pad_t - h
        pr = wp_u - pad_l - w
        if pad_t:
            xp_sc[:, 0:pad_t, 0:wp_u, :] = jnp.zeros((1, pad_t, wp_u, C), jnp.float32)
        if pb:
            xp_sc[:, pad_t + h:hp_u, 0:wp_u, :] = jnp.zeros((1, pb, wp_u, C), jnp.float32)
        if pad_l:
            xp_sc[:, pad_t:pad_t + h, 0:pad_l, :] = jnp.zeros((1, h, pad_l, C), jnp.float32)
        if pr:
            xp_sc[:, pad_t:pad_t + h, pad_l + w:wp_u, :] = jnp.zeros((1, h, pr, C), jnp.float32)
        xp_sc[:, pad_t:pad_t + h, pad_l:pad_l + w, :] = y.reshape(1, h, w, C)
        xpd = xp_sc[:, 0:hp_u, 0:wp_u, :]               # only the used sub-region

        # -- depthwise kxk conv: subsample each tap BEFORE the MAC (stride folded),
        #    then folded BN + swish.  MAC kept in f32 (portable to v5e). --
        acc = jnp.zeros((1, ho, wo, C), jnp.float32)
        for kh in range(k):
            for kw in range(k):
                t = _subsample(xpd[:, kh:kh + s * ho, kw:kw + s * wo, :], s)
                acc = acc + t * bp["dw"][kh, kw, :][None, None, None, :]
        y = acc.reshape(ho * wo, C)
        y = _swish(y * bp["ds"][...] + bp["db"][...])

        # -- squeeze & excitation: per-image global pool + 2 tiny matmuls + gate.
        #    Padded channels are exactly zero here, so sigmoid(0)=0.5 on them is
        #    harmless (0 * 0.5 = 0); keep biases/weights zero-padded. --
        if cfg["has_se"]:
            pooled = jnp.mean(y, axis=0, keepdims=True)                   # (1, C)
            sq = jnp.dot(pooled.astype(jnp.bfloat16), bp["srw"][...],
                         preferred_element_type=jnp.float32)
            sq = _swish(sq + bp["srb"][...])
            sq = jnp.dot(sq.astype(jnp.bfloat16), bp["sew"][...],
                         preferred_element_type=jnp.float32) + bp["seb"][...]
            y = y * jax.nn.sigmoid(sq)

        # -- projection 1x1 conv + folded BN (+ identity skip) --
        z = jnp.dot(y.astype(jnp.bfloat16), bp["pw"][...],
                    preferred_element_type=jnp.float32)
        z = z * bp["ps"][...] + bp["pb"][...]
        if cfg["has_skip"]:
            z = z + x
        x = z
        h, w = ho, wo
        if cfg["emit_tap"]:
            tap_refs[ti][...] = x.reshape(1, h, w, C).astype(tap_refs[ti].dtype)
            ti += 1

    # ====== head: 1x1 conv + BN + swish -> global average pool -> FC ======
    y = jnp.dot(x.astype(jnp.bfloat16), head_w_ref[...],
                preferred_element_type=jnp.float32)
    y = _swish(y * head_s_ref[...] + head_b_ref[...])
    final_ref[...] = y.reshape(1, h, w, C).astype(final_ref.dtype)
    pooled = jnp.mean(y, axis=0, keepdims=True)                           # (1, C)
    # TODO(synk): nn.Dropout is identity in inference mode; no RNG dropout applied here.
    logits = jnp.dot(pooled.astype(jnp.bfloat16), fc_w_ref[...],
                     preferred_element_type=jnp.float32) + fc_b_ref[...]
    logits_ref[...] = logits.reshape(1, 1, C).astype(logits_ref.dtype)


# ----------------------------------------------------------------------------
# BlockSpec helpers for the single pallas_call
# ----------------------------------------------------------------------------

def _const_spec(shape):
    """Weight / bias: full array resident, same block for every grid step."""
    zeros = (0,) * len(shape)
    return pl.BlockSpec(tuple(shape), lambda b, _z=zeros: _z)


def _batch_spec(shape):
    """Batched activation / output: one image per grid step."""
    rest = (0,) * (len(shape) - 1)
    return pl.BlockSpec((1,) + tuple(shape[1:]), lambda b, _r=rest: (b,) + _r)


# ----------------------------------------------------------------------------
# Architecture config + deterministic synthetic parameters
# ----------------------------------------------------------------------------

BLOCKS_ARGS = [
    dict(num_repeat=1, kernel_size=3, stride=1, expand_ratio=1,
         input_filters=8, output_filters=8, se_ratio=0.25, id_skip=True),
    dict(num_repeat=2, kernel_size=3, stride=2, expand_ratio=6,
         input_filters=8, output_filters=16, se_ratio=0.25, id_skip=True),
]
GLOBAL = dict(bn_eps=1e-3, stem_filters=8, head_filters=32, num_classes=10,
              dropout_rate=0.2, drop_connect_rate=0.0)


def expand_blocks_args(blocks_args):
    """Replicates EfficientNet.__init__ block/stage expansion."""
    expanded, stage_map = [], []
    stage = 0
    for ba in blocks_args:
        stage += 1
        stage_map += [''] * (ba["num_repeat"] - 1)
        stage_map.append('b%d' % stage)
        expanded.append(dict(ba))
        ba2 = dict(ba)
        if ba["num_repeat"] > 1:
            ba2["input_filters"] = ba["output_filters"]
            ba2["stride"] = 1
        for _ in range(ba["num_repeat"] - 1):
            expanded.append(dict(ba2))
    return expanded, stage_map


def _conv_init(key, shape):
    fan_in = shape[0] if len(shape) == 2 else shape[0] * shape[1] * shape[2]
    return jax.random.normal(key, shape, jnp.float32) / math.sqrt(fan_in)


def _init_bn(key, c, eps):
    k1, k2, k3, k4 = jax.random.split(key, 4)
    return dict(
        gamma=jax.random.uniform(k1, (c,), jnp.float32, 0.5, 1.5),
        beta=0.1 * jax.random.normal(k2, (c,), jnp.float32),
        mean=0.1 * jax.random.normal(k3, (c,), jnp.float32),
        var=jax.random.uniform(k4, (c,), jnp.float32, 0.5, 1.5),
        eps=eps,
    )


def _init_block_params(key, args, eps):
    inp = args["input_filters"]
    oup = inp * args["expand_ratio"]
    keys = jax.random.split(key, 10)
    p = {}
    if args["expand_ratio"] != 1:
        p["expand_w"] = _conv_init(keys[0], (inp, oup))
        p["bn0"] = _init_bn(keys[1], oup, eps)
    k = args["kernel_size"]
    p["dw_w"] = jax.random.normal(keys[2], (k, k, oup), jnp.float32) / math.sqrt(k * k)
    p["bn1"] = _init_bn(keys[3], oup, eps)
    if args["se_ratio"] is not None and 0 < args["se_ratio"] <= 1:
        nsq = max(1, int(inp * args["se_ratio"]))
        p["se_reduce_w"] = _conv_init(keys[4], (oup, nsq))
        p["se_reduce_b"] = 0.1 * jax.random.normal(keys[5], (nsq,), jnp.float32)
        p["se_expand_w"] = _conv_init(keys[6], (nsq, oup))
        p["se_expand_b"] = 0.1 * jax.random.normal(keys[7], (oup,), jnp.float32)
    p["project_w"] = _conv_init(keys[8], (oup, args["output_filters"]))
    p["bn2"] = _init_bn(keys[9], args["output_filters"], eps)
    return p


def init_params(key):
    expanded, stage_map = expand_blocks_args(BLOCKS_ARGS)
    keys = jax.random.split(key, 6 + len(expanded))
    params = {}
    params["stem_w"] = _conv_init(keys[0], (3, 3, 3, GLOBAL["stem_filters"]))
    params["bn_stem"] = _init_bn(keys[1], GLOBAL["stem_filters"], GLOBAL["bn_eps"])
    params["blocks"] = [
        _init_block_params(keys[6 + i], a, GLOBAL["bn_eps"])
        for i, a in enumerate(expanded)
    ]
    last_out = expanded[-1]["output_filters"]
    params["head_w"] = _conv_init(keys[2], (last_out, GLOBAL["head_filters"]))
    params["bn_head"] = _init_bn(keys[3], GLOBAL["head_filters"], GLOBAL["bn_eps"])
    params["fc_w"] = _conv_init(keys[4], (GLOBAL["head_filters"], GLOBAL["num_classes"]))
    params["fc_b"] = 0.1 * jax.random.normal(keys[5], (GLOBAL["num_classes"],), jnp.float32)
    return params, expanded, stage_map


def prepare_params(params, expanded_args):
    """Fold BatchNorm into (scale, bias), zero-pad every channel dim to LANE once and
    store matmul weights as bf16 (MXU operands); BN/SE epilogues stay f32."""
    prep = {}
    s, b = _bn_fold(params["bn_stem"])
    stem_w = _pad_axis(_pad_axis(params["stem_w"], 2, LANE), 3, LANE)     # (3,3,LANE,LANE)
    prep["stem_w"] = stem_w.reshape(-1, LANE).astype(jnp.bfloat16)        # merged-K (9*LANE, LANE)
    prep["bn_stem_s"], prep["bn_stem_b"] = _row(s), _row(b)

    blocks = []
    for bp, args in zip(params["blocks"], expanded_args):
        d = {}
        if args["expand_ratio"] != 1:
            d["expand_w"] = _mat(bp["expand_w"]).astype(jnp.bfloat16)
            s, b = _bn_fold(bp["bn0"])
            d["bn0_s"], d["bn0_b"] = _row(s), _row(b)
        d["dw_w"] = _pad_axis(bp["dw_w"], 2, LANE).astype(jnp.float32)    # depthwise MAC in f32
        s, b = _bn_fold(bp["bn1"])
        d["bn1_s"], d["bn1_b"] = _row(s), _row(b)
        if "se_reduce_w" in bp:
            d["se_reduce_w"] = _mat(bp["se_reduce_w"]).astype(jnp.bfloat16)
            d["se_reduce_b"] = _row(bp["se_reduce_b"])
            d["se_expand_w"] = _mat(bp["se_expand_w"]).astype(jnp.bfloat16)
            d["se_expand_b"] = _row(bp["se_expand_b"])
        d["project_w"] = _mat(bp["project_w"]).astype(jnp.bfloat16)
        s, b = _bn_fold(bp["bn2"])
        d["bn2_s"], d["bn2_b"] = _row(s), _row(b)
        blocks.append(d)
    prep["blocks"] = blocks

    s, b = _bn_fold(params["bn_head"])
    prep["head_w"] = _mat(params["head_w"]).astype(jnp.bfloat16)
    prep["bn_head_s"], prep["bn_head_b"] = _row(s), _row(b)
    prep["fc_w"] = _mat(params["fc_w"]).astype(jnp.bfloat16)
    prep["fc_b"] = _row(params["fc_b"])
    return prep


# ----------------------------------------------------------------------------
# Forward pass: a single pallas_call (mirrors EfficientNet.forward, inference)
# ----------------------------------------------------------------------------

def _block_cfg(args, h, w, emit_tap):
    k, s = args["kernel_size"], args["stride"]
    ho, wo = -(-h // s), -(-w // s)
    pad_t, _, pad_l, _ = _same_pads(h, w, k, s)
    return dict(
        k=k, s=s, h=h, w=w, ho=ho, wo=wo, pad_t=pad_t, pad_l=pad_l,
        has_expand=args["expand_ratio"] != 1,
        has_se=(args["se_ratio"] is not None and 0 < args["se_ratio"] <= 1),
        has_skip=(args["id_skip"] and s == 1
                  and args["input_filters"] == args["output_filters"]),
        emit_tap=emit_tap,
    )


def efficientnet_forward(prep, expanded_args, stage_map, x_nchw):
    n, cin, h, w = x_nchw.shape
    x_nhwc = jnp.transpose(x_nchw, (0, 2, 3, 1)).astype(jnp.float32)

    # Stem spatial + channel zero pad of the raw input (one tiny XLA op before the call).
    ks, ss = 3, 2
    ho0, wo0 = -(-h // ss), -(-w // ss)
    pad_t0, _, pad_l0, _ = _same_pads(h, w, ks, ss)
    hp0, wp0 = (ks - 1) + ss * ho0, (ks - 1) + ss * wo0
    x_pad = jnp.pad(x_nhwc, ((0, 0), (pad_t0, hp0 - h - pad_t0),
                             (pad_l0, wp0 - w - pad_l0), (0, LANE - cin)))
    stem_cfg = dict(k=ks, s=ss, ho=ho0, wo=wo0)

    # Static per-block configs (spatial sizes, SAME pads, flags).
    cfgs = []
    ch, cw = ho0, wo0
    for idx, args in enumerate(expanded_args):
        cfg = _block_cfg(args, ch, cw, emit_tap=bool(stage_map[idx]))
        cfgs.append(cfg)
        ch, cw = cfg["ho"], cfg["wo"]
    hp_max = max((c["k"] - 1) + c["s"] * c["ho"] for c in cfgs)
    wp_max = max((c["k"] - 1) + c["s"] * c["wo"] for c in cfgs)

    # Flatten operands + in_specs (order must match the kernel's unpacking).
    operands = [x_pad]
    in_specs = [_batch_spec(x_pad.shape)]

    def add_full(a):
        operands.append(a)
        in_specs.append(_const_spec(a.shape))

    add_full(prep["stem_w"]); add_full(prep["bn_stem_s"]); add_full(prep["bn_stem_b"])
    for bp, cfg in zip(prep["blocks"], cfgs):
        if cfg["has_expand"]:
            add_full(bp["expand_w"]); add_full(bp["bn0_s"]); add_full(bp["bn0_b"])
        add_full(bp["dw_w"]); add_full(bp["bn1_s"]); add_full(bp["bn1_b"])
        if cfg["has_se"]:
            add_full(bp["se_reduce_w"]); add_full(bp["se_reduce_b"])
            add_full(bp["se_expand_w"]); add_full(bp["se_expand_b"])
        add_full(bp["project_w"]); add_full(bp["bn2_s"]); add_full(bp["bn2_b"])
    add_full(prep["head_w"]); add_full(prep["bn_head_s"]); add_full(prep["bn_head_b"])
    add_full(prep["fc_w"]); add_full(prep["fc_b"])

    # Outputs: b0 tap, per-stage block taps, final feature map, logits.
    out_shapes = [jax.ShapeDtypeStruct((n, ho0, wo0, LANE), jnp.float32)]
    for cfg in cfgs:
        if cfg["emit_tap"]:
            out_shapes.append(jax.ShapeDtypeStruct((n, cfg["ho"], cfg["wo"], LANE),
                                                   jnp.float32))
    out_shapes.append(jax.ShapeDtypeStruct((n, ch, cw, LANE), jnp.float32))   # final
    out_shapes.append(jax.ShapeDtypeStruct((n, 1, LANE), jnp.float32))        # logits
    out_specs = tuple(_batch_spec(sh.shape) for sh in out_shapes)

    kernel = partial(_efficientnet_kernel, stem_cfg=stem_cfg, block_cfgs=cfgs)
    results = pl.pallas_call(
        kernel,
        out_shape=tuple(out_shapes),
        grid_spec=pltpu.PrefetchScalarGridSpec(
            num_scalar_prefetch=0,
            grid=(n,),                                   # one image per grid step
            in_specs=in_specs,
            out_specs=out_specs,
            scratch_shapes=[pltpu.VMEM((1, hp_max, wp_max, LANE), jnp.float32)],
        ),
        compiler_params=pltpu.CompilerParams(
            dimension_semantics=("parallel",)),          # uses both TCs on v7x
    )(*operands)

    # NCHW slice + transpose, once at the very end (XLA glue only on taps actually used).
    def to_nchw(t, c_real):
        return jnp.transpose(t[..., :c_real], (0, 3, 1, 2))

    layers = {}
    ri = 0
    layers["b0"] = to_nchw(results[ri], GLOBAL["stem_filters"]); ri += 1
    for idx, cfg in enumerate(cfgs):
        if cfg["emit_tap"]:
            layers[stage_map[idx]] = to_nchw(results[ri],
                                             expanded_args[idx]["output_filters"])
            ri += 1
    layers["final"] = to_nchw(results[ri], GLOBAL["head_filters"]); ri += 1
    layers["logits"] = results[ri][:, 0, :GLOBAL["num_classes"]]
    return layers


# ----------------------------------------------------------------------------

if __name__ == "__main__":
    key = jax.random.PRNGKey(0)
    k_param, k_input = jax.random.split(key)

    params, expanded_args, stage_map = init_params(k_param)
    prep = prepare_params(params, expanded_args)
    x = jax.random.normal(k_input, (2, 3, 16, 16), jnp.float32)        # NCHW like PyTorch

    fwd = jax.jit(lambda p, inp: efficientnet_forward(p, expanded_args, stage_map, inp))
    layers = jax.block_until_ready(fwd(prep, x))

    # light sanity checks on shapes produced by the fused Pallas pipeline
    assert layers["b0"].shape == (2, 8, 8, 8)
    assert layers["b1"].shape == (2, 8, 8, 8)
    assert layers["b2"].shape == (2, 16, 4, 4)
    assert layers["final"].shape == (2, 32, 4, 4)
    assert layers["logits"].shape == (2, 10)
    assert all(bool(jnp.all(jnp.isfinite(v))) for v in layers.values())

    print("KERNEL_OK")
</pallas_src>

<mosaic_0001>
module attributes {stable_mosaic.version = 11 : i64} {
  func.func @_efficientnet_kernel(%arg0: i32, %arg1: memref<1x18x18x128xf32, #tpu.memory_space<vmem>>, %arg2: memref<1152x128xbf16, #tpu.memory_space<vmem>>, %arg3: memref<1x128xf32, #tpu.memory_space<vmem>>, %arg4: memref<1x128xf32, #tpu.memory_space<vmem>>, %arg5: memref<3x3x128xf32, #tpu.memory_space<vmem>>, %arg6: memref<1x128xf32, #tpu.memory_space<vmem>>, %arg7: memref<1x128xf32, #tpu.memory_space<vmem>>, %arg8: memref<128x128xbf16, #tpu.memory_space<vmem>>, %arg9: memref<1x128xf32, #tpu.memory_space<vmem>>, %arg10: memref<128x128xbf16, #tpu.memory_space<vmem>>, %arg11: memref<1x128xf32, #tpu.memory_space<vmem>>, %arg12: memref<128x128xbf16, #tpu.memory_space<vmem>>, %arg13: memref<1x128xf32, #tpu.memory_space<vmem>>, %arg14: memref<1x128xf32, #tpu.memory_space<vmem>>, %arg15: memref<128x128xbf16, #tpu.memory_space<vmem>>, %arg16: memref<1x128xf32, #tpu.memory_space<vmem>>, %arg17: memref<1x128xf32, #tpu.memory_space<vmem>>, %arg18: memref<3x3x128xf32, #tpu.memory_space<vmem>>, %arg19: memref<1x128xf32, #tpu.memory_space<vmem>>, %arg20: memref<1x128xf32, #tpu.memory_space<vmem>>, %arg21: memref<128x128xbf16, #tpu.memory_space<vmem>>, %arg22: memref<1x128xf32, #tpu.memory_space<vmem>>, %arg23: memref<128x128xbf16, #tpu.memory_space<vmem>>, %arg24: memref<1x128xf32, #tpu.memory_space<vmem>>, %arg25: memref<128x128xbf16, #tpu.memory_space<vmem>>, %arg26: memref<1x128xf32, #tpu.memory_space<vmem>>, %arg27: memref<1x128xf32, #tpu.memory_space<vmem>>, %arg28: memref<128x128xbf16, #tpu.memory_space<vmem>>, %arg29: memref<1x128xf32, #tpu.memory_space<vmem>>, %arg30: memref<1x128xf32, #tpu.memory_space<vmem>>, %arg31: memref<3x3x128xf32, #tpu.memory_space<vmem>>, %arg32: memref<1x128xf32, #tpu.memory_space<vmem>>, %arg33: memref<1x128xf32, #tpu.memory_space<vmem>>, %arg34: memref<128x128xbf16, #tpu.memory_space<vmem>>, %arg35: memref<1x128xf32, #tpu.memory_space<vmem>>, %arg36: memref<128x128xbf16, #tpu.memory_space<vmem>>, %arg37: memref<1x128xf32, #tpu.memory_space<vmem>>, %arg38: memref<128x128xbf16, #tpu.memory_space<vmem>>, %arg39: memref<1x128xf32, #tpu.memory_space<vmem>>, %arg40: memref<1x128xf32, #tpu.memory_space<vmem>>, %arg41: memref<128x128xbf16, #tpu.memory_space<vmem>>, %arg42: memref<1x128xf32, #tpu.memory_space<vmem>>, %arg43: memref<1x128xf32, #tpu.memory_space<vmem>>, %arg44: memref<128x128xbf16, #tpu.memory_space<vmem>>, %arg45: memref<1x128xf32, #tpu.memory_space<vmem>>, %arg46: memref<1x8x8x128xf32, #tpu.memory_space<vmem>>, %arg47: memref<1x8x8x128xf32, #tpu.memory_space<vmem>>, %arg48: memref<1x4x4x128xf32, #tpu.memory_space<vmem>>, %arg49: memref<1x4x4x128xf32, #tpu.memory_space<vmem>>, %arg50: memref<1x1x128xf32, #tpu.memory_space<vmem>>, %arg51: memref<1x10x10x128xf32, #tpu.memory_space<vmem>>) attributes {dimension_semantics = [#tpu.dimension_semantics<parallel>], iteration_bounds = array<i64: 2>, scalar_prefetch = 0 : i64, scratch_operands = 1 : i64, tpu.core_type = #tpu.core_type<tc>, window_params = [{transform_indices = @transform_0, window_bounds = array<i64: 1, 18, 18, 128>}, {pipeline_mode = #tpu.pipeline_mode<synchronous>, transform_indices = @transform_1, window_bounds = array<i64: 1152, 128>}, {pipeline_mode = #tpu.pipeline_mode<synchronous>, transform_indices = @transform_2, window_bounds = array<i64: 1, 128>}, {pipeline_mode = #tpu.pipeline_mode<synchronous>, transform_indices = @transform_3, window_bounds = array<i64: 1, 128>}, {pipeline_mode = #tpu.pipeline_mode<synchronous>, transform_indices = @transform_4, window_bounds = array<i64: 3, 3, 128>}, {pipeline_mode = #tpu.pipeline_mode<synchronous>, transform_indices = @transform_5, window_bounds = array<i64: 1, 128>}, {pipeline_mode = #tpu.pipeline_mode<synchronous>, transform_indices = @transform_6, window_bounds = array<i64: 1, 128>}, {pipeline_mode = #tpu.pipeline_mode<synchronous>, transform_indices = @transform_7, window_bounds = array<i64: 128, 128>}, {pipeline_mode = #tpu.pipeline_mode<synchronous>, transform_indices = @transform_8, window_bounds = array<i64: 1, 128>}, {pipeline_mode = #tpu.pipeline_mode<synchronous>, transform_indices = @transform_9, window_bounds = array<i64: 128, 128>}, {pipeline_mode = #tpu.pipeline_mode<synchronous>, transform_indices = @transform_10, window_bounds = array<i64: 1, 128>}, {pipeline_mode = #tpu.pipeline_mode<synchronous>, transform_indices = @transform_11, window_bounds = array<i64: 128, 128>}, {pipeline_mode = #tpu.pipeline_mode<synchronous>, transform_indices = @transform_12, window_bounds = array<i64: 1, 128>}, {pipeline_mode = #tpu.pipeline_mode<synchronous>, transform_indices = @transform_13, window_bounds = array<i64: 1, 128>}, {pipeline_mode = #tpu.pipeline_mode<synchronous>, transform_indices = @transform_14, window_bounds = array<i64: 128, 128>}, {pipeline_mode = #tpu.pipeline_mode<synchronous>, transform_indices = @transform_15, window_bounds = array<i64: 1, 128>}, {pipeline_mode = #tpu.pipeline_mode<synchronous>, transform_indices = @transform_16, window_bounds = array<i64: 1, 128>}, {pipeline_mode = #tpu.pipeline_mode<synchronous>, transform_indices = @transform_17, window_bounds = array<i64: 3, 3, 128>}, {pipeline_mode = #tpu.pipeline_mode<synchronous>, transform_indices = @transform_18, window_bounds = array<i64: 1, 128>}, {pipeline_mode = #tpu.pipeline_mode<synchronous>, transform_indices = @transform_19, window_bounds = array<i64: 1, 128>}, {pipeline_mode = #tpu.pipeline_mode<synchronous>, transform_indices = @transform_20, window_bounds = array<i64: 128, 128>}, {pipeline_mode = #tpu.pipeline_mode<synchronous>, transform_indices = @transform_21, window_bounds = array<i64: 1, 128>}, {pipeline_mode = #tpu.pipeline_mode<synchronous>, transform_indices = @transform_22, window_bounds = array<i64: 128, 128>}, {pipeline_mode = #tpu.pipeline_mode<synchronous>, transform_indices = @transform_23, window_bounds = array<i64: 1, 128>}, {pipeline_mode = #tpu.pipeline_mode<synchronous>, transform_indices = @transform_24, window_bounds = array<i64: 128, 128>}, {pipeline_mode = #tpu.pipeline_mode<synchronous>, transform_indices = @transform_25, window_bounds = array<i64: 1, 128>}, {pipeline_mode = #tpu.pipeline_mode<synchronous>, transform_indices = @transform_26, window_bounds = array<i64: 1, 128>}, {pipeline_mode = #tpu.pipeline_mode<synchronous>, transform_indices = @transform_27, window_bounds = array<i64: 128, 128>}, {pipeline_mode = #tpu.pipeline_mode<synchronous>, transform_indices = @transform_28, window_bounds = array<i64: 1, 128>}, {pipeline_mode = #tpu.pipeline_mode<synchronous>, transform_indices = @transform_29, window_bounds = array<i64: 1, 128>}, {pipeline_mode = #tpu.pipeline_mode<synchronous>, transform_indices = @transform_30, window_bounds = array<i64: 3, 3, 128>}, {pipeline_mode = #tpu.pipeline_mode<synchronous>, transform_indices = @transform_31, window_bounds = array<i64: 1, 128>}, {pipeline_mode = #tpu.pipeline_mode<synchronous>, transform_indices = @transform_32, window_bounds = array<i64: 1, 128>}, {pipeline_mode = #tpu.pipeline_mode<synchronous>, transform_indices = @transform_33, window_bounds = array<i64: 128, 128>}, {pipeline_mode = #tpu.pipeline_mode<synchronous>, transform_indices = @transform_34, window_bounds = array<i64: 1, 128>}, {pipeline_mode = #tpu.pipeline_mode<synchronous>, transform_indices = @transform_35, window_bounds = array<i64: 128, 128>}, {pipeline_mode = #tpu.pipeline_mode<synchronous>, transform_indices = @transform_36, window_bounds = array<i64: 1, 128>}, {pipeline_mode = #tpu.pipeline_mode<synchronous>, transform_indices = @transform_37, window_bounds = array<i64: 128, 128>}, {pipeline_mode = #tpu.pipeline_mode<synchronous>, transform_indices = @transform_38, window_bounds = array<i64: 1, 128>}, {pipeline_mode = #tpu.pipeline_mode<synchronous>, transform_indices = @transform_39, window_bounds = array<i64: 1, 128>}, {pipeline_mode = #tpu.pipeline_mode<synchronous>, transform_indices = @transform_40, window_bounds = array<i64: 128, 128>}, {pipeline_mode = #tpu.pipeline_mode<synchronous>, transform_indices = @transform_41, window_bounds = array<i64: 1, 128>}, {pipeline_mode = #tpu.pipeline_mode<synchronous>, transform_indices = @transform_42, window_bounds = array<i64: 1, 128>}, {pipeline_mode = #tpu.pipeline_mode<synchronous>, transform_indices = @transform_43, window_bounds = array<i64: 128, 128>}, {pipeline_mode = #tpu.pipeline_mode<synchronous>, transform_indices = @transform_44, window_bounds = array<i64: 1, 128>}, {transform_indices = @transform_45, window_bounds = array<i64: 1, 8, 8, 128>}, {transform_indices = @transform_46, window_bounds = array<i64: 1, 8, 8, 128>}, {transform_indices = @transform_47, window_bounds = array<i64: 1, 4, 4, 128>}, {transform_indices = @transform_48, window_bounds = array<i64: 1, 4, 4, 128>}, {transform_indices = @transform_49, window_bounds = array<i64: 1, 1, 128>}]} {
    %c0 = arith.constant 0 : index
    %c0_0 = arith.constant 0 : index
    %c0_1 = arith.constant 0 : index
    %c0_2 = arith.constant 0 : index
    %0 = vector.load %arg1[%c0, %c0_0, %c0_1, %c0_2] : memref<1x18x18x128xf32, #tpu.memory_space<vmem>>, vector<1x18x18x128xf32>
    %1 = vector.extract_strided_slice %0 {offsets = [0, 0, 0, 0], sizes = [1, 16, 16, 128], strides = [1, 1, 1, 1]} : vector<1x18x18x128xf32> to vector<1x16x16x128xf32>
    %2 = vector.shape_cast %1 : vector<1x16x16x128xf32> to vector<1x8x2x16x128xf32>
    %3 = vector.extract_strided_slice %2 {offsets = [0, 0, 0, 0, 0], sizes = [1, 8, 1, 16, 128], strides = [1, 1, 1, 1, 1]} : vector<1x8x2x16x128xf32> to vector<1x8x1x16x128xf32>
    %4 = vector.shape_cast %3 : vector<1x8x1x16x128xf32> to vector<1x8x16x128xf32>
    %5 = vector.shape_cast %4 : vector<1x8x16x128xf32> to vector<1x8x8x2x128xf32>
    %6 = vector.extract_strided_slice %5 {offsets = [0, 0, 0, 0, 0], sizes = [1, 8, 8, 1, 128], strides = [1, 1, 1, 1, 1]} : vector<1x8x8x2x128xf32> to vector<1x8x8x1x128xf32>
    %7 = vector.shape_cast %6 : vector<1x8x8x1x128xf32> to vector<1x8x8x128xf32>
    %8 = vector.shape_cast %7 : vector<1x8x8x128xf32> to vector<64x128xf32>
    %9 = vector.extract_strided_slice %0 {offsets = [0, 0, 1, 0], sizes = [1, 16, 16, 128], strides = [1, 1, 1, 1]} : vector<1x18x18x128xf32> to vector<1x16x16x128xf32>
    %10 = vector.shape_cast %9 : vector<1x16x16x128xf32> to vector<1x8x2x16x128xf32>
    %11 = vector.extract_strided_slice %10 {offsets = [0, 0, 0, 0, 0], sizes = [1, 8, 1, 16, 128], strides = [1, 1, 1, 1, 1]} : vector<1x8x2x16x128xf32> to vector<1x8x1x16x128xf32>
    %12 = vector.shape_cast %11 : vector<1x8x1x16x128xf32> to vector<1x8x16x128xf32>
    %13 = vector.shape_cast %12 : vector<1x8x16x128xf32> to vector<1x8x8x2x128xf32>
    %14 = vector.extract_strided_slice %13 {offsets = [0, 0, 0, 0, 0], sizes = [1, 8, 8, 1, 128], strides = [1, 1, 1, 1, 1]} : vector<1x8x8x2x128xf32> to vector<1x8x8x1x128xf32>
    %15 = vector.shape_cast %14 : vector<1x8x8x1x128xf32> to vector<1x8x8x128xf32>
    %16 = vector.shape_cast %15 : vector<1x8x8x128xf32> to vector<64x128xf32>
    %17 = vector.extract_strided_slice %0 {offsets = [0, 0, 2, 0], sizes = [1, 16, 16, 128], strides = [1, 1, 1, 1]} : vector<1x18x18x128xf32> to vector<1x16x16x128xf32>
    %18 = vector.shape_cast %17 : vector<1x16x16x128xf32> to vector<1x8x2x16x128xf32>
    %19 = vector.extract_strided_slice %18 {offsets = [0, 0, 0, 0, 0], sizes = [1, 8, 1, 16, 128], strides = [1, 1, 1, 1, 1]} : vector<1x8x2x16x128xf32> to vector<1x8x1x16x128xf32>
    %20 = vector.shape_cast %19 : vector<1x8x1x16x128xf32> to vector<1x8x16x128xf32>
    %21 = vector.shape_cast %20 : vector<1x8x16x128xf32> to vector<1x8x8x2x128xf32>
    %22 = vector.extract_strided_slice %21 {offsets = [0, 0, 0, 0, 0], sizes = [1, 8, 8, 1, 128], strides = [1, 1, 1, 1, 1]} : vector<1x8x8x2x128xf32> to vector<1x8x8x1x128xf32>
    %23 = vector.shape_cast %22 : vector<1x8x8x1x128xf32> to vector<1x8x8x128xf32>
    %24 = vector.shape_cast %23 : vector<1x8x8x128xf32> to vector<64x128xf32>
    %25 = vector.extract_strided_slice %0 {offsets = [0, 1, 0, 0], sizes = [1, 16, 16, 128], strides = [1, 1, 1, 1]} : vector<1x18x18x128xf32> to vector<1x16x16x128xf32>
    %26 = vector.shape_cast %25 : vector<1x16x16x128xf32> to vector<1x8x2x16x128xf32>
    %27 = vector.extract_strided_slice %26 {offsets = [0, 0, 0, 0, 0], sizes = [1, 8, 1, 16, 128], strides = [1, 1, 1, 1, 1]} : vector<1x8x2x16x128xf32> to vector<1x8x1x16x128xf32>
    %28 = vector.shape_cast %27 : vector<1x8x1x16x128xf32> to vector<1x8x16x128xf32>
    %29 = vector.shape_cast %28 : vector<1x8x16x128xf32> to vector<1x8x8x2x128xf32>
    %30 = vector.extract_strided_slice %29 {offsets = [0, 0, 0, 0, 0], sizes = [1, 8, 8, 1, 128], strides = [1, 1, 1, 1, 1]} : vector<1x8x8x2x128xf32> to vector<1x8x8x1x128xf32>
    %31 = vector.shape_cast %30 : vector<1x8x8x1x128xf32> to vector<1x8x8x128xf32>
    %32 = vector.shape_cast %31 : vector<1x8x8x128xf32> to vector<64x128xf32>
    %33 = vector.extract_strided_slice %0 {offsets = [0, 1, 1, 0], sizes = [1, 16, 16, 128], strides = [1, 1, 1, 1]} : vector<1x18x18x128xf32> to vector<1x16x16x128xf32>
    %34 = vector.shape_cast %33 : vector<1x16x16x128xf32> to vector<1x8x2x16x128xf32>
    %35 = vector.extract_strided_slice %34 {offsets = [0, 0, 0, 0, 0], sizes = [1, 8, 1, 16, 128], strides = [1, 1, 1, 1, 1]} : vector<1x8x2x16x128xf32> to vector<1x8x1x16x128xf32>
    %36 = vector.shape_cast %35 : vector<1x8x1x16x128xf32> to vector<1x8x16x128xf32>
    %37 = vector.shape_cast %36 : vector<1x8x16x128xf32> to vector<1x8x8x2x128xf32>
    %38 = vector.extract_strided_slice %37 {offsets = [0, 0, 0, 0, 0], sizes = [1, 8, 8, 1, 128], strides = [1, 1, 1, 1, 1]} : vector<1x8x8x2x128xf32> to vector<1x8x8x1x128xf32>
    %39 = vector.shape_cast %38 : vector<1x8x8x1x128xf32> to vector<1x8x8x128xf32>
    %40 = vector.shape_cast %39 : vector<1x8x8x128xf32> to vector<64x128xf32>
    %41 = vector.extract_strided_slice %0 {offsets = [0, 1, 2, 0], sizes = [1, 16, 16, 128], strides = [1, 1, 1, 1]} : vector<1x18x18x128xf32> to vector<1x16x16x128xf32>
    %42 = vector.shape_cast %41 : vector<1x16x16x128xf32> to vector<1x8x2x16x128xf32>
    %43 = vector.extract_strided_slice %42 {offsets = [0, 0, 0, 0, 0], sizes = [1, 8, 1, 16, 128], strides = [1, 1, 1, 1, 1]} : vector<1x8x2x16x128xf32> to vector<1x8x1x16x128xf32>
    %44 = vector.shape_cast %43 : vector<1x8x1x16x128xf32> to vector<1x8x16x128xf32>
    %45 = vector.shape_cast %44 : vector<1x8x16x128xf32> to vector<1x8x8x2x128xf32>
    %46 = vector.extract_strided_slice %45 {offsets = [0, 0, 0, 0, 0], sizes = [1, 8, 8, 1, 128], strides = [1, 1, 1, 1, 1]} : vector<1x8x8x2x128xf32> to vector<1x8x8x1x128xf32>
    %47 = vector.shape_cast %46 : vector<1x8x8x1x128xf32> to vector<1x8x8x128xf32>
    %48 = vector.shape_cast %47 : vector<1x8x8x128xf32> to vector<64x128xf32>
    %49 = vector.extract_strided_slice %0 {offsets = [0, 2, 0, 0], sizes = [1, 16, 16, 128], strides = [1, 1, 1, 1]} : vector<1x18x18x128xf32> to vector<1x16x16x128xf32>
    %50 = vector.shape_cast %49 : vector<1x16x16x128xf32> to vector<1x8x2x16x128xf32>
    %51 = vector.extract_strided_slice %50 {offsets = [0, 0, 0, 0, 0], sizes = [1, 8, 1, 16, 128], strides = [1, 1, 1, 1, 1]} : vector<1x8x2x16x128xf32> to vector<1x8x1x16x128xf32>
    %52 = vector.shape_cast %51 : vector<1x8x1x16x128xf32> to vector<1x8x16x128xf32>
    %53 = vector.shape_cast %52 : vector<1x8x16x128xf32> to vector<1x8x8x2x128xf32>
    %54 = vector.extract_strided_slice %53 {offsets = [0, 0, 0, 0, 0], sizes = [1, 8, 8, 1, 128], strides = [1, 1, 1, 1, 1]} : vector<1x8x8x2x128xf32> to vector<1x8x8x1x128xf32>
    %55 = vector.shape_cast %54 : vector<1x8x8x1x128xf32> to vector<1x8x8x128xf32>
    %56 = vector.shape_cast %55 : vector<1x8x8x128xf32> to vector<64x128xf32>
    %57 = vector.extract_strided_slice %0 {offsets = [0, 2, 1, 0], sizes = [1, 16, 16, 128], strides = [1, 1, 1, 1]} : vector<1x18x18x128xf32> to vector<1x16x16x128xf32>
    %58 = vector.shape_cast %57 : vector<1x16x16x128xf32> to vector<1x8x2x16x128xf32>
    %59 = vector.extract_strided_slice %58 {offsets = [0, 0, 0, 0, 0], sizes = [1, 8, 1, 16, 128], strides = [1, 1, 1, 1, 1]} : vector<1x8x2x16x128xf32> to vector<1x8x1x16x128xf32>
    %60 = vector.shape_cast %59 : vector<1x8x1x16x128xf32> to vector<1x8x16x128xf32>
    %61 = vector.shape_cast %60 : vector<1x8x16x128xf32> to vector<1x8x8x2x128xf32>
    %62 = vector.extract_strided_slice %61 {offsets = [0, 0, 0, 0, 0], sizes = [1, 8, 8, 1, 128], strides = [1, 1, 1, 1, 1]} : vector<1x8x8x2x128xf32> to vector<1x8x8x1x128xf32>
    %63 = vector.shape_cast %62 : vector<1x8x8x1x128xf32> to vector<1x8x8x128xf32>
    %64 = vector.shape_cast %63 : vector<1x8x8x128xf32> to vector<64x128xf32>
    %65 = vector.extract_strided_slice %0 {offsets = [0, 2, 2, 0], sizes = [1, 16, 16, 128], strides = [1, 1, 1, 1]} : vector<1x18x18x128xf32> to vector<1x16x16x128xf32>
    %66 = vector.shape_cast %65 : vector<1x16x16x128xf32> to vector<1x8x2x16x128xf32>
    %67 = vector.extract_strided_slice %66 {offsets = [0, 0, 0, 0, 0], sizes = [1, 8, 1, 16, 128], strides = [1, 1, 1, 1, 1]} : vector<1x8x2x16x128xf32> to vector<1x8x1x16x128xf32>
    %68 = vector.shape_cast %67 : vector<1x8x1x16x128xf32> to vector<1x8x16x128xf32>
    %69 = vector.shape_cast %68 : vector<1x8x16x128xf32> to vector<1x8x8x2x128xf32>
    %70 = vector.extract_strided_slice %69 {offsets = [0, 0, 0, 0, 0], sizes = [1, 8, 8, 1, 128], strides = [1, 1, 1, 1, 1]} : vector<1x8x8x2x128xf32> to vector<1x8x8x1x128xf32>
    %71 = vector.shape_cast %70 : vector<1x8x8x1x128xf32> to vector<1x8x8x128xf32>
    %72 = vector.shape_cast %71 : vector<1x8x8x128xf32> to vector<64x128xf32>
    %73 = tpu.concatenate %8, %16, %24, %32, %40, %48, %56, %64, %72 in 1 : vector<64x128xf32>, vector<64x128xf32>, vector<64x128xf32>, vector<64x128xf32>, vector<64x128xf32>, vector<64x128xf32>, vector<64x128xf32>, vector<64x128xf32>, vector<64x128xf32> -> vector<64x1152xf32>
    %74 = arith.truncf %73 : vector<64x1152xf32> to vector<64x1152xbf16>
    %c0_3 = arith.constant 0 : index
    %c0_4 = arith.constant 0 : index
    %75 = vector.load %arg2[%c0_3, %c0_4] : memref<1152x128xbf16, #tpu.memory_space<vmem>>, vector<1152x128xbf16>
    %cst = arith.constant dense<0.000000e+00> : vector<64x128xf32>
    %76 = tpu.matmul %74, %75, %cst {dimension_numbers = #tpu.dot_dimension_numbers<[1], [0], [0], [1], [0, 0, 1, 1], [], []>} : vector<64x1152xbf16>, vector<1152x128xbf16>, vector<64x128xf32> -> vector<64x128xf32>
    %c0_5 = arith.constant 0 : index
    %c0_6 = arith.constant 0 : index
    %77 = vector.load %arg3[%c0_5, %c0_6] : memref<1x128xf32, #tpu.memory_space<vmem>>, vector<1x128xf32>
    %78 = vector.broadcast %77 : vector<1x128xf32> to vector<64x128xf32>
    %79 = arith.mulf %76, %78 : vector<64x128xf32>
    %c0_7 = arith.constant 0 : index
    %c0_8 = arith.constant 0 : index
    %80 = vector.load %arg4[%c0_7, %c0_8] : memref<1x128xf32, #tpu.memory_space<vmem>>, vector<1x128xf32>
    %81 = vector.broadcast %80 : vector<1x128xf32> to vector<64x128xf32>
    %82 = arith.addf %79, %81 : vector<64x128xf32>
    %83 = arith.negf %82 : vector<64x128xf32>
    %84 = math.exp %83 : vector<64x128xf32>
    %cst_9 = arith.constant 1.000000e+00 : f32
    %85 = vector.broadcast %cst_9 : f32 to vector<64x128xf32>
    %86 = arith.addf %85, %84 : vector<64x128xf32>
    %87 = arith.divf %85, %86 : vector<64x128xf32>
    %88 = arith.mulf %82, %87 : vector<64x128xf32>
    %89 = vector.shape_cast %88 : vector<64x128xf32> to vector<1x8x8x128xf32>
    %c0_10 = arith.constant 0 : index
    %c0_11 = arith.constant 0 : index
    %c0_12 = arith.constant 0 : index
    %c0_13 = arith.constant 0 : index
    %90 = vector.load %arg46[%c0_10, %c0_11, %c0_12, %c0_13] : memref<1x8x8x128xf32, #tpu.memory_space<vmem>>, vector<1x8x8x128xf32>
    tpu.vector_store %arg46[%c0_10, %c0_11, %c0_12, %c0_13], %89 {strides = array<i32>} : memref<1x8x8x128xf32, #tpu.memory_space<vmem>>, vector<1x8x8x128xf32>,
    %cst_14 = arith.constant 0.000000e+00 : f32
    %91 = vector.broadcast %cst_14 : f32 to vector<1x1x10x128xf32>
    %c0_15 = arith.constant 0 : index
    %c0_16 = arith.constant 0 : index
    %c0_17 = arith.constant 0 : index
    %c0_18 = arith.constant 0 : index
    %92 = vector.load %arg51[%c0_15, %c0_16, %c0_17, %c0_18] : memref<1x10x10x128xf32, #tpu.memory_space<vmem>>, vector<1x1x10x128xf32>
    tpu.vector_store %arg51[%c0_15, %c0_16, %c0_17, %c0_18], %91 {strides = array<i32>} : memref<1x10x10x128xf32, #tpu.memory_space<vmem>>, vector<1x1x10x128xf32>,
    %cst_19 = arith.constant 0.000000e+00 : f32
    %93 = vector.broadcast %cst_19 : f32 to vector<1x1x10x128xf32>
    %c0_20 = arith.constant 0 : index
    %c9 = arith.constant 9 : index
    %c0_21 = arith.constant 0 : index
    %c0_22 = arith.constant 0 : index
    %94 = vector.load %arg51[%c0_20, %c9, %c0_21, %c0_22] : memref<1x10x10x128xf32, #tpu.memory_space<vmem>>, vector<1x1x10x128xf32>
    tpu.vector_store %arg51[%c0_20, %c9, %c0_21, %c0_22], %93 {strides = array<i32>} : memref<1x10x10x128xf32, #tpu.memory_space<vmem>>, vector<1x1x10x128xf32>,
    %cst_23 = arith.constant 0.000000e+00 : f32
    %95 = vector.broadcast %cst_23 : f32 to vector<1x8x1x128xf32>
    %c0_24 = arith.constant 0 : index
    %c1 = arith.constant 1 : index
    %c0_25 = arith.constant 0 : index
    %c0_26 = arith.constant 0 : index
    %96 = vector.load %arg51[%c0_24, %c1, %c0_25, %c0_26] : memref<1x10x10x128xf32, #tpu.memory_space<vmem>>, vector<1x8x1x128xf32>
    tpu.vector_store %arg51[%c0_24, %c1, %c0_25, %c0_26], %95 {strides = array<i32>} : memref<1x10x10x128xf32, #tpu.memory_space<vmem>>, vector<1x8x1x128xf32>,
    %cst_27 = arith.constant 0.000000e+00 : f32
    %97 = vector.broadcast %cst_27 : f32 to vector<1x8x1x128xf32>
    %c0_28 = arith.constant 0 : index
    %c1_29 = arith.constant 1 : index
    %c9_30 = arith.constant 9 : index
    %c0_31 = arith.constant 0 : index
    %98 = vector.load %arg51[%c0_28, %c1_29, %c9_30, %c0_31] : memref<1x10x10x128xf32, #tpu.memory_space<vmem>>, vector<1x8x1x128xf32>
    tpu.vector_store %arg51[%c0_28, %c1_29, %c9_30, %c0_31], %97 {strides = array<i32>} : memref<1x10x10x128xf32, #tpu.memory_space<vmem>>, vector<1x8x1x128xf32>,
    %99 = vector.shape_cast %88 : vector<64x128xf32> to vector<1x8x8x128xf32>
    %c0_32 = arith.constant 0 : index
    %c1_33 = arith.constant 1 : index
    %c1_34 = arith.constant 1 : index
    %c0_35 = arith.constant 0 : index
    %100 = vector.load %arg51[%c0_32, %c1_33, %c1_34, %c0_35] : memref<1x10x10x128xf32, #tpu.memory_space<vmem>>, vector<1x8x8x128xf32>
    tpu.vector_store %arg51[%c0_32, %c1_33, %c1_34, %c0_35], %99 {strides = array<i32>} : memref<1x10x10x128xf32, #tpu.memory_space<vmem>>, vector<1x8x8x128xf32>,
    %c0_36 = arith.constant 0 : index
    %c0_37 = arith.constant 0 : index
    %c0_38 = arith.constant 0 : index
    %c0_39 = arith.constant 0 : index
    %101 = vector.load %arg51[%c0_36, %c0_37, %c0_38, %c0_39] : memref<1x10x10x128xf32, #tpu.memory_space<vmem>>, vector<1x10x10x128xf32>
    %cst_40 = arith.constant 0.000000e+00 : f32
    %102 = vector.broadcast %cst_40 : f32 to vector<1x8x8x128xf32>
    %103 = vector.extract_strided_slice %101 {offsets = [0, 0, 0, 0], sizes = [1, 8, 8, 128], strides = [1, 1, 1, 1]} : vector<1x10x10x128xf32> to vector<1x8x8x128xf32>
    %c0_41 = arith.constant 0 : index
    %c0_42 = arith.constant 0 : index
    %c0_43 = arith.constant 0 : index
    %104 = vector.load %arg5[%c0_41, %c0_42, %c0_43] : memref<3x3x128xf32, #tpu.memory_space<vmem>>, vector<1x1x128xf32>
    %105 = vector.shape_cast %104 : vector<1x1x128xf32> to vector<128xf32>
    %106 = vector.shape_cast %105 : vector<128xf32> to vector<1x1x1x128xf32>
    %107 = vector.broadcast %106 : vector<1x1x1x128xf32> to vector<1x8x8x128xf32>
    %108 = arith.mulf %103, %107 : vector<1x8x8x128xf32>
    %109 = arith.addf %102, %108 : vector<1x8x8x128xf32>
    %110 = vector.extract_strided_slice %101 {offsets = [0, 0, 1, 0], sizes = [1, 8, 8, 128], strides = [1, 1, 1, 1]} : vector<1x10x10x128xf32> to vector<1x8x8x128xf32>
    %c0_44 = arith.constant 0 : index
    %c1_45 = arith.constant 1 : index
    %c0_46 = arith.constant 0 : index
    %111 = vector.load %arg5[%c0_44, %c1_45, %c0_46] : memref<3x3x128xf32, #tpu.memory_space<vmem>>, vector<1x1x128xf32>
    %112 = vector.shape_cast %111 : vector<1x1x128xf32> to vector<128xf32>
    %113 = vector.shape_cast %112 : vector<128xf32> to vector<1x1x1x128xf32>
    %114 = vector.broadcast %113 : vector<1x1x1x128xf32> to vector<1x8x8x128xf32>
    %115 = arith.mulf %110, %114 : vector<1x8x8x128xf32>
    %116 = arith.addf %109, %115 : vector<1x8x8x128xf32>
    %117 = vector.extract_strided_slice %101 {offsets = [0, 0, 2, 0], sizes = [1, 8, 8, 128], strides = [1, 1, 1, 1]} : vector<1x10x10x128xf32> to vector<1x8x8x128xf32>
    %c0_47 = arith.constant 0 : index
    %c2 = arith.constant 2 : index
    %c0_48 = arith.constant 0 : index
    %118 = vector.load %arg5[%c0_47, %c2, %c0_48] : memref<3x3x128xf32, #tpu.memory_space<vmem>>, vector<1x1x128xf32>
    %119 = vector.shape_cast %118 : vector<1x1x128xf32> to vector<128xf32>
    %120 = vector.shape_cast %119 : vector<128xf32> to vector<1x1x1x128xf32>
    %121 = vector.broadcast %120 : vector<1x1x1x128xf32> to vector<1x8x8x128xf32>
    %122 = arith.mulf %117, %121 : vector<1x8x8x128xf32>
    %123 = arith.addf %116, %122 : vector<1x8x8x128xf32>
    %124 = vector.extract_strided_slice %101 {offsets = [0, 1, 0, 0], sizes = [1, 8, 8, 128], strides = [1, 1, 1, 1]} : vector<1x10x10x128xf32> to vector<1x8x8x128xf32>
    %c1_49 = arith.constant 1 : index
    %c0_50 = arith.constant 0 : index
    %c0_51 = arith.constant 0 : index
    %125 = vector.load %arg5[%c1_49, %c0_50, %c0_51] : memref<3x3x128xf32, #tpu.memory_space<vmem>>, vector<1x1x128xf32>
    %126 = vector.shape_cast %125 : vector<1x1x128xf32> to vector<128xf32>
    %127 = vector.shape_cast %126 : vector<128xf32> to vector<1x1x1x128xf32>
    %128 = vector.broadcast %127 : vector<1x1x1x128xf32> to vector<1x8x8x128xf32>
    %129 = arith.mulf %124, %128 : vector<1x8x8x128xf32>
    %130 = arith.addf %123, %129 : vector<1x8x8x128xf32>
    %131 = vector.extract_strided_slice %101 {offsets = [0, 1, 1, 0], sizes = [1, 8, 8, 128], strides = [1, 1, 1, 1]} : vector<1x10x10x128xf32> to vector<1x8x8x128xf32>
    %c1_52 = arith.constant 1 : index
    %c1_53 = arith.constant 1 : index
    %c0_54 = arith.constant 0 : index
    %132 = vector.load %arg5[%c1_52, %c1_53, %c0_54] : memref<3x3x128xf32, #tpu.memory_space<vmem>>, vector<1x1x128xf32>
    %133 = vector.shape_cast %132 : vector<1x1x128xf32> to vector<128xf32>
    %134 = vector.shape_cast %133 : vector<128xf32> to vector<1x1x1x128xf32>
    %135 = vector.broadcast %134 : vector<1x1x1x128xf32> to vector<1x8x8x128xf32>
    %136 = arith.mulf %131, %135 : vector<1x8x8x128xf32>
    %137 = arith.addf %130, %136 : vector<1x8x8x128xf32>
    %138 = vector.extract_strided_slice %101 {offsets = [0, 1, 2, 0], sizes = [1, 8, 8, 128], strides = [1, 1, 1, 1]} : vector<1x10x10x128xf32> to vector<1x8x8x128xf32>
    %c1_55 = arith.constant 1 : index
    %c2_56 = arith.constant 2 : index
    %c0_57 = arith.constant 0 : index
    %139 = vector.load %arg5[%c1_55, %c2_56, %c0_57] : memref<3x3x128xf32, #tpu.memory_space<vmem>>, vector<1x1x128xf32>
    %140 = vector.shape_cast %139 : vector<1x1x128xf32> to vector<128xf32>
    %141 = vector.shape_cast %140 : vector<128xf32> to vector<1x1x1x128xf32>
    %142 = vector.broadcast %141 : vector<1x1x1x128xf32> to vector<1x8x8x128xf32>
    %143 = arith.mulf %138, %142 : vector<1x8x8x128xf32>
    %144 = arith.addf %137, %143 : vector<1x8x8x128xf32>
    %145 = vector.extract_strided_slice %101 {offsets = [0, 2, 0, 0], sizes = [1, 8, 8, 128], strides = [1, 1, 1, 1]} : vector<1x10x10x128xf32> to vector<1x8x8x128xf32>
    %c2_58 = arith.constant 2 : index
    %c0_59 = arith.constant 0 : index
    %c0_60 = arith.constant 0 : index
    %146 = vector.load %arg5[%c2_58, %c0_59, %c0_60] : memref<3x3x128xf32, #tpu.memory_space<vmem>>, vector<1x1x128xf32>
    %147 = vector.shape_cast %146 : vector<1x1x128xf32> to vector<128xf32>
    %148 = vector.shape_cast %147 : vector<128xf32> to vector<1x1x1x128xf32>
    %149 = vector.broadcast %148 : vector<1x1x1x128xf32> to vector<1x8x8x128xf32>
    %150 = arith.mulf %145, %149 : vector<1x8x8x128xf32>
    %151 = arith.addf %144, %150 : vector<1x8x8x128xf32>
    %152 = vector.extract_strided_slice %101 {offsets = [0, 2, 1, 0], sizes = [1, 8, 8, 128], strides = [1, 1, 1, 1]} : vector<1x10x10x128xf32> to vector<1x8x8x128xf32>
    %c2_61 = arith.constant 2 : index
    %c1_62 = arith.constant 1 : index
    %c0_63 = arith.constant 0 : index
    %153 = vector.load %arg5[%c2_61, %c1_62, %c0_63] : memref<3x3x128xf32, #tpu.memory_space<vmem>>, vector<1x1x128xf32>
    %154 = vector.shape_cast %153 : vector<1x1x128xf32> to vector<128xf32>
    %155 = vector.shape_cast %154 : vector<128xf32> to vector<1x1x1x128xf32>
    %156 = vector.broadcast %155 : vector<1x1x1x128xf32> to vector<1x8x8x128xf32>
    %157 = arith.mulf %152, %156 : vector<1x8x8x128xf32>
    %158 = arith.addf %151, %157 : vector<1x8x8x128xf32>
    %159 = vector.extract_strided_slice %101 {offsets = [0, 2, 2, 0], sizes = [1, 8, 8, 128], strides = [1, 1, 1, 1]} : vector<1x10x10x128xf32> to vector<1x8x8x128xf32>
    %c2_64 = arith.constant 2 : index
    %c2_65 = arith.constant 2 : index
    %c0_66 = arith.constant 0 : index
    %160 = vector.load %arg5[%c2_64, %c2_65, %c0_66] : memref<3x3x128xf32, #tpu.memory_space<vmem>>, vector<1x1x128xf32>
    %161 = vector.shape_cast %160 : vector<1x1x128xf32> to vector<128xf32>
    %162 = vector.shape_cast %161 : vector<128xf32> to vector<1x1x1x128xf32>
    %163 = vector.broadcast %162 : vector<1x1x1x128xf32> to vector<1x8x8x128xf32>
    %164 = arith.mulf %159, %163 : vector<1x8x8x128xf32>
    %165 = arith.addf %158, %164 : vector<1x8x8x128xf32>
    %166 = vector.shape_cast %165 : vector<1x8x8x128xf32> to vector<64x128xf32>
    %c0_67 = arith.constant 0 : index
    %c0_68 = arith.constant 0 : index
    %167 = vector.load %arg6[%c0_67, %c0_68] : memref<1x128xf32, #tpu.memory_space<vmem>>, vector<1x128xf32>
    %168 = vector.broadcast %167 : vector<1x128xf32> to vector<64x128xf32>
    %169 = arith.mulf %166, %168 : vector<64x128xf32>
    %c0_69 = arith.constant 0 : index
    %c0_70 = arith.constant 0 : index
    %170 = vector.load %arg7[%c0_69, %c0_70] : memref<1x128xf32, #tpu.memory_space<vmem>>, vector<1x128xf32>
    %171 = vector.broadcast %170 : vector<1x128xf32> to vector<64x128xf32>
    %172 = arith.addf %169, %171 : vector<64x128xf32>
    %173 = arith.negf %172 : vector<64x128xf32>
    %174 = math.exp %173 : vector<64x128xf32>
    %cst_71 = arith.constant 1.000000e+00 : f32
    %175 = vector.broadcast %cst_71 : f32 to vector<64x128xf32>
    %176 = arith.addf %175, %174 : vector<64x128xf32>
    %177 = arith.divf %175, %176 : vector<64x128xf32>
    %178 = arith.mulf %172, %177 : vector<64x128xf32>
    %cst_72 = arith.constant dense<0.000000e+00> : vector<128xf32>
    %179 = vector.multi_reduction <add>, %178, %cst_72 [0] : vector<64x128xf32> to vector<128xf32>
    %180 = vector.shape_cast %179 : vector<128xf32> to vector<1x128xf32>
    %cst_73 = arith.constant 6.400000e+01 : f32
    %181 = vector.broadcast %cst_73 : f32 to vector<1x128xf32>
    %182 = arith.divf %180, %181 : vector<1x128xf32>
    %183 = arith.truncf %182 : vector<1x128xf32> to vector<1x128xbf16>
    %c0_74 = arith.constant 0 : index
    %c0_75 = arith.constant 0 : index
    %184 = vector.load %arg8[%c0_74, %c0_75] : memref<128x128xbf16, #tpu.memory_space<vmem>>, vector<128x128xbf16>
    %cst_76 = arith.constant dense<0.000000e+00> : vector<1x128xf32>
    %185 = tpu.matmul %183, %184, %cst_76 {dimension_numbers = #tpu.dot_dimension_numbers<[1], [0], [0], [1], [0, 0, 1, 1], [], []>} : vector<1x128xbf16>, vector<128x128xbf16>, vector<1x128xf32> -> vector<1x128xf32>
    %c0_77 = arith.constant 0 : index
    %c0_78 = arith.constant 0 : index
    %186 = vector.load %arg9[%c0_77, %c0_78] : memref<1x128xf32, #tpu.memory_space<vmem>>, vector<1x128xf32>
    %187 = arith.addf %185, %186 : vector<1x128xf32>
    %188 = arith.negf %187 : vector<1x128xf32>
    %189 = math.exp %188 : vector<1x128xf32>
    %cst_79 = arith.constant 1.000000e+00 : f32
    %190 = vector.broadcast %cst_79 : f32 to vector<1x128xf32>
    %191 = arith.addf %190, %189 : vector<1x128xf32>
    %192 = arith.divf %190, %191 : vector<1x128xf32>
    %193 = arith.mulf %187, %192 : vector<1x128xf32>
    %194 = arith.truncf %193 : vector<1x128xf32> to vector<1x128xbf16>
    %c0_80 = arith.constant 0 : index
    %c0_81 = arith.constant 0 : index
    %195 = vector.load %arg10[%c0_80, %c0_81] : memref<128x128xbf16, #tpu.memory_space<vmem>>, vector<128x128xbf16>
    %cst_82 = arith.constant dense<0.000000e+00> : vector<1x128xf32>
    %196 = tpu.matmul %194, %195, %cst_82 {dimension_numbers = #tpu.dot_dimension_numbers<[1], [0], [0], [1], [0, 0, 1, 1], [], []>} : vector<1x128xbf16>, vector<128x128xbf16>, vector<1x128xf32> -> vector<1x128xf32>
    %c0_83 = arith.constant 0 : index
    %c0_84 = arith.constant 0 : index
    %197 = vector.load %arg11[%c0_83, %c0_84] : memref<1x128xf32, #tpu.memory_space<vmem>>, vector<1x128xf32>
    %198 = arith.addf %196, %197 : vector<1x128xf32>
    %199 = arith.negf %198 : vector<1x128xf32>
    %200 = math.exp %199 : vector<1x128xf32>
    %cst_85 = arith.constant 1.000000e+00 : f32
    %201 = vector.broadcast %cst_85 : f32 to vector<1x128xf32>
    %202 = arith.addf %201, %200 : vector<1x128xf32>
    %203 = arith.divf %201, %202 : vector<1x128xf32>
    %204 = vector.broadcast %203 : vector<1x128xf32> to vector<64x128xf32>
    %205 = arith.mulf %178, %204 : vector<64x128xf32>
    %206 = arith.truncf %205 : vector<64x128xf32> to vector<64x128xbf16>
    %c0_86 = arith.constant 0 : index
    %c0_87 = arith.constant 0 : index
    %207 = vector.load %arg12[%c0_86, %c0_87] : memref<128x128xbf16, #tpu.memory_space<vmem>>, vector<128x128xbf16>
    %cst_88 = arith.constant dense<0.000000e+00> : vector<64x128xf32>
    %208 = tpu.matmul %206, %207, %cst_88 {dimension_numbers = #tpu.dot_dimension_numbers<[1], [0], [0], [1], [0, 0, 1, 1], [], []>} : vector<64x128xbf16>, vector<128x128xbf16>, vector<64x128xf32> -> vector<64x128xf32>
    %c0_89 = arith.constant 0 : index
    %c0_90 = arith.constant 0 : index
    %209 = vector.load %arg13[%c0_89, %c0_90] : memref<1x128xf32, #tpu.memory_space<vmem>>, vector<1x128xf32>
    %210 = vector.broadcast %209 : vector<1x128xf32> to vector<64x128xf32>
    %211 = arith.mulf %208, %210 : vector<64x128xf32>
    %c0_91 = arith.constant 0 : index
    %c0_92 = arith.constant 0 : index
    %212 = vector.load %arg14[%c0_91, %c0_92] : memref<1x128xf32, #tpu.memory_space<vmem>>, vector<1x128xf32>
    %213 = vector.broadcast %212 : vector<1x128xf32> to vector<64x128xf32>
    %214 = arith.addf %211, %213 : vector<64x128xf32>
    %215 = arith.addf %214, %88 : vector<64x128xf32>
    %216 = vector.shape_cast %215 : vector<64x128xf32> to vector<1x8x8x128xf32>
    %c0_93 = arith.constant 0 : index
    %c0_94 = arith.constant 0 : index
    %c0_95 = arith.constant 0 : index
    %c0_96 = arith.constant 0 : index
    %217 = vector.load %arg47[%c0_93, %c0_94, %c0_95, %c0_96] : memref<1x8x8x128xf32, #tpu.memory_space<vmem>>, vector<1x8x8x128xf32>
    tpu.vector_store %arg47[%c0_93, %c0_94, %c0_95, %c0_96], %216 {strides = array<i32>} : memref<1x8x8x128xf32, #tpu.memory_space<vmem>>, vector<1x8x8x128xf32>,
    %218 = arith.truncf %215 : vector<64x128xf32> to vector<64x128xbf16>
    %c0_97 = arith.constant 0 : index
    %c0_98 = arith.constant 0 : index
    %219 = vector.load %arg15[%c0_97, %c0_98] : memref<128x128xbf16, #tpu.memory_space<vmem>>, vector<128x128xbf16>
    %cst_99 = arith.constant dense<0.000000e+00> : vector<64x128xf32>
    %220 = tpu.matmul %218, %219, %cst_99 {dimension_numbers = #tpu.dot_dimension_numbers<[1], [0], [0], [1], [0, 0, 1, 1], [], []>} : vector<64x128xbf16>, vector<128x128xbf16>, vector<64x128xf32> -> vector<64x128xf32>
    %c0_100 = arith.constant 0 : index
    %c0_101 = arith.constant 0 : index
    %221 = vector.load %arg16[%c0_100, %c0_101] : memref<1x128xf32, #tpu.memory_space<vmem>>, vector<1x128xf32>
    %222 = vector.broadcast %221 : vector<1x128xf32> to vector<64x128xf32>
    %223 = arith.mulf %220, %222 : vector<64x128xf32>
    %c0_102 = arith.constant 0 : index
    %c0_103 = arith.constant 0 : index
    %224 = vector.load %arg17[%c0_102, %c0_103] : memref<1x128xf32, #tpu.memory_space<vmem>>, vector<1x128xf32>
    %225 = vector.broadcast %224 : vector<1x128xf32> to vector<64x128xf32>
    %226 = arith.addf %223, %225 : vector<64x128xf32>
    %227 = arith.negf %226 : vector<64x128xf32>
    %228 = math.exp %227 : vector<64x128xf32>
    %cst_104 = arith.constant 1.000000e+00 : f32
    %229 = vector.broadcast %cst_104 : f32 to vector<64x128xf32>
    %230 = arith.addf %229, %228 : vector<64x128xf32>
    %231 = arith.divf %229, %230 : vector<64x128xf32>
    %232 = arith.mulf %226, %231 : vector<64x128xf32>
    %cst_105 = arith.constant 0.000000e+00 : f32
    %233 = vector.broadcast %cst_105 : f32 to vector<1x2x10x128xf32>
    %c0_106 = arith.constant 0 : index
    %c8 = arith.constant 8 : index
    %c0_107 = arith.constant 0 : index
    %c0_108 = arith.constant 0 : index
    %234 = vector.load %arg51[%c0_106, %c8, %c0_107, %c0_108] : memref<1x10x10x128xf32, #tpu.memory_space<vmem>>, vector<1x2x10x128xf32>
    tpu.vector_store %arg51[%c0_106, %c8, %c0_107, %c0_108], %233 {strides = array<i32>} : memref<1x10x10x128xf32, #tpu.memory_space<vmem>>, vector<1x2x10x128xf32>,
    %cst_109 = arith.constant 0.000000e+00 : f32
    %235 = vector.broadcast %cst_109 : f32 to vector<1x8x2x128xf32>
    %c0_110 = arith.constant 0 : index
    %c0_111 = arith.constant 0 : index
    %c8_112 = arith.constant 8 : index
    %c0_113 = arith.constant 0 : index
    %236 = vector.load %arg51[%c0_110, %c0_111, %c8_112, %c0_113] : memref<1x10x10x128xf32, #tpu.memory_space<vmem>>, vector<1x8x2x128xf32>
    tpu.vector_store %arg51[%c0_110, %c0_111, %c8_112, %c0_113], %235 {strides = array<i32>} : memref<1x10x10x128xf32, #tpu.memory_space<vmem>>, vector<1x8x2x128xf32>,
    %237 = vector.shape_cast %232 : vector<64x128xf32> to vector<1x8x8x128xf32>
    %c0_114 = arith.constant 0 : index
    %c0_115 = arith.constant 0 : index
    %c0_116 = arith.constant 0 : index
    %c0_117 = arith.constant 0 : index
    %238 = vector.load %arg51[%c0_114, %c0_115, %c0_116, %c0_117] : memref<1x10x10x128xf32, #tpu.memory_space<vmem>>, vector<1x8x8x128xf32>
    tpu.vector_store %arg51[%c0_114, %c0_115, %c0_116, %c0_117], %237 {strides = array<i32>} : memref<1x10x10x128xf32, #tpu.memory_space<vmem>>, vector<1x8x8x128xf32>,
    %c0_118 = arith.constant 0 : index
    %c0_119 = arith.constant 0 : index
    %c0_120 = arith.constant 0 : index
    %c0_121 = arith.constant 0 : index
    %239 = vector.load %arg51[%c0_118, %c0_119, %c0_120, %c0_121] : memref<1x10x10x128xf32, #tpu.memory_space<vmem>>, vector<1x10x10x128xf32>
    %cst_122 = arith.constant 0.000000e+00 : f32
    %240 = vector.broadcast %cst_122 : f32 to vector<1x4x4x128xf32>
    %241 = vector.extract_strided_slice %239 {offsets = [0, 0, 0, 0], sizes = [1, 8, 8, 128], strides = [1, 1, 1, 1]} : vector<1x10x10x128xf32> to vector<1x8x8x128xf32>
    %242 = vector.shape_cast %241 : vector<1x8x8x128xf32> to vector<1x4x2x8x128xf32>
    %243 = vector.extract_strided_slice %242 {offsets = [0, 0, 0, 0, 0], sizes = [1, 4, 1, 8, 128], strides = [1, 1, 1, 1, 1]} : vector<1x4x2x8x128xf32> to vector<1x4x1x8x128xf32>
    %244 = vector.shape_cast %243 : vector<1x4x1x8x128xf32> to vector<1x4x8x128xf32>
    %245 = vector.shape_cast %244 : vector<1x4x8x128xf32> to vector<1x4x4x2x128xf32>
    %246 = vector.extract_strided_slice %245 {offsets = [0, 0, 0, 0, 0], sizes = [1, 4, 4, 1, 128], strides = [1, 1, 1, 1, 1]} : vector<1x4x4x2x128xf32> to vector<1x4x4x1x128xf32>
    %247 = vector.shape_cast %246 : vector<1x4x4x1x128xf32> to vector<1x4x4x128xf32>
    %c0_123 = arith.constant 0 : index
    %c0_124 = arith.constant 0 : index
    %c0_125 = arith.constant 0 : index
    %248 = vector.load %arg18[%c0_123, %c0_124, %c0_125] : memref<3x3x128xf32, #tpu.memory_space<vmem>>, vector<1x1x128xf32>
    %249 = vector.shape_cast %248 : vector<1x1x128xf32> to vector<128xf32>
    %250 = vector.shape_cast %249 : vector<128xf32> to vector<1x1x1x128xf32>
    %251 = vector.broadcast %250 : vector<1x1x1x128xf32> to vector<1x4x4x128xf32>
    %252 = arith.mulf %247, %251 : vector<1x4x4x128xf32>
    %253 = arith.addf %240, %252 : vector<1x4x4x128xf32>
    %254 = vector.extract_strided_slice %239 {offsets = [0, 0, 1, 0], sizes = [1, 8, 8, 128], strides = [1, 1, 1, 1]} : vector<1x10x10x128xf32> to vector<1x8x8x128xf32>
    %255 = vector.shape_cast %254 : vector<1x8x8x128xf32> to vector<1x4x2x8x128xf32>
    %256 = vector.extract_strided_slice %255 {offsets = [0, 0, 0, 0, 0], sizes = [1, 4, 1, 8, 128], strides = [1, 1, 1, 1, 1]} : vector<1x4x2x8x128xf32> to vector<1x4x1x8x128xf32>
    %257 = vector.shape_cast %256 : vector<1x4x1x8x128xf32> to vector<1x4x8x128xf32>
    %258 = vector.shape_cast %257 : vector<1x4x8x128xf32> to vector<1x4x4x2x128xf32>
    %259 = vector.extract_strided_slice %258 {offsets = [0, 0, 0, 0, 0], sizes = [1, 4, 4, 1, 128], strides = [1, 1, 1, 1, 1]} : vector<1x4x4x2x128xf32> to vector<1x4x4x1x128xf32>
    %260 = vector.shape_cast %259 : vector<1x4x4x1x128xf32> to vector<1x4x4x128xf32>
    %c0_126 = arith.constant 0 : index
    %c1_127 = arith.constant 1 : index
    %c0_128 = arith.constant 0 : index
    %261 = vector.load %arg18[%c0_126, %c1_127, %c0_128] : memref<3x3x128xf32, #tpu.memory_space<vmem>>, vector<1x1x128xf32>
    %262 = vector.shape_cast %261 : vector<1x1x128xf32> to vector<128xf32>
    %263 = vector.shape_cast %262 : vector<128xf32> to vector<1x1x1x128xf32>
    %264 = vector.broadcast %263 : vector<1x1x1x128xf32> to vector<1x4x4x128xf32>
    %265 = arith.mulf %260, %264 : vector<1x4x4x128xf32>
    %266 = arith.addf %253, %265 : vector<1x4x4x128xf32>
    %267 = vector.extract_strided_slice %239 {offsets = [0, 0, 2, 0], sizes = [1, 8, 8, 128], strides = [1, 1, 1, 1]} : vector<1x10x10x128xf32> to vector<1x8x8x128xf32>
    %268 = vector.shape_cast %267 : vector<1x8x8x128xf32> to vector<1x4x2x8x128xf32>
    %269 = vector.extract_strided_slice %268 {offsets = [0, 0, 0, 0, 0], sizes = [1, 4, 1, 8, 128], strides = [1, 1, 1, 1, 1]} : vector<1x4x2x8x128xf32> to vector<1x4x1x8x128xf32>
    %270 = vector.shape_cast %269 : vector<1x4x1x8x128xf32> to vector<1x4x8x128xf32>
    %271 = vector.shape_cast %270 : vector<1x4x8x128xf32> to vector<1x4x4x2x128xf32>
    %272 = vector.extract_strided_slice %271 {offsets = [0, 0, 0, 0, 0], sizes = [1, 4, 4, 1, 128], strides = [1, 1, 1, 1, 1]} : vector<1x4x4x2x128xf32> to vector<1x4x4x1x128xf32>
    %273 = vector.shape_cast %272 : vector<1x4x4x1x128xf32> to vector<1x4x4x128xf32>
    %c0_129 = arith.constant 0 : index
    %c2_130 = arith.constant 2 : index
    %c0_131 = arith.constant 0 : index
    %274 = vector.load %arg18[%c0_129, %c2_130, %c0_131] : memref<3x3x128xf32, #tpu.memory_space<vmem>>, vector<1x1x128xf32>
    %275 = vector.shape_cast %274 : vector<1x1x128xf32> to vector<128xf32>
    %276 = vector.shape_cast %275 : vector<128xf32> to vector<1x1x1x128xf32>
    %277 = vector.broadcast %276 : vector<1x1x1x128xf32> to vector<1x4x4x128xf32>
    %278 = arith.mulf %273, %277 : vector<1x4x4x128xf32>
    %279 = arith.addf %266, %278 : vector<1x4x4x128xf32>
    %280 = vector.extract_strided_slice %239 {offsets = [0, 1, 0, 0], sizes = [1, 8, 8, 128], strides = [1, 1, 1, 1]} : vector<1x10x10x128xf32> to vector<1x8x8x128xf32>
    %281 = vector.shape_cast %280 : vector<1x8x8x128xf32> to vector<1x4x2x8x128xf32>
    %282 = vector.extract_strided_slice %281 {offsets = [0, 0, 0, 0, 0], sizes = [1, 4, 1, 8, 128], strides = [1, 1, 1, 1, 1]} : vector<1x4x2x8x128xf32> to vector<1x4x1x8x128xf32>
    %283 = vector.shape_cast %282 : vector<1x4x1x8x128xf32> to vector<1x4x8x128xf32>
    %284 = vector.shape_cast %283 : vector<1x4x8x128xf32> to vector<1x4x4x2x128xf32>
    %285 = vector.extract_strided_slice %284 {offsets = [0, 0, 0, 0, 0], sizes = [1, 4, 4, 1, 128], strides = [1, 1, 1, 1, 1]} : vector<1x4x4x2x128xf32> to vector<1x4x4x1x128xf32>
    %286 = vector.shape_cast %285 : vector<1x4x4x1x128xf32> to vector<1x4x4x128xf32>
    %c1_132 = arith.constant 1 : index
    %c0_133 = arith.constant 0 : index
    %c0_134 = arith.constant 0 : index
    %287 = vector.load %arg18[%c1_132, %c0_133, %c0_134] : memref<3x3x128xf32, #tpu.memory_space<vmem>>, vector<1x1x128xf32>
    %288 = vector.shape_cast %287 : vector<1x1x128xf32> to vector<128xf32>
    %289 = vector.shape_cast %288 : vector<128xf32> to vector<1x1x1x128xf32>
    %290 = vector.broadcast %289 : vector<1x1x1x128xf32> to vector<1x4x4x128xf32>
    %291 = arith.mulf %286, %290 : vector<1x4x4x128xf32>
    %292 = arith.addf %279, %291 : vector<1x4x4x128xf32>
    %293 = vector.extract_strided_slice %239 {offsets = [0, 1, 1, 0], sizes = [1, 8, 8, 128], strides = [1, 1, 1, 1]} : vector<1x10x10x128xf32> to vector<1x8x8x128xf32>
    %294 = vector.shape_cast %293 : vector<1x8x8x128xf32> to vector<1x4x2x8x128xf32>
    %295 = vector.extract_strided_slice %294 {offsets = [0, 0, 0, 0, 0], sizes = [1, 4, 1, 8, 128], strides = [1, 1, 1, 1, 1]} : vector<1x4x2x8x128xf32> to vector<1x4x1x8x128xf32>
    %296 = vector.shape_cast %295 : vector<1x4x1x8x128xf32> to vector<1x4x8x128xf32>
    %297 = vector.shape_cast %296 : vector<1x4x8x128xf32> to vector<1x4x4x2x128xf32>
    %298 = vector.extract_strided_slice %297 {offsets = [0, 0, 0, 0, 0], sizes = [1, 4, 4, 1, 128], strides = [1, 1, 1, 1, 1]} : vector<1x4x4x2x128xf32> to vector<1x4x4x1x128xf32>
    %299 = vector.shape_cast %298 : vector<1x4x4x1x128xf32> to vector<1x4x4x128xf32>
    %c1_135 = arith.constant 1 : index
    %c1_136 = arith.constant 1 : index
    %c0_137 = arith.constant 0 : index
    %300 = vector.load %arg18[%c1_135, %c1_136, %c0_137] : memref<3x3x128xf32, #tpu.memory_space<vmem>>, vector<1x1x128xf32>
    %301 = vector.shape_cast %300 : vector<1x1x128xf32> to vector<128xf32>
    %302 = vector.shape_cast %301 : vector<128xf32> to vector<1x1x1x128xf32>
    %303 = vector.broadcast %302 : vector<1x1x1x128xf32> to vector<1x4x4x128xf32>
    %304 = arith.mulf %299, %303 : vector<1x4x4x128xf32>
    %305 = arith.addf %292, %304 : vector<1x4x4x128xf32>
    %306 = vector.extract_strided_slice %239 {offsets = [0, 1, 2, 0], sizes = [1, 8, 8, 128], strides = [1, 1, 1, 1]} : vector<1x10x10x128xf32> to vector<1x8x8x128xf32>
    %307 = vector.shape_cast %306 : vector<1x8x8x128xf32> to vector<1x4x2x8x128xf32>
    %308 = vector.extract_strided_slice %307 {offsets = [0, 0, 0, 0, 0], sizes = [1, 4, 1, 8, 128], strides = [1, 1, 1, 1, 1]} : vector<1x4x2x8x128xf32> to vector<1x4x1x8x128xf32>
    %309 = vector.shape_cast %308 : vector<1x4x1x8x128xf32> to vector<1x4x8x128xf32>
    %310 = vector.shape_cast %309 : vector<1x4x8x128xf32> to vector<1x4x4x2x128xf32>
    %311 = vector.extract_strided_slice %310 {offsets = [0, 0, 0, 0, 0], sizes = [1, 4, 4, 1, 128], strides = [1, 1, 1, 1, 1]} : vector<1x4x4x2x128xf32> to vector<1x4x4x1x128xf32>
    %312 = vector.shape_cast %311 : vector<1x4x4x1x128xf32> to vector<1x4x4x128xf32>
    %c1_138 = arith.constant 1 : index
    %c2_139 = arith.constant 2 : index
    %c0_140 = arith.constant 0 : index
    %313 = vector.load %arg18[%c1_138, %c2_139, %c0_140] : memref<3x3x128xf32, #tpu.memory_space<vmem>>, vector<1x1x128xf32>
    %314 = vector.shape_cast %313 : vector<1x1x128xf32> to vector<128xf32>
    %315 = vector.shape_cast %314 : vector<128xf32> to vector<1x1x1x128xf32>
    %316 = vector.broadcast %315 : vector<1x1x1x128xf32> to vector<1x4x4x128xf32>
    %317 = arith.mulf %312, %316 : vector<1x4x4x128xf32>
    %318 = arith.addf %305, %317 : vector<1x4x4x128xf32>
    %319 = vector.extract_strided_slice %239 {offsets = [0, 2, 0, 0], sizes = [1, 8, 8, 128], strides = [1, 1, 1, 1]} : vector<1x10x10x128xf32> to vector<1x8x8x128xf32>
    %320 = vector.shape_cast %319 : vector<1x8x8x128xf32> to vector<1x4x2x8x128xf32>
    %321 = vector.extract_strided_slice %320 {offsets = [0, 0, 0, 0, 0], sizes = [1, 4, 1, 8, 128], strides = [1, 1, 1, 1, 1]} : vector<1x4x2x8x128xf32> to vector<1x4x1x8x128xf32>
    %322 = vector.shape_cast %321 : vector<1x4x1x8x128xf32> to vector<1x4x8x128xf32>
    %323 = vector.shape_cast %322 : vector<1x4x8x128xf32> to vector<1x4x4x2x128xf32>
    %324 = vector.extract_strided_slice %323 {offsets = [0, 0, 0, 0, 0], sizes = [1, 4, 4, 1, 128], strides = [1, 1, 1, 1, 1]} : vector<1x4x4x2x128xf32> to vector<1x4x4x1x128xf32>
    %325 = vector.shape_cast %324 : vector<1x4x4x1x128xf32> to vector<1x4x4x128xf32>
    %c2_141 = arith.constant 2 : index
    %c0_142 = arith.constant 0 : index
    %c0_143 = arith.constant 0 : index
    %326 = vector.load %arg18[%c2_141, %c0_142, %c0_143] : memref<3x3x128xf32, #tpu.memory_space<vmem>>, vector<1x1x128xf32>
    %327 = vector.shape_cast %326 : vector<1x1x128xf32> to vector<128xf32>
    %328 = vector.shape_cast %327 : vector<128xf32> to vector<1x1x1x128xf32>
    %329 = vector.broadcast %328 : vector<1x1x1x128xf32> to vector<1x4x4x128xf32>
    %330 = arith.mulf %325, %329 : vector<1x4x4x128xf32>
    %331 = arith.addf %318, %330 : vector<1x4x4x128xf32>
    %332 = vector.extract_strided_slice %239 {offsets = [0, 2, 1, 0], sizes = [1, 8, 8, 128], strides = [1, 1, 1, 1]} : vector<1x10x10x128xf32> to vector<1x8x8x128xf32>
    %333 = vector.shape_cast %332 : vector<1x8x8x128xf32> to vector<1x4x2x8x128xf32>
    %334 = vector.extract_strided_slice %333 {offsets = [0, 0, 0, 0, 0], sizes = [1, 4, 1, 8, 128], strides = [1, 1, 1, 1, 1]} : vector<1x4x2x8x128xf32> to vector<1x4x1x8x128xf32>
    %335 = vector.shape_cast %334 : vector<1x4x1x8x128xf32> to vector<1x4x8x128xf32>
    %336 = vector.shape_cast %335 : vector<1x4x8x128xf32> to vector<1x4x4x2x128xf32>
    %337 = vector.extract_strided_slice %336 {offsets = [0, 0, 0, 0, 0], sizes = [1, 4, 4, 1, 128], strides = [1, 1, 1, 1, 1]} : vector<1x4x4x2x128xf32> to vector<1x4x4x1x128xf32>
    %338 = vector.shape_cast %337 : vector<1x4x4x1x128xf32> to vector<1x4x4x128xf32>
    %c2_144 = arith.constant 2 : index
    %c1_145 = arith.constant 1 : index
    %c0_146 = arith.constant 0 : index
    %339 = vector.load %arg18[%c2_144, %c1_145, %c0_146] : memref<3x3x128xf32, #tpu.memory_space<vmem>>, vector<1x1x128xf32>
    %340 = vector.shape_cast %339 : vector<1x1x128xf32> to vector<128xf32>
    %341 = vector.shape_cast %340 : vector<128xf32> to vector<1x1x1x128xf32>
    %342 = vector.broadcast %341 : vector<1x1x1x128xf32> to vector<1x4x4x128xf32>
    %343 = arith.mulf %338, %342 : vector<1x4x4x128xf32>
    %344 = arith.addf %331, %343 : vector<1x4x4x128xf32>
    %345 = vector.extract_strided_slice %239 {offsets = [0, 2, 2, 0], sizes = [1, 8, 8, 128], strides = [1, 1, 1, 1]} : vector<1x10x10x128xf32> to vector<1x8x8x128xf32>
    %346 = vector.shape_cast %345 : vector<1x8x8x128xf32> to vector<1x4x2x8x128xf32>
    %347 = vector.extract_strided_slice %346 {offsets = [0, 0, 0, 0, 0], sizes = [1, 4, 1, 8, 128], strides = [1, 1, 1, 1, 1]} : vector<1x4x2x8x128xf32> to vector<1x4x1x8x128xf32>
    %348 = vector.shape_cast %347 : vector<1x4x1x8x128xf32> to vector<1x4x8x128xf32>
    %349 = vector.shape_cast %348 : vector<1x4x8x128xf32> to vector<1x4x4x2x128xf32>
    %350 = vector.extract_strided_slice %349 {offsets = [0, 0, 0, 0, 0], sizes = [1, 4, 4, 1, 128], strides = [1, 1, 1, 1, 1]} : vector<1x4x4x2x128xf32> to vector<1x4x4x1x128xf32>
    %351 = vector.shape_cast %350 : vector<1x4x4x1x128xf32> to vector<1x4x4x128xf32>
    %c2_147 = arith.constant 2 : index
    %c2_148 = arith.constant 2 : index
    %c0_149 = arith.constant 0 : index
    %352 = vector.load %arg18[%c2_147, %c2_148, %c0_149] : memref<3x3x128xf32, #tpu.memory_space<vmem>>, vector<1x1x128xf32>
    %353 = vector.shape_cast %352 : vector<1x1x128xf32> to vector<128xf32>
    %354 = vector.shape_cast %353 : vector<128xf32> to vector<1x1x1x128xf32>
    %355 = vector.broadcast %354 : vector<1x1x1x128xf32> to vector<1x4x4x128xf32>
    %356 = arith.mulf %351, %355 : vector<1x4x4x128xf32>
    %357 = arith.addf %344, %356 : vector<1x4x4x128xf32>
    %358 = vector.shape_cast %357 : vector<1x4x4x128xf32> to vector<16x128xf32>
    %c0_150 = arith.constant 0 : index
    %c0_151 = arith.constant 0 : index
    %359 = vector.load %arg19[%c0_150, %c0_151] : memref<1x128xf32, #tpu.memory_space<vmem>>, vector<1x128xf32>
    %360 = vector.broadcast %359 : vector<1x128xf32> to vector<16x128xf32>
    %361 = arith.mulf %358, %360 : vector<16x128xf32>
    %c0_152 = arith.constant 0 : index
    %c0_153 = arith.constant 0 : index
    %362 = vector.load %arg20[%c0_152, %c0_153] : memref<1x128xf32, #tpu.memory_space<vmem>>, vector<1x128xf32>
    %363 = vector.broadcast %362 : vector<1x128xf32> to vector<16x128xf32>
    %364 = arith.addf %361, %363 : vector<16x128xf32>
    %365 = arith.negf %364 : vector<16x128xf32>
    %366 = math.exp %365 : vector<16x128xf32>
    %cst_154 = arith.constant 1.000000e+00 : f32
    %367 = vector.broadcast %cst_154 : f32 to vector<16x128xf32>
    %368 = arith.addf %367, %366 : vector<16x128xf32>
    %369 = arith.divf %367, %368 : vector<16x128xf32>
    %370 = arith.mulf %364, %369 : vector<16x128xf32>
    %cst_155 = arith.constant dense<0.000000e+00> : vector<128xf32>
    %371 = vector.multi_reduction <add>, %370, %cst_155 [0] : vector<16x128xf32> to vector<128xf32>
    %372 = vector.shape_cast %371 : vector<128xf32> to vector<1x128xf32>
    %cst_156 = arith.constant 1.600000e+01 : f32
    %373 = vector.broadcast %cst_156 : f32 to vector<1x128xf32>
    %374 = arith.divf %372, %373 : vector<1x128xf32>
    %375 = arith.truncf %374 : vector<1x128xf32> to vector<1x128xbf16>
    %c0_157 = arith.constant 0 : index
    %c0_158 = arith.constant 0 : index
    %376 = vector.load %arg21[%c0_157, %c0_158] : memref<128x128xbf16, #tpu.memory_space<vmem>>, vector<128x128xbf16>
    %cst_159 = arith.constant dense<0.000000e+00> : vector<1x128xf32>
    %377 = tpu.matmul %375, %376, %cst_159 {dimension_numbers = #tpu.dot_dimension_numbers<[1], [0], [0], [1], [0, 0, 1, 1], [], []>} : vector<1x128xbf16>, vector<128x128xbf16>, vector<1x128xf32> -> vector<1x128xf32>
    %c0_160 = arith.constant 0 : index
    %c0_161 = arith.constant 0 : index
    %378 = vector.load %arg22[%c0_160, %c0_161] : memref<1x128xf32, #tpu.memory_space<vmem>>, vector<1x128xf32>
    %379 = arith.addf %377, %378 : vector<1x128xf32>
    %380 = arith.negf %379 : vector<1x128xf32>
    %381 = math.exp %380 : vector<1x128xf32>
    %cst_162 = arith.constant 1.000000e+00 : f32
    %382 = vector.broadcast %cst_162 : f32 to vector<1x128xf32>
    %383 = arith.addf %382, %381 : vector<1x128xf32>
    %384 = arith.divf %382, %383 : vector<1x128xf32>
    %385 = arith.mulf %379, %384 : vector<1x128xf32>
    %386 = arith.truncf %385 : vector<1x128xf32> to vector<1x128xbf16>
    %c0_163 = arith.constant 0 : index
    %c0_164 = arith.constant 0 : index
    %387 = vector.load %arg23[%c0_163, %c0_164] : memref<128x128xbf16, #tpu.memory_space<vmem>>, vector<128x128xbf16>
    %cst_165 = arith.constant dense<0.000000e+00> : vector<1x128xf32>
    %388 = tpu.matmul %386, %387, %cst_165 {dimension_numbers = #tpu.dot_dimension_numbers<[1], [0], [0], [1], [0, 0, 1, 1], [], []>} : vector<1x128xbf16>, vector<128x128xbf16>, vector<1x128xf32> -> vector<1x128xf32>
    %c0_166 = arith.constant 0 : index
    %c0_167 = arith.constant 0 : index
    %389 = vector.load %arg24[%c0_166, %c0_167] : memref<1x128xf32, #tpu.memory_space<vmem>>, vector<1x128xf32>
    %390 = arith.addf %388, %389 : vector<1x128xf32>
    %391 = arith.negf %390 : vector<1x128xf32>
    %392 = math.exp %391 : vector<1x128xf32>
    %cst_168 = arith.constant 1.000000e+00 : f32
    %393 = vector.broadcast %cst_168 : f32 to vector<1x128xf32>
    %394 = arith.addf %393, %392 : vector<1x128xf32>
    %395 = arith.divf %393, %394 : vector<1x128xf32>
    %396 = vector.broadcast %395 : vector<1x128xf32> to vector<16x128xf32>
    %397 = arith.mulf %370, %396 : vector<16x128xf32>
    %398 = arith.truncf %397 : vector<16x128xf32> to vector<16x128xbf16>
    %c0_169 = arith.constant 0 : index
    %c0_170 = arith.constant 0 : index
    %399 = vector.load %arg25[%c0_169, %c0_170] : memref<128x128xbf16, #tpu.memory_space<vmem>>, vector<128x128xbf16>
    %cst_171 = arith.constant dense<0.000000e+00> : vector<16x128xf32>
    %400 = tpu.matmul %398, %399, %cst_171 {dimension_numbers = #tpu.dot_dimension_numbers<[1], [0], [0], [1], [0, 0, 1, 1], [], []>} : vector<16x128xbf16>, vector<128x128xbf16>, vector<16x128xf32> -> vector<16x128xf32>
    %c0_172 = arith.constant 0 : index
    %c0_173 = arith.constant 0 : index
    %401 = vector.load %arg26[%c0_172, %c0_173] : memref<1x128xf32, #tpu.memory_space<vmem>>, vector<1x128xf32>
    %402 = vector.broadcast %401 : vector<1x128xf32> to vector<16x128xf32>
    %403 = arith.mulf %400, %402 : vector<16x128xf32>
    %c0_174 = arith.constant 0 : index
    %c0_175 = arith.constant 0 : index
    %404 = vector.load %arg27[%c0_174, %c0_175] : memref<1x128xf32, #tpu.memory_space<vmem>>, vector<1x128xf32>
    %405 = vector.broadcast %404 : vector<1x128xf32> to vector<16x128xf32>
    %406 = arith.addf %403, %405 : vector<16x128xf32>
    %407 = arith.truncf %406 : vector<16x128xf32> to vector<16x128xbf16>
    %c0_176 = arith.constant 0 : index
    %c0_177 = arith.constant 0 : index
    %408 = vector.load %arg28[%c0_176, %c0_177] : memref<128x128xbf16, #tpu.memory_space<vmem>>, vector<128x128xbf16>
    %cst_178 = arith.constant dense<0.000000e+00> : vector<16x128xf32>
    %409 = tpu.matmul %407, %408, %cst_178 {dimension_numbers = #tpu.dot_dimension_numbers<[1], [0], [0], [1], [0, 0, 1, 1], [], []>} : vector<16x128xbf16>, vector<128x128xbf16>, vector<16x128xf32> -> vector<16x128xf32>
    %c0_179 = arith.constant 0 : index
    %c0_180 = arith.constant 0 : index
    %410 = vector.load %arg29[%c0_179, %c0_180] : memref<1x128xf32, #tpu.memory_space<vmem>>, vector<1x128xf32>
    %411 = vector.broadcast %410 : vector<1x128xf32> to vector<16x128xf32>
    %412 = arith.mulf %409, %411 : vector<16x128xf32>
    %c0_181 = arith.constant 0 : index
    %c0_182 = arith.constant 0 : index
    %413 = vector.load %arg30[%c0_181, %c0_182] : memref<1x128xf32, #tpu.memory_space<vmem>>, vector<1x128xf32>
    %414 = vector.broadcast %413 : vector<1x128xf32> to vector<16x128xf32>
    %415 = arith.addf %412, %414 : vector<16x128xf32>
    %416 = arith.negf %415 : vector<16x128xf32>
    %417 = math.exp %416 : vector<16x128xf32>
    %cst_183 = arith.constant 1.000000e+00 : f32
    %418 = vector.broadcast %cst_183 : f32 to vector<16x128xf32>
    %419 = arith.addf %418, %417 : vector<16x128xf32>
    %420 = arith.divf %418, %419 : vector<16x128xf32>
    %421 = arith.mulf %415, %420 : vector<16x128xf32>
    %cst_184 = arith.constant 0.000000e+00 : f32
    %422 = vector.broadcast %cst_184 : f32 to vector<1x1x6x128xf32>
    %c0_185 = arith.constant 0 : index
    %c0_186 = arith.constant 0 : index
    %c0_187 = arith.constant 0 : index
    %c0_188 = arith.constant 0 : index
    %423 = vector.load %arg51[%c0_185, %c0_186, %c0_187, %c0_188] : memref<1x10x10x128xf32, #tpu.memory_space<vmem>>, vector<1x1x6x128xf32>
    tpu.vector_store %arg51[%c0_185, %c0_186, %c0_187, %c0_188], %422 {strides = array<i32>} : memref<1x10x10x128xf32, #tpu.memory_space<vmem>>, vector<1x1x6x128xf32>,
    %cst_189 = arith.constant 0.000000e+00 : f32
    %424 = vector.broadcast %cst_189 : f32 to vector<1x1x6x128xf32>
    %c0_190 = arith.constant 0 : index
    %c5 = arith.constant 5 : index
    %c0_191 = arith.constant 0 : index
    %c0_192 = arith.constant 0 : index
    %425 = vector.load %arg51[%c0_190, %c5, %c0_191, %c0_192] : memref<1x10x10x128xf32, #tpu.memory_space<vmem>>, vector<1x1x6x128xf32>
    tpu.vector_store %arg51[%c0_190, %c5, %c0_191, %c0_192], %424 {strides = array<i32>} : memref<1x10x10x128xf32, #tpu.memory_space<vmem>>, vector<1x1x6x128xf32>,
    %cst_193 = arith.constant 0.000000e+00 : f32
    %426 = vector.broadcast %cst_193 : f32 to vector<1x4x1x128xf32>
    %c0_194 = arith.constant 0 : index
    %c1_195 = arith.constant 1 : index
    %c0_196 = arith.constant 0 : index
    %c0_197 = arith.constant 0 : index
    %427 = vector.load %arg51[%c0_194, %c1_195, %c0_196, %c0_197] : memref<1x10x10x128xf32, #tpu.memory_space<vmem>>, vector<1x4x1x128xf32>
    tpu.vector_store %arg51[%c0_194, %c1_195, %c0_196, %c0_197], %426 {strides = array<i32>} : memref<1x10x10x128xf32, #tpu.memory_space<vmem>>, vector<1x4x1x128xf32>,
    %cst_198 = arith.constant 0.000000e+00 : f32
    %428 = vector.broadcast %cst_198 : f32 to vector<1x4x1x128xf32>
    %c0_199 = arith.constant 0 : index
    %c1_200 = arith.constant 1 : index
    %c5_201 = arith.constant 5 : index
    %c0_202 = arith.constant 0 : index
    %429 = vector.load %arg51[%c0_199, %c1_200, %c5_201, %c0_202] : memref<1x10x10x128xf32, #tpu.memory_space<vmem>>, vector<1x4x1x128xf32>
    tpu.vector_store %arg51[%c0_199, %c1_200, %c5_201, %c0_202], %428 {strides = array<i32>} : memref<1x10x10x128xf32, #tpu.memory_space<vmem>>, vector<1x4x1x128xf32>,
    %430 = vector.shape_cast %421 : vector<16x128xf32> to vector<1x4x4x128xf32>
    %c0_203 = arith.constant 0 : index
    %c1_204 = arith.constant 1 : index
    %c1_205 = arith.constant 1 : index
    %c0_206 = arith.constant 0 : index
    %431 = vector.load %arg51[%c0_203, %c1_204, %c1_205, %c0_206] : memref<1x10x10x128xf32, #tpu.memory_space<vmem>>, vector<1x4x4x128xf32>
    tpu.vector_store %arg51[%c0_203, %c1_204, %c1_205, %c0_206], %430 {strides = array<i32>} : memref<1x10x10x128xf32, #tpu.memory_space<vmem>>, vector<1x4x4x128xf32>,
    %c0_207 = arith.constant 0 : index
    %c0_208 = arith.constant 0 : index
    %c0_209 = arith.constant 0 : index
    %c0_210 = arith.constant 0 : index
    %432 = vector.load %arg51[%c0_207, %c0_208, %c0_209, %c0_210] : memref<1x10x10x128xf32, #tpu.memory_space<vmem>>, vector<1x6x6x128xf32>
    %cst_211 = arith.constant 0.000000e+00 : f32
    %433 = vector.broadcast %cst_211 : f32 to vector<1x4x4x128xf32>
    %434 = vector.extract_strided_slice %432 {offsets = [0, 0, 0, 0], sizes = [1, 4, 4, 128], strides = [1, 1, 1, 1]} : vector<1x6x6x128xf32> to vector<1x4x4x128xf32>
    %c0_212 = arith.constant 0 : index
    %c0_213 = arith.constant 0 : index
    %c0_214 = arith.constant 0 : index
    %435 = vector.load %arg31[%c0_212, %c0_213, %c0_214] : memref<3x3x128xf32, #tpu.memory_space<vmem>>, vector<1x1x128xf32>
    %436 = vector.shape_cast %435 : vector<1x1x128xf32> to vector<128xf32>
    %437 = vector.shape_cast %436 : vector<128xf32> to vector<1x1x1x128xf32>
    %438 = vector.broadcast %437 : vector<1x1x1x128xf32> to vector<1x4x4x128xf32>
    %439 = arith.mulf %434, %438 : vector<1x4x4x128xf32>
    %440 = arith.addf %433, %439 : vector<1x4x4x128xf32>
    %441 = vector.extract_strided_slice %432 {offsets = [0, 0, 1, 0], sizes = [1, 4, 4, 128], strides = [1, 1, 1, 1]} : vector<1x6x6x128xf32> to vector<1x4x4x128xf32>
    %c0_215 = arith.constant 0 : index
    %c1_216 = arith.constant 1 : index
    %c0_217 = arith.constant 0 : index
    %442 = vector.load %arg31[%c0_215, %c1_216, %c0_217] : memref<3x3x128xf32, #tpu.memory_space<vmem>>, vector<1x1x128xf32>
    %443 = vector.shape_cast %442 : vector<1x1x128xf32> to vector<128xf32>
    %444 = vector.shape_cast %443 : vector<128xf32> to vector<1x1x1x128xf32>
    %445 = vector.broadcast %444 : vector<1x1x1x128xf32> to vector<1x4x4x128xf32>
    %446 = arith.mulf %441, %445 : vector<1x4x4x128xf32>
    %447 = arith.addf %440, %446 : vector<1x4x4x128xf32>
    %448 = vector.extract_strided_slice %432 {offsets = [0, 0, 2, 0], sizes = [1, 4, 4, 128], strides = [1, 1, 1, 1]} : vector<1x6x6x128xf32> to vector<1x4x4x128xf32>
    %c0_218 = arith.constant 0 : index
    %c2_219 = arith.constant 2 : index
    %c0_220 = arith.constant 0 : index
    %449 = vector.load %arg31[%c0_218, %c2_219, %c0_220] : memref<3x3x128xf32, #tpu.memory_space<vmem>>, vector<1x1x128xf32>
    %450 = vector.shape_cast %449 : vector<1x1x128xf32> to vector<128xf32>
    %451 = vector.shape_cast %450 : vector<128xf32> to vector<1x1x1x128xf32>
    %452 = vector.broadcast %451 : vector<1x1x1x128xf32> to vector<1x4x4x128xf32>
    %453 = arith.mulf %448, %452 : vector<1x4x4x128xf32>
    %454 = arith.addf %447, %453 : vector<1x4x4x128xf32>
    %455 = vector.extract_strided_slice %432 {offsets = [0, 1, 0, 0], sizes = [1, 4, 4, 128], strides = [1, 1, 1, 1]} : vector<1x6x6x128xf32> to vector<1x4x4x128xf32>
    %c1_221 = arith.constant 1 : index
    %c0_222 = arith.constant 0 : index
    %c0_223 = arith.constant 0 : index
    %456 = vector.load %arg31[%c1_221, %c0_222, %c0_223] : memref<3x3x128xf32, #tpu.memory_space<vmem>>, vector<1x1x128xf32>
    %457 = vector.shape_cast %456 : vector<1x1x128xf32> to vector<128xf32>
    %458 = vector.shape_cast %457 : vector<128xf32> to vector<1x1x1x128xf32>
    %459 = vector.broadcast %458 : vector<1x1x1x128xf32> to vector<1x4x4x128xf32>
    %460 = arith.mulf %455, %459 : vector<1x4x4x128xf32>
    %461 = arith.addf %454, %460 : vector<1x4x4x128xf32>
    %462 = vector.extract_strided_slice %432 {offsets = [0, 1, 1, 0], sizes = [1, 4, 4, 128], strides = [1, 1, 1, 1]} : vector<1x6x6x128xf32> to vector<1x4x4x128xf32>
    %c1_224 = arith.constant 1 : index
    %c1_225 = arith.constant 1 : index
    %c0_226 = arith.constant 0 : index
    %463 = vector.load %arg31[%c1_224, %c1_225, %c0_226] : memref<3x3x128xf32, #tpu.memory_space<vmem>>, vector<1x1x128xf32>
    %464 = vector.shape_cast %463 : vector<1x1x128xf32> to vector<128xf32>
    %465 = vector.shape_cast %464 : vector<128xf32> to vector<1x1x1x128xf32>
    %466 = vector.broadcast %465 : vector<1x1x1x128xf32> to vector<1x4x4x128xf32>
    %467 = arith.mulf %462, %466 : vector<1x4x4x128xf32>
    %468 = arith.addf %461, %467 : vector<1x4x4x128xf32>
    %469 = vector.extract_strided_slice %432 {offsets = [0, 1, 2, 0], sizes = [1, 4, 4, 128], strides = [1, 1, 1, 1]} : vector<1x6x6x128xf32> to vector<1x4x4x128xf32>
    %c1_227 = arith.constant 1 : index
    %c2_228 = arith.constant 2 : index
    %c0_229 = arith.constant 0 : index
    %470 = vector.load %arg31[%c1_227, %c2_228, %c0_229] : memref<3x3x128xf32, #tpu.memory_space<vmem>>, vector<1x1x128xf32>
    %471 = vector.shape_cast %470 : vector<1x1x128xf32> to vector<128xf32>
    %472 = vector.shape_cast %471 : vector<128xf32> to vector<1x1x1x128xf32>
    %473 = vector.broadcast %472 : vector<1x1x1x128xf32> to vector<1x4x4x128xf32>
    %474 = arith.mulf %469, %473 : vector<1x4x4x128xf32>
    %475 = arith.addf %468, %474 : vector<1x4x4x128xf32>
    %476 = vector.extract_strided_slice %432 {offsets = [0, 2, 0, 0], sizes = [1, 4, 4, 128], strides = [1, 1, 1, 1]} : vector<1x6x6x128xf32> to vector<1x4x4x128xf32>
    %c2_230 = arith.constant 2 : index
    %c0_231 = arith.constant 0 : index
    %c0_232 = arith.constant 0 : index
    %477 = vector.load %arg31[%c2_230, %c0_231, %c0_232] : memref<3x3x128xf32, #tpu.memory_space<vmem>>, vector<1x1x128xf32>
    %478 = vector.shape_cast %477 : vector<1x1x128xf32> to vector<128xf32>
    %479 = vector.shape_cast %478 : vector<128xf32> to vector<1x1x1x128xf32>
    %480 = vector.broadcast %479 : vector<1x1x1x128xf32> to vector<1x4x4x128xf32>
    %481 = arith.mulf %476, %480 : vector<1x4x4x128xf32>
    %482 = arith.addf %475, %481 : vector<1x4x4x128xf32>
    %483 = vector.extract_strided_slice %432 {offsets = [0, 2, 1, 0], sizes = [1, 4, 4, 128], strides = [1, 1, 1, 1]} : vector<1x6x6x128xf32> to vector<1x4x4x128xf32>
    %c2_233 = arith.constant 2 : index
    %c1_234 = arith.constant 1 : index
    %c0_235 = arith.constant 0 : index
    %484 = vector.load %arg31[%c2_233, %c1_234, %c0_235] : memref<3x3x128xf32, #tpu.memory_space<vmem>>, vector<1x1x128xf32>
    %485 = vector.shape_cast %484 : vector<1x1x128xf32> to vector<128xf32>
    %486 = vector.shape_cast %485 : vector<128xf32> to vector<1x1x1x128xf32>
    %487 = vector.broadcast %486 : vector<1x1x1x128xf32> to vector<1x4x4x128xf32>
    %488 = arith.mulf %483, %487 : vector<1x4x4x128xf32>
    %489 = arith.addf %482, %488 : vector<1x4x4x128xf32>
    %490 = vector.extract_strided_slice %432 {offsets = [0, 2, 2, 0], sizes = [1, 4, 4, 128], strides = [1, 1, 1, 1]} : vector<1x6x6x128xf32> to vector<1x4x4x128xf32>
    %c2_236 = arith.constant 2 : index
    %c2_237 = arith.constant 2 : index
    %c0_238 = arith.constant 0 : index
    %491 = vector.load %arg31[%c2_236, %c2_237, %c0_238] : memref<3x3x128xf32, #tpu.memory_space<vmem>>, vector<1x1x128xf32>
    %492 = vector.shape_cast %491 : vector<1x1x128xf32> to vector<128xf32>
    %493 = vector.shape_cast %492 : vector<128xf32> to vector<1x1x1x128xf32>
    %494 = vector.broadcast %493 : vector<1x1x1x128xf32> to vector<1x4x4x128xf32>
    %495 = arith.mulf %490, %494 : vector<1x4x4x128xf32>
    %496 = arith.addf %489, %495 : vector<1x4x4x128xf32>
    %497 = vector.shape_cast %496 : vector<1x4x4x128xf32> to vector<16x128xf32>
    %c0_239 = arith.constant 0 : index
    %c0_240 = arith.constant 0 : index
    %498 = vector.load %arg32[%c0_239, %c0_240] : memref<1x128xf32, #tpu.memory_space<vmem>>, vector<1x128xf32>
    %499 = vector.broadcast %498 : vector<1x128xf32> to vector<16x128xf32>
    %500 = arith.mulf %497, %499 : vector<16x128xf32>
    %c0_241 = arith.constant 0 : index
    %c0_242 = arith.constant 0 : index
    %501 = vector.load %arg33[%c0_241, %c0_242] : memref<1x128xf32, #tpu.memory_space<vmem>>, vector<1x128xf32>
    %502 = vector.broadcast %501 : vector<1x128xf32> to vector<16x128xf32>
    %503 = arith.addf %500, %502 : vector<16x128xf32>
    %504 = arith.negf %503 : vector<16x128xf32>
    %505 = math.exp %504 : vector<16x128xf32>
    %cst_243 = arith.constant 1.000000e+00 : f32
    %506 = vector.broadcast %cst_243 : f32 to vector<16x128xf32>
    %507 = arith.addf %506, %505 : vector<16x128xf32>
    %508 = arith.divf %506, %507 : vector<16x128xf32>
    %509 = arith.mulf %503, %508 : vector<16x128xf32>
    %cst_244 = arith.constant dense<0.000000e+00> : vector<128xf32>
    %510 = vector.multi_reduction <add>, %509, %cst_244 [0] : vector<16x128xf32> to vector<128xf32>
    %511 = vector.shape_cast %510 : vector<128xf32> to vector<1x128xf32>
    %cst_245 = arith.constant 1.600000e+01 : f32
    %512 = vector.broadcast %cst_245 : f32 to vector<1x128xf32>
    %513 = arith.divf %511, %512 : vector<1x128xf32>
    %514 = arith.truncf %513 : vector<1x128xf32> to vector<1x128xbf16>
    %c0_246 = arith.constant 0 : index
    %c0_247 = arith.constant 0 : index
    %515 = vector.load %arg34[%c0_246, %c0_247] : memref<128x128xbf16, #tpu.memory_space<vmem>>, vector<128x128xbf16>
    %cst_248 = arith.constant dense<0.000000e+00> : vector<1x128xf32>
    %516 = tpu.matmul %514, %515, %cst_248 {dimension_numbers = #tpu.dot_dimension_numbers<[1], [0], [0], [1], [0, 0, 1, 1], [], []>} : vector<1x128xbf16>, vector<128x128xbf16>, vector<1x128xf32> -> vector<1x128xf32>
    %c0_249 = arith.constant 0 : index
    %c0_250 = arith.constant 0 : index
    %517 = vector.load %arg35[%c0_249, %c0_250] : memref<1x128xf32, #tpu.memory_space<vmem>>, vector<1x128xf32>
    %518 = arith.addf %516, %517 : vector<1x128xf32>
    %519 = arith.negf %518 : vector<1x128xf32>
    %520 = math.exp %519 : vector<1x128xf32>
    %cst_251 = arith.constant 1.000000e+00 : f32
    %521 = vector.broadcast %cst_251 : f32 to vector<1x128xf32>
    %522 = arith.addf %521, %520 : vector<1x128xf32>
    %523 = arith.divf %521, %522 : vector<1x128xf32>
    %524 = arith.mulf %518, %523 : vector<1x128xf32>
    %525 = arith.truncf %524 : vector<1x128xf32> to vector<1x128xbf16>
    %c0_252 = arith.constant 0 : index
    %c0_253 = arith.constant 0 : index
    %526 = vector.load %arg36[%c0_252, %c0_253] : memref<128x128xbf16, #tpu.memory_space<vmem>>, vector<128x128xbf16>
    %cst_254 = arith.constant dense<0.000000e+00> : vector<1x128xf32>
    %527 = tpu.matmul %525, %526, %cst_254 {dimension_numbers = #tpu.dot_dimension_numbers<[1], [0], [0], [1], [0, 0, 1, 1], [], []>} : vector<1x128xbf16>, vector<128x128xbf16>, vector<1x128xf32> -> vector<1x128xf32>
    %c0_255 = arith.constant 0 : index
    %c0_256 = arith.constant 0 : index
    %528 = vector.load %arg37[%c0_255, %c0_256] : memref<1x128xf32, #tpu.memory_space<vmem>>, vector<1x128xf32>
    %529 = arith.addf %527, %528 : vector<1x128xf32>
    %530 = arith.negf %529 : vector<1x128xf32>
    %531 = math.exp %530 : vector<1x128xf32>
    %cst_257 = arith.constant 1.000000e+00 : f32
    %532 = vector.broadcast %cst_257 : f32 to vector<1x128xf32>
    %533 = arith.addf %532, %531 : vector<1x128xf32>
    %534 = arith.divf %532, %533 : vector<1x128xf32>
    %535 = vector.broadcast %534 : vector<1x128xf32> to vector<16x128xf32>
    %536 = arith.mulf %509, %535 : vector<16x128xf32>
    %537 = arith.truncf %536 : vector<16x128xf32> to vector<16x128xbf16>
    %c0_258 = arith.constant 0 : index
    %c0_259 = arith.constant 0 : index
    %538 = vector.load %arg38[%c0_258, %c0_259] : memref<128x128xbf16, #tpu.memory_space<vmem>>, vector<128x128xbf16>
    %cst_260 = arith.constant dense<0.000000e+00> : vector<16x128xf32>
    %539 = tpu.matmul %537, %538, %cst_260 {dimension_numbers = #tpu.dot_dimension_numbers<[1], [0], [0], [1], [0, 0, 1, 1], [], []>} : vector<16x128xbf16>, vector<128x128xbf16>, vector<16x128xf32> -> vector<16x128xf32>
    %c0_261 = arith.constant 0 : index
    %c0_262 = arith.constant 0 : index
    %540 = vector.load %arg39[%c0_261, %c0_262] : memref<1x128xf32, #tpu.memory_space<vmem>>, vector<1x128xf32>
    %541 = vector.broadcast %540 : vector<1x128xf32> to vector<16x128xf32>
    %542 = arith.mulf %539, %541 : vector<16x128xf32>
    %c0_263 = arith.constant 0 : index
    %c0_264 = arith.constant 0 : index
    %543 = vector.load %arg40[%c0_263, %c0_264] : memref<1x128xf32, #tpu.memory_space<vmem>>, vector<1x128xf32>
    %544 = vector.broadcast %543 : vector<1x128xf32> to vector<16x128xf32>
    %545 = arith.addf %542, %544 : vector<16x128xf32>
    %546 = arith.addf %545, %406 : vector<16x128xf32>
    %547 = vector.shape_cast %546 : vector<16x128xf32> to vector<1x4x4x128xf32>
    %c0_265 = arith.constant 0 : index
    %c0_266 = arith.constant 0 : index
    %c0_267 = arith.constant 0 : index
    %c0_268 = arith.constant 0 : index
    %548 = vector.load %arg48[%c0_265, %c0_266, %c0_267, %c0_268] : memref<1x4x4x128xf32, #tpu.memory_space<vmem>>, vector<1x4x4x128xf32>
    tpu.vector_store %arg48[%c0_265, %c0_266, %c0_267, %c0_268], %547 {strides = array<i32>} : memref<1x4x4x128xf32, #tpu.memory_space<vmem>>, vector<1x4x4x128xf32>,
    %549 = arith.truncf %546 : vector<16x128xf32> to vector<16x128xbf16>
    %c0_269 = arith.constant 0 : index
    %c0_270 = arith.constant 0 : index
    %550 = vector.load %arg41[%c0_269, %c0_270] : memref<128x128xbf16, #tpu.memory_space<vmem>>, vector<128x128xbf16>
    %cst_271 = arith.constant dense<0.000000e+00> : vector<16x128xf32>
    %551 = tpu.matmul %549, %550, %cst_271 {dimension_numbers = #tpu.dot_dimension_numbers<[1], [0], [0], [1], [0, 0, 1, 1], [], []>} : vector<16x128xbf16>, vector<128x128xbf16>, vector<16x128xf32> -> vector<16x128xf32>
    %c0_272 = arith.constant 0 : index
    %c0_273 = arith.constant 0 : index
    %552 = vector.load %arg42[%c0_272, %c0_273] : memref<1x128xf32, #tpu.memory_space<vmem>>, vector<1x128xf32>
    %553 = vector.broadcast %552 : vector<1x128xf32> to vector<16x128xf32>
    %554 = arith.mulf %551, %553 : vector<16x128xf32>
    %c0_274 = arith.constant 0 : index
    %c0_275 = arith.constant 0 : index
    %555 = vector.load %arg43[%c0_274, %c0_275] : memref<1x128xf32, #tpu.memory_space<vmem>>, vector<1x128xf32>
    %556 = vector.broadcast %555 : vector<1x128xf32> to vector<16x128xf32>
    %557 = arith.addf %554, %556 : vector<16x128xf32>
    %558 = arith.negf %557 : vector<16x128xf32>
    %559 = math.exp %558 : vector<16x128xf32>
    %cst_276 = arith.constant 1.000000e+00 : f32
    %560 = vector.broadcast %cst_276 : f32 to vector<16x128xf32>
    %561 = arith.addf %560, %559 : vector<16x128xf32>
    %562 = arith.divf %560, %561 : vector<16x128xf32>
    %563 = arith.mulf %557, %562 : vector<16x128xf32>
    %564 = vector.shape_cast %563 : vector<16x128xf32> to vector<1x4x4x128xf32>
    %c0_277 = arith.constant 0 : index
    %c0_278 = arith.constant 0 : index
    %c0_279 = arith.constant 0 : index
    %c0_280 = arith.constant 0 : index
    %565 = vector.load %arg49[%c0_277, %c0_278, %c0_279, %c0_280] : memref<1x4x4x128xf32, #tpu.memory_space<vmem>>, vector<1x4x4x128xf32>
    tpu.vector_store %arg49[%c0_277, %c0_278, %c0_279, %c0_280], %564 {strides = array<i32>} : memref<1x4x4x128xf32, #tpu.memory_space<vmem>>, vector<1x4x4x128xf32>,
    %cst_281 = arith.constant dense<0.000000e+00> : vector<128xf32>
    %566 = vector.multi_reduction <add>, %563, %cst_281 [0] : vector<16x128xf32> to vector<128xf32>
    %567 = vector.shape_cast %566 : vector<128xf32> to vector<1x128xf32>
    %cst_282 = arith.constant 1.600000e+01 : f32
    %568 = vector.broadcast %cst_282 : f32 to vector<1x128xf32>
    %569 = arith.divf %567, %568 : vector<1x128xf32>
    %570 = arith.truncf %569 : vector<1x128xf32> to vector<1x128xbf16>
    %c0_283 = arith.constant 0 : index
    %c0_284 = arith.constant 0 : index
    %571 = vector.load %arg44[%c0_283, %c0_284] : memref<128x128xbf16, #tpu.memory_space<vmem>>, vector<128x128xbf16>
    %cst_285 = arith.constant dense<0.000000e+00> : vector<1x128xf32>
    %572 = tpu.matmul %570, %571, %cst_285 {dimension_numbers = #tpu.dot_dimension_numbers<[1], [0], [0], [1], [0, 0, 1, 1], [], []>} : vector<1x128xbf16>, vector<128x128xbf16>, vector<1x128xf32> -> vector<1x128xf32>
    %c0_286 = arith.constant 0 : index
    %c0_287 = arith.constant 0 : index
    %573 = vector.load %arg45[%c0_286, %c0_287] : memref<1x128xf32, #tpu.memory_space<vmem>>, vector<1x128xf32>
    %574 = arith.addf %572, %573 : vector<1x128xf32>
    %575 = vector.shape_cast %574 : vector<1x128xf32> to vector<1x1x128xf32>
    %c0_288 = arith.constant 0 : index
    %c0_289 = arith.constant 0 : index
    %c0_290 = arith.constant 0 : index
    %576 = vector.load %arg50[%c0_288, %c0_289, %c0_290] : memref<1x1x128xf32, #tpu.memory_space<vmem>>, vector<1x1x128xf32>
    tpu.vector_store %arg50[%c0_288, %c0_289, %c0_290], %575 {strides = array<i32>} : memref<1x1x128xf32, #tpu.memory_space<vmem>>, vector<1x1x128xf32>,
    return
  }
  func.func @transform_0(%arg0: i32) -> (i32, i32, i32, i32) {
    %c0_i32 = arith.constant 0 : i32
    %c0_i32_0 = arith.constant 0 : i32
    %c0_i32_1 = arith.constant 0 : i32
    %c0_i32_2 = arith.constant 0 : i32
    return %arg0, %c0_i32, %c0_i32_0, %c0_i32_1 : i32, i32, i32, i32
  }
  func.func @transform_1(%arg0: i32) -> (i32, i32) {
    %c0_i32 = arith.constant 0 : i32
    %c0_i32_0 = arith.constant 0 : i32
    %c0_i32_1 = arith.constant 0 : i32
    return %c0_i32, %c0_i32_0 : i32, i32
  }
  func.func @transform_2(%arg0: i32) -> (i32, i32) {
    %c0_i32 = arith.constant 0 : i32
    %c0_i32_0 = arith.constant 0 : i32
    %c0_i32_1 = arith.constant 0 : i32
    return %c0_i32, %c0_i32_0 : i32, i32
  }
  func.func @transform_3(%arg0: i32) -> (i32, i32) {
    %c0_i32 = arith.constant 0 : i32
    %c0_i32_0 = arith.constant 0 : i32
    %c0_i32_1 = arith.constant 0 : i32
    return %c0_i32, %c0_i32_0 : i32, i32
  }
  func.func @transform_4(%arg0: i32) -> (i32, i32, i32) {
    %c0_i32 = arith.constant 0 : i32
    %c0_i32_0 = arith.constant 0 : i32
    %c0_i32_1 = arith.constant 0 : i32
    %c0_i32_2 = arith.constant 0 : i32
    return %c0_i32, %c0_i32_0, %c0_i32_1 : i32, i32, i32
  }
  func.func @transform_5(%arg0: i32) -> (i32, i32) {
    %c0_i32 = arith.constant 0 : i32
    %c0_i32_0 = arith.constant 0 : i32
    %c0_i32_1 = arith.constant 0 : i32
    return %c0_i32, %c0_i32_0 : i32, i32
  }
  func.func @transform_6(%arg0: i32) -> (i32, i32) {
    %c0_i32 = arith.constant 0 : i32
    %c0_i32_0 = arith.constant 0 : i32
    %c0_i32_1 = arith.constant 0 : i32
    return %c0_i32, %c0_i32_0 : i32, i32
  }
  func.func @transform_7(%arg0: i32) -> (i32, i32) {
    %c0_i32 = arith.constant 0 : i32
    %c0_i32_0 = arith.constant 0 : i32
    %c0_i32_1 = arith.constant 0 : i32
    return %c0_i32, %c0_i32_0 : i32, i32
  }
  func.func @transform_8(%arg0: i32) -> (i32, i32) {
    %c0_i32 = arith.constant 0 : i32
    %c0_i32_0 = arith.constant 0 : i32
    %c0_i32_1 = arith.constant 0 : i32
    return %c0_i32, %c0_i32_0 : i32, i32
  }
  func.func @transform_9(%arg0: i32) -> (i32, i32) {
    %c0_i32 = arith.constant 0 : i32
    %c0_i32_0 = arith.constant 0 : i32
    %c0_i32_1 = arith.constant 0 : i32
    return %c0_i32, %c0_i32_0 : i32, i32
  }
  func.func @transform_10(%arg0: i32) -> (i32, i32) {
    %c0_i32 = arith.constant 0 : i32
    %c0_i32_0 = arith.constant 0 : i32
    %c0_i32_1 = arith.constant 0 : i32
    return %c0_i32, %c0_i32_0 : i32, i32
  }
  func.func @transform_11(%arg0: i32) -> (i32, i32) {
    %c0_i32 = arith.constant 0 : i32
    %c0_i32_0 = arith.constant 0 : i32
    %c0_i32_1 = arith.constant 0 : i32
    return %c0_i32, %c0_i32_0 : i32, i32
  }
  func.func @transform_12(%arg0: i32) -> (i32, i32) {
    %c0_i32 = arith.constant 0 : i32
    %c0_i32_0 = arith.constant 0 : i32
    %c0_i32_1 = arith.constant 0 : i32
    return %c0_i32, %c0_i32_0 : i32, i32
  }
  func.func @transform_13(%arg0: i32) -> (i32, i32) {
    %c0_i32 = arith.constant 0 : i32
    %c0_i32_0 = arith.constant 0 : i32
    %c0_i32_1 = arith.constant 0 : i32
    return %c0_i32, %c0_i32_0 : i32, i32
  }
  func.func @transform_14(%arg0: i32) -> (i32, i32) {
    %c0_i32 = arith.constant 0 : i32
    %c0_i32_0 = arith.constant 0 : i32
    %c0_i32_1 = arith.constant 0 : i32
    return %c0_i32, %c0_i32_0 : i32, i32
  }
  func.func @transform_15(%arg0: i32) -> (i32, i32) {
    %c0_i32 = arith.constant 0 : i32
    %c0_i32_0 = arith.constant 0 : i32
    %c0_i32_1 = arith.constant 0 : i32
    return %c0_i32, %c0_i32_0 : i32, i32
  }
  func.func @transform_16(%arg0: i32) -> (i32, i32) {
    %c0_i32 = arith.constant 0 : i32
    %c0_i32_0 = arith.constant 0 : i32
    %c0_i32_1 = arith.constant 0 : i32
    return %c0_i32, %c0_i32_0 : i32, i32
  }
  func.func @transform_17(%arg0: i32) -> (i32, i32, i32) {
    %c0_i32 = arith.constant 0 : i32
    %c0_i32_0 = arith.constant 0 : i32
    %c0_i32_1 = arith.constant 0 : i32
    %c0_i32_2 = arith.constant 0 : i32
    return %c0_i32, %c0_i32_0, %c0_i32_1 : i32, i32, i32
  }
  func.func @transform_18(%arg0: i32) -> (i32, i32) {
    %c0_i32 = arith.constant 0 : i32
    %c0_i32_0 = arith.constant 0 : i32
    %c0_i32_1 = arith.constant 0 : i32
    return %c0_i32, %c0_i32_0 : i32, i32
  }
  func.func @transform_19(%arg0: i32) -> (i32, i32) {
    %c0_i32 = arith.constant 0 : i32
    %c0_i32_0 = arith.constant 0 : i32
    %c0_i32_1 = arith.constant 0 : i32
    return %c0_i32, %c0_i32_0 : i32, i32
  }
  func.func @transform_20(%arg0: i32) -> (i32, i32) {
    %c0_i32 = arith.constant 0 : i32
    %c0_i32_0 = arith.constant 0 : i32
    %c0_i32_1 = arith.constant 0 : i32
    return %c0_i32, %c0_i32_0 : i32, i32
  }
  func.func @transform_21(%arg0: i32) -> (i32, i32) {
    %c0_i32 = arith.constant 0 : i32
    %c0_i32_0 = arith.constant 0 : i32
    %c0_i32_1 = arith.constant 0 : i32
    return %c0_i32, %c0_i32_0 : i32, i32
  }
  func.func @transform_22(%arg0: i32) -> (i32, i32) {
    %c0_i32 = arith.constant 0 : i32
    %c0_i32_0 = arith.constant 0 : i32
    %c0_i32_1 = arith.constant 0 : i32
    return %c0_i32, %c0_i32_0 : i32, i32
  }
  func.func @transform_23(%arg0: i32) -> (i32, i32) {
    %c0_i32 = arith.constant 0 : i32
    %c0_i32_0 = arith.constant 0 : i32
    %c0_i32_1 = arith.constant 0 : i32
    return %c0_i32, %c0_i32_0 : i32, i32
  }
  func.func @transform_24(%arg0: i32) -> (i32, i32) {
    %c0_i32 = arith.constant 0 : i32
    %c0_i32_0 = arith.constant 0 : i32
    %c0_i32_1 = arith.constant 0 : i32
    return %c0_i32, %c0_i32_0 : i32, i32
  }
  func.func @transform_25(%arg0: i32) -> (i32, i32) {
    %c0_i32 = arith.constant 0 : i32
    %c0_i32_0 = arith.constant 0 : i32
    %c0_i32_1 = arith.constant 0 : i32
    return %c0_i32, %c0_i32_0 : i32, i32
  }
  func.func @transform_26(%arg0: i32) -> (i32, i32) {
    %c0_i32 = arith.constant 0 : i32
    %c0_i32_0 = arith.constant 0 : i32
    %c0_i32_1 = arith.constant 0 : i32
    return %c0_i32, %c0_i32_0 : i32, i32
  }
  func.func @transform_27(%arg0: i32) -> (i32, i32) {
    %c0_i32 = arith.constant 0 : i32
    %c0_i32_0 = arith.constant 0 : i32
    %c0_i32_1 = arith.constant 0 : i32
    return %c0_i32, %c0_i32_0 : i32, i32
  }
  func.func @transform_28(%arg0: i32) -> (i32, i32) {
    %c0_i32 = arith.constant 0 : i32
    %c0_i32_0 = arith.constant 0 : i32
    %c0_i32_1 = arith.constant 0 : i32
    return %c0_i32, %c0_i32_0 : i32, i32
  }
  func.func @transform_29(%arg0: i32) -> (i32, i32) {
    %c0_i32 = arith.constant 0 : i32
    %c0_i32_0 = arith.constant 0 : i32
    %c0_i32_1 = arith.constant 0 : i32
    return %c0_i32, %c0_i32_0 : i32, i32
  }
  func.func @transform_30(%arg0: i32) -> (i32, i32, i32) {
    %c0_i32 = arith.constant 0 : i32
    %c0_i32_0 = arith.constant 0 : i32
    %c0_i32_1 = arith.constant 0 : i32
    %c0_i32_2 = arith.constant 0 : i32
    return %c0_i32, %c0_i32_0, %c0_i32_1 : i32, i32, i32
  }
  func.func @transform_31(%arg0: i32) -> (i32, i32) {
    %c0_i32 = arith.constant 0 : i32
    %c0_i32_0 = arith.constant 0 : i32
    %c0_i32_1 = arith.constant 0 : i32
    return %c0_i32, %c0_i32_0 : i32, i32
  }
  func.func @transform_32(%arg0: i32) -> (i32, i32) {
    %c0_i32 = arith.constant 0 : i32
    %c0_i32_0 = arith.constant 0 : i32
    %c0_i32_1 = arith.constant 0 : i32
    return %c0_i32, %c0_i32_0 : i32, i32
  }
  func.func @transform_33(%arg0: i32) -> (i32, i32) {
    %c0_i32 = arith.constant 0 : i32
    %c0_i32_0 = arith.constant 0 : i32
    %c0_i32_1 = arith.constant 0 : i32
    return %c0_i32, %c0_i32_0 : i32, i32
  }
  func.func @transform_34(%arg0: i32) -> (i32, i32) {
    %c0_i32 = arith.constant 0 : i32
    %c0_i32_0 = arith.constant 0 : i32
    %c0_i32_1 = arith.constant 0 : i32
    return %c0_i32, %c0_i32_0 : i32, i32
  }
  func.func @transform_35(%arg0: i32) -> (i32, i32) {
    %c0_i32 = arith.constant 0 : i32
    %c0_i32_0 = arith.constant 0 : i32
    %c0_i32_1 = arith.constant 0 : i32
    return %c0_i32, %c0_i32_0 : i32, i32
  }
  func.func @transform_36(%arg0: i32) -> (i32, i32) {
    %c0_i32 = arith.constant 0 : i32
    %c0_i32_0 = arith.constant 0 : i32
    %c0_i32_1 = arith.constant 0 : i32
    return %c0_i32, %c0_i32_0 : i32, i32
  }
  func.func @transform_37(%arg0: i32) -> (i32, i32) {
    %c0_i32 = arith.constant 0 : i32
    %c0_i32_0 = arith.constant 0 : i32
    %c0_i32_1 = arith.constant 0 : i32
    return %c0_i32, %c0_i32_0 : i32, i32
  }
  func.func @transform_38(%arg0: i32) -> (i32, i32) {
    %c0_i32 = arith.constant 0 : i32
    %c0_i32_0 = arith.constant 0 : i32
    %c0_i32_1 = arith.constant 0 : i32
    return %c0_i32, %c0_i32_0 : i32, i32
  }
  func.func @transform_39(%arg0: i32) -> (i32, i32) {
    %c0_i32 = arith.constant 0 : i32
    %c0_i32_0 = arith.constant 0 : i32
    %c0_i32_1 = arith.constant 0 : i32
    return %c0_i32, %c0_i32_0 : i32, i32
  }
  func.func @transform_40(%arg0: i32) -> (i32, i32) {
    %c0_i32 = arith.constant 0 : i32
    %c0_i32_0 = arith.constant 0 : i32
    %c0_i32_1 = arith.constant 0 : i32
    return %c0_i32, %c0_i32_0 : i32, i32
  }
  func.func @transform_41(%arg0: i32) -> (i32, i32) {
    %c0_i32 = arith.constant 0 : i32
    %c0_i32_0 = arith.constant 0 : i32
    %c0_i32_1 = arith.constant 0 : i32
    return %c0_i32, %c0_i32_0 : i32, i32
  }
  func.func @transform_42(%arg0: i32) -> (i32, i32) {
    %c0_i32 = arith.constant 0 : i32
    %c0_i32_0 = arith.constant 0 : i32
    %c0_i32_1 = arith.constant 0 : i32
    return %c0_i32, %c0_i32_0 : i32, i32
  }
  func.func @transform_43(%arg0: i32) -> (i32, i32) {
    %c0_i32 = arith.constant 0 : i32
    %c0_i32_0 = arith.constant 0 : i32
    %c0_i32_1 = arith.constant 0 : i32
    return %c0_i32, %c0_i32_0 : i32, i32
  }
  func.func @transform_44(%arg0: i32) -> (i32, i32) {
    %c0_i32 = arith.constant 0 : i32
    %c0_i32_0 = arith.constant 0 : i32
    %c0_i32_1 = arith.constant 0 : i32
    return %c0_i32, %c0_i32_0 : i32, i32
  }
  func.func @transform_45(%arg0: i32) -> (i32, i32, i32, i32) {
    %c0_i32 = arith.constant 0 : i32
    %c0_i32_0 = arith.constant 0 : i32
    %c0_i32_1 = arith.constant 0 : i32
    %c0_i32_2 = arith.constant 0 : i32
    return %arg0, %c0_i32, %c0_i32_0, %c0_i32_1 : i32, i32, i32, i32
  }
  func.func @transform_46(%arg0: i32) -> (i32, i32, i32, i32) {
    %c0_i32 = arith.constant 0 : i32
    %c0_i32_0 = arith.constant 0 : i32
    %c0_i32_1 = arith.constant 0 : i32
    %c0_i32_2 = arith.constant 0 : i32
    return %arg0, %c0_i32, %c0_i32_0, %c0_i32_1 : i32, i32, i32, i32
  }
  func.func @transform_47(%arg0: i32) -> (i32, i32, i32, i32) {
    %c0_i32 = arith.constant 0 : i32
    %c0_i32_0 = arith.constant 0 : i32
    %c0_i32_1 = arith.constant 0 : i32
    %c0_i32_2 = arith.constant 0 : i32
    return %arg0, %c0_i32, %c0_i32_0, %c0_i32_1 : i32, i32, i32, i32
  }
  func.func @transform_48(%arg0: i32) -> (i32, i32, i32, i32) {
    %c0_i32 = arith.constant 0 : i32
    %c0_i32_0 = arith.constant 0 : i32
    %c0_i32_1 = arith.constant 0 : i32
    %c0_i32_2 = arith.constant 0 : i32
    return %arg0, %c0_i32, %c0_i32_0, %c0_i32_1 : i32, i32, i32, i32
  }
  func.func @transform_49(%arg0: i32) -> (i32, i32, i32) {
    %c0_i32 = arith.constant 0 : i32
    %c0_i32_0 = arith.constant 0 : i32
    %c0_i32_1 = arith.constant 0 : i32
    return %arg0, %c0_i32, %c0_i32_0 : i32, i32, i32
  }
}

</mosaic_0001>

<bundles_post_ra>
// kernel: _lambda_.1
= control target key start
LH: loop header
LB: loop body
LE: loop exit
PB: predicated region body
PF: predicated region fallthrough
CT: control target
= control target key end

     0   :  { %s10394_s6 = smov 1   ;;  %s10395_s10 = smov 2   ;;  %s15811_s0 = inlined_call_operand.smem [shape: u32[50], index: -1, kind: input, shape index: {}] }
   0x1   :  { %s10458_s5 = sld [smem:[%s15811_s0]]   ;;  %s10396_s14 = smov 3  }
   0x2   :  { %s10463_s9 = sld [smem:[%s15811_s0 + %s10394_s6]]   ;;  %s10397_s18 = smov 4  }
   0x3   :  { %s10468_s13 = sld [smem:[%s15811_s0 + %s10395_s10]]   ;;  %s10398_s22 = smov 5  }
   0x4   :  { %s10473_s17 = sld [smem:[%s15811_s0 + %s10396_s14]]   ;;  %s10399_s26 = smov 6  }
   0x5   :  { %s10478_s21 = sld [smem:[%s15811_s0 + %s10397_s18]]   ;;  %s10400_s30 = smov 7  }
   0x6   :  { %s10483_s25 = sld [smem:[%s15811_s0 + %s10398_s22]]   ;;  %s10401_s4 = smov 8  }
   0x7   :  { %16025 = sst [smem:[#allocation16_spill]] %s10458_s5  ;;  %s10402_s10 = smov 9  }
   0x8   :  { %16026 = sst [smem:[#allocation17_spill]] %s10463_s9  ;;  %s10403_s15 = smov 10  }
   0x9   :  { %s10488_s29 = sld [smem:[%s15811_s0 + %s10399_s26]]   ;;  %s10404_s20 = smov 11  }
   0xa   :  { %s10493_s3 = sld [smem:[%s15811_s0 + %s10400_s30]]   ;;  %s10405_s26 = smov 12  }
   0xb   :  { %s10498_s8 = sld [smem:[%s15811_s0 + %s10401_s4]]   ;;  %s10406_s1 = smov 13  }
   0xc   :  { %s10503_s14 = sld [smem:[%s15811_s0 + %s10402_s10]]   ;;  %s10407_s7 = smov 14  }
   0xd   :  { %s10508_s19 = sld [smem:[%s15811_s0 + %s10403_s15]]   ;;  %s10408_s15 = smov 15  }
   0xe   :  { %s10513_s24 = sld [smem:[%s15811_s0 + %s10404_s20]]   ;;  %s10409_s22 = smov 16  }
   0xf   :  { %s10518_s30 = sld [smem:[%s15811_s0 + %s10405_s26]]   ;;  %s10410_s28 = smov 17  }
  0x10   :  { %16027 = sst [smem:[#allocation18_spill]] %s10493_s3 }
  0x11   :  { %16028 = sst [smem:[#allocation19_spill]] %s10498_s8 }
  0x12   :  { %s10523_s6 = sld [smem:[%s15811_s0 + %s10406_s1]]  }
  0x13   :  { %16029 = sst [smem:[#allocation20_spill]] %s10508_s19 }
  0x14   :  { %16030 = sst [smem:[#allocation21_spill]] %s10513_s24 }
  0x15   :  { %16031 = sst [smem:[#allocation22_spill]] %s10518_s30 }
  0x16   :  { %s10528_s12 = sld [smem:[%s15811_s0 + %s10407_s7]]   ;;  %s10411_s7 = smov 18  }
  0x17   :  { %s10533_s20 = sld [smem:[%s15811_s0 + %s10408_s15]]   ;;  %s10412_s15 = smov 19  }
  0x18   :  { %16032 = sst [smem:[#allocation23_spill]] %s10523_s6 }
  0x19   :  { %s10538_s27 = sld [smem:[%s15811_s0 + %s10409_s22]]   ;;  %s10413_s22 = smov 20  }
  0x1a   :  { %s10543_s4 = sld [smem:[%s15811_s0 + %s10410_s28]]   ;;  %s10414_s28 = smov 21  }
  0x1b   :  { %s10548_s6 = sld [smem:[%s15811_s0 + %s10411_s7]]   ;;  %s10415_s7 = smov 22  }
  0x1c   :  { %16033 = sst [smem:[#allocation24_spill]] %s10528_s12 }
  0x1d   :  { %16034 = sst [smem:[#allocation25_spill]] %s10533_s20 }
  0x1e   :  { %s10553_s20 = sld [smem:[%s15811_s0 + %s10412_s15]]   ;;  %s10416_s15 = smov 23  }
  0x1f   :  { %16035 = sst [smem:[#allocation26_spill]] %s10538_s27 }
  0x20   :  { %16036 = sst [smem:[#allocation27_spill]] %s10543_s4 }
  0x21   :  { %16037 = sst [smem:[#allocation28_spill]] %s10548_s6 }
  0x22   :  { %s10558_s27 = sld [smem:[%s15811_s0 + %s10413_s22]]   ;;  %s10417_s22 = smov 24  }
  0x23   :  { %s10563_s4 = sld [smem:[%s15811_s0 + %s10414_s28]]   ;;  %s10418_s28 = smov 25  }
  0x24   :  { %16038 = sst [smem:[#allocation29_spill]] %s10553_s20 }
  0x25   :  { %s10568_s6 = sld [smem:[%s15811_s0 + %s10415_s7]]   ;;  %s10419_s7 = smov 26  }
  0x26   :  { %s10573_s20 = sld [smem:[%s15811_s0 + %s10416_s15]]   ;;  %s10420_s15 = smov 27  }
  0x28   :  { %16039 = sst [smem:[#allocation30_spill]] %s10558_s27 }
  0x29   :  { %16040 = sst [smem:[#allocation31_spill]] %s10563_s4 }
  0x2a   :  { %s10578_s27 = sld [smem:[%s15811_s0 + %s10417_s22]]   ;;  %s10421_s22 = smov 28  }
  0x2b   :  { %16041 = sst [smem:[#allocation32_spill]] %s10568_s6 }
  0x2c   :  { %16042 = sst [smem:[#allocation33_spill]] %s10573_s20 }
  0x2d   :  { %s10583_s4 = sld [smem:[%s15811_s0 + %s10418_s28]]   ;;  %s10422_s28 = smov 29  }
  0x2e   :  { %s10588_s6 = sld [smem:[%s15811_s0 + %s10419_s7]]   ;;  %s10423_s7 = smov 30  }
  0x2f   :  { %s10593_s20 = sld [smem:[%s15811_s0 + %s10420_s15]]   ;;  %s10424_s15 = smov 31  }
  0x30   :  { %16043 = sst [smem:[#allocation34_spill]] %s10578_s27 }
  0x31   :  { %s10598_s27 = sld [smem:[%s15811_s0 + %s10421_s22]]   ;;  %s10425_s22 = smov 32  }
  0x33   :  { %16044 = sst [smem:[#allocation35_spill]] %s10583_s4 }
  0x34   :  { %16045 = sst [smem:[#allocation36_spill]] %s10588_s6 }
  0x35   :  { %16046 = sst [smem:[#allocation37_spill]] %s10593_s20 }
  0x36   :  { %s10603_s4 = sld [smem:[%s15811_s0 + %s10422_s28]]   ;;  %s10426_s28 = smov 33  }
  0x37   :  { %16047 = sst [smem:[#allocation38_spill]] %s10598_s27 }
  0x38   :  { %s10608_s6 = sld [smem:[%s15811_s0 + %s10423_s7]]   ;;  %s10427_s7 = smov 34  }
  0x39   :  { %s10613_s20 = sld [smem:[%s15811_s0 + %s10424_s15]]   ;;  %s10428_s15 = smov 35  }
  0x3a   :  { %s10618_s27 = sld [smem:[%s15811_s0 + %s10425_s22]]   ;;  %s10429_s22 = smov 36  }
  0x3c   :  { %16048 = sst [smem:[#allocation39_spill]] %s10603_s4 }
  0x3d   :  { %s10623_s4 = sld [smem:[%s15811_s0 + %s10426_s28]]   ;;  %s10430_s28 = smov 37  }
  0x3e   :  { %16049 = sst [smem:[#allocation40_spill]] %s10608_s6 }
  0x3f   :  { %16050 = sst [smem:[#allocation41_spill]] %s10613_s20 }
  0x40   :  { %16051 = sst [smem:[#allocation42_spill]] %s10618_s27 }
  0x41   :  { %s10628_s6 = sld [smem:[%s15811_s0 + %s10427_s7]]   ;;  %s10431_s7 = smov 38  }
  0x42   :  { %s10633_s20 = sld [smem:[%s15811_s0 + %s10428_s15]]   ;;  %s10432_s15 = smov 39  }
  0x43   :  { %16052 = sst [smem:[#allocation43_spill]] %s10623_s4 }
  0x44   :  { %s10638_s27 = sld [smem:[%s15811_s0 + %s10429_s22]]   ;;  %s10433_s22 = smov 40  }
  0x45   :  { %s10643_s4 = sld [smem:[%s15811_s0 + %s10430_s28]]   ;;  %s10434_s28 = smov 41  }
  0x47   :  { %16053 = sst [smem:[#allocation44_spill]] %s10628_s6 }
  0x48   :  { %16054 = sst [smem:[#allocation45_spill]] %s10633_s20 }
  0x49   :  { %s10648_s6 = sld [smem:[%s15811_s0 + %s10431_s7]]   ;;  %s10435_s7 = smov 42  }
  0x4a   :  { %16055 = sst [smem:[#allocation46_spill]] %s10638_s27 }
  0x4b   :  { %16056 = sst [smem:[#allocation47_spill]] %s10643_s4 }
  0x4c   :  { %s10653_s20 = sld [smem:[%s15811_s0 + %s10432_s15]]   ;;  %s10436_s15 = smov 43  }
  0x4d   :  { %s10658_s27 = sld [smem:[%s15811_s0 + %s10433_s22]]   ;;  %s10437_s22 = smov 44  }
  0x4e   :  { %s10663_s4 = sld [smem:[%s15811_s0 + %s10434_s28]]   ;;  %s10438_s28 = smov 45  }
  0x4f   :  { %16057 = sst [smem:[#allocation48_spill]] %s10648_s6 }
  0x50   :  { %s10668_s6 = sld [smem:[%s15811_s0 + %s10435_s7]]   ;;  %s10439_s7 = smov 46  }
  0x51   :  { %s10673_s30 = sld [smem:[%s15811_s0 + %s10436_s15]]   ;;  %s10440_s15 = smov 47  }
  0x52   :  { %s10683_s12 = sld [smem:[%s15811_s0 + %s10438_s28]]   ;;  %s10442_s28 = smov 49  }
  0x53   :  { %16058 = sst [smem:[#allocation49_spill]] %s10658_s27 }
  0x54   :  { %16059 = sst [smem:[#allocation50_spill]] %s10663_s4 }
  0x55   :  { %s10678_s27 = sld [smem:[%s15811_s0 + %s10437_s22]]   ;;  %s10441_s22 = smov 48  }
  0x56   :  { %16060 = sst [smem:[#allocation51_spill]] %s10668_s6 }
  0x57   :  { %16061 = sst [smem:[#allocation52_spill]] %s10673_s30 }
  0x58   :  { %16062 = sst [smem:[#allocation53_spill]] %s10683_s12 }
  0x59   :  { %s10688_s19 = sld [smem:[%s15811_s0 + %s10439_s7]]  }
  0x5a   :  { %s10693_s30 = sld [smem:[%s15811_s0 + %s10440_s15]]  }
  0x5b   :  { %s10698_s24 = sld [smem:[%s15811_s0 + %s10441_s22]]  }
  0x5c   :  { %s10703_s8 = sld [smem:[%s15811_s0 + %s10442_s28]]  }
  0x62   :  { %16063 = sst [smem:[#allocation54_spill]] %s10703_s8 }
  0x63   :  { %105 = vsyncpa [#allocation4], 0 }
  0x64   :  { %106 = vsyncpa [#allocation7], 0 }
  0x65   :  { %107 = vsyncpa [#allocation10], 0 }
  0x66   :  { %108 = vsyncpa [#allocation5], 0 }
  0x67   :  { %110 = vsyncpa [#allocation5 + $0x1], 0  ;;  %s10705_s7 = smov 0   ;;  %s10707_s10 = smov 0  }
  0x68   :  { %s10709_s11 = smov 0   ;;  %s10711_s15 = smov 0  }
  0x69 LB: > { %s16064_s9 = sld [smem:[#allocation17_spill]]  ;;  %s10726_s0 = sadd.s32 4294967295, %s10392_s15   ;;  %s10392_s15 = sphi %s10711_s15, %s16589_s15   ;;  %s10388_s11 = sphi %s10709_s11, %s16591_s11   ;;  %s10384_s10 = sphi %s10707_s10, %s16593_s10   ;;  %s10380_s7 = sphi %s10705_s7, %s16592_s7  }
  0x6a   : > { %s16065_s6 = sld [smem:[#allocation51_spill]]  ;;  %s8779_s16 = sadd.s32 4294967294, %s10392_s15  }
  0x6b   : > { %s16066_s4 = sld [smem:[#allocation50_spill]]  ;;  %s10730_s18 = sadd.s32 1, %s10392_s15  }
  0x6c   : > { %s16067_s3 = sld [smem:[#allocation18_spill]]  ;;  %s1177_s22 = sadd.s32 1, %s10388_s11 }
  0x6d   : > { %16068 = sst [smem:[#allocation55_spill]] %s10380_s7  ;;  %s1174_s23 = ssub.s32 %s10392_s15, %s10730_s18 }
  0x6e   : > { %16069 = sst [smem:[#allocation56_spill]] %s10388_s11  ;;  %p1187_p0 = scmp.ne.s32.totalorder %s10388_s11, %s10384_s10 }
  0x6f   : > { %16070 = sst [smem:[#allocation57_spill]] %s10392_s15  ;;  %p1175_p1 = scmp.eq.s32.totalorder %s1174_s23, 0 }
  0x70   : > { %16071 = sst [smem:[#allocation58_spill]] %s10730_s18  ;;  %p1188_p2 = scmp.eq.s32.totalorder %s10726_s0, 1 }
  0x71   : > { %p1193_p3 = scmp.ne.s32.totalorder %s10384_s10, %s10380_s7  ;;  %p1194_p4 = scmp.eq.s32.totalorder %s8779_s16, 1 }
  0x72   : > { %s10741_s26 = scalar_select %p1175_p1, %s10388_s11, %s1177_s22  }
  0x73   : > { %p10743_p5 = por %p1188_p2, %p1187_p0  ;;  %p10747_p6 = por %p1194_p4, %p1193_p3 }
  0x74   : > { %16072 = sst [smem:[#allocation59_spill]] %s10741_s26  ;;  %p8780_p7 = scmp.ge.s32.totalorder %s10392_s15, 1 }
  0x75   : > { %s16073_s28 = scalar_select %p10743_p5, 1, 0 }
  0x76   : > { %s16075_s1 = scalar_select %p10747_p6, 1, 0 }
  0x77   : > { %16074 = sst [smem:[#allocation60_spill]] %s16073_s28  ;;  %p1201_p8 = scmp.lt.s32.totalorder %s10392_s15, 3 }
  0x78   : > { %16076 = sst [smem:[#allocation61_spill]] %s16075_s1  ;;  %p9820_p9 = scmp.eq.s32.totalorder %s10726_s0, 0 }
  0x79   : > { %p10754_p10 = pnand %p8780_p7, %p1201_p8  ;;  %s1342_s16 = sshll.u32 %s16066_s4, 4  ;;  %s1343_s16 = int_to_ptr.hbm [resolvable:$true] %s1342_s16 }
  0x7a   : > { %s10443_s22 = smov [#allocation6]   ;;  %s1327_s26 = sshll.u32 %s10653_s20, 4  ;;  %s10768_s26 = int_to_ptr.hbm [resolvable:$true] %s1327_s26 }
  0x7b   : > { %p9803_p11 = pneg %p10754_p10  ;;  %s1344_s23 = sshll.u32 %s10443_s22, 4  ;;  %s1345_s23 = int_to_ptr.vmem [resolvable:$true] %s1344_s23 }
  0x7c   : > { %s1354_s18 = sshll.u32 %s16065_s6, 4  ;;  %s10444_s1 = smov [#allocation3]   ;;  %s10783_s18 = int_to_ptr.hbm [resolvable:$true] %s1354_s18 }
  0x7d   : > { %p10764_p12 = pnand %p9820_p9, %p9803_p11  ;;  %s10771_s7 = sshll.u32 %s10444_s1, 4  ;;  %s1330_s7 = int_to_ptr.vmem [resolvable:$true] %s10771_s7 }
  0x7e   : > { %s10198_s15 = sshra.s32 %s1343_s16, 4  ;;  %s10205_s22 = scalar_lea.hbm %s16066_s4, 1  ;;  %s10199_s15 = int_to_ptr.hbm [resolvable:$true] %s10198_s15 }
  0x7f   : > { %s10200_s28 = scalar_lea.hbm %s10199_s15, 1  ;;  %p10202_p0 = pneg %p10764_p12 }
  0x80   : > { %p10201_p13 = scmp.ne.s32.totalorder %s10199_s15, %s10200_s28  ;;  %p10206_p3 = scmp.lt.s32.totalorder %s10199_s15, %s16066_s4 }
  0x81   : > { %p10207_p4 = scmp.lt.s32.totalorder %s10205_s22, %s10200_s28 }
  0x82   : > { %p10203_p1 = pnand %p10202_p0, %p10201_p13 }
  0x83   : > { %p10208_p7 = por %p10207_p4, %p10206_p3 }
  0x84   : > { %p10204_p2 = pneg %p10203_p1 }
  0x86   : > { %p10209_p8 = pnand %p10208_p7, %p10204_p2 }
  0x88   : > { %10212 = shalt.err (!%p10209_p8)
}
  0x89   : > { %9809 = dma.hbm_to_vmem [thread:$0]  (!%p10764_p12), %s1343_s16, 16, %s1345_s23, [#allocation7]  }
  0x8a   : > { %s10228_s1 = sshra.s32 %s10768_s26, 4  ;;  %s10235_s15 = scalar_lea.hbm %s10653_s20, 1  ;;  %s10229_s1 = int_to_ptr.hbm [resolvable:$true] %s10228_s1 }
  0x8b   : > { %s10230_s8 = scalar_lea.hbm %s10229_s1, 1  ;;  %p10236_p2 = scmp.lt.s32.totalorder %s10229_s1, %s10653_s20 }
  0x8c   : > { %p10231_p11 = scmp.ne.s32.totalorder %s10229_s1, %s10230_s8  ;;  %p10237_p3 = scmp.lt.s32.totalorder %s10235_s15, %s10230_s8 }
  0x8e   : > { %p10233_p13 = pnand %p10231_p11, %p10202_p0  ;;  %p10238_p4 = por %p10237_p3, %p10236_p2 }
  0x90   : > { %p10234_p1 = pneg %p10233_p13 }
  0x92   : > { %p10239_p7 = pnand %p10238_p4, %p10234_p1 }
  0x94   : > { %10242 = shalt.err (!%p10239_p7)
}
  0x95   : > { %9806 = dma.hbm_to_vmem [thread:$0]  (!%p10764_p12), %s10768_s26, 16, %s1330_s7, [#allocation4]  }
  0x96   : > { %s1369_s28 = sshll.u32 %s10678_s27, 4  ;;  %s10445_s16 = smov [#allocation8]   ;;  %s10795_s28 = int_to_ptr.hbm [resolvable:$true] %s1369_s28 }
  0x97   : > { %s1356_s23 = sshll.u32 %s10445_s16, 4  ;;  %s10258_s22 = sshra.s32 %s10783_s18, 4  ;;  %s1357_s23 = int_to_ptr.vmem [resolvable:$true] %s1356_s23  ;;  %s10259_s22 = int_to_ptr.hbm [resolvable:$true] %s10258_s22 }
  0x98   : > { %s10260_s8 = scalar_lea.hbm %s10259_s22, 1  ;;  %s10265_s1 = scalar_lea.hbm %s16065_s6, 1 }
  0x99   : > { %p10261_p8 = scmp.ne.s32.totalorder %s10259_s22, %s10260_s8  ;;  %p10266_p1 = scmp.lt.s32.totalorder %s10259_s22, %s16065_s6 }
  0x9a   : > { %p10267_p2 = scmp.lt.s32.totalorder %s10265_s1, %s10260_s8 }
  0x9b   : > { %p10263_p11 = pnand %p10261_p8, %p10202_p0 }
  0x9c   : > { %p10268_p3 = por %p10267_p2, %p10266_p1 }
  0x9d   : > { %p10264_p13 = pneg %p10263_p11 }
  0x9f   : > { %p10269_p4 = pnand %p10268_p3, %p10264_p13 }
  0xa1   : > { %10272 = shalt.err (!%p10269_p4)
}
  0xa2   : > { %9812 = dma.hbm_to_vmem [thread:$0]  (!%p10764_p12), %s10783_s18, 16, %s1357_s23, [#allocation7]  }
  0xa3   : > { %s10446_s7 = smov [#allocation9]   ;;  %s10288_s15 = sshra.s32 %s10795_s28, 4  ;;  %s10289_s15 = int_to_ptr.hbm [resolvable:$true] %s10288_s15 }
  0xa4   : > { %s1371_s26 = sshll.u32 %s10446_s7, 4  ;;  %s10290_s16 = scalar_lea.hbm %s10289_s15, 1  ;;  %s1372_s26 = int_to_ptr.vmem [resolvable:$true] %s1371_s26 }
  0xa5   : > { %p10291_p7 = scmp.ne.s32.totalorder %s10289_s15, %s10290_s16  ;;  %s10295_s22 = scalar_lea.hbm %s10678_s27, 1 }
  0xa6   : > { %p10296_p13 = scmp.lt.s32.totalorder %s10289_s15, %s10678_s27  ;;  %p10297_p1 = scmp.lt.s32.totalorder %s10295_s22, %s10290_s16 }
  0xa7   : > { %p10293_p8 = pnand %p10291_p7, %p10202_p0 }
  0xa8   : > { %p10298_p2 = por %p10297_p1, %p10296_p13 }
  0xa9   : > { %p10294_p11 = pneg %p10293_p8 }
  0xab   : > { %p10299_p3 = pnand %p10298_p2, %p10294_p11 }
  0xad   : > { %10302 = shalt.err (!%p10299_p3)
}
  0xae   : > { %9815 = dma.hbm_to_vmem [thread:$0]  (!%p10764_p12), %s10795_s28, 16, %s1372_s26, [#allocation10]  }
  0xaf   : > { %1392 = sbr.rel (%p10754_p10) target bundleno = 3402 (0xd4a), region = 200 }
  0xb4   : > { %10363 = dma.done.wait (%p9820_p9), [#allocation4], 16  }
  0xb5   : > { %10365 = vsyncadd (%p9820_p9), [#allocation4], 4294967280 }
  0xb6   : > { %10367 = dma.done.wait (%p9820_p9), [#allocation7], 32  }
  0xb7   : > { %10369 = vsyncadd (%p9820_p9), [#allocation7], 4294967264 }
  0xb8   : > { %10371 = dma.done.wait (%p9820_p9), [#allocation10], 16  }
  0xb9   : > { %10373 = vsyncadd (%p9820_p9), [#allocation10], 4294967280  ;;  %p1543_p10 = scmp.lt.s32.totalorder %s10726_s0, 1  ;;  %v9615_v0 = vld [vmem:[%s16064_s9 + $0x38] sm:$0xff]  ;;  %s16079_s5 = sld [smem:[#allocation16_spill]]  ;;  %v9614_v4 = vld [vmem:[%s16064_s9 + $0x30] sm:$0xff] }
  0xba   : > { %v9631_v1 = vld [vmem:[%s16064_s9 + $0xb8] sm:$0xff]  ;;  %4033 = vmatpush.bf16.msra.mxu0 %v9615_v0  ;;  %v9630_v5 = vld [vmem:[%s16064_s9 + $0xb0] sm:$0xff]  ;;  %v9613_v8 = vld [vmem:[%s16064_s9 + $0x28] sm:$0xff]  ;;  %vm15960_vm0 = vcmask 1042434   ;;  %vm15958_vm1 = vcmask 1044484   ;;  %vm15956_vm2 = vcmask 1046534  }
  0xbb   : > { %s10831_s11 = scalar_select %p1543_p10, %s10726_s0, 1  ;;  %v9639_v2 = vld [vmem:[%s16064_s9 + $0xf8] sm:$0xff]  ;;  %4091 = vmatpush.bf16.msra.mxu2 %v9631_v1  ;;  %v9638_v6 = vld [vmem:[%s16064_s9 + $0xf0] sm:$0xff]  ;;  %v9629_v9 = vld [vmem:[%s16064_s9 + $0xa8] sm:$0xff]  ;;  %vm16013_vm3 = vcmask 1041409   ;;  %vm15959_vm4 = vcmask 1043459  }
  0xbc   : > { %v9623_v3 = vld [vmem:[%s16064_s9 + $0x78] sm:$0xff]  ;;  %4120 = vmatpush.bf16.msra.mxu3 %v9639_v2  ;;  %v9622_v7 = vld [vmem:[%s16064_s9 + $0x70] sm:$0xff]  ;;  %v9637_v10 = vld [vmem:[%s16064_s9 + $0xe8] sm:$0xff]  ;;  %vm15957_vm5 = vcmask 1045509   ;;  %vm15954_vm6 = vcmask 1047559   ;;  %vm1691_vm7 = vcmask 1040384  }
  0xbd   : > { %s9784_s18 = smul.u32 432, %s10831_s11  ;;  %4062 = vmatpush.bf16.msra.mxu1 %v9623_v3  ;;  %v9621_v11 = vld [vmem:[%s16064_s9 + $0x68] sm:$0xff]  ;;  %v9612_v12 = vld [vmem:[%s16064_s9 + $0x20] sm:$0xff]  ;;  %v9611_v30 = vld [vmem:[%s16064_s9 + $0x18] sm:$0xff]  ;;  %s9604_s28 = sshll.u32 %s10831_s11, 6  ;;  %vm4588_vm15 = vcmask 1046528  }
  0xbe   : > { %4034 = vmatpush.bf16.msra.mxu0 %v9614_v4  ;;  %v9628_v13 = vld [vmem:[%s16064_s9 + $0xa0] sm:$0xff]  ;;  %v9627_v31 = vld [vmem:[%s16064_s9 + $0x98] sm:$0xff]  ;;  %v9610_v46 = vld [vmem:[%s16064_s9 + $0x10] sm:$0xff]  ;;  %s16294_s12 = sld [smem:[#allocation53_spill]]  ;;  %s14059_s22 = scalar_lea.vmem %s10688_s19, %s9604_s28 }
  0xbf   : > { %4092 = vmatpush.bf16.msra.mxu2 %v9630_v5  ;;  %s10845_s2 = scalar_lea.vmem %s16079_s5, %s9784_s18  ;;  %v9636_v15 = vld [vmem:[%s16064_s9 + $0xe0] sm:$0xff]  ;;  %v9635_v36 = vld [vmem:[%s16064_s9 + $0xd8] sm:$0xff]  ;;  %v9626_v53 = vld [vmem:[%s16064_s9 + $0x90] sm:$0xff]  ;;  %s16332_s8 = sld [smem:[#allocation19_spill]] }
  0xc0   : > { %4121 = vmatpush.bf16.msra.mxu3 %v9638_v6  ;;  %v10852_v14 = vld [vmem:[%s10845_s2] sm:$0xff]  ;;  %v10857_v17 = vld [vmem:[%s10845_s2 + $0x8] sm:$0xff]  ;;  %v10862_v20 = vld [vmem:[%s10845_s2 + $0x30] sm:$0xff]  ;;  %s16333_s1 = sld [smem:[#allocation21_spill]] }
  0xc1   : > { %4063 = vmatpush.bf16.msra.mxu1 %v9622_v7  ;;  %v9620_v16 = vld [vmem:[%s16064_s9 + $0x60] sm:$0xff]  ;;  %v1635_v18 = vrot.slane %v10852_v14, 2  ;;  %v1636_v19 = vrot.slane %v10852_v14, 4  ;;  %16080 = vst [vmem:[#allocation62_spill] sm:$0xff] %v10862_v20  ;;  %v10865_v21 = vld [vmem:[%s10845_s2 + $0x38] sm:$0xff]  ;;  %v1637_v22 = vrot.slane %v10852_v14, 6  ;;  %vm1693_vm8 = vmor %vm1691_vm7, %vm15960_vm0 }
  0xc2   : > { %4035 = vmatpush.bf16.msra.mxu0 %v9613_v8  ;;  %16081 = vst [vmem:[#allocation63_spill] sm:$0xff] %v10865_v21  ;;  %v1638_v23 = vrot.slane %v10857_v17, 2  ;;  %v1639_v24 = vrot.slane %v10857_v17, 4  ;;  %v1640_v25 = vrot.slane %v10857_v17, 6  ;;  %v1641_v26 = vrot.slane %v10862_v20, 2  ;;  %v9619_v37 = vld [vmem:[%s16064_s9 + $0x58] sm:$0xff]  ;;  %vm1695_vm9 = vmor %vm1693_vm8, %vm15958_vm1 }
  0xc3   : > { %4093 = vmatpush.bf16.msra.mxu2 %v9629_v9  ;;  %v1642_v27 = vrot.slane %v10862_v20, 4  ;;  %v1643_v28 = vrot.slane %v10862_v20, 6  ;;  %v1644_v29 = vrot.slane %v10865_v21, 2  ;;  %v1645_v32 = vrot.slane %v10865_v21, 4  ;;  %v9634_v54 = vld [vmem:[%s16064_s9 + $0xd0] sm:$0xff]  ;;  %v10917_v0 = vld [vmem:[%s10845_s2 + $0x18] sm:$0xff]  ;;  %vm11119_vm10 = vmor %vm1695_vm9, %vm15956_vm2 }
  0xc4   : > { %4122 = vmatpush.bf16.msra.mxu3 %v9637_v10  ;;  %v1646_v33 = vrot.slane %v10865_v21, 6  ;;  %v10879_v34 = vrot.slane %v1635_v18, 7  ;;  %v10881_v35 = vrot.slane %v1636_v19, 7  ;;  %v10885_v38 = vrot.slane %v1637_v22, 7  ;;  %v9618_v59 = vld [vmem:[%s16064_s9 + $0x50] sm:$0xff]  ;;  %16082 = vst [vmem:[#allocation64_spill] sm:$0xff] %v10917_v0  ;;  %s13154_s23 = scalar_lea.vmem %s16294_s12, %s9604_s28 }
  0xc5   : > { %4064 = vmatpush.bf16.msra.mxu1 %v9621_v11  ;;  %v10887_v39 = vrot.slane %v1638_v23, 7  ;;  %v10889_v40 = vrot.slane %v1639_v24, 7  ;;  %v10891_v41 = vrot.slane %v1640_v25, 7  ;;  %v10893_v42 = vrot.slane %v1641_v26, 7  ;;  %v9609_v1 = vld [vmem:[%s16064_s9 + $0x8] sm:$0xff]  ;;  %s16334_s7 = sld [smem:[#allocation20_spill]] }
  0xc6   : > { %4036 = vmatpush.bf16.msra.mxu0 %v9612_v12  ;;  %v10895_v43 = vrot.slane %v1642_v27, 7  ;;  %v10897_v44 = vrot.slane %v1643_v28, 7  ;;  %v10899_v45 = vrot.slane %v1644_v29, 7  ;;  %v10902_v47 = vrot.slane %v1645_v32, 7  ;;  %v9625_v2 = vld [vmem:[%s16064_s9 + $0x88] sm:$0xff]  ;;  %s16335_s26 = sld [smem:[#allocation24_spill]] }
  0xc7   : > { %4094 = vmatpush.bf16.msra.mxu2 %v9628_v13  ;;  %v10904_v48 = vrot.slane %v1646_v33, 7  ;;  %1898 = vst.sshfl [vmem:[#allocation1] sm:$0xff pattern:$0x73625140] %v10852_v14  ;;  %v2489_v49 = vperm.slane %v10852_v14, 0  ;;  %v2490_v50 = vperm.slane %v1635_v18, 0 }
  0xc8   : > { %4123 = vmatpush.bf16.msra.mxu3 %v9636_v15  ;;  %1899 = vst.sshfl [vmem:[#allocation1 + $0x20] sm:$0xff pattern:$0x73625140] %v10857_v17  ;;  %v2491_v51 = vperm.slane %v1636_v19, 0  ;;  %v2492_v52 = vperm.slane %v1637_v22, 0  ;;  %v2493_v55 = vperm.slane %v10857_v17, 0 }
  0xc9   : > { %4065 = vmatpush.bf16.msra.mxu1 %v9620_v16  ;;  %v2494_v56 = vperm.slane %v1638_v23, 0  ;;  %v2495_v57 = vperm.slane %v1639_v24, 0  ;;  %v10912_v58 = vperm.slane %v1640_v25, 0  ;;  %v2497_v60 = vperm.slane %v10862_v20, 0  ;;  %v10923_v7 = vld [vmem:[%s10845_s2 + $0x10] sm:$0x3] }
  0xca   : > { %4037 = vmatpush.bf16.msra.mxu0 %v9611_v30  ;;  %v2498_v61 = vperm.slane %v1641_v26, 0  ;;  %v2499_v62 = vperm.slane %v1642_v27, 0  ;;  %v2500_v63 = vperm.slane %v1643_v28, 0  ;;  %v2501_v3 = vperm.slane %v10865_v21, 0  ;;  %v9633_v10 = vld [vmem:[%s16064_s9 + $0xc8] sm:$0xff]  ;;  %v9608_v23 = vld [vmem:[%s16064_s9] sm:$0xff] }
  0xcb   : > { %4095 = vmatpush.bf16.msra.mxu2 %v9627_v31  ;;  %v2502_v4 = vperm.slane %v1644_v29, 0  ;;  %v2503_v5 = vperm.slane %v1645_v32, 0  ;;  %v2504_v6 = vperm.slane %v1646_v33, 0  ;;  %v2554_v8 = vsel %vm16013_vm3, %v2490_v50, %v2489_v49  ;;  %v9617_v11 = vld [vmem:[%s16064_s9 + $0x48] sm:$0xff]  ;;  %v9624_v29 = vld [vmem:[%s16064_s9 + $0x80] sm:$0xff]  ;;  %s16336_s15 = sld [smem:[#allocation22_spill]] }
  0xcc   : > { %4124 = vmatpush.bf16.msra.mxu3 %v9635_v36  ;;  %v2564_v9 = vsel %vm16013_vm3, %v2498_v61, %v2497_v60  ;;  %v2009_v12 = vrot.slane %v10917_v0, 2  ;;  %v2010_v13 = vrot.slane %v10917_v0, 4  ;;  %v2555_v19 = vsel %vm15960_vm0, %v2491_v51, %v2554_v8  ;;  %v10938_v30 = vld [vmem:[%s10845_s2 + $0x20] sm:$0xff]  ;;  %v10948_v49 = vld [vmem:[%s10845_s2 + $0x48] sm:$0xff]  ;;  %s16337_s16 = sld [smem:[#allocation23_spill]] }
  0xcd   : > { %4066 = vmatpush.bf16.msra.mxu1 %v9619_v37  ;;  %v2565_v22 = vsel %vm15960_vm0, %v2499_v62, %v2564_v9  ;;  %v2557_v27 = vsel %vm15959_vm4, %v2492_v52, %v2555_v19  ;;  %16083 = vst [vmem:[#allocation65_spill] sm:$0xff] %v10938_v30  ;;  %v9632_v36 = vld [vmem:[%s16064_s9 + $0xc0] sm:$0xff]  ;;  %v2014_v8 = vrot.slane %v10938_v30, 6  ;;  %v15839_v9 = vrot.slane %v10948_v49, 2  ;;  %s16338_s18 = sld [smem:[#allocation25_spill]] }
  0xce   : > { %4038 = vmatpush.bf16.msra.mxu0 %v9610_v46  ;;  %v1901_v15 = vld [vmem:[#allocation1 + $0x1] ss:$4 sm:$0xff]  ;;  %v1903_v16 = vld [vmem:[#allocation1 + $0x2] ss:$4 sm:$0xff]  ;;  %v1905_v18 = vld [vmem:[#allocation1 + $0x3] ss:$4 sm:$0xff]  ;;  %v2566_v28 = vsel %vm15959_vm4, %v2500_v63, %v2565_v22  ;;  %v2558_v32 = vsel %vm15958_vm1, %v2493_v55, %v2557_v27 }
  0xcf   : > { %4096 = vmatpush.bf16.msra.mxu2 %v9626_v53  ;;  %v1907_v24 = vld [vmem:[#allocation1 + $0x20] ss:$4 sm:$0xff]  ;;  %v1909_v25 = vld [vmem:[#allocation1 + $0x21] ss:$4 sm:$0xff]  ;;  %v1911_v26 = vld [vmem:[#allocation1 + $0x22] ss:$4 sm:$0xff]  ;;  %v2567_v33 = vsel %vm15958_vm1, %v2501_v3, %v2566_v28  ;;  %v2560_v50 = vsel %vm15957_vm5, %v2494_v56, %v2558_v32 }
  0xd0   : > { %4125 = vmatpush.bf16.msra.mxu3 %v9634_v54  ;;  %v10940_v31 = vld [vmem:[#allocation1 + $0x23] ss:$4 sm:$0xff]  ;;  %1914 = vst.sshfl [vmem:[#allocation1] sm:$0xff pattern:$0x73625140] %v10923_v7  ;;  %v2749_v37 = vperm.slane %v1901_v15, 0  ;;  %v2568_v51 = vsel %vm15957_vm5, %v2502_v4, %v2567_v33  ;;  %v2561_v55 = vsel %vm15956_vm2, %v2495_v57, %v2560_v50 }
  0xd1   : > { %4067 = vmatpush.bf16.msra.mxu1 %v9618_v59  ;;  %v9616_v46 = vld [vmem:[%s16064_s9 + $0x40] sm:$0xff]  ;;  %16084 = vst [vmem:[#allocation66_spill] sm:$0xff] %v10948_v49  ;;  %v2750_v52 = vperm.slane %v1903_v16, 0  ;;  %v2751_v53 = vperm.slane %v1905_v18, 0  ;;  %v10954_v54 = vld [vmem:[%s10845_s2 + $0x50] sm:$0xff]  ;;  %v2569_v59 = vsel %vm15956_vm2, %v2503_v5, %v2568_v51  ;;  %v2752_v60 = vperm.slane %v1907_v24, 0 }
  0xd2   : > { %4039 = vmatpush.bf16.msra.mxu0 %v9609_v1  ;;  %1916 = vst.sshfl [vmem:[#allocation1 + $0x20] sm:$0xff pattern:$0x73625140] %v10862_v20  ;;  %v2753_v61 = vperm.slane %v1909_v25, 0  ;;  %v2563_v62 = vsel %vm15954_vm6, %v10912_v58, %v2561_v55  ;;  %v10961_v56 = vsel %vm15954_vm6, %v2504_v6, %v2569_v59  ;;  %v2754_v63 = vperm.slane %v1911_v26, 0  ;;  %s16342_s28 = sld [smem:[#allocation27_spill]] }
  0xd3   : > { %4097 = vmatpush.bf16.msra.mxu2 %v9625_v2  ;;  %16085 = vst [vmem:[#allocation67_spill] sm:$0xff] %v10954_v54  ;;  %v2755_v1 = vperm.slane %v10940_v31, 0  ;;  %v3421_v2 = vpack.c.bf16 %v10961_v56, %v2563_v62  ;;  %v2813_v3 = vsel %vm16013_vm3, %v2750_v52, %v2749_v37  ;;  %v2011_v57 = vrot.slane %v10917_v0, 6  ;;  %v10969_v5 = vld [vmem:[%s10845_s2 + $0x40] sm:$0x3] }
  0xd4   : > { %4126 = vmatpush.bf16.msra.mxu3 %v9633_v10  ;;  %16086 = vst [vmem:[#allocation68_spill] sm:$0xff] %v10961_v56  ;;  %v2012_v4 = vrot.slane %v10938_v30, 2  ;;  %v2814_v58 = vsel %vm15960_vm0, %v2751_v53, %v2813_v3  ;;  %v2013_v6 = vrot.slane %v10938_v30, 4  ;;  %v15837_v15 = vrot.slane %v10948_v49, 6 }
  0xd5   : > { %4068 = vmatpush.bf16.msra.mxu1 %v9617_v11  ;;  %16087 = vst [vmem:[#allocation69_spill] sm:$0xff] %v10969_v5  ;;  %v2815_v10 = vsel %vm15959_vm4, %v2752_v60, %v2814_v58  ;;  %v15838_v11 = vrot.slane %v10948_v49, 4  ;;  %v15835_v16 = vrot.slane %v10954_v54, 2  ;;  %v15834_v22 = vrot.slane %v10954_v54, 4 }
  0xd6   : > { %4040 = vmatpush.bf16.msra.mxu0 %v9608_v23  ;;  %v2816_v19 = vsel %vm15958_vm1, %v2753_v61, %v2815_v10  ;;  %v15836_v23 = vrot.slane %v10954_v54, 6  ;;  %v10984_v24 = vrot.slane %v2009_v12, 7  ;;  %v10992_v37 = vrot.slane %v2010_v13, 7  ;;  %v11034_v10 = vld [vmem:[%s10845_s2 + $0x60] sm:$0xff] }
  0xd7   : > { %4098 = vmatpush.bf16.msra.mxu2 %v9624_v29  ;;  %v1915_v18 = vld [vmem:[#allocation1] ss:$4 sm:$0xff]  ;;  %v2817_v28 = vsel %vm15957_vm5, %v2754_v63, %v2816_v19  ;;  %v10997_v50 = vrot.slane %v2011_v57, 7  ;;  %v11001_v51 = vrot.slane %v2012_v4, 7  ;;  %v11007_v55 = vrot.slane %v2013_v6, 7  ;;  %16098 = vst [vmem:[#allocation80_spill] sm:$0xff] %v11034_v10 }
  0xd8   : > { %4127 = vmatpush.bf16.msra.mxu3 %v9632_v36  ;;  %16088 = vst [vmem:[#allocation70_spill] sm:$0xff] %v10984_v24  ;;  %v2756_v29 = vperm.slane %v1915_v18, 0  ;;  %v11011_v59 = vrot.slane %v2014_v8, 7  ;;  %v11017_v62 = vrot.slane %v15839_v9, 7  ;;  %v11021_v63 = vrot.slane %v15838_v11, 7 }
  0xd9   : > { %4069 = vmatpush.bf16.msra.mxu1 %v9616_v46  ;;  %v1917_v25 = vld [vmem:[#allocation1 + $0x21] ss:$4 sm:$0xff]  ;;  %v1918_v26 = vld [vmem:[#allocation1 + $0x22] ss:$4 sm:$0xff]  ;;  %v1919_v27 = vld [vmem:[#allocation1 + $0x23] ss:$4 sm:$0xff]  ;;  %4041 = vmatmul.bf16.vlgmr.msra.gmra.mxu0 %v3421_v2  ;;  %v2818_v46 = vsel %vm15956_vm2, %v2755_v1, %v2817_v28 }
  0xda   : > { %1920 = vst.sshfl [vmem:[#allocation1] sm:$0xff pattern:$0x73625140] %v10865_v21  ;;  %v2757_v31 = vperm.slane %v1917_v25, 0  ;;  %v2758_v32 = vperm.slane %v1918_v26, 0  ;;  %v2759_v33 = vperm.slane %v1919_v27, 0  ;;  %v2819_v19 = vsel %vm15954_vm6, %v2756_v29, %v2818_v46 }
  0xdb   : > { %1921 = vst.sshfl [vmem:[#allocation1 + $0x20] sm:$0xff pattern:$0x73625140] %v10969_v5  ;;  %v11027_v3 = vrot.slane %v15837_v15, 7  ;;  %v11031_v58 = vrot.slane %v15835_v16, 7  ;;  %v11040_v25 = vrot.slane %v15834_v22, 7 }
  0xdc   : > { %16089 = vst [vmem:[#allocation71_spill] sm:$0xff] %v10992_v37  ;;  %v2820_v52 = vsel %vm16013_vm3, %v2758_v32, %v2757_v31  ;;  %v11044_v26 = vrot.slane %v15836_v23, 7  ;;  %v11047_v27 = vld [vmem:[%s10845_s2 + $0x68] sm:$0xff]  ;;  %v2878_v29 = vperm.slane %v2009_v12, 0  ;;  %v2879_v46 = vperm.slane %v2010_v13, 0 }
  0xdd   : > { %16090 = vst [vmem:[#allocation72_spill] sm:$0xff] %v10997_v50  ;;  %v2821_v2 = vsel %vm15960_vm0, %v2759_v33, %v2820_v52  ;;  %v2877_v52 = vperm.slane %v10917_v0, 0  ;;  %v2883_v12 = vperm.slane %v2013_v6, 0  ;;  %v2884_v13 = vperm.slane %v2014_v8, 0  ;;  %v11089_v11 = vld [vmem:[%s10845_s2 + $0x70] sm:$0x3] }
  0xde   : > { %16091 = vst [vmem:[#allocation73_spill] sm:$0xff] %v11001_v51  ;;  %v2889_v6 = vperm.slane %v10954_v54, 0  ;;  %v16106_v8 = vrot.slane %v10954_v54, 4  ;;  %v11303_v0 = vld [vmem:[%s10845_s2 + $0xd0] sm:$0x3]  ;;  %vm4663_vm8 = vcmask 1045504  }
  0xdf   : > { %16092 = vst [vmem:[#allocation74_spill] sm:$0xff] %v11007_v55 }
  0xe0   : > { %16093 = vst [vmem:[#allocation75_spill] sm:$0xff] %v11011_v59  ;;  %v2891_v16 = vperm.slane %v16106_v8, 0  ;;  %v1702_v8 = vrot.slane %v10879_v34, 2 }
  0xe1   : > { %16094 = vst [vmem:[#allocation76_spill] sm:$0xff] %v11017_v62  ;;  %v1922_v28 = vld [vmem:[#allocation1] ss:$4 sm:$0xff]  ;;  %v1923_v31 = vld [vmem:[#allocation1 + $0x1] ss:$4 sm:$0xff] }
  0xe2   : > { %16095 = vst [vmem:[#allocation77_spill] sm:$0xff] %v11021_v63  ;;  %v1924_v32 = vld [vmem:[#allocation1 + $0x2] ss:$4 sm:$0xff]  ;;  %v1925_v60 = vld [vmem:[#allocation1 + $0x3] ss:$4 sm:$0xff]  ;;  %v2760_v18 = vperm.slane %v1922_v28, 0 }
  0xe3   : > { %16096 = vst [vmem:[#allocation78_spill] sm:$0xff] %v11027_v3  ;;  %v1926_v1 = vld [vmem:[#allocation1 + $0x20] ss:$4 sm:$0xff]  ;;  %v2761_v61 = vperm.slane %v1923_v31, 0  ;;  %v2762_v53 = vperm.slane %v1924_v32, 0  ;;  %v2763_v36 = vperm.slane %v1925_v60, 0 }
  0xe4   : > { %16097 = vst [vmem:[#allocation79_spill] sm:$0xff] %v11031_v58  ;;  %v2764_v22 = vperm.slane %v1926_v1, 0  ;;  %v2822_v23 = vsel %vm15959_vm4, %v2760_v18, %v2821_v2  ;;  %v2880_v1 = vperm.slane %v2011_v57, 0  ;;  %v2881_v2 = vperm.slane %v10938_v30, 0 }
  0xe5   : > { %16099 = vst [vmem:[#allocation81_spill] sm:$0xff] %v11040_v25  ;;  %v2823_v33 = vsel %vm15958_vm1, %v2761_v61, %v2822_v23  ;;  %v2882_v23 = vperm.slane %v2012_v4, 0  ;;  %v16102_v57 = vrot.slane %v10948_v49, 2  ;;  %v16103_v31 = vrot.slane %v10948_v49, 4  ;;  %v11295_v25 = vld [vmem:[%s10845_s2 + $0xc8] sm:$0xff] }
  0xe6   : > { %16100 = vst [vmem:[#allocation82_spill] sm:$0xff] %v11044_v26  ;;  %v2824_v60 = vsel %vm15957_vm5, %v2762_v53, %v2823_v33  ;;  %v2885_v53 = vperm.slane %v10948_v49, 0  ;;  %v16104_v4 = vrot.slane %v10948_v49, 6  ;;  %v2505_v3 = vperm.slane %v11034_v10, 0 }
  0xe7   : > { %16101 = vst [vmem:[#allocation83_spill] sm:$0xff] %v11047_v27  ;;  %v2825_v61 = vsel %vm15956_vm2, %v2763_v36, %v2824_v60  ;;  %v2886_v28 = vperm.slane %v16102_v57, 0  ;;  %v2887_v32 = vperm.slane %v16103_v31, 0  ;;  %v16105_v60 = vrot.slane %v10954_v54, 2 }
  0xe8   : > { %1927 = vst.sshfl [vmem:[#allocation1] sm:$0xff pattern:$0x73625140] %v11034_v10  ;;  %v2826_v18 = vsel %vm15954_vm6, %v2764_v22, %v2825_v61  ;;  %v2888_v36 = vperm.slane %v16104_v4, 0  ;;  %v16108_v22 = vrot.slane %v10954_v54, 6  ;;  %v2941_v57 = vsel %vm16013_vm3, %v2878_v29, %v2877_v52  ;;  %v11096_v4 = vld [vmem:[%s10845_s2 + $0x90] sm:$0xff] }
  0xe9   : > { %1928 = vst.sshfl [vmem:[#allocation1 + $0x20] sm:$0xff pattern:$0x73625140] %v11047_v27  ;;  %v3423_v33 = vpack.c.bf16 %v2826_v18, %v2819_v19  ;;  %v2890_v9 = vperm.slane %v16105_v60, 0  ;;  %v2948_v31 = vsel %vm16013_vm3, %v2886_v28, %v2885_v53  ;;  %v2942_v19 = vsel %vm15960_vm0, %v2879_v46, %v2941_v57 }
  0xea   : > { %16107 = vst [vmem:[#allocation84_spill] sm:$0xff] %v11089_v11  ;;  %v2892_v61 = vperm.slane %v16108_v22, 0  ;;  %v2949_v18 = vsel %vm15960_vm0, %v2887_v32, %v2948_v31  ;;  %v8800_v60 = vrot.slane %v10852_v14, 9  ;;  %v2943_v52 = vsel %vm15959_vm4, %v2880_v1, %v2942_v19 }
  0xeb   : > { %16109 = vst [vmem:[#allocation85_spill] sm:$0xff] %v11096_v4  ;;  %4099 = vmatmul.bf16.vlgmr.msra.gmra.mxu2 %v3423_v33  ;;  %v2950_v29 = vsel %vm15959_vm4, %v2888_v36, %v2949_v18  ;;  %v1705_v46 = vrot.slane %v10881_v35, 2  ;;  %v1708_v53 = vrot.slane %v10885_v38, 2  ;;  %v2944_v14 = vsel %vm15958_vm1, %v2881_v2, %v2943_v52 }
  0xec   : > { %v2951_v33 = vsel %vm15958_vm1, %v2889_v6, %v2950_v29  ;;  %v1709_v1 = vrot.slane %v10857_v17, 7  ;;  %v1714_v36 = vrot.slane %v10887_v39, 2  ;;  %v2945_v18 = vsel %vm15957_vm5, %v2882_v23, %v2944_v14  ;;  %16116 = vst [vmem:[#allocation90_spill] sm:$0xff] %v11295_v25 }
  0xed   : > { %v2952_v26 = vsel %vm15957_vm5, %v2890_v9, %v2951_v33  ;;  %v11134_v2 = vsel %vm11119_vm10, %v8800_v60, %v10879_v34  ;;  %v11139_v6 = vsel %vm11119_vm10, %v1702_v8, %v10881_v35  ;;  %v2946_v52 = vsel %vm15956_vm2, %v2883_v12, %v2945_v18  ;;  %16117 = vst [vmem:[#allocation91_spill] sm:$0xff] %v11303_v0 }
  0xee   : > { %v2953_v23 = vsel %vm15956_vm2, %v2891_v16, %v2952_v26  ;;  %v1707_v9 = vsel %vm11119_vm10, %v1705_v46, %v10885_v38  ;;  %v11151_v34 = vsel %vm11119_vm10, %v1708_v53, %v1709_v1  ;;  %v2947_v35 = vsel %vm15954_vm6, %v2884_v13, %v2946_v52 }
  0xef   : > { %v11103_v15 = vld [vmem:[#allocation1 + $0x1] ss:$4 sm:$0xff]  ;;  %v11105_v22 = vld [vmem:[#allocation1 + $0x2] ss:$4 sm:$0xff]  ;;  %v11112_v28 = vld [vmem:[#allocation1 + $0x3] ss:$4 sm:$0xff]  ;;  %v2954_v60 = vsel %vm15954_vm6, %v2892_v61, %v2953_v23  ;;  %v11159_v12 = vsel %vm11119_vm10, %v1714_v36, %v10889_v40 }
  0xf0   : > { %v11114_v32 = vld [vmem:[#allocation1 + $0x20] ss:$4 sm:$0xff]  ;;  %v11125_v31 = vld [vmem:[#allocation1 + $0x21] ss:$4 sm:$0xff]  ;;  %v11127_v19 = vld [vmem:[#allocation1 + $0x22] ss:$4 sm:$0xff]  ;;  %v3424_v16 = vpack.c.bf16 %v2954_v60, %v2947_v35 }
  0xf1   : > { %v11141_v17 = vld [vmem:[#allocation1 + $0x23] ss:$4 sm:$0xff]  ;;  %1936 = vst.sshfl [vmem:[#allocation1] sm:$0xff pattern:$0x73625140] %v11089_v11  ;;  %v1711_v8 = vrot.slane %v1709_v1, 2 }
  0xf2   : > { %1938 = vst.sshfl [vmem:[#allocation1 + $0x20] sm:$0xff pattern:$0x73625140] %v11096_v4  ;;  %v1717_v26 = vrot.slane %v10889_v40, 2  ;;  %v1720_v38 = vrot.slane %v10891_v41, 2  ;;  %v1721_v29 = vrot.slane %v10923_v7, 7  ;;  %4128 = vmatmul.bf16.vlgmr.msra.gmra.mxu3 %v3424_v16 }
  0xf3   : > { %v1713_v46 = vsel %vm11119_vm10, %v1711_v8, %v10887_v39  ;;  %v8801_v13 = vrot.slane %v10862_v20, 9  ;;  %v1727_v61 = vrot.slane %v10893_v42, 2  ;;  %v1730_v53 = vrot.slane %v10895_v43, 2  ;;  %v11196_v60 = vld [vmem:[%s10845_s2 + $0x98] sm:$0xff] }
  0xf4   : > { %v11173_v40 = vsel %vm11119_vm10, %v1717_v26, %v10891_v41  ;;  %v11177_v7 = vsel %vm11119_vm10, %v1720_v38, %v1721_v29  ;;  %v1733_v14 = vrot.slane %v10897_v44, 2  ;;  %v1734_v39 = vrot.slane %v10865_v21, 7  ;;  %16112 = vst [vmem:[#allocation86_spill] sm:$0xff] %v11196_v60  ;;  %v11207_v26 = vld [vmem:[%s10845_s2 + $0xa0] sm:$0x3] }
  0xf5   : > { %v1726_v33 = vsel %vm11119_vm10, %v8801_v13, %v10893_v42  ;;  %v1729_v1 = vsel %vm11119_vm10, %v1727_v61, %v10895_v43  ;;  %v1732_v41 = vsel %vm11119_vm10, %v1730_v53, %v10897_v44  ;;  %v1739_v36 = vrot.slane %v10899_v45, 2  ;;  %16113 = vst [vmem:[#allocation87_spill] sm:$0xff] %v11207_v26 }
  0xf6   : > { %v1735_v18 = vsel %vm11119_vm10, %v1733_v14, %v1734_v39  ;;  %v1736_v52 = vrot.slane %v1734_v39, 2  ;;  %v1742_v23 = vrot.slane %v10902_v47, 2  ;;  %v1745_v35 = vrot.slane %v10904_v48, 2 }
  0xf7   : > { %v1741_v43 = vsel %vm11119_vm10, %v1739_v36, %v10902_v47  ;;  %v1746_v44 = vrot.slane %v10969_v5, 7  ;;  %v2621_v8 = vperm.slane %v11134_v2, 0  ;;  %v2622_v16 = vperm.slane %v11139_v6, 0 }
  0xf8   : > { %v11198_v42 = vld [vmem:[#allocation1] ss:$4 sm:$0xff]  ;;  %v1738_v29 = vsel %vm11119_vm10, %v1736_v52, %v10899_v45  ;;  %v1744_v13 = vsel %vm11119_vm10, %v1742_v23, %v10904_v48  ;;  %v2623_v61 = vperm.slane %v1707_v9, 0  ;;  %v2624_v47 = vperm.slane %v11151_v34, 0 }
  0xf9   : > { %v11209_v38 = vld [vmem:[#allocation1 + $0x21] ss:$4 sm:$0xff]  ;;  %v11218_v53 = vld [vmem:[#allocation1 + $0x22] ss:$4 sm:$0xff]  ;;  %v11220_v2 = vld [vmem:[#allocation1 + $0x23] ss:$4 sm:$0xff]  ;;  %v1747_v6 = vsel %vm11119_vm10, %v1745_v35, %v1746_v44  ;;  %v2685_v58 = vsel %vm16013_vm3, %v2622_v16, %v2621_v8 }
  0xfa   : > { %v2625_v14 = vperm.slane %v1713_v46, 0  ;;  %v2626_v39 = vperm.slane %v11159_v12, 0  ;;  %v2627_v36 = vperm.slane %v11173_v40, 0  ;;  %1942 = vst.sshfl [vmem:[#allocation1] sm:$0xff pattern:$0x73625140] %v11196_v60  ;;  %v2686_v40 = vsel %vm15960_vm0, %v2623_v61, %v2685_v58 }
  0xfb   : > { %v2628_v45 = vperm.slane %v11177_v7, 0  ;;  %v2629_v48 = vperm.slane %v1726_v33, 0  ;;  %v2630_v9 = vperm.slane %v1729_v1, 0  ;;  %v2631_v52 = vperm.slane %v1732_v41, 0 }
  0xfc   : > { %v2632_v34 = vperm.slane %v1735_v18, 0  ;;  %v2633_v23 = vperm.slane %v1738_v29, 0  ;;  %v2634_v5 = vperm.slane %v1741_v43, 0  ;;  %v2635_v21 = vperm.slane %v1744_v13, 0  ;;  %v11245_v29 = vld [vmem:[%s10845_s2 + $0xc0] sm:$0xff] }
  0xfd   : > { %v2636_v20 = vperm.slane %v1747_v6, 0  ;;  %v2692_v46 = vsel %vm16013_vm3, %v2630_v9, %v2629_v48  ;;  %v1647_v12 = vrot.slane %v11034_v10, 2  ;;  %1943 = vst.sshfl [vmem:[#allocation1 + $0x20] sm:$0xff pattern:$0x73625140] %v11207_v26  ;;  %v1648_v33 = vrot.slane %v11034_v10, 4 }
  0xfe   : > { %v2693_v7 = vsel %vm15960_vm0, %v2631_v52, %v2692_v46  ;;  %v1649_v1 = vrot.slane %v11034_v10, 6  ;;  %v2687_v41 = vsel %vm15959_vm4, %v2624_v47, %v2686_v40  ;;  %v1650_v35 = vrot.slane %v11047_v27, 2  ;;  %16114 = vst [vmem:[#allocation88_spill] sm:$0xff] %v11245_v29 }
  0xff   : > { %v2694_v18 = vsel %vm15959_vm4, %v2632_v34, %v2693_v7  ;;  %v1651_v43 = vrot.slane %v11047_v27, 4  ;;  %v2688_v44 = vsel %vm15958_vm1, %v2625_v14, %v2687_v41  ;;  %v1652_v58 = vrot.slane %v11047_v27, 6 }
 0x100   : > { %v2695_v8 = vsel %vm15958_vm1, %v2633_v23, %v2694_v18  ;;  %v1653_v16 = vrot.slane %v11096_v4, 2  ;;  %v2689_v13 = vsel %vm15957_vm5, %v2626_v39, %v2688_v44  ;;  %v1654_v47 = vrot.slane %v11096_v4, 4 }
 0x101   : > { %v2696_v61 = vsel %vm15957_vm5, %v2634_v5, %v2695_v8  ;;  %v1655_v6 = vrot.slane %v11096_v4, 6  ;;  %v11251_v48 = vld [vmem:[#allocation1] ss:$4 sm:$0xff]  ;;  %v11253_v9 = vld [vmem:[#allocation1 + $0x1] ss:$4 sm:$0xff]  ;;  %v2690_v14 = vsel %vm15956_vm2, %v2627_v36, %v2689_v13  ;;  %v1656_v34 = vrot.slane %v11196_v60, 2 }
 0x102   : > { %v2697_v52 = vsel %vm15956_vm2, %v2635_v21, %v2696_v61  ;;  %v1657_v23 = vrot.slane %v11196_v60, 4  ;;  %v11259_v46 = vld [vmem:[#allocation1 + $0x2] ss:$4 sm:$0xff]  ;;  %v11261_v39 = vld [vmem:[#allocation1 + $0x3] ss:$4 sm:$0xff]  ;;  %v2691_v5 = vsel %vm15954_vm6, %v2628_v45, %v2690_v14  ;;  %v1658_v7 = vrot.slane %v11196_v60, 6 }
 0x103   : > { %v11265_v40 = vsel %vm15954_vm6, %v2636_v20, %v2697_v52  ;;  %v11268_v41 = vrot.slane %v1647_v12, 7  ;;  %1949 = vst.sshfl [vmem:[#allocation1] sm:$0xff pattern:$0x73625140] %v11245_v29  ;;  %v11272_v36 = vrot.slane %v1648_v33, 7  ;;  %v11274_v18 = vrot.slane %v1649_v1, 7 }
 0x104   : > { %16115 = vst [vmem:[#allocation89_spill] sm:$0xff] %v11265_v40  ;;  %v3422_v21 = vpack.c.bf16 %v11265_v40, %v2691_v5  ;;  %v11276_v44 = vrot.slane %v1650_v35, 7  ;;  %v11278_v8 = vrot.slane %v1651_v43, 7  ;;  %v11280_v45 = vrot.slane %v1652_v58, 7  ;;  %v11298_v51 = vld [vmem:[#allocation1 + $0x20] ss:$4 sm:$0xff] }
 0x105   : > { %v11282_v20 = vrot.slane %v1653_v16, 7  ;;  %v11284_v13 = vrot.slane %v1654_v47, 7  ;;  %v11286_v61 = vrot.slane %v1655_v6, 7  ;;  %v11288_v14 = vrot.slane %v1656_v34, 7 }
 0x106   : > { %4070 = vmatmul.bf16.vlgmr.msra.gmra.mxu1 %v3422_v21  ;;  %v11290_v52 = vrot.slane %v1657_v23, 7  ;;  %v11292_v5 = vrot.slane %v1658_v7, 7  ;;  %v2506_v62 = vperm.slane %v1647_v12, 0  ;;  %v2507_v63 = vperm.slane %v1648_v33, 0 }
 0x107   : > { %v2508_v59 = vperm.slane %v1649_v1, 0  ;;  %v2509_v21 = vperm.slane %v11047_v27, 0  ;;  %v2510_v55 = vperm.slane %v1650_v35, 0  ;;  %v2511_v50 = vperm.slane %v1651_v43, 0 }
 0x108   : > { %v2512_v24 = vperm.slane %v1652_v58, 0  ;;  %v2513_v37 = vperm.slane %v11096_v4, 0  ;;  %v2514_v54 = vperm.slane %v1653_v16, 0  ;;  %v2515_v49 = vperm.slane %v1654_v47, 0 }
 0x109   : > { %v2516_v30 = vperm.slane %v1655_v6, 0  ;;  %v2517_v40 = vperm.slane %v11196_v60, 0  ;;  %v2518_v29 = vperm.slane %v1656_v34, 0  ;;  %v2519_v12 = vperm.slane %v1657_v23, 0 }
 0x10a   : > { %v2520_v33 = vperm.slane %v1658_v7, 0  ;;  %v11306_v1 = vld [vmem:[#allocation1 + $0x1] ss:$4 sm:$0xff]  ;;  %v2571_v26 = vsel %vm16013_vm3, %v2506_v62, %v2505_v3  ;;  %v2578_v35 = vsel %vm16013_vm3, %v2514_v54, %v2513_v37  ;;  %v2765_v43 = vperm.slane %v11103_v15, 0  ;;  %v11317_v23 = vld [vmem:[#allocation1 + $0x2] ss:$4 sm:$0xff] }
 0x10b   : > { %v2766_v58 = vperm.slane %v11105_v22, 0  ;;  %1950 = vst.sshfl [vmem:[#allocation1 + $0x20] sm:$0xff pattern:$0x73625140] %v11295_v25  ;;  %v2572_v16 = vsel %vm15960_vm0, %v2507_v63, %v2571_v26  ;;  %v2579_v47 = vsel %vm15960_vm0, %v2515_v49, %v2578_v35  ;;  %v2767_v6 = vperm.slane %v11112_v28, 0  ;;  %v11338_v26 = vld [vmem:[%s10845_s2 + $0x80] sm:$0xff] }
 0x10c   : > { %v2768_v34 = vperm.slane %v11114_v32, 0  ;;  %v2573_v54 = vsel %vm15959_vm4, %v2508_v59, %v2572_v16  ;;  %v2580_v15 = vsel %vm15959_vm4, %v2516_v30, %v2579_v47  ;;  %v2769_v37 = vperm.slane %v11125_v31, 0  ;;  %v11323_v3 = vld [vmem:[#allocation1 + $0x3] ss:$4 sm:$0xff]  ;;  %16119 = vst [vmem:[#allocation93_spill] sm:$0xff] %v11338_v26 }
 0x10d   : > { %v2770_v62 = vperm.slane %v11127_v19, 0  ;;  %v2574_v49 = vsel %vm15958_vm1, %v2509_v21, %v2573_v54  ;;  %v2581_v63 = vsel %vm15958_vm1, %v2517_v40, %v2580_v15  ;;  %v2771_v22 = vperm.slane %v11141_v17, 0  ;;  %v11330_v32 = vld [vmem:[%s10845_s2 + $0x78] sm:$0xff]  ;;  %1958 = vst.sshfl [vmem:[#allocation1] sm:$0xff pattern:$0x73625140] %v11303_v0 }
 0x10e   : > { %v2772_v28 = vperm.slane %v11198_v42, 0  ;;  %16118 = vst [vmem:[#allocation92_spill] sm:$0xff] %v11330_v32  ;;  %v2575_v30 = vsel %vm15957_vm5, %v2510_v55, %v2574_v49  ;;  %v2582_v59 = vsel %vm15957_vm5, %v2518_v29, %v2581_v63  ;;  %v2773_v31 = vperm.slane %v11209_v38, 0  ;;  %v11341_v40 = vld [vmem:[%s10845_s2 + $0xf0] sm:$0xff]  ;;  %v11356_v35 = vld [vmem:[%s10845_s2 + $0xa8] sm:$0xff]  ;;  %v11359_v16 = vld [vmem:[%s10845_s2 + $0xf8] sm:$0xff] }
 0x10f   : > { %v2774_v19 = vperm.slane %v11218_v53, 0  ;;  %16120 = vst [vmem:[#allocation94_spill] sm:$0xff] %v11341_v40  ;;  %v2576_v17 = vsel %vm15956_vm2, %v2511_v50, %v2575_v30  ;;  %v2583_v42 = vsel %vm15956_vm2, %v2519_v12, %v2582_v59  ;;  %v2775_v7 = vperm.slane %v11220_v2, 0  ;;  %v11382_v63 = vld [vmem:[%s10845_s2 + $0xb0] sm:$0xff] }
 0x110   : > { %v2776_v21 = vperm.slane %v11251_v48, 0  ;;  %v11348_v55 = vsel %vm15954_vm6, %v2512_v24, %v2576_v17  ;;  %v11351_v29 = vsel %vm15954_vm6, %v2520_v33, %v2583_v42  ;;  %v2777_v38 = vperm.slane %v11253_v9, 0  ;;  %16123 = vst [vmem:[#allocation97_spill] sm:$0xff] %v11356_v35 }
 0x111   : > { %16121 = vst [vmem:[#allocation95_spill] sm:$0xff] %v11348_v55  ;;  %v2778_v53 = vperm.slane %v11259_v46, 0  ;;  %v3430_v2 = vpack.c.bf16 %v11351_v29, %v11348_v55  ;;  %v2779_v24 = vperm.slane %v11261_v39, 0  ;;  %v2780_v48 = vperm.slane %v11298_v51, 0 }
 0x112   : > { %16122 = vst [vmem:[#allocation96_spill] sm:$0xff] %v11351_v29  ;;  %v11367_v12 = vld [vmem:[#allocation1 + $0x20] ss:$4 sm:$0xff]  ;;  %v11369_v9 = vld [vmem:[#allocation1 + $0x21] ss:$4 sm:$0xff]  ;;  %v2827_v46 = vsel %vm16013_vm3, %v2766_v58, %v2765_v43  ;;  %v2834_v33 = vsel %vm16013_vm3, %v2774_v19, %v2773_v31  ;;  %v2021_v47 = vrot.slane %v11330_v32, 2 }
 0x113   : > { %16124 = vst [vmem:[#allocation98_spill] sm:$0xff] %v11359_v16  ;;  %v2022_v54 = vrot.slane %v11330_v32, 4  ;;  %v11375_v15 = vld [vmem:[#allocation1 + $0x22] ss:$4 sm:$0xff]  ;;  %v11377_v49 = vld [vmem:[#allocation1 + $0x23] ss:$4 sm:$0xff]  ;;  %4046 = vmatmul.bf16.gmra.mxu0 %v3430_v2  ;;  %v2828_v39 = vsel %vm15960_vm0, %v2767_v6, %v2827_v46  ;;  %v2835_v51 = vsel %vm15960_vm0, %v2775_v7, %v2834_v33 }
 0x114   : > { %16125 = vst [vmem:[#allocation99_spill] sm:$0xff] %v11382_v63  ;;  %v2023_v30 = vrot.slane %v11330_v32, 6  ;;  %v2024_v43 = vrot.slane %v11338_v26, 2  ;;  %v2829_v58 = vsel %vm15959_vm4, %v2768_v34, %v2828_v39  ;;  %v2836_v59 = vsel %vm15959_vm4, %v2776_v21, %v2835_v51  ;;  %v11391_v17 = vld [vmem:[#allocation1] ss:$4 sm:$0xff] }
 0x115   : > { %1960 = vst.sshfl [vmem:[#allocation1 + $0x20] sm:$0xff pattern:$0x73625140] %v11341_v40  ;;  %v2025_v31 = vrot.slane %v11338_v26, 4  ;;  %v2026_v19 = vrot.slane %v11338_v26, 6  ;;  %v2830_v6 = vsel %vm15958_vm1, %v2769_v37, %v2829_v58  ;;  %v2837_v42 = vsel %vm15958_vm1, %v2777_v38, %v2836_v59 }
 0x116   : > { %v2027_v7 = vrot.slane %v11356_v35, 2  ;;  %v2028_v2 = vrot.slane %v11356_v35, 4  ;;  %1964 = vst.sshfl [vmem:[#allocation1] sm:$0xff pattern:$0x73625140] %v11359_v16  ;;  %v2831_v34 = vsel %vm15957_vm5, %v2770_v62, %v2830_v6  ;;  %v2838_v21 = vsel %vm15957_vm5, %v2778_v53, %v2837_v42 }
 0x117   : > { %v2029_v46 = vrot.slane %v11356_v35, 6  ;;  %v2030_v33 = vrot.slane %v11382_v63, 2  ;;  %v2832_v39 = vsel %vm15956_vm2, %v2771_v22, %v2831_v34  ;;  %v2839_v37 = vsel %vm15956_vm2, %v2779_v24, %v2838_v21 }
 0x118   : > { %v2031_v38 = vrot.slane %v11382_v63, 4  ;;  %v2032_v51 = vrot.slane %v11382_v63, 6  ;;  %v2833_v58 = vsel %vm15954_vm6, %v2772_v28, %v2832_v39  ;;  %v2840_v59 = vsel %vm15954_vm6, %v2780_v48, %v2839_v37  ;;  %v11427_v48 = vld [vmem:[%s10845_s2 + $0x100] sm:$0x3] }
 0x119   : > { %v11408_v62 = vrot.slane %v2021_v47, 7  ;;  %v11410_v53 = vrot.slane %v2022_v54, 7  ;;  %v3432_v6 = vpack.c.bf16 %v2840_v59, %v2833_v58  ;;  %v11412_v42 = vrot.slane %v2023_v30, 7  ;;  %16135 = vst [vmem:[#allocation109_spill] sm:$0xff] %v11427_v48 }
 0x11a   : > { %v11414_v50 = vrot.slane %v2024_v43, 7  ;;  %v11416_v22 = vrot.slane %v2025_v31, 7  ;;  %v11418_v24 = vrot.slane %v2026_v19, 7  ;;  %v11420_v34 = vrot.slane %v2027_v7, 7 }
 0x11b   : > { %16126 = vst [vmem:[#allocation100_spill] sm:$0xff] %v11408_v62  ;;  %v11422_v21 = vrot.slane %v2028_v2, 7  ;;  %v11424_v28 = vrot.slane %v2029_v46, 7  ;;  %4104 = vmatmul.bf16.gmra.mxu2 %v3432_v6  ;;  %v11431_v37 = vrot.slane %v2030_v33, 7  ;;  %v11433_v58 = vrot.slane %v2031_v38, 7 }
 0x11c   : > { %16127 = vst [vmem:[#allocation101_spill] sm:$0xff] %v11410_v53  ;;  %v11429_v39 = vld [vmem:[#allocation1 + $0x21] ss:$4 sm:$0xff]  ;;  %v11435_v59 = vrot.slane %v2032_v51, 7  ;;  %v2893_v29 = vperm.slane %v11330_v32, 0  ;;  %v2899_v53 = vperm.slane %v2025_v31, 0 }
 0x11d   : > { %16128 = vst [vmem:[#allocation102_spill] sm:$0xff] %v11412_v42  ;;  %v2898_v42 = vperm.slane %v2024_v43, 0  ;;  %v2900_v6 = vperm.slane %v2026_v19, 0  ;;  %v2902_v62 = vperm.slane %v2027_v7, 0  ;;  %v2904_v56 = vperm.slane %v2029_v46, 0 }
 0x11e   : > { %16129 = vst [vmem:[#allocation103_spill] sm:$0xff] %v11414_v50  ;;  %v11441_v50 = vld [vmem:[#allocation1 + $0x23] ss:$4 sm:$0xff]  ;;  %v2906_v32 = vperm.slane %v2030_v33, 0  ;;  %v2907_v55 = vperm.slane %v2031_v38, 0  ;;  %v2908_v0 = vperm.slane %v2032_v51, 0 }
 0x11f   : > { %16130 = vst [vmem:[#allocation104_spill] sm:$0xff] %v11416_v22  ;;  %v2895_v22 = vperm.slane %v2022_v54, 0  ;;  %v8802_v43 = vrot.slane %v11034_v10, 9  ;;  %v1752_v31 = vrot.slane %v11268_v41, 2  ;;  %v1758_v46 = vrot.slane %v11274_v18, 2 }
 0x120   : > { %16131 = vst [vmem:[#allocation105_spill] sm:$0xff] %v11418_v24  ;;  %v11438_v24 = vld [vmem:[#allocation1 + $0x22] ss:$4 sm:$0xff] }
 0x121   : > { %16132 = vst [vmem:[#allocation106_spill] sm:$0xff] %v11420_v34  ;;  %v2894_v34 = vperm.slane %v2021_v47, 0  ;;  %v11460_v38 = vsel %vm11119_vm10, %v8802_v43, %v11268_v41  ;;  %v11465_v51 = vsel %vm11119_vm10, %v1752_v31, %v11272_v36  ;;  %v1780_v43 = vrot.slane %v11284_v13, 2 }
 0x122   : > { %16133 = vst [vmem:[#allocation107_spill] sm:$0xff] %v11422_v21  ;;  %v2896_v21 = vperm.slane %v2023_v30, 0  ;;  %v1783_v31 = vrot.slane %v11286_v61, 2 }
 0x123   : > { %16134 = vst [vmem:[#allocation108_spill] sm:$0xff] %v11424_v28  ;;  %v2897_v28 = vperm.slane %v11338_v26, 0  ;;  %v2955_v47 = vsel %vm16013_vm3, %v2894_v34, %v2893_v29  ;;  %v11627_v26 = vld [vmem:[%s10845_s2 + $0x130] sm:$0x3] }
 0x124   : > { %16136 = vst [vmem:[#allocation110_spill] sm:$0xff] %v11431_v37  ;;  %v2901_v37 = vperm.slane %v11356_v35, 0  ;;  %v2956_v54 = vsel %vm15960_vm0, %v2895_v22, %v2955_v47 }
 0x125   : > { %16137 = vst [vmem:[#allocation111_spill] sm:$0xff] %v11433_v58  ;;  %v2903_v58 = vperm.slane %v2028_v2, 0  ;;  %v2957_v19 = vsel %vm15959_vm4, %v2896_v21, %v2956_v54  ;;  %v1755_v2 = vrot.slane %v11272_v36, 2  ;;  %v1767_v36 = vrot.slane %v11278_v8, 2 }
 0x126   : > { %16138 = vst [vmem:[#allocation112_spill] sm:$0xff] %v11435_v59  ;;  %v2905_v59 = vperm.slane %v11382_v63, 0  ;;  %v2962_v30 = vsel %vm16013_vm3, %v2902_v62, %v2901_v37  ;;  %v2958_v29 = vsel %vm15958_vm1, %v2897_v28, %v2957_v19  ;;  %v1764_v28 = vrot.slane %v11276_v44, 2  ;;  %v9671_v63 = vld [vmem:[%s16064_s9 + $0x1f8] sm:$0xff] }
 0x127   : > { %1965 = vst.sshfl [vmem:[#allocation1 + $0x20] sm:$0xff pattern:$0x73625140] %v11427_v48  ;;  %v2963_v7 = vsel %vm15960_vm0, %v2903_v58, %v2962_v30  ;;  %v2959_v62 = vsel %vm15957_vm5, %v2898_v42, %v2958_v29  ;;  %v11472_v34 = vsel %vm11119_vm10, %v1755_v2, %v11274_v18  ;;  %v8803_v30 = vrot.slane %v11096_v4, 9  ;;  %4236 = vmatpush.bf16.msrb.mxu3 %v9671_v63 }
 0x128   : > { %v2964_v33 = vsel %vm15959_vm4, %v2904_v56, %v2963_v7  ;;  %v1759_v56 = vrot.slane %v11047_v27, 7  ;;  %v2960_v41 = vsel %vm15956_vm2, %v2899_v53, %v2959_v62  ;;  %v11487_v53 = vsel %vm11119_vm10, %v1764_v28, %v11278_v8  ;;  %16146 = vst [vmem:[#allocation117_spill] sm:$0xff] %v11627_v26 }
 0x129   : > { %v2965_v22 = vsel %vm15958_vm1, %v2905_v59, %v2964_v33  ;;  %v2961_v42 = vsel %vm15954_vm6, %v2900_v6, %v2960_v41  ;;  %v1770_v6 = vrot.slane %v11280_v45, 2  ;;  %v1777_v8 = vrot.slane %v11282_v20, 2 }
 0x12a   : > { %v2966_v21 = vsel %vm15957_vm5, %v2906_v32, %v2965_v22  ;;  %v1760_v58 = vsel %vm11119_vm10, %v1758_v46, %v1759_v56  ;;  %v1761_v18 = vrot.slane %v1759_v56, 2  ;;  %v11492_v32 = vsel %vm11119_vm10, %v1767_v36, %v11280_v45  ;;  %v9646_v45 = vld [vmem:[%s16064_s9 + $0x130] sm:$0xff] }
 0x12b   : > { %v2967_v37 = vsel %vm15956_vm2, %v2907_v55, %v2966_v21  ;;  %v9647_v55 = vld [vmem:[%s16064_s9 + $0x138] sm:$0xff]  ;;  %v1784_v19 = vrot.slane %v11196_v60, 7  ;;  %v1789_v2 = vrot.slane %v11288_v14, 2  ;;  %v1792_v46 = vrot.slane %v11290_v52, 2  ;;  %v11618_v60 = vld [vmem:[%s10845_s2 + $0x128] sm:$0xff] }
 0x12c   : > { %v2968_v59 = vsel %vm15954_vm6, %v2908_v0, %v2967_v37  ;;  %v1763_v54 = vsel %vm11119_vm10, %v1761_v18, %v11276_v44  ;;  %v1771_v0 = vrot.slane %v11089_v11, 7  ;;  %4149 = vmatpush.bf16.msrb.mxu0 %v9647_v55  ;;  %v1776_v44 = vsel %vm11119_vm10, %v8803_v30, %v11282_v20  ;;  %16145 = vst [vmem:[#allocation116_spill] sm:$0xff] %v11618_v60 }
 0x12d   : > { %v3433_v47 = vpack.c.bf16 %v2968_v59, %v2961_v42  ;;  %v1779_v29 = vsel %vm11119_vm10, %v1777_v8, %v11284_v13  ;;  %v1782_v33 = vsel %vm11119_vm10, %v1780_v43, %v11286_v61  ;;  %v1785_v62 = vsel %vm11119_vm10, %v1783_v31, %v1784_v19  ;;  %v16139_v13 = vld [vmem:[#allocation87_spill] sm:$0xff] }
 0x12e   : > { %v11508_v7 = vsel %vm11119_vm10, %v1770_v6, %v1771_v0  ;;  %v1786_v22 = vrot.slane %v1784_v19, 2  ;;  %v1791_v20 = vsel %vm11119_vm10, %v1789_v2, %v11290_v52  ;;  %v1794_v56 = vsel %vm11119_vm10, %v1792_v46, %v11292_v5 }
 0x12f   : > { %4133 = vmatmul.bf16.gmra.mxu3 %v3433_v47  ;;  %v1795_v41 = vrot.slane %v11292_v5, 2  ;;  %v1796_v21 = vrot.slane %v16139_v13, 7  ;;  %v2637_v28 = vperm.slane %v11460_v38, 0  ;;  %v2638_v36 = vperm.slane %v11465_v51, 0  ;;  %v9663_v47 = vld [vmem:[%s16064_s9 + $0x1b8] sm:$0xff] }
 0x130   : > { %v1788_v61 = vsel %vm11119_vm10, %v1786_v22, %v11288_v14  ;;  %v2639_v42 = vperm.slane %v11472_v34, 0  ;;  %4150 = vmatpush.bf16.msrb.mxu0 %v9646_v45  ;;  %v2640_v37 = vperm.slane %v1760_v58, 0  ;;  %v2641_v18 = vperm.slane %v1763_v54, 0  ;;  %4207 = vmatpush.bf16.msrb.mxu2 %v9663_v47  ;;  %v16140_v54 = vld [vmem:[#allocation88_spill] sm:$0xff] }
 0x131   : > { %v1797_v52 = vsel %vm11119_vm10, %v1795_v41, %v1796_v21  ;;  %v2642_v5 = vperm.slane %v11487_v53, 0  ;;  %v2643_v59 = vperm.slane %v11492_v32, 0  ;;  %v2644_v6 = vperm.slane %v11508_v7, 0  ;;  %v11549_v45 = vld [vmem:[#allocation1] ss:$4 sm:$0xff] }
 0x132   : > { %v2645_v55 = vperm.slane %v1776_v44, 0  ;;  %v2646_v14 = vperm.slane %v1779_v29, 0  ;;  %v2647_v38 = vperm.slane %v1782_v33, 0  ;;  %v2648_v0 = vperm.slane %v1785_v62, 0  ;;  %v11551_v7 = vld [vmem:[#allocation1 + $0x1] ss:$4 sm:$0xff] }
 0x133   : > { %v2649_v51 = vperm.slane %v1788_v61, 0  ;;  %v2650_v30 = vperm.slane %v1791_v20, 0  ;;  %v2651_v34 = vperm.slane %v1794_v56, 0  ;;  %v2652_v8 = vperm.slane %v1797_v52, 0  ;;  %v11557_v33 = vld [vmem:[#allocation1 + $0x2] ss:$4 sm:$0xff] }
 0x134   : > { %v2699_v43 = vsel %vm16013_vm3, %v2638_v36, %v2637_v28  ;;  %v2706_v58 = vsel %vm16013_vm3, %v2646_v14, %v2645_v55  ;;  %v1659_v31 = vrot.slane %v16140_v54, 2  ;;  %v1660_v19 = vrot.slane %v16140_v54, 4  ;;  %v11559_v62 = vld [vmem:[#allocation1 + $0x3] ss:$4 sm:$0xff] }
 0x135   : > { %v2700_v53 = vsel %vm15960_vm0, %v2639_v42, %v2699_v43  ;;  %v2707_v32 = vsel %vm15960_vm0, %v2647_v38, %v2706_v58  ;;  %v1661_v46 = vrot.slane %v16140_v54, 6  ;;  %v1662_v29 = vrot.slane %v11295_v25, 2  ;;  %v11570_v42 = vld [vmem:[%s10845_s2 + $0x120] sm:$0xff] }
 0x136   : > { %v2701_v44 = vsel %vm15959_vm4, %v2640_v37, %v2700_v53  ;;  %v2708_v2 = vsel %vm15959_vm4, %v2648_v0, %v2707_v32  ;;  %v1663_v56 = vrot.slane %v11295_v25, 4  ;;  %v1664_v41 = vrot.slane %v11295_v25, 6  ;;  %16141 = vst [vmem:[#allocation113_spill] sm:$0xff] %v11570_v42 }
 0x137   : > { %v2702_v22 = vsel %vm15958_vm1, %v2641_v18, %v2701_v44  ;;  %v2709_v20 = vsel %vm15958_vm1, %v2649_v51, %v2708_v2  ;;  %v1665_v28 = vrot.slane %v11341_v40, 2  ;;  %v1666_v36 = vrot.slane %v11341_v40, 4  ;;  %1971 = vst.sshfl [vmem:[#allocation1] sm:$0xff pattern:$0x73625140] %v11570_v42 }
 0x138   : > { %v2703_v21 = vsel %vm15957_vm5, %v2642_v5, %v2702_v22  ;;  %v2710_v61 = vsel %vm15957_vm5, %v2650_v30, %v2709_v20  ;;  %v1667_v18 = vrot.slane %v11341_v40, 6  ;;  %v1668_v55 = vrot.slane %v11359_v16, 2 }
 0x139   : > { %v2704_v52 = vsel %vm15956_vm2, %v2643_v59, %v2703_v21  ;;  %v2711_v37 = vsel %vm15956_vm2, %v2651_v34, %v2710_v61  ;;  %v1669_v47 = vrot.slane %v11359_v16, 4  ;;  %v1670_v38 = vrot.slane %v11359_v16, 6  ;;  %v11613_v21 = vld [vmem:[#allocation1 + $0x20] ss:$4 sm:$0xff] }
 0x13a   : > { %v11578_v5 = vsel %vm15954_vm6, %v2644_v6, %v2704_v52  ;;  %v11581_v14 = vsel %vm15954_vm6, %v2652_v8, %v2711_v37  ;;  %v11589_v30 = vrot.slane %v1659_v31, 7  ;;  %v11591_v34 = vrot.slane %v1660_v19, 7  ;;  %1972 = vst.sshfl [vmem:[#allocation1 + $0x20] sm:$0xff pattern:$0x73625140] %v11618_v60 }
 0x13b   : > { %16142 = vst [vmem:[#allocation114_spill] sm:$0xff] %v11578_v5  ;;  %v3431_v51 = vpack.c.bf16 %v11581_v14, %v11578_v5  ;;  %v11593_v43 = vrot.slane %v1661_v46, 7  ;;  %v11595_v6 = vrot.slane %v1662_v29, 7  ;;  %v11597_v8 = vrot.slane %v1663_v56, 7 }
 0x13c   : > { %16143 = vst [vmem:[#allocation115_spill] sm:$0xff] %v11581_v14  ;;  %v11599_v58 = vrot.slane %v1664_v41, 7  ;;  %v11601_v53 = vrot.slane %v1665_v28, 7  ;;  %v11603_v32 = vrot.slane %v1666_v36, 7  ;;  %v11605_v44 = vrot.slane %v1667_v18, 7  ;;  %v9645_v14 = vld [vmem:[%s16064_s9 + $0x128] sm:$0xff] }
 0x13d   : > { %4075 = vmatmul.bf16.gmra.mxu1 %v3431_v51  ;;  %v11607_v2 = vrot.slane %v1668_v55, 7  ;;  %v11609_v22 = vrot.slane %v1669_v47, 7  ;;  %v11611_v20 = vrot.slane %v1670_v38, 7  ;;  %v2521_v61 = vperm.slane %v16140_v54, 0  ;;  %4151 = vmatpush.bf16.msrb.mxu0 %v9645_v14 }
 0x13e   : > { %v2522_v52 = vperm.slane %v1659_v31, 0  ;;  %v2523_v37 = vperm.slane %v1660_v19, 0  ;;  %v2524_v51 = vperm.slane %v1661_v46, 0  ;;  %v2525_v59 = vperm.slane %v11295_v25, 0  ;;  %v11641_v14 = vld [vmem:[#allocation1 + $0x3] ss:$4 sm:$0xff] }
 0x13f   : > { %v2526_v13 = vperm.slane %v1662_v29, 0  ;;  %v2527_v4 = vperm.slane %v1663_v56, 0  ;;  %v2528_v11 = vperm.slane %v1664_v41, 0  ;;  %v2529_v27 = vperm.slane %v11341_v40, 0 }
 0x140   : > { %v2530_v10 = vperm.slane %v1665_v28, 0  ;;  %v2531_v35 = vperm.slane %v1666_v36, 0  ;;  %v2532_v0 = vperm.slane %v1667_v18, 0  ;;  %v2533_v5 = vperm.slane %v11359_v16, 0  ;;  %v11633_v18 = vld [vmem:[#allocation1 + $0x1] ss:$4 sm:$0xff] }
 0x141   : > { %v2534_v31 = vperm.slane %v1668_v55, 0  ;;  %v2535_v19 = vperm.slane %v1669_v47, 0  ;;  %v2585_v46 = vsel %vm16013_vm3, %v2522_v52, %v2521_v61  ;;  %v2536_v56 = vperm.slane %v1670_v38, 0  ;;  %v11635_v55 = vld [vmem:[#allocation1 + $0x2] ss:$4 sm:$0xff] }
 0x142   : > { %v2592_v29 = vsel %vm16013_vm3, %v2530_v10, %v2529_v27  ;;  %v2586_v41 = vsel %vm15960_vm0, %v2523_v37, %v2585_v46  ;;  %v2781_v36 = vperm.slane %v11306_v1, 0  ;;  %v2782_v27 = vperm.slane %v11317_v23, 0  ;;  %1980 = vst.sshfl [vmem:[#allocation1] sm:$0xff pattern:$0x73625140] %v11627_v26 }
 0x143   : > { %v2593_v28 = vsel %vm15960_vm0, %v2531_v35, %v2592_v29  ;;  %v2587_v47 = vsel %vm15959_vm4, %v2524_v51, %v2586_v41  ;;  %v2783_v63 = vperm.slane %v11323_v3, 0  ;;  %v2784_v1 = vperm.slane %v11367_v12, 0  ;;  %v11684_v41 = vld [vmem:[#allocation1 + $0x21] ss:$4 sm:$0xff] }
 0x144   : > { %v2594_v10 = vsel %vm15959_vm4, %v2532_v0, %v2593_v28  ;;  %v2588_v38 = vsel %vm15958_vm1, %v2525_v59, %v2587_v47  ;;  %v2785_v61 = vperm.slane %v11369_v9, 0  ;;  %v2786_v3 = vperm.slane %v11375_v15, 0  ;;  %v11691_v28 = vld [vmem:[%s10845_s2 + $0x108] sm:$0xff] }
 0x145   : > { %v2595_v35 = vsel %vm15958_vm1, %v2533_v5, %v2594_v10  ;;  %v2589_v0 = vsel %vm15957_vm5, %v2526_v13, %v2588_v38  ;;  %v2787_v52 = vperm.slane %v11377_v49, 0  ;;  %v2789_v12 = vperm.slane %v11429_v39, 0  ;;  %v11668_v49 = vld [vmem:[%s10845_s2 + $0xe0] sm:$0xff]  ;;  %v11703_v38 = vld [vmem:[%s10845_s2 + $0x110] sm:$0xff] }
 0x146   : > { %v2596_v23 = vsel %vm15957_vm5, %v2534_v31, %v2595_v35  ;;  %v2590_v59 = vsel %vm15956_vm2, %v2527_v4, %v2589_v0  ;;  %v2790_v37 = vperm.slane %v11438_v24, 0  ;;  %v2791_v51 = vperm.slane %v11441_v50, 0  ;;  %v11665_v31 = vld [vmem:[%s10845_s2 + $0xd8] sm:$0xff]  ;;  %16150 = vst [vmem:[#allocation121_spill] sm:$0xff] %v11668_v49 }
 0x147   : > { %v2597_v5 = vsel %vm15956_vm2, %v2535_v19, %v2596_v23  ;;  %v11657_v9 = vsel %vm15954_vm6, %v2528_v11, %v2590_v59  ;;  %v2792_v15 = vperm.slane %v11549_v45, 0  ;;  %16149 = vst [vmem:[#allocation120_spill] sm:$0xff] %v11665_v31  ;;  %v2788_v24 = vperm.slane %v11391_v17, 0  ;;  %v11676_v19 = vld [vmem:[%s10845_s2 + $0x150] sm:$0xff] }
 0x148   : > { %16147 = vst [vmem:[#allocation118_spill] sm:$0xff] %v11657_v9  ;;  %v11660_v13 = vsel %vm15954_vm6, %v2536_v56, %v2597_v5  ;;  %v2793_v11 = vperm.slane %v11551_v7, 0  ;;  %v2794_v39 = vperm.slane %v11557_v33, 0  ;;  %v11678_v50 = vld [vmem:[#allocation1 + $0x20] ss:$4 sm:$0xff]  ;;  %v2795_v45 = vperm.slane %v11559_v62, 0 }
 0x149   : > { %16148 = vst [vmem:[#allocation119_spill] sm:$0xff] %v11660_v13  ;;  %v3439_v4 = vpack.c.bf16 %v11660_v13, %v11657_v9  ;;  %v2796_v46 = vperm.slane %v11613_v21, 0  ;;  %v2841_v29 = vsel %vm16013_vm3, %v2782_v27, %v2781_v36  ;;  %v2848_v56 = vsel %vm16013_vm3, %v2790_v37, %v2789_v12  ;;  %v11686_v17 = vld [vmem:[#allocation1 + $0x22] ss:$4 sm:$0xff]  ;;  %v11698_v36 = vld [vmem:[#allocation1 + $0x23] ss:$4 sm:$0xff] }
 0x14a   : > { %16151 = vst [vmem:[#allocation122_spill] sm:$0xff] %v11676_v19  ;;  %v2842_v7 = vsel %vm15960_vm0, %v2783_v63, %v2841_v29  ;;  %v2849_v33 = vsel %vm15960_vm0, %v2791_v51, %v2848_v56  ;;  %v2033_v62 = vrot.slane %v11665_v31, 2  ;;  %v2034_v47 = vrot.slane %v11665_v31, 4  ;;  %v11696_v21 = vld [vmem:[%s10845_s2 + $0x158] sm:$0xff] }
 0x14b   : > { %4051 = vmatmul.bf16.gmra.mxu0 %v3439_v4  ;;  %16152 = vst [vmem:[#allocation123_spill] sm:$0xff] %v11696_v21  ;;  %v2843_v10 = vsel %vm15959_vm4, %v2784_v1, %v2842_v7  ;;  %v2850_v27 = vsel %vm15959_vm4, %v2792_v15, %v2849_v33  ;;  %v2035_v63 = vrot.slane %v11665_v31, 6  ;;  %v2036_v35 = vrot.slane %v11668_v49, 2  ;;  %v11707_v0 = vld [vmem:[#allocation1] ss:$4 sm:$0xff] }
 0x14c   : > { %v2844_v23 = vsel %vm15958_vm1, %v2785_v61, %v2843_v10  ;;  %v2851_v59 = vsel %vm15958_vm1, %v2793_v11, %v2850_v27  ;;  %v2037_v5 = vrot.slane %v11668_v49, 4  ;;  %v2038_v12 = vrot.slane %v11668_v49, 6  ;;  %1982 = vst.sshfl [vmem:[#allocation1 + $0x20] sm:$0xff pattern:$0x73625140] %v11676_v19  ;;  %v9655_v27 = vld [vmem:[%s16064_s9 + $0x178] sm:$0xff] }
 0x14d   : > { %v2845_v1 = vsel %vm15957_vm5, %v2786_v3, %v2844_v23  ;;  %v2852_v37 = vsel %vm15957_vm5, %v2794_v39, %v2851_v59  ;;  %v2039_v51 = vrot.slane %v11691_v28, 2  ;;  %v2040_v15 = vrot.slane %v11691_v28, 4  ;;  %1986 = vst.sshfl [vmem:[#allocation1] sm:$0xff pattern:$0x73625140] %v11696_v21  ;;  %v9662_v23 = vld [vmem:[%s16064_s9 + $0x1b0] sm:$0xff]  ;;  %4178 = vmatpush.bf16.msrb.mxu1 %v9655_v27 }
 0x14e   : > { %v2846_v61 = vsel %vm15956_vm2, %v2787_v52, %v2845_v1  ;;  %v2853_v4 = vsel %vm15956_vm2, %v2795_v45, %v2852_v37  ;;  %v2041_v11 = vrot.slane %v11691_v28, 6  ;;  %v2042_v29 = vrot.slane %v11703_v38, 2  ;;  %v9644_v37 = vld [vmem:[%s16064_s9 + $0x120] sm:$0xff]  ;;  %4208 = vmatpush.bf16.msrb.mxu2 %v9662_v23 }
 0x14f   : > { %v2847_v3 = vsel %vm15954_vm6, %v2788_v24, %v2846_v61  ;;  %v2854_v39 = vsel %vm15954_vm6, %v2796_v46, %v2853_v4  ;;  %v2043_v56 = vrot.slane %v11703_v38, 4  ;;  %v2044_v7 = vrot.slane %v11703_v38, 6  ;;  %v9670_v61 = vld [vmem:[%s16064_s9 + $0x1f0] sm:$0xff]  ;;  %4152 = vmatpush.bf16.msrb.mxu0 %v9644_v37 }
 0x150   : > { %v3441_v33 = vpack.c.bf16 %v2854_v39, %v2847_v3  ;;  %v11727_v10 = vrot.slane %v2033_v62, 7  ;;  %v11729_v52 = vrot.slane %v2034_v47, 7  ;;  %v11731_v45 = vrot.slane %v2035_v63, 7  ;;  %4237 = vmatpush.bf16.msrb.mxu3 %v9670_v61 }
 0x151   : > { %v11735_v59 = vrot.slane %v2036_v35, 7  ;;  %v11737_v1 = vrot.slane %v2037_v5, 7  ;;  %v11739_v24 = vrot.slane %v2038_v12, 7  ;;  %v11741_v46 = vrot.slane %v2039_v51, 7 }
 0x152   : > { %16153 = vst [vmem:[#allocation124_spill] sm:$0xff] %v11727_v10  ;;  %4109 = vmatmul.bf16.gmra.mxu2 %v3441_v33  ;;  %v11745_v4 = vrot.slane %v2040_v15, 7  ;;  %v11747_v3 = vrot.slane %v2041_v11, 7  ;;  %v11749_v39 = vrot.slane %v2042_v29, 7  ;;  %v11751_v13 = vrot.slane %v2043_v56, 7 }
 0x153   : > { %16154 = vst [vmem:[#allocation125_spill] sm:$0xff] %v11729_v52  ;;  %v9661_v52 = vld [vmem:[%s16064_s9 + $0x1a8] sm:$0xff]  ;;  %v2912_v33 = vperm.slane %v2035_v63, 0  ;;  %v2914_v10 = vperm.slane %v2036_v35, 0  ;;  %v2919_v27 = vperm.slane %v2040_v15, 0  ;;  %v2920_v9 = vperm.slane %v2041_v11, 0 }
 0x154   : > { %16155 = vst [vmem:[#allocation126_spill] sm:$0xff] %v11731_v45  ;;  %v11754_v45 = vrot.slane %v2044_v7, 7  ;;  %v11760_v26 = vld [vmem:[#allocation1 + $0x21] ss:$4 sm:$0xff]  ;;  %v2921_v23 = vperm.slane %v11703_v38, 0  ;;  %v2922_v63 = vperm.slane %v2042_v29, 0  ;;  %4209 = vmatpush.bf16.msrb.mxu2 %v9661_v52 }
 0x155   : > { %16156 = vst [vmem:[#allocation127_spill] sm:$0xff] %v11735_v59  ;;  %v9654_v59 = vld [vmem:[%s16064_s9 + $0x170] sm:$0xff]  ;;  %v2923_v37 = vperm.slane %v2043_v56, 0  ;;  %v1802_v15 = vrot.slane %v11589_v30, 2  ;;  %v2924_v38 = vperm.slane %v2044_v7, 0  ;;  %v1808_v7 = vrot.slane %v11593_v43, 2 }
 0x156   : > { %16157 = vst [vmem:[#allocation128_spill] sm:$0xff] %v11737_v1  ;;  %v2910_v1 = vperm.slane %v2033_v62, 0  ;;  %v11764_v62 = vld [vmem:[#allocation1 + $0x23] ss:$4 sm:$0xff]  ;;  %4179 = vmatpush.bf16.msrb.mxu1 %v9654_v59  ;;  %v11767_v35 = vld [vmem:[#allocation1] ss:$4 sm:$0xff] }
 0x157   : > { %16158 = vst [vmem:[#allocation129_spill] sm:$0xff] %v11739_v24  ;;  %v2909_v24 = vperm.slane %v11665_v31, 0  ;;  %v11773_v11 = vld [vmem:[#allocation1 + $0x1] ss:$4 sm:$0xff]  ;;  %v1805_v59 = vrot.slane %v11591_v34, 2 }
 0x158   : > { %16159 = vst [vmem:[#allocation130_spill] sm:$0xff] %v11741_v46  ;;  %v2911_v46 = vperm.slane %v2034_v47, 0  ;;  %v2916_v47 = vperm.slane %v2038_v12, 0  ;;  %v11775_v12 = vld [vmem:[#allocation1 + $0x2] ss:$4 sm:$0xff] }
 0x159   : > { %16160 = vst [vmem:[#allocation131_spill] sm:$0xff] %v11745_v4  ;;  %v2913_v4 = vperm.slane %v11668_v49, 0  ;;  %v11780_v61 = vld [vmem:[#allocation1 + $0x3] ss:$4 sm:$0xff]  ;;  %v2549_v49 = vperm.slane %v11696_v21, 0 }
 0x15a   : > { %16161 = vst [vmem:[#allocation132_spill] sm:$0xff] %v11747_v3  ;;  %v2915_v3 = vperm.slane %v2037_v5, 0 }
 0x15b   : > { %16162 = vst [vmem:[#allocation133_spill] sm:$0xff] %v11749_v39  ;;  %v2917_v39 = vperm.slane %v11691_v28, 0  ;;  %v2969_v28 = vsel %vm16013_vm3, %v2910_v1, %v2909_v24  ;;  %v11783_v1 = vld [vmem:[%s10845_s2 + $0x160] sm:$0x3] }
 0x15c   : > { %16163 = vst [vmem:[#allocation134_spill] sm:$0xff] %v11751_v13  ;;  %v2918_v13 = vperm.slane %v2039_v51, 0  ;;  %v8804_v51 = vrot.slane %v16140_v54, 9  ;;  %v2970_v29 = vsel %vm15960_vm0, %v2911_v46, %v2969_v28  ;;  %v16166_v46 = vld [vmem:[#allocation64_spill] sm:$0xff] }
 0x15d   : > { %16164 = vst [vmem:[#allocation135_spill] sm:$0xff] %v11754_v45  ;;  %v11762_v45 = vld [vmem:[#allocation1 + $0x22] ss:$4 sm:$0xff] }
 0x15e   : > { %v2976_v5 = vsel %vm16013_vm3, %v2918_v13, %v2917_v39  ;;  %16165 = vst [vmem:[#allocation136_spill] sm:$0xff] %v11783_v1  ;;  %v2971_v13 = vsel %vm15959_vm4, %v2912_v33, %v2970_v29  ;;  %v11790_v52 = vsel %vm11119_vm10, %v8804_v51, %v11589_v30  ;;  %v11799_v33 = vsel %vm11119_vm10, %v1802_v15, %v11591_v34 }
 0x15f   : > { %v2977_v56 = vsel %vm15960_vm0, %v2919_v27, %v2976_v5  ;;  %2265 = vst.sshfl [vmem:[#allocation1] sm:$0xff pattern:$0x73625140] %v16166_v46  ;;  %v2972_v39 = vsel %vm15958_vm1, %v2913_v4, %v2971_v13  ;;  %v1814_v5 = vrot.slane %v11595_v6, 2  ;;  %v1817_v4 = vrot.slane %v11597_v8, 2 }
 0x160   : > { %v2978_v24 = vsel %vm15959_vm4, %v2920_v9, %v2977_v56  ;;  %v1809_v9 = vrot.slane %v11295_v25, 7  ;;  %1987 = vst.sshfl [vmem:[#allocation1 + $0x20] sm:$0xff pattern:$0x73625140] %v11783_v1  ;;  %v2973_v30 = vsel %vm15957_vm5, %v2914_v10, %v2972_v39  ;;  %v11812_v51 = vsel %vm11119_vm10, %v1805_v59, %v11593_v43  ;;  %v9669_v56 = vld [vmem:[%s16064_s9 + $0x1e8] sm:$0xff]  ;;  %v16167_v59 = vld [vmem:[#allocation91_spill] sm:$0xff] }
 0x161   : > { %v2979_v27 = vsel %vm15958_vm1, %v2921_v23, %v2978_v24  ;;  %v2974_v23 = vsel %vm15956_vm2, %v2915_v3, %v2973_v30  ;;  %v11823_v3 = vsel %vm11119_vm10, %v1814_v5, %v11597_v8  ;;  %v1821_v13 = vrot.slane %v16167_v59, 7  ;;  %v9653_v24 = vld [vmem:[%s16064_s9 + $0x168] sm:$0xff]  ;;  %4238 = vmatpush.bf16.msrb.mxu3 %v9669_v56  ;;  %v9642_v30 = vld [vmem:[%s16064_s9 + $0x110] sm:$0xff] }
 0x162   : > { %v2980_v28 = vsel %vm15957_vm5, %v2922_v63, %v2979_v27  ;;  %v1811_v15 = vrot.slane %v1809_v9, 2  ;;  %v2975_v10 = vsel %vm15954_vm6, %v2916_v47, %v2974_v23  ;;  %v11818_v29 = vsel %vm11119_vm10, %v1808_v7, %v1809_v9  ;;  %v9660_v7 = vld [vmem:[%s16064_s9 + $0x1a0] sm:$0xff]  ;;  %4180 = vmatpush.bf16.msrb.mxu1 %v9653_v24  ;;  %v9641_v25 = vld [vmem:[%s16064_s9 + $0x108] sm:$0xff] }
 0x163   : > { %v2981_v34 = vsel %vm15956_vm2, %v2923_v37, %v2980_v28  ;;  %v9643_v37 = vld [vmem:[%s16064_s9 + $0x118] sm:$0xff]  ;;  %v11830_v47 = vsel %vm11119_vm10, %v1817_v4, %v11599_v58  ;;  %v8805_v39 = vrot.slane %v11341_v40, 9  ;;  %v1827_v8 = vrot.slane %v11601_v53, 2  ;;  %v9668_v28 = vld [vmem:[%s16064_s9 + $0x1e0] sm:$0xff]  ;;  %4210 = vmatpush.bf16.msrb.mxu2 %v9660_v7 }
 0x164   : > { %v2982_v63 = vsel %vm15954_vm6, %v2924_v38, %v2981_v34  ;;  %v1820_v38 = vrot.slane %v11599_v58, 2  ;;  %v1830_v27 = vrot.slane %v11603_v32, 2  ;;  %v1833_v9 = vrot.slane %v11605_v44, 2  ;;  %4153 = vmatpush.bf16.msrb.mxu0 %v9643_v37 }
 0x165   : > { %v3442_v43 = vpack.c.bf16 %v2982_v63, %v2975_v10  ;;  %v1813_v58 = vsel %vm11119_vm10, %v1811_v15, %v11595_v6  ;;  %v1834_v5 = vrot.slane %v11359_v16, 7  ;;  %v1839_v4 = vrot.slane %v11607_v2, 2  ;;  %4239 = vmatpush.bf16.msrb.mxu3 %v9668_v28 }
 0x166   : > { %v1842_v23 = vrot.slane %v11609_v22, 2  ;;  %v1822_v34 = vsel %vm11119_vm10, %v1820_v38, %v1821_v13  ;;  %v1826_v10 = vsel %vm11119_vm10, %v8805_v39, %v11601_v53  ;;  %v1829_v63 = vsel %vm11119_vm10, %v1827_v8, %v11603_v32  ;;  %v16168_v8 = vld [vmem:[#allocation65_spill] sm:$0xff] }
 0x167   : > { %4138 = vmatmul.bf16.gmra.mxu3 %v3442_v43  ;;  %v1845_v6 = vrot.slane %v11611_v20, 2  ;;  %v1832_v15 = vsel %vm11119_vm10, %v1830_v27, %v11605_v44  ;;  %v1835_v37 = vsel %vm11119_vm10, %v1833_v9, %v1834_v5  ;;  %v1836_v56 = vrot.slane %v1834_v5, 2  ;;  %v11865_v53 = vld [vmem:[#allocation1 + $0x20] ss:$4 sm:$0xff] }
 0x168   : > { %v1841_v43 = vsel %vm11119_vm10, %v1839_v4, %v11609_v22  ;;  %v1844_v32 = vsel %vm11119_vm10, %v1842_v23, %v11611_v20  ;;  %v1846_v38 = vrot.slane %v11427_v48, 7  ;;  %v2653_v44 = vperm.slane %v11790_v52, 0  ;;  %4154 = vmatpush.bf16.msrb.mxu0 %v9642_v30  ;;  %2266 = vst.sshfl [vmem:[#allocation1 + $0x20] sm:$0xff pattern:$0x73625140] %v16168_v8  ;;  %v9652_v9 = vld [vmem:[%s16064_s9 + $0x160] sm:$0xff] }
 0x169   : > { %v2654_v13 = vperm.slane %v11799_v33, 0  ;;  %v1838_v22 = vsel %vm11119_vm10, %v1836_v56, %v11607_v2  ;;  %v2655_v24 = vperm.slane %v11812_v51, 0  ;;  %v2656_v7 = vperm.slane %v11818_v29, 0  ;;  %v9659_v30 = vld [vmem:[%s16064_s9 + $0x198] sm:$0xff]  ;;  %4181 = vmatpush.bf16.msrb.mxu1 %v9652_v9 }
 0x16a   : > { %v2657_v39 = vperm.slane %v1813_v58, 0  ;;  %v1847_v20 = vsel %vm11119_vm10, %v1845_v6, %v1846_v38  ;;  %v2658_v52 = vperm.slane %v11823_v3, 0  ;;  %v2659_v33 = vperm.slane %v11830_v47, 0  ;;  %4211 = vmatpush.bf16.msrb.mxu2 %v9659_v30 }
 0x16b   : > { %v2661_v27 = vperm.slane %v1826_v10, 0  ;;  %v2660_v28 = vperm.slane %v1822_v34, 0  ;;  %v2662_v5 = vperm.slane %v1829_v63, 0  ;;  %v2663_v2 = vperm.slane %v1832_v15, 0 }
 0x16c   : > { %v2664_v4 = vperm.slane %v1835_v37, 0  ;;  %v2665_v51 = vperm.slane %v1838_v22, 0  ;;  %v2666_v23 = vperm.slane %v1841_v43, 0  ;;  %v2667_v29 = vperm.slane %v1844_v32, 0  ;;  %4155 = vmatpush.bf16.msrb.mxu0 %v9641_v25 }
 0x16d   : > { %v2713_v58 = vsel %vm16013_vm3, %v2654_v13, %v2653_v44  ;;  %v2668_v56 = vperm.slane %v1847_v20, 0  ;;  %v2720_v3 = vsel %vm16013_vm3, %v2662_v5, %v2661_v27  ;;  %v1671_v47 = vrot.slane %v11570_v42, 2 }
 0x16e   : > { %v2714_v6 = vsel %vm15960_vm0, %v2655_v24, %v2713_v58  ;;  %v2721_v34 = vsel %vm15960_vm0, %v2663_v2, %v2720_v3  ;;  %v1672_v63 = vrot.slane %v11570_v42, 4  ;;  %v1673_v15 = vrot.slane %v11570_v42, 6 }
 0x16f   : > { %v2715_v10 = vsel %vm15959_vm4, %v2656_v7, %v2714_v6  ;;  %v2722_v43 = vsel %vm15959_vm4, %v2664_v4, %v2721_v34  ;;  %v1674_v32 = vrot.slane %v11618_v60, 2  ;;  %v1675_v38 = vrot.slane %v11618_v60, 4 }
 0x170   : > { %v2716_v37 = vsel %vm15958_vm1, %v2657_v39, %v2715_v10  ;;  %v2723_v13 = vsel %vm15958_vm1, %v2665_v51, %v2722_v43  ;;  %v1676_v22 = vrot.slane %v11618_v60, 6  ;;  %v1677_v24 = vrot.slane %v11676_v19, 2 }
 0x171   : > { %v2717_v44 = vsel %vm15957_vm5, %v2658_v52, %v2716_v37  ;;  %v2724_v20 = vsel %vm15957_vm5, %v2666_v23, %v2723_v13  ;;  %v1678_v39 = vrot.slane %v11676_v19, 4  ;;  %v1679_v27 = vrot.slane %v11676_v19, 6 }
 0x172   : > { %v2718_v7 = vsel %vm15956_vm2, %v2659_v33, %v2717_v44  ;;  %v2725_v30 = vsel %vm15956_vm2, %v2667_v29, %v2724_v20  ;;  %v1680_v52 = vrot.slane %v11696_v21, 2  ;;  %v1681_v5 = vrot.slane %v11696_v21, 4 }
 0x173   : > { %v11906_v9 = vsel %vm15954_vm6, %v2660_v28, %v2718_v7  ;;  %v11912_v2 = vsel %vm15954_vm6, %v2668_v56, %v2725_v30  ;;  %v1682_v33 = vrot.slane %v11696_v21, 6  ;;  %v11915_v4 = vrot.slane %v1671_v47, 7 }
 0x174   : > { %16169 = vst [vmem:[#allocation64_spill] sm:$0xff] %v11906_v9  ;;  %v11917_v51 = vrot.slane %v1672_v63, 7  ;;  %v3440_v23 = vpack.c.bf16 %v11912_v2, %v11906_v9  ;;  %v11921_v28 = vrot.slane %v1673_v15, 7  ;;  %v11923_v58 = vrot.slane %v1674_v32, 7 }
 0x175   : > { %16170 = vst [vmem:[#allocation137_spill] sm:$0xff] %v11912_v2  ;;  %v11925_v29 = vrot.slane %v1675_v38, 7  ;;  %v11927_v6 = vrot.slane %v1676_v22, 7  ;;  %v11929_v3 = vrot.slane %v1677_v24, 7  ;;  %v11931_v56 = vrot.slane %v1678_v39, 7 }
 0x176   : > { %v11933_v10 = vrot.slane %v1679_v27, 7  ;;  %4080 = vmatmul.bf16.gmra.mxu1 %v3440_v23  ;;  %v11935_v34 = vrot.slane %v1680_v52, 7  ;;  %v11937_v37 = vrot.slane %v1681_v5, 7  ;;  %v2537_v43 = vperm.slane %v11570_v42, 0  ;;  %v9667_v23 = vld [vmem:[%s16064_s9 + $0x1d8] sm:$0xff] }
 0x177   : > { %v2538_v44 = vperm.slane %v1671_v47, 0  ;;  %v11940_v13 = vrot.slane %v1682_v33, 7  ;;  %v2539_v7 = vperm.slane %v1672_v63, 0  ;;  %v2540_v20 = vperm.slane %v1673_v15, 0  ;;  %4240 = vmatpush.bf16.msrb.mxu3 %v9667_v23 }
 0x178   : > { %v2541_v30 = vperm.slane %v11618_v60, 0  ;;  %v2542_v48 = vperm.slane %v1674_v32, 0  ;;  %v2543_v16 = vperm.slane %v1675_v38, 0  ;;  %v2545_v40 = vperm.slane %v11676_v19, 0 }
 0x179   : > { %v2546_v59 = vperm.slane %v1677_v24, 0  ;;  %v2544_v54 = vperm.slane %v1676_v22, 0  ;;  %v2547_v2 = vperm.slane %v1678_v39, 0  ;;  %v2548_v9 = vperm.slane %v1679_v27, 0 }
 0x17a   : > { %v2550_v31 = vperm.slane %v1680_v52, 0  ;;  %v2551_v47 = vperm.slane %v1681_v5, 0  ;;  %v2599_v8 = vsel %vm16013_vm3, %v2538_v44, %v2537_v43  ;;  %v2552_v15 = vperm.slane %v1682_v33, 0  ;;  %v11956_v5 = vld [vmem:[#allocation1 + $0x1] ss:$4 sm:$0xff] }
 0x17b   : > { %v2606_v63 = vsel %vm16013_vm3, %v2546_v59, %v2545_v40  ;;  %v2600_v32 = vsel %vm15960_vm0, %v2539_v7, %v2599_v8  ;;  %v2797_v24 = vperm.slane %v11633_v18, 0  ;;  %v2798_v27 = vperm.slane %v11635_v55, 0  ;;  %v11962_v18 = vld [vmem:[#allocation1 + $0x2] ss:$4 sm:$0xff] }
 0x17c   : > { %v2607_v38 = vsel %vm15960_vm0, %v2547_v2, %v2606_v63  ;;  %v2601_v22 = vsel %vm15959_vm4, %v2540_v20, %v2600_v32  ;;  %v2799_v52 = vperm.slane %v11641_v14, 0  ;;  %v2800_v59 = vperm.slane %v11678_v50, 0  ;;  %v12004_v63 = vld [vmem:[%s10845_s2 + $0x168] sm:$0xff] }
 0x17d   : > { %v2608_v39 = vsel %vm15959_vm4, %v2548_v9, %v2607_v38  ;;  %v2602_v25 = vsel %vm15958_vm1, %v2541_v30, %v2601_v22  ;;  %v2801_v8 = vperm.slane %v11684_v41, 0  ;;  %v11964_v9 = vld [vmem:[#allocation1 + $0x3] ss:$4 sm:$0xff]  ;;  %v2802_v2 = vperm.slane %v11686_v17, 0 }
 0x17e   : > { %v2609_v40 = vsel %vm15958_vm1, %v2549_v49, %v2608_v39  ;;  %v2603_v55 = vsel %vm15957_vm5, %v2542_v48, %v2602_v25  ;;  %v2803_v33 = vperm.slane %v11698_v36, 0  ;;  %v2805_v41 = vperm.slane %v11760_v26, 0  ;;  %v11983_v17 = vld [vmem:[%s10845_s2 + $0x138] sm:$0xff]  ;;  %v11989_v36 = vld [vmem:[%s10845_s2 + $0x28] sm:$0x3] }
 0x17f   : > { %v2610_v14 = vsel %vm15957_vm5, %v2550_v31, %v2609_v40  ;;  %v2604_v49 = vsel %vm15956_vm2, %v2543_v16, %v2603_v55  ;;  %v2806_v43 = vperm.slane %v11762_v45, 0  ;;  %v2807_v48 = vperm.slane %v11764_v62, 0  ;;  %v11986_v16 = vld [vmem:[%s10845_s2 + $0x140] sm:$0xff]  ;;  %2281 = vst.sshfl [vmem:[#allocation1] sm:$0xff pattern:$0x73625140] %v11989_v36 }
 0x180   : > { %v2611_v50 = vsel %vm15956_vm2, %v2551_v47, %v2610_v14  ;;  %v11975_v44 = vsel %vm15954_vm6, %v2544_v54, %v2604_v49  ;;  %v2808_v31 = vperm.slane %v11767_v35, 0  ;;  %v2804_v54 = vperm.slane %v11707_v0, 0 }
 0x181   : > { %16171 = vst [vmem:[#allocation138_spill] sm:$0xff] %v11975_v44  ;;  %v11978_v7 = vsel %vm15954_vm6, %v2552_v15, %v2611_v50  ;;  %v2809_v45 = vperm.slane %v11773_v11, 0  ;;  %v2810_v20 = vperm.slane %v11775_v12, 0  ;;  %v2811_v62 = vperm.slane %v11780_v61, 0 }
 0x182   : > { %16172 = vst [vmem:[#allocation139_spill] sm:$0xff] %v11978_v7  ;;  %v3448_v26 = vpack.c.bf16 %v11978_v7, %v11975_v44  ;;  %v2812_v35 = vperm.slane %v11865_v53, 0  ;;  %v2855_v30 = vsel %vm16013_vm3, %v2798_v27, %v2797_v24  ;;  %v2862_v23 = vsel %vm16013_vm3, %v2806_v43, %v2805_v41  ;;  %v12011_v53 = vld [vmem:[%s10845_s2 + $0x170] sm:$0xff] }
 0x183   : > { %v2856_v47 = vsel %vm15960_vm0, %v2799_v52, %v2855_v30  ;;  %v2863_v0 = vsel %vm15960_vm0, %v2807_v48, %v2862_v23  ;;  %v2045_v11 = vrot.slane %v11983_v17, 2  ;;  %v2046_v12 = vrot.slane %v11983_v17, 4  ;;  %v9640_v23 = vld [vmem:[%s16064_s9 + $0x100] sm:$0xff] }
 0x184   : > { %4056 = vmatmul.bf16.gmra.mxu0 %v3448_v26  ;;  %v2857_v15 = vsel %vm15959_vm4, %v2800_v59, %v2856_v47  ;;  %v2864_v61 = vsel %vm15959_vm4, %v2808_v31, %v2863_v0  ;;  %v2047_v32 = vrot.slane %v11983_v17, 6  ;;  %v2048_v38 = vrot.slane %v11986_v16, 2  ;;  %v9666_v47 = vld [vmem:[%s16064_s9 + $0x1d0] sm:$0xff] }
 0x185   : > { %v2858_v24 = vsel %vm15958_vm1, %v2801_v8, %v2857_v15  ;;  %v2865_v22 = vsel %vm15958_vm1, %v2809_v45, %v2864_v61  ;;  %v2049_v39 = vrot.slane %v11986_v16, 4  ;;  %v2050_v27 = vrot.slane %v11986_v16, 6  ;;  %v9651_v45 = vld [vmem:[%s16064_s9 + $0x158] sm:$0xff]  ;;  %4156 = vmatpush.bf16.msrb.mxu0 %v9640_v23  ;;  %4241 = vmatpush.bf16.msrb.mxu3 %v9666_v47 }
 0x186   : > { %v2859_v52 = vsel %vm15957_vm5, %v2802_v2, %v2858_v24  ;;  %v2866_v25 = vsel %vm15957_vm5, %v2810_v20, %v2865_v22  ;;  %v2051_v40 = vrot.slane %v12004_v63, 2  ;;  %v2052_v59 = vrot.slane %v12004_v63, 4  ;;  %v9658_v20 = vld [vmem:[%s16064_s9 + $0x190] sm:$0xff]  ;;  %4182 = vmatpush.bf16.msrb.mxu1 %v9651_v45 }
 0x187   : > { %v2860_v55 = vsel %vm15956_vm2, %v2803_v33, %v2859_v52  ;;  %v2867_v8 = vsel %vm15956_vm2, %v2811_v62, %v2866_v25  ;;  %v2053_v14 = vrot.slane %v12004_v63, 6  ;;  %v2054_v49 = vrot.slane %v12011_v53, 2  ;;  %v9650_v22 = vld [vmem:[%s16064_s9 + $0x150] sm:$0xff]  ;;  %4212 = vmatpush.bf16.msrb.mxu2 %v9658_v20 }
 0x188   : > { %v2861_v2 = vsel %vm15954_vm6, %v2804_v54, %v2860_v55  ;;  %v2868_v50 = vsel %vm15954_vm6, %v2812_v35, %v2867_v8  ;;  %v2055_v41 = vrot.slane %v12011_v53, 4  ;;  %v12031_v31 = vrot.slane %v2045_v11, 7  ;;  %v9657_v8 = vld [vmem:[%s16064_s9 + $0x188] sm:$0xff] }
 0x189   : > { %v3450_v48 = vpack.c.bf16 %v2868_v50, %v2861_v2  ;;  %v12033_v33 = vrot.slane %v2046_v12, 7  ;;  %v12035_v26 = vrot.slane %v2047_v32, 7  ;;  %v12039_v62 = vrot.slane %v2048_v38, 7  ;;  %v12060_v2 = vld [vmem:[#allocation1 + $0x20] ss:$4 sm:$0xff] }
 0x18a   : > { %v12041_v30 = vrot.slane %v2049_v39, 7  ;;  %v12043_v54 = vrot.slane %v2050_v27, 7  ;;  %v12045_v35 = vrot.slane %v2051_v40, 7  ;;  %v12049_v0 = vrot.slane %v2052_v59, 7  ;;  %v12063_v44 = vld [vmem:[#allocation1 + $0x21] ss:$4 sm:$0xff]  ;;  %4183 = vmatpush.bf16.msrb.mxu1 %v9650_v22 }
 0x18b   : > { %4114 = vmatmul.bf16.gmra.mxu2 %v3450_v48  ;;  %v12051_v15 = vrot.slane %v2053_v14, 7  ;;  %v12053_v61 = vrot.slane %v2054_v49, 7  ;;  %v12055_v24 = vrot.slane %v2055_v41, 7  ;;  %v2925_v52 = vperm.slane %v11983_v17, 0 }
 0x18c   : > { %16173 = vst [vmem:[#allocation140_spill] sm:$0xff] %v12045_v35  ;;  %v2926_v25 = vperm.slane %v2045_v11, 0  ;;  %v2927_v55 = vperm.slane %v2046_v12, 0  ;;  %v2928_v50 = vperm.slane %v2047_v32, 0  ;;  %v2929_v48 = vperm.slane %v11986_v16, 0  ;;  %4213 = vmatpush.bf16.msrb.mxu2 %v9657_v8  ;;  %v16179_v35 = vld [vmem:[#allocation66_spill] sm:$0xff] }
 0x18d   : > { %16174 = vst [vmem:[#allocation141_spill] sm:$0xff] %v12049_v0  ;;  %v2930_v43 = vperm.slane %v2048_v38, 0  ;;  %v2931_v7 = vperm.slane %v2049_v39, 0  ;;  %v2933_v45 = vperm.slane %v12004_v63, 0  ;;  %v12066_v11 = vld [vmem:[#allocation1 + $0x22] ss:$4 sm:$0xff] }
 0x18e   : > { %16175 = vst [vmem:[#allocation142_spill] sm:$0xff] %v12051_v15  ;;  %v2936_v15 = vperm.slane %v2053_v14, 0  ;;  %v2932_v12 = vperm.slane %v2050_v27, 0  ;;  %v2937_v20 = vperm.slane %v12011_v53, 0  ;;  %v2938_v23 = vperm.slane %v2054_v49, 0 }
 0x18f   : > { %16176 = vst [vmem:[#allocation143_spill] sm:$0xff] %v12053_v61  ;;  %v2935_v61 = vperm.slane %v2052_v59, 0  ;;  %v2939_v0 = vperm.slane %v2055_v41, 0  ;;  %v12069_v32 = vld [vmem:[#allocation1 + $0x23] ss:$4 sm:$0xff]  ;;  %v2983_v38 = vsel %vm16013_vm3, %v2926_v25, %v2925_v52  ;;  %v8806_v47 = vrot.slane %v11570_v42, 9 }
 0x190   : > { %16177 = vst [vmem:[#allocation144_spill] sm:$0xff] %v12055_v24  ;;  %v2934_v24 = vperm.slane %v2051_v40, 0  ;;  %v1852_v40 = vrot.slane %v11915_v4, 2  ;;  %v12075_v59 = vld [vmem:[#allocation1] ss:$4 sm:$0xff]  ;;  %v16178_v27 = vrot.slane %v12011_v53, 6  ;;  %v2984_v49 = vsel %vm15960_vm0, %v2927_v55, %v2983_v38 }
 0x191   : > { %v1855_v22 = vrot.slane %v11917_v51, 2  ;;  %2283 = vst.sshfl [vmem:[#allocation1 + $0x20] sm:$0xff pattern:$0x73625140] %v16179_v35  ;;  %v12088_v25 = vsel %vm11119_vm10, %v8806_v47, %v11915_v4  ;;  %v1858_v8 = vrot.slane %v11921_v28, 2 }
 0x192   : > { %v2990_v39 = vsel %vm16013_vm3, %v2934_v24, %v2933_v45  ;;  %v2940_v14 = vperm.slane %v16178_v27, 0  ;;  %v2985_v24 = vsel %vm15959_vm4, %v2928_v50, %v2984_v49  ;;  %v16180_v45 = vld [vmem:[#allocation67_spill] sm:$0xff]  ;;  %v12097_v50 = vsel %vm11119_vm10, %v1852_v40, %v11917_v51 }
 0x193   : > { %v2991_v41 = vsel %vm15960_vm0, %v2935_v61, %v2990_v39  ;;  %2287 = vst.sshfl [vmem:[#allocation1] sm:$0xff pattern:$0x73625140] %v16180_v45  ;;  %v2986_v55 = vsel %vm15958_vm1, %v2929_v48, %v2985_v24  ;;  %v1864_v39 = vrot.slane %v11923_v58, 2  ;;  %v1867_v48 = vrot.slane %v11925_v29, 2  ;;  %v9656_v24 = vld [vmem:[%s16064_s9 + $0x180] sm:$0xff] }
 0x194   : > { %v2992_v52 = vsel %vm15959_vm4, %v2936_v15, %v2991_v41  ;;  %v1859_v15 = vrot.slane %v11618_v60, 7  ;;  %v2987_v38 = vsel %vm15957_vm5, %v2930_v43, %v2986_v55  ;;  %v12109_v51 = vsel %vm11119_vm10, %v1855_v22, %v11921_v28  ;;  %v9649_v22 = vld [vmem:[%s16064_s9 + $0x148] sm:$0xff]  ;;  %4214 = vmatpush.bf16.msrb.mxu2 %v9656_v24 }
 0x195   : > { %v2993_v61 = vsel %vm15958_vm1, %v2937_v20, %v2992_v52  ;;  %v2988_v47 = vsel %vm15956_vm2, %v2931_v7, %v2987_v38  ;;  %v12120_v7 = vsel %vm11119_vm10, %v1864_v39, %v11925_v29  ;;  %v12126_v28 = vsel %vm11119_vm10, %v1867_v48, %v11927_v6  ;;  %4184 = vmatpush.bf16.msrb.mxu1 %v9649_v22  ;;  %v9648_v48 = vld [vmem:[%s16064_s9 + $0x140] sm:$0xff] }
 0x196   : > { %v2994_v4 = vsel %vm15957_vm5, %v2938_v23, %v2993_v61  ;;  %v1861_v40 = vrot.slane %v1859_v15, 2  ;;  %v2989_v43 = vsel %vm15954_vm6, %v2932_v12, %v2988_v47  ;;  %v12115_v27 = vsel %vm11119_vm10, %v1858_v8, %v1859_v15  ;;  %v12137_v61 = vld [vmem:[%s10845_s2 + $0x58] sm:$0x3]  ;;  %v9664_v15 = vld [vmem:[%s16064_s9 + $0x1c0] sm:$0xff] }
 0x197   : > { %v2995_v20 = vsel %vm15956_vm2, %v2939_v0, %v2994_v4  ;;  %v9665_v0 = vld [vmem:[%s16064_s9 + $0x1c8] sm:$0xff]  ;;  %v1870_v12 = vrot.slane %v11927_v6, 2  ;;  %v8807_v52 = vrot.slane %v11676_v19, 9  ;;  %v1877_v8 = vrot.slane %v11929_v3, 2 }
 0x198   : > { %v2996_v23 = vsel %vm15954_vm6, %v2940_v14, %v2995_v20  ;;  %v16181_v14 = vld [vmem:[#allocation117_spill] sm:$0xff]  ;;  %v1880_v29 = vrot.slane %v11931_v56, 2  ;;  %v1883_v55 = vrot.slane %v11933_v10, 2  ;;  %4242 = vmatpush.bf16.msrb.mxu3 %v9665_v0  ;;  %v1863_v6 = vsel %vm11119_vm10, %v1861_v40, %v11923_v58  ;;  %v16185_v19 = vld [vmem:[#allocation92_spill] sm:$0xff] }
 0x199   : > { %v3451_v49 = vpack.c.bf16 %v2996_v23, %v2989_v43  ;;  %v1871_v41 = vrot.slane %v16181_v14, 7  ;;  %v1884_v38 = vrot.slane %v11696_v21, 7  ;;  %v1889_v4 = vrot.slane %v11935_v34, 2  ;;  %v12147_v47 = vld [vmem:[#allocation1 + $0x21] ss:$4 sm:$0xff]  ;;  %4185 = vmatpush.bf16.msrb.mxu1 %v9648_v48 }
 0x19a   : > { %v1892_v39 = vrot.slane %v11937_v37, 2  ;;  %v1876_v43 = vsel %vm11119_vm10, %v8807_v52, %v11929_v3  ;;  %v1879_v58 = vsel %vm11119_vm10, %v1877_v8, %v11931_v56  ;;  %v1895_v40 = vrot.slane %v11940_v13, 2  ;;  %v12160_v23 = vld [vmem:[#allocation1 + $0x22] ss:$4 sm:$0xff]  ;;  %v12162_v0 = vld [vmem:[#allocation1 + $0x23] ss:$4 sm:$0xff] }
 0x19b   : > { %4143 = vmatmul.bf16.gmra.mxu3 %v3451_v49  ;;  %v12151_v20 = vsel %vm11119_vm10, %v1870_v12, %v1871_v41  ;;  %v1882_v49 = vsel %vm11119_vm10, %v1880_v29, %v11933_v10  ;;  %v1885_v12 = vsel %vm11119_vm10, %v1883_v55, %v1884_v38  ;;  %v1886_v41 = vrot.slane %v1884_v38, 2  ;;  %2288 = vst.sshfl [vmem:[#allocation1 + $0x20] sm:$0xff pattern:$0x73625140] %v12137_v61  ;;  %v12177_v10 = vld [vmem:[#allocation1] ss:$4 sm:$0xff] }
 0x19c   : > { %v1891_v3 = vsel %vm11119_vm10, %v1889_v4, %v11937_v37  ;;  %v1896_v56 = vrot.slane %v11783_v1, 7  ;;  %v2669_v22 = vperm.slane %v12088_v25, 0  ;;  %v2670_v24 = vperm.slane %v12097_v50, 0  ;;  %4243 = vmatpush.bf16.msrb.mxu3 %v9664_v15  ;;  %v16182_v38 = vld [vmem:[#allocation95_spill] sm:$0xff]  ;;  %v16183_v25 = vld [vmem:[#allocation68_spill] sm:$0xff] }
 0x19d   : > { %v2671_v52 = vperm.slane %v12109_v51, 0  ;;  %v1888_v8 = vsel %vm11119_vm10, %v1886_v41, %v11935_v34  ;;  %v1894_v37 = vsel %vm11119_vm10, %v1892_v39, %v11940_v13  ;;  %v2672_v29 = vperm.slane %v12115_v27, 0  ;;  %v12189_v50 = vld [vmem:[#allocation1 + $0x1] ss:$4 sm:$0xff]  ;;  %v12191_v51 = vld [vmem:[#allocation1 + $0x2] ss:$4 sm:$0xff] }
 0x19e   : > { %v2673_v55 = vperm.slane %v1863_v6, 0  ;;  %v16184_v4 = vpack.c.bf16 %v16182_v38, %v16183_v25  ;;  %v1897_v15 = vsel %vm11119_vm10, %v1895_v40, %v1896_v56  ;;  %v2674_v34 = vperm.slane %v12120_v7, 0  ;;  %v12197_v39 = vld [vmem:[#allocation1 + $0x3] ss:$4 sm:$0xff] }
 0x19f   : > { %v2675_v41 = vperm.slane %v12126_v28, 0  ;;  %v2677_v13 = vperm.slane %v1876_v43, 0  ;;  %v2676_v27 = vperm.slane %v12151_v20, 0  ;;  %v2678_v6 = vperm.slane %v1879_v58, 0  ;;  %v16186_v43 = vld [vmem:[#allocation71_spill] sm:$0xff]  ;;  %v16187_v56 = vld [vmem:[#allocation70_spill] sm:$0xff] }
 0x1a0   : > { %4215 = vmatmul.bf16.vlgmr.msrb.gmra.mxu2 %v16184_v4  ;;  %v2679_v38 = vperm.slane %v1882_v49, 0  ;;  %v2680_v25 = vperm.slane %v1885_v12, 0  ;;  %v2681_v48 = vperm.slane %v1888_v8, 0  ;;  %v2682_v4 = vperm.slane %v1891_v3, 0  ;;  %v16189_v12 = vld [vmem:[#allocation72_spill] sm:$0xff] }
 0x1a1   : > { %v2683_v1 = vperm.slane %v1894_v37, 0  ;;  %v2727_v21 = vsel %vm16013_vm3, %v2670_v24, %v2669_v22  ;;  %2294 = vst.sshfl [vmem:[#allocation1] sm:$0xff pattern:$0x73625140] %v16185_v19  ;;  %v2734_v7 = vsel %vm16013_vm3, %v2678_v6, %v2677_v13  ;;  %v8808_v28 = vrot.slane %v16166_v46, 9  ;;  %v16191_v22 = vld [vmem:[#allocation65_spill] sm:$0xff] }
 0x1a2   : > { %v2728_v40 = vsel %vm15960_vm0, %v2671_v52, %v2727_v21  ;;  %v16188_v14 = vrot.slane %v16187_v56, 2  ;;  %v2735_v49 = vsel %vm15960_vm0, %v2679_v38, %v2734_v7  ;;  %v16190_v3 = vrot.slane %v16186_v43, 2  ;;  %v12222_v24 = vld [vmem:[#allocation1 + $0x20] ss:$4 sm:$0xff] }
 0x1a3   : > { %v2729_v58 = vsel %vm15959_vm4, %v2672_v29, %v2728_v40  ;;  %v2076_v46 = vrot.slane %v16191_v22, 7  ;;  %v2684_v52 = vperm.slane %v1897_v15, 0  ;;  %v16192_v37 = vld [vmem:[#allocation74_spill] sm:$0xff]  ;;  %v16193_v29 = vld [vmem:[#allocation73_spill] sm:$0xff]  ;;  %v2068_v15 = vsel %vm11119_vm10, %v8808_v28, %v16187_v56 }
 0x1a4   : > { %v12210_v20 = vsel %vm11119_vm10, %v16188_v14, %v16186_v43  ;;  %v12219_v21 = vsel %vm11119_vm10, %v16190_v3, %v16189_v12  ;;  %v2730_v8 = vsel %vm15958_vm1, %v2673_v55, %v2729_v58  ;;  %v2736_v14 = vsel %vm15959_vm4, %v2680_v25, %v2735_v49  ;;  %v16195_v38 = vld [vmem:[#allocation93_spill] sm:$0xff]  ;;  %v16196_v58 = vld [vmem:[#allocation75_spill] sm:$0xff] }
 0x1a5   : > { %v16194_v13 = vrot.slane %v16193_v29, 2  ;;  %2295 = vst.sshfl [vmem:[#allocation1 + $0x20] sm:$0xff pattern:$0x73625140] %v16195_v38  ;;  %v2731_v40 = vsel %vm15957_vm5, %v2674_v34, %v2730_v8  ;;  %v2737_v7 = vsel %vm15958_vm1, %v2681_v48, %v2736_v14  ;;  %v2078_v55 = vrot.slane %v2076_v46, 2  ;;  %v16201_v8 = vld [vmem:[#allocation77_spill] sm:$0xff] }
 0x1a6   : > { %v2732_v25 = vsel %vm15956_vm2, %v2675_v41, %v2731_v40  ;;  %v2738_v43 = vsel %vm15957_vm5, %v2682_v4, %v2737_v7  ;;  %v16197_v49 = vrot.slane %v16192_v37, 2  ;;  %v2088_v34 = vrot.slane %v11989_v36, 7  ;;  %v16207_v40 = vld [vmem:[#allocation81_spill] sm:$0xff]  ;;  %v16208_v7 = vld [vmem:[#allocation79_spill] sm:$0xff] }
 0x1a7   : > { %v12231_v6 = vsel %vm11119_vm10, %v16194_v13, %v16192_v37  ;;  %v12250_v48 = vsel %vm15954_vm6, %v2676_v27, %v2732_v25  ;;  %v2739_v22 = vsel %vm15956_vm2, %v2683_v1, %v2738_v43  ;;  %v16199_v28 = vrot.slane %v16189_v12, 2  ;;  %v16202_v27 = vld [vmem:[#allocation76_spill] sm:$0xff]  ;;  %v16204_v12 = vld [vmem:[#allocation78_spill] sm:$0xff] }
 0x1a8   : > { %v12246_v3 = vsel %vm11119_vm10, %v16197_v49, %v16196_v58  ;;  %16198 = vst [vmem:[#allocation66_spill] sm:$0xff] %v12250_v48  ;;  %v8809_v4 = vrot.slane %v16179_v35, 9  ;;  %v12259_v56 = vsel %vm15954_vm6, %v2684_v52, %v2739_v22  ;;  %v2080_v36 = vsel %vm11119_vm10, %v2078_v55, %v16193_v29  ;;  %v16210_v49 = vld [vmem:[#allocation82_spill] sm:$0xff] }
 0x1a9   : > { %v2077_v41 = vsel %vm11119_vm10, %v16199_v28, %v2076_v46  ;;  %16200 = vst [vmem:[#allocation67_spill] sm:$0xff] %v12259_v56  ;;  %v16203_v14 = vrot.slane %v16202_v27, 2  ;;  %v16205_v37 = vrot.slane %v16201_v8, 2  ;;  %v3449_v35 = vpack.c.bf16 %v12259_v56, %v12250_v48 }
 0x1aa   : > { %v16206_v52 = vrot.slane %v16196_v58, 2  ;;  %v2101_v13 = vrot.slane %v16180_v45, 7  ;;  %v16209_v55 = vrot.slane %v16208_v7, 2  ;;  %v2093_v43 = vsel %vm11119_vm10, %v8809_v4, %v16202_v27  ;;  %v16212_v45 = vld [vmem:[#allocation114_spill] sm:$0xff] }
 0x1ab   : > { %v2096_v1 = vsel %vm11119_vm10, %v16203_v14, %v16201_v8  ;;  %v2099_v46 = vsel %vm11119_vm10, %v16205_v37, %v16204_v12  ;;  %v16211_v22 = vrot.slane %v16207_v40, 2  ;;  %v3005_v28 = vperm.slane %v2068_v15, 0  ;;  %v16213_v8 = vld [vmem:[#allocation89_spill] sm:$0xff]  ;;  %v12299_v37 = vld [vmem:[%s10845_s2 + $0x88] sm:$0x3]  ;;  %4085 = vmatmul.bf16.gmra.mxu1 %v3449_v35 }
 0x1ac   : > { %v2089_v29 = vsel %vm11119_vm10, %v16206_v52, %v2088_v34  ;;  %v2108_v25 = vsel %vm11119_vm10, %v16209_v55, %v16207_v40  ;;  %v2113_v34 = vrot.slane %v12137_v61, 7  ;;  %v16214_v14 = vpack.c.bf16 %v16212_v45, %v16213_v8  ;;  %v12301_v52 = vld [vmem:[#allocation1 + $0x1] ss:$4 sm:$0xff]  ;;  %v12309_v15 = vld [vmem:[#allocation1 + $0x2] ss:$4 sm:$0xff] }
 0x1ad   : > { %v2111_v58 = vsel %vm11119_vm10, %v16211_v22, %v16210_v49  ;;  %v16215_v4 = vrot.slane %v16204_v12, 2  ;;  %v2103_v40 = vrot.slane %v2101_v13, 2  ;;  %v3006_v55 = vperm.slane %v12210_v20, 0  ;;  %v12316_v12 = vld [vmem:[#allocation1 + $0x3] ss:$4 sm:$0xff] }
 0x1ae   : > { %4244 = vmatmul.bf16.vlgmr.msrb.gmra.mxu3 %v16214_v14  ;;  %v3007_v61 = vperm.slane %v12219_v21, 0  ;;  %v16216_v22 = vrot.slane %v16210_v49, 2  ;;  %v3008_v8 = vperm.slane %v2077_v41, 0  ;;  %v3009_v14 = vperm.slane %v2080_v36, 0  ;;  %v12323_v41 = vld [vmem:[#allocation1 + $0x20] ss:$4 sm:$0xff] }
 0x1af   : > { %v2102_v27 = vsel %vm11119_vm10, %v16215_v4, %v2101_v13  ;;  %v3010_v35 = vperm.slane %v12231_v6, 0  ;;  %v2105_v13 = vsel %vm11119_vm10, %v2103_v40, %v16208_v7  ;;  %v3011_v20 = vperm.slane %v12246_v3, 0  ;;  %2303 = vst.sshfl [vmem:[#allocation1] sm:$0xff pattern:$0x73625140] %v12299_v37 }
 0x1b0   : > { %v2114_v45 = vsel %vm11119_vm10, %v16216_v22, %v2113_v34  ;;  %v3013_v21 = vperm.slane %v2093_v43, 0  ;;  %v3014_v4 = vperm.slane %v2096_v1, 0  ;;  %v3012_v49 = vperm.slane %v2089_v29, 0  ;;  %v12327_v48 = vld [vmem:[#allocation1 + $0x21] ss:$4 sm:$0xff] }
 0x1b1   : > { %v3015_v60 = vperm.slane %v2099_v46, 0  ;;  %v3016_v42 = vperm.slane %v2102_v27, 0  ;;  %v3017_v34 = vperm.slane %v2105_v13, 0  ;;  %v3018_v36 = vperm.slane %v2108_v25, 0  ;;  %v12329_v7 = vld [vmem:[#allocation1 + $0x22] ss:$4 sm:$0xff] }
 0x1b2   : > { %v3019_v6 = vperm.slane %v2111_v58, 0  ;;  %v3069_v22 = vsel %vm16013_vm3, %v3006_v55, %v3005_v28  ;;  %v3076_v56 = vsel %vm16013_vm3, %v3014_v4, %v3013_v21  ;;  %v3020_v3 = vperm.slane %v2114_v45, 0  ;;  %v12334_v43 = vld [vmem:[#allocation1 + $0x23] ss:$4 sm:$0xff] }
 0x1b3   : > { %v3070_v1 = vsel %vm15960_vm0, %v3007_v61, %v3069_v22  ;;  %v3077_v29 = vsel %vm15960_vm0, %v3015_v60, %v3076_v56  ;;  %v3133_v46 = vperm.slane %v11956_v5, 0  ;;  %v3134_v28 = vperm.slane %v11962_v18, 0  ;;  %v16217_v56 = vld [vmem:[#allocation97_spill] sm:$0xff]  ;;  %v16218_v4 = vld [vmem:[#allocation99_spill] sm:$0xff]  ;;  %v16219_v22 = vld [vmem:[#allocation100_spill] sm:$0xff] }
 0x1b4   : > { %v3071_v25 = vsel %vm15959_vm4, %v3008_v8, %v3070_v1  ;;  %v3078_v58 = vsel %vm15959_vm4, %v3016_v42, %v3077_v29  ;;  %v3135_v27 = vperm.slane %v11964_v9, 0  ;;  %v3136_v61 = vperm.slane %v12060_v2, 0  ;;  %2305 = vst.sshfl [vmem:[#allocation1 + $0x20] sm:$0xff pattern:$0x73625140] %v16217_v56  ;;  %v16221_v29 = vld [vmem:[#allocation102_spill] sm:$0xff] }
 0x1b5   : > { %v3072_v40 = vsel %vm15958_vm1, %v3009_v14, %v3071_v25  ;;  %v3079_v55 = vsel %vm15958_vm1, %v3017_v34, %v3078_v58  ;;  %v3137_v60 = vperm.slane %v12063_v44, 0  ;;  %v3138_v42 = vperm.slane %v12066_v11, 0 }
 0x1b6   : > { %v3073_v5 = vsel %vm15957_vm5, %v3010_v35, %v3072_v40  ;;  %v3080_v45 = vsel %vm15957_vm5, %v3018_v36, %v3079_v55  ;;  %v3139_v18 = vperm.slane %v12069_v32, 0  ;;  %v3141_v14 = vperm.slane %v12147_v47, 0  ;;  %v12353_v13 = vld [vmem:[#allocation1] ss:$4 sm:$0xff] }
 0x1b7   : > { %v3074_v9 = vsel %vm15956_vm2, %v3011_v20, %v3073_v5  ;;  %v3081_v8 = vsel %vm15956_vm2, %v3019_v6, %v3080_v45  ;;  %v3142_v2 = vperm.slane %v12160_v23, 0  ;;  %v3143_v21 = vperm.slane %v12162_v0, 0  ;;  %2309 = vst.sshfl [vmem:[#allocation1] sm:$0xff pattern:$0x73625140] %v16218_v4  ;;  %v16222_v45 = vld [vmem:[#allocation103_spill] sm:$0xff] }
 0x1b8   : > { %v3075_v44 = vsel %vm15954_vm6, %v3012_v49, %v3074_v9  ;;  %v3082_v35 = vsel %vm15954_vm6, %v3020_v3, %v3081_v8  ;;  %v3144_v11 = vperm.slane %v12177_v10, 0  ;;  %v3140_v20 = vperm.slane %v12075_v59, 0  ;;  %v16220_v3 = vld [vmem:[#allocation101_spill] sm:$0xff] }
 0x1b9   : > { %v3425_v32 = vpack.c.bf16 %v3082_v35, %v3075_v44  ;;  %v3145_v34 = vperm.slane %v12189_v50, 0  ;;  %v3146_v47 = vperm.slane %v12191_v51, 0  ;;  %v3147_v23 = vperm.slane %v12197_v39, 0  ;;  %v16223_v44 = vld [vmem:[#allocation104_spill] sm:$0xff] }
 0x1ba   : > { %v3197_v36 = vsel %vm16013_vm3, %v3134_v28, %v3133_v46  ;;  %v3204_v49 = vsel %vm16013_vm3, %v3142_v2, %v3141_v14  ;;  %v8810_v0 = vrot.slane %v16185_v19, 9  ;;  %v2119_v59 = vrot.slane %v16219_v22, 2 }
 0x1bb   : > { %4157 = vmatmul.bf16.vlgmr.msrb.gmra.mxu0 %v3425_v32  ;;  %v3198_v10 = vsel %vm15960_vm0, %v3135_v27, %v3197_v36  ;;  %v3205_v6 = vsel %vm15960_vm0, %v3143_v21, %v3204_v49  ;;  %v2122_v50 = vrot.slane %v16220_v3, 2  ;;  %v3148_v51 = vperm.slane %v12222_v24, 0  ;;  %v12375_v25 = vld [vmem:[#allocation1 + $0x21] ss:$4 sm:$0xff]  ;;  %v12377_v19 = vld [vmem:[#allocation1 + $0x22] ss:$4 sm:$0xff] }
 0x1bc   : > { %v3199_v39 = vsel %vm15959_vm4, %v3136_v61, %v3198_v10  ;;  %v3206_v1 = vsel %vm15959_vm4, %v3144_v11, %v3205_v6  ;;  %v2125_v46 = vrot.slane %v16221_v29, 2  ;;  %v1591_v27 = vld [vmem:[%s10845_s2 + $0xb8] sm:$0x3]  ;;  %v12385_v40 = vsel %vm11119_vm10, %v2119_v59, %v16220_v3  ;;  %v12392_v55 = vld [vmem:[#allocation1 + $0x23] ss:$4 sm:$0xff] }
 0x1bd   : > { %v3200_v58 = vsel %vm15958_vm1, %v3137_v60, %v3199_v39  ;;  %v3207_v28 = vsel %vm15958_vm1, %v3145_v34, %v3206_v1  ;;  %v12390_v24 = vsel %vm11119_vm10, %v2122_v50, %v16221_v29  ;;  %v2126_v60 = vrot.slane %v16195_v38, 7  ;;  %2310 = vst.sshfl [vmem:[#allocation1 + $0x20] sm:$0xff pattern:$0x73625140] %v1591_v27  ;;  %v16224_v34 = vld [vmem:[#allocation105_spill] sm:$0xff]  ;;  %v16225_v10 = vld [vmem:[#allocation120_spill] sm:$0xff] }
 0x1be   : > { %v3201_v61 = vsel %vm15957_vm5, %v3138_v42, %v3200_v58  ;;  %v3208_v5 = vsel %vm15957_vm5, %v3146_v47, %v3207_v28  ;;  %v2131_v9 = vrot.slane %v16222_v45, 2  ;;  %v2118_v2 = vsel %vm11119_vm10, %v8810_v0, %v16219_v22  ;;  %v12404_v21 = vld [vmem:[#allocation1] ss:$4 sm:$0xff]  ;;  %v12406_v42 = vld [vmem:[#allocation1 + $0x1] ss:$4 sm:$0xff] }
 0x1bf   : > { %v3202_v8 = vsel %vm15956_vm2, %v3139_v18, %v3201_v61  ;;  %v3209_v14 = vsel %vm15956_vm2, %v3147_v23, %v3208_v5  ;;  %v2134_v35 = vrot.slane %v16223_v44, 2  ;;  %v2128_v32 = vrot.slane %v2126_v60, 2  ;;  %v12411_v18 = vld [vmem:[#allocation1 + $0x2] ss:$4 sm:$0xff]  ;;  %v12413_v23 = vld [vmem:[#allocation1 + $0x3] ss:$4 sm:$0xff] }
 0x1c0   : > { %v3203_v11 = vsel %vm15954_vm6, %v3140_v20, %v3202_v8  ;;  %v3210_v38 = vsel %vm15954_vm6, %v3148_v51, %v3209_v14  ;;  %v2137_v47 = vrot.slane %v16224_v34, 2  ;;  %v12418_v49 = vsel %vm11119_vm10, %v2131_v9, %v16223_v44  ;;  %2316 = vst.sshfl [vmem:[#allocation1] sm:$0xff pattern:$0x73625140] %v16225_v10  ;;  %v16226_v59 = vld [vmem:[#allocation106_spill] sm:$0xff]  ;;  %v16227_v50 = vld [vmem:[#allocation107_spill] sm:$0xff] }
 0x1c1   : > { %v3426_v36 = vpack.c.bf16 %v3210_v38, %v3203_v11  ;;  %v12423_v0 = vsel %vm11119_vm10, %v2134_v35, %v16224_v34  ;;  %v2138_v20 = vrot.slane %v12299_v37, 7  ;;  %v2127_v6 = vsel %vm11119_vm10, %v2125_v46, %v2126_v60  ;;  %v16228_v1 = vld [vmem:[#allocation108_spill] sm:$0xff]  ;;  %v16229_v58 = vld [vmem:[#allocation110_spill] sm:$0xff]  ;;  %v16230_v5 = vld [vmem:[#allocation111_spill] sm:$0xff] }
 0x1c2   : > { %v8811_v22 = vrot.slane %v16217_v56, 9  ;;  %v2144_v3 = vrot.slane %v16226_v59, 2  ;;  %v2147_v51 = vrot.slane %v16227_v50, 2  ;;  %v2130_v39 = vsel %vm11119_vm10, %v2128_v32, %v16222_v45  ;;  %v16231_v8 = vld [vmem:[#allocation112_spill] sm:$0xff]  ;;  %v16232_v34 = vld [vmem:[#allocation121_spill] sm:$0xff] }
 0x1c3   : > { %4186 = vmatmul.bf16.vlgmr.msrb.gmra.mxu1 %v3426_v36  ;;  %v2150_v29 = vrot.slane %v16228_v1, 2  ;;  %v2151_v37 = vrot.slane %v16218_v4, 7  ;;  %v2156_v28 = vrot.slane %v16229_v58, 2  ;;  %v2139_v46 = vsel %vm11119_vm10, %v2137_v47, %v2138_v20 }
 0x1c4   : > { %v2146_v56 = vsel %vm11119_vm10, %v2144_v3, %v16227_v50  ;;  %v2149_v61 = vsel %vm11119_vm10, %v2147_v51, %v16228_v1  ;;  %v2159_v60 = vrot.slane %v16230_v5, 2  ;;  %v2143_v45 = vsel %vm11119_vm10, %v8811_v22, %v16226_v59  ;;  %v12454_v44 = vld [vmem:[#allocation1 + $0x20] ss:$4 sm:$0xff] }
 0x1c5   : > { %v2153_v4 = vrot.slane %v2151_v37, 2  ;;  %v2158_v9 = vsel %vm11119_vm10, %v2156_v28, %v16230_v5  ;;  %v2162_v14 = vrot.slane %v16231_v8, 2  ;;  %v2152_v35 = vsel %vm11119_vm10, %v2150_v29, %v2151_v37  ;;  %2317 = vst.sshfl [vmem:[#allocation1 + $0x20] sm:$0xff pattern:$0x73625140] %v16232_v34  ;;  %v16233_v5 = vld [vmem:[#allocation96_spill] sm:$0xff] }
 0x1c6   : > { %v2161_v11 = vsel %vm11119_vm10, %v2159_v60, %v16231_v8  ;;  %v2163_v38 = vrot.slane %v1591_v27, 7  ;;  %v3021_v32 = vperm.slane %v2118_v2, 0  ;;  %v3022_v36 = vperm.slane %v12385_v40, 0  ;;  %v16234_v60 = vld [vmem:[#allocation118_spill] sm:$0xff] }
 0x1c7   : > { %v2155_v47 = vsel %vm11119_vm10, %v2153_v4, %v16229_v58  ;;  %v3023_v20 = vperm.slane %v12390_v24, 0  ;;  %v3024_v22 = vperm.slane %v2127_v6, 0  ;;  %v3025_v3 = vperm.slane %v2130_v39, 0 }
 0x1c8   : > { %v2164_v59 = vsel %vm11119_vm10, %v2162_v14, %v2163_v38  ;;  %v3026_v50 = vperm.slane %v12418_v49, 0  ;;  %v3027_v27 = vperm.slane %v12423_v0, 0  ;;  %v3029_v2 = vperm.slane %v2143_v45, 0 }
 0x1c9   : > { %v3030_v51 = vperm.slane %v2146_v56, 0  ;;  %v3031_v1 = vperm.slane %v2149_v61, 0  ;;  %v3032_v29 = vperm.slane %v2152_v35, 0  ;;  %v3028_v37 = vperm.slane %v2139_v46, 0  ;;  %v16235_v61 = vld [vmem:[#allocation124_spill] sm:$0xff]  ;;  %v16236_v46 = vld [vmem:[#allocation125_spill] sm:$0xff] }
 0x1ca   : > { %v3033_v58 = vperm.slane %v2155_v47, 0  ;;  %v3034_v28 = vperm.slane %v2158_v9, 0  ;;  %v3035_v40 = vperm.slane %v2161_v11, 0  ;;  %v3083_v24 = vsel %vm16013_vm3, %v3022_v36, %v3021_v32  ;;  %v1597_v35 = vld [vmem:[%s10845_s2 + $0xe8] sm:$0x3]  ;;  %v16237_v11 = vld [vmem:[#allocation126_spill] sm:$0xff] }
 0x1cb   : > { %v3090_v6 = vsel %vm16013_vm3, %v3030_v51, %v3029_v2  ;;  %v3436_v39 = vpack.c.bf16 %v16234_v60, %v16233_v5  ;;  %v8812_v49 = vrot.slane %v16225_v10, 9  ;;  %v3084_v0 = vsel %vm15960_vm0, %v3023_v20, %v3083_v24  ;;  %v12496_v20 = vld [vmem:[#allocation1 + $0x1] ss:$4 sm:$0xff] }
 0x1cc   : > { %v3091_v56 = vsel %vm15960_vm0, %v3031_v1, %v3090_v6  ;;  %v2169_v45 = vrot.slane %v16235_v61, 2  ;;  %v2172_v4 = vrot.slane %v16236_v46, 2  ;;  %v3036_v8 = vperm.slane %v2164_v59, 0  ;;  %v12500_v59 = vld [vmem:[#allocation1 + $0x3] ss:$4 sm:$0xff] }
 0x1cd   : > { %v3085_v9 = vsel %vm15959_vm4, %v3024_v22, %v3084_v0  ;;  %v3092_v14 = vsel %vm15959_vm4, %v3032_v29, %v3091_v56  ;;  %4220 = vmatmul.bf16.gmra.mxu2 %v3436_v39  ;;  %v2175_v38 = vrot.slane %v16237_v11, 2  ;;  %v12498_v22 = vld [vmem:[#allocation1 + $0x2] ss:$4 sm:$0xff]  ;;  %v2176_v51 = vrot.slane %v16232_v34, 7 }
 0x1ce   : > { %v3086_v32 = vsel %vm15958_vm1, %v3025_v3, %v3085_v9  ;;  %v3093_v10 = vsel %vm15958_vm1, %v3033_v58, %v3092_v14  ;;  %v12489_v47 = vsel %vm11119_vm10, %v2169_v45, %v16236_v46  ;;  %v12494_v36 = vsel %vm11119_vm10, %v2172_v4, %v16237_v11  ;;  %v16238_v1 = vld [vmem:[#allocation127_spill] sm:$0xff]  ;;  %2325 = vst.sshfl [vmem:[#allocation1] sm:$0xff pattern:$0x73625140] %v1597_v35  ;;  %v16239_v5 = vld [vmem:[#allocation128_spill] sm:$0xff]  ;;  %v16240_v34 = vld [vmem:[#allocation129_spill] sm:$0xff] }
 0x1cf   : > { %v3087_v3 = vsel %vm15957_vm5, %v3026_v50, %v3086_v32  ;;  %v3094_v2 = vsel %vm15957_vm5, %v3034_v28, %v3093_v10  ;;  %v2181_v29 = vrot.slane %v16238_v1, 2  ;;  %v2168_v6 = vsel %vm11119_vm10, %v8812_v49, %v16235_v61  ;;  %v12516_v45 = vld [vmem:[%s10845_s2 + $0x118] sm:$0x3]  ;;  %v10184_v4 = vld [vmem:[%s10845_s2 + $0x108] sm:$0xff]  ;;  %v16243_v11 = vld [vmem:[#allocation131_spill] sm:$0xff] }
 0x1d0   : > { %v3088_v58 = vsel %vm15956_vm2, %v3027_v27, %v3087_v3  ;;  %v3095_v24 = vsel %vm15956_vm2, %v3035_v40, %v3094_v2  ;;  %v2184_v60 = vrot.slane %v16239_v5, 2  ;;  %v2178_v39 = vrot.slane %v2176_v51, 2  ;;  %v12528_v49 = vld [vmem:[#allocation1 + $0x20] ss:$4 sm:$0xff]  ;;  %v12530_v61 = vld [vmem:[#allocation1 + $0x21] ss:$4 sm:$0xff] }
 0x1d1   : > { %v3089_v50 = vsel %vm15954_vm6, %v3028_v37, %v3088_v58  ;;  %v3096_v28 = vsel %vm15954_vm6, %v3036_v8, %v3095_v24  ;;  %v2187_v0 = vrot.slane %v16240_v34, 2  ;;  %v12521_v27 = vsel %vm11119_vm10, %v2181_v29, %v16239_v5  ;;  %16241 = vst [vmem:[#allocation95_spill] sm:$0xff] %v12530_v61  ;;  %v16242_v9 = vld [vmem:[#allocation130_spill] sm:$0xff]  ;;  %v16245_v3 = vld [vmem:[#allocation132_spill] sm:$0xff]  ;;  %v16246_v24 = vld [vmem:[#allocation133_spill] sm:$0xff] }
 0x1d2   : > { %v3434_v56 = vpack.c.bf16 %v3096_v28, %v3089_v50  ;;  %v12526_v40 = vsel %vm11119_vm10, %v2184_v60, %v16240_v34  ;;  %v2188_v37 = vrot.slane %v1597_v35, 7  ;;  %v2177_v46 = vsel %vm11119_vm10, %v2175_v38, %v2176_v51  ;;  %v12537_v10 = vld [vmem:[#allocation1 + $0x22] ss:$4 sm:$0xff]  ;;  %v12545_v38 = vld [vmem:[#allocation1 + $0x23] ss:$4 sm:$0xff] }
 0x1d3   : > { %v8813_v8 = vrot.slane %v10184_v4, 9  ;;  %v2194_v14 = vrot.slane %v16242_v9, 2  ;;  %v2197_v32 = vrot.slane %v16243_v11, 2  ;;  %16244 = vst [vmem:[#allocation68_spill] sm:$0xff] %v12537_v10  ;;  %v2180_v35 = vsel %vm11119_vm10, %v2178_v39, %v16238_v1  ;;  %v10185_v29 = vld [vmem:[%s10845_s2 + $0x110] sm:$0xff] }
 0x1d4   : > { %4162 = vmatmul.bf16.gmra.mxu0 %v3434_v56  ;;  %v2200_v2 = vrot.slane %v16245_v3, 2  ;;  %v2201_v58 = vrot.slane %v10185_v29, 7  ;;  %v2206_v5 = vrot.slane %v16246_v24, 2  ;;  %16247 = vst [vmem:[#allocation92_spill] sm:$0xff] %v12545_v38  ;;  %v12549_v51 = vsel %vm11119_vm10, %v2187_v0, %v2188_v37  ;;  %v16248_v50 = vld [vmem:[#allocation134_spill] sm:$0xff]  ;;  %v16249_v56 = vld [vmem:[#allocation135_spill] sm:$0xff] }
 0x1d5   : > { %v2196_v60 = vsel %vm11119_vm10, %v2194_v14, %v16243_v11  ;;  %v2199_v1 = vsel %vm11119_vm10, %v2197_v32, %v16245_v3  ;;  %v2209_v28 = vrot.slane %v16248_v50, 2  ;;  %2327 = vst.sshfl [vmem:[#allocation1 + $0x20] sm:$0xff pattern:$0x73625140] %v10184_v4  ;;  %v2193_v39 = vsel %vm11119_vm10, %v8813_v8, %v16242_v9  ;;  %v12565_v38 = vld [vmem:[#allocation1] ss:$4 sm:$0xff] }
 0x1d6   : > { %v2203_v34 = vrot.slane %v2201_v58, 2  ;;  %v2208_v0 = vsel %vm11119_vm10, %v2206_v5, %v16248_v50  ;;  %v2212_v37 = vrot.slane %v16249_v56, 2  ;;  %16250 = vst [vmem:[#allocation71_spill] sm:$0xff] %v12565_v38  ;;  %v2202_v14 = vsel %vm11119_vm10, %v2200_v2, %v2201_v58 }
 0x1d7   : > { %v2211_v4 = vsel %vm11119_vm10, %v2209_v28, %v16249_v56  ;;  %v2213_v11 = vrot.slane %v12516_v45, 7  ;;  %v3037_v32 = vperm.slane %v2168_v6, 0  ;;  %2331 = vst.sshfl [vmem:[#allocation1] sm:$0xff pattern:$0x73625140] %v10185_v29  ;;  %v3038_v9 = vperm.slane %v12489_v47, 0 }
 0x1d8   : > { %v2205_v8 = vsel %vm11119_vm10, %v2203_v34, %v16246_v24  ;;  %v3039_v3 = vperm.slane %v12494_v36, 0  ;;  %v3040_v5 = vperm.slane %v2177_v46, 0  ;;  %v3041_v58 = vperm.slane %v2180_v35, 0  ;;  %v16252_v35 = vld [vmem:[#allocation64_spill] sm:$0xff] }
 0x1d9   : > { %v2214_v2 = vsel %vm11119_vm10, %v2212_v37, %v2213_v11  ;;  %v3042_v50 = vperm.slane %v12521_v27, 0  ;;  %v3043_v28 = vperm.slane %v12526_v40, 0  ;;  %v3045_v56 = vperm.slane %v2193_v39, 0  ;;  %v16251_v37 = vld [vmem:[#allocation115_spill] sm:$0xff] }
 0x1da   : > { %v3046_v6 = vperm.slane %v2196_v60, 0  ;;  %v3047_v29 = vperm.slane %v2199_v1, 0  ;;  %v3048_v38 = vperm.slane %v2202_v14, 0  ;;  %v3044_v10 = vperm.slane %v12549_v51, 0 }
 0x1db   : > { %v3049_v24 = vperm.slane %v2205_v8, 0  ;;  %v3050_v34 = vperm.slane %v2208_v0, 0  ;;  %v3051_v47 = vperm.slane %v2211_v4, 0  ;;  %v3052_v61 = vperm.slane %v2214_v2, 0 }
 0x1dc   : > { %v3097_v36 = vsel %vm16013_vm3, %v3038_v9, %v3037_v32  ;;  %v3104_v46 = vsel %vm16013_vm3, %v3046_v6, %v3045_v56  ;;  %v3437_v11 = vpack.c.bf16 %v16252_v35, %v16251_v37  ;;  %v12587_v27 = vld [vmem:[#allocation1 + $0x21] ss:$4 sm:$0xff]  ;;  %v12589_v40 = vld [vmem:[#allocation1 + $0x22] ss:$4 sm:$0xff]  ;;  %v3149_v51 = vperm.slane %v12301_v52, 0 }
 0x1dd   : > { %v3098_v60 = vsel %vm15960_vm0, %v3039_v3, %v3097_v36  ;;  %v3105_v1 = vsel %vm15960_vm0, %v3047_v29, %v3104_v46  ;;  %v3150_v39 = vperm.slane %v12309_v15, 0  ;;  %v12595_v0 = vld [vmem:[#allocation1 + $0x23] ss:$4 sm:$0xff]  ;;  %v3151_v32 = vperm.slane %v12316_v12, 0 }
 0x1de   : > { %v3099_v14 = vsel %vm15959_vm4, %v3040_v5, %v3098_v60  ;;  %v3106_v4 = vsel %vm15959_vm4, %v3048_v38, %v3105_v1  ;;  %4249 = vmatmul.bf16.gmra.mxu3 %v3437_v11  ;;  %v3152_v8 = vperm.slane %v12323_v41, 0  ;;  %2332 = vst.sshfl [vmem:[#allocation1 + $0x20] sm:$0xff pattern:$0x73625140] %v12516_v45  ;;  %v3153_v52 = vperm.slane %v12327_v48, 0  ;;  %v9679_v11 = vld [vmem:[%s16064_s9 + $0x238] sm:$0xff] }
 0x1df   : > { %v3100_v9 = vsel %vm15958_vm1, %v3041_v58, %v3099_v14  ;;  %v3107_v3 = vsel %vm15958_vm1, %v3049_v24, %v3106_v4  ;;  %v3154_v15 = vperm.slane %v12329_v7, 0  ;;  %v12606_v2 = vld [vmem:[#allocation1] ss:$4 sm:$0xff]  ;;  %v12608_v5 = vld [vmem:[#allocation1 + $0x1] ss:$4 sm:$0xff]  ;;  %v3155_v41 = vperm.slane %v12334_v43, 0  ;;  %4265 = vmatpush.bf16.msra.mxu0 %v9679_v11 }
 0x1e0   : > { %v3101_v38 = vsel %vm15957_vm5, %v3042_v50, %v3100_v9  ;;  %v3108_v12 = vsel %vm15957_vm5, %v3050_v34, %v3107_v3  ;;  %v3157_v45 = vperm.slane %v12375_v25, 0  ;;  %v12614_v56 = vld [vmem:[#allocation1 + $0x2] ss:$4 sm:$0xff]  ;;  %v12616_v58 = vld [vmem:[#allocation1 + $0x3] ss:$4 sm:$0xff]  ;;  %v3158_v6 = vperm.slane %v12377_v19, 0 }
 0x1e1   : > { %v3102_v48 = vsel %vm15956_vm2, %v3043_v28, %v3101_v38  ;;  %v3109_v7 = vsel %vm15956_vm2, %v3051_v47, %v3108_v12  ;;  %v3159_v29 = vperm.slane %v12392_v55, 0  ;;  %2338 = vst.sshfl [vmem:[#allocation1] sm:$0xff pattern:$0x73625140] %v11983_v17  ;;  %v3156_v25 = vperm.slane %v12353_v13, 0 }
 0x1e2   : > { %v3103_v50 = vsel %vm15954_vm6, %v3044_v10, %v3102_v48  ;;  %v3110_v43 = vsel %vm15954_vm6, %v3052_v61, %v3109_v7  ;;  %v3160_v24 = vperm.slane %v12404_v21, 0  ;;  %v3161_v36 = vperm.slane %v12406_v42, 0  ;;  %v1609_v38 = vld [vmem:[%s10845_s2 + $0x148] sm:$0x3] }
 0x1e3   : > { %v3443_v34 = vpack.c.bf16 %v3110_v43, %v3103_v50  ;;  %v3162_v28 = vperm.slane %v12411_v18, 0  ;;  %v3163_v47 = vperm.slane %v12413_v23, 0  ;;  %v3164_v19 = vperm.slane %v12454_v44, 0 }
 0x1e4   : > { %v3211_v55 = vsel %vm16013_vm3, %v3150_v39, %v3149_v51  ;;  %v3218_v10 = vsel %vm16013_vm3, %v3158_v6, %v3157_v45  ;;  %v2219_v61 = vrot.slane %v12031_v31, 2  ;;  %v8814_v42 = vrot.slane %v11983_v17, 9  ;;  %v9678_v39 = vld [vmem:[%s16064_s9 + $0x230] sm:$0xff] }
 0x1e5   : > { %4167 = vmatmul.bf16.gmra.mxu0 %v3443_v34  ;;  %v3212_v13 = vsel %vm15960_vm0, %v3151_v32, %v3211_v55  ;;  %v3219_v21 = vsel %vm15960_vm0, %v3159_v29, %v3218_v10  ;;  %v2222_v18 = vrot.slane %v12033_v33, 2  ;;  %v12638_v23 = vld [vmem:[#allocation1 + $0x20] ss:$4 sm:$0xff]  ;;  %v2225_v35 = vrot.slane %v12035_v26, 2 }
 0x1e6   : > { %v3213_v44 = vsel %vm15959_vm4, %v3152_v8, %v3212_v13  ;;  %v3220_v46 = vsel %vm15959_vm4, %v3160_v24, %v3219_v21  ;;  %v12645_v37 = vsel %vm11119_vm10, %v2219_v61, %v12033_v33  ;;  %2339 = vst.sshfl [vmem:[#allocation1 + $0x20] sm:$0xff pattern:$0x73625140] %v11986_v16  ;;  %v2226_v51 = vrot.slane %v11986_v16, 7  ;;  %v16255_v24 = vld [vmem:[#allocation141_spill] sm:$0xff]  ;;  %4266 = vmatpush.bf16.msra.mxu0 %v9678_v39  ;;  %v16257_v10 = vld [vmem:[#allocation143_spill] sm:$0xff] }
 0x1e7   : > { %v3214_v17 = vsel %vm15958_vm1, %v3153_v52, %v3213_v44  ;;  %v3221_v60 = vsel %vm15958_vm1, %v3161_v36, %v3220_v46  ;;  %v12655_v1 = vsel %vm11119_vm10, %v2222_v18, %v12035_v26  ;;  %v2231_v4 = vrot.slane %v12039_v62, 2  ;;  %v16256_v36 = vld [vmem:[#allocation142_spill] sm:$0xff]  ;;  %v16258_v13 = vld [vmem:[#allocation144_spill] sm:$0xff] }
 0x1e8   : > { %v3215_v33 = vsel %vm15957_vm5, %v3154_v15, %v3214_v17  ;;  %v3222_v14 = vsel %vm15957_vm5, %v3162_v28, %v3221_v60  ;;  %v2234_v32 = vrot.slane %v12041_v30, 2  ;;  %v12663_v8 = vld [vmem:[#allocation1 + $0x1] ss:$4 sm:$0xff]  ;;  %v12665_v9 = vld [vmem:[#allocation1 + $0x2] ss:$4 sm:$0xff]  ;;  %v16253_v3 = vrot.slane %v12011_v53, 6 }
 0x1e9   : > { %v3216_v52 = vsel %vm15956_vm2, %v3155_v41, %v3215_v33  ;;  %v3223_v16 = vsel %vm15956_vm2, %v3163_v47, %v3222_v14  ;;  %v2228_v15 = vrot.slane %v2226_v51, 2  ;;  %v12672_v12 = vld [vmem:[#allocation1 + $0x3] ss:$4 sm:$0xff]  ;;  %v12679_v7 = vsel %vm11119_vm10, %v2231_v4, %v12041_v30  ;;  %v12697_v47 = vld [vmem:[%s10845_s2 + $0x178] sm:$0x3]  ;;  %v12727_v33 = vpop.f32.mrf.mxu2 }
 0x1ea   : > { %v2260_v26 = vrot.slane %v16253_v3, 7  ;;  %v3217_v45 = vsel %vm15954_vm6, %v3156_v25, %v3216_v52  ;;  %v3224_v48 = vsel %vm15954_vm6, %v3164_v19, %v3223_v16  ;;  %v12684_v53 = vsel %vm11119_vm10, %v2234_v32, %v12043_v54  ;;  %2347 = vst.sshfl [vmem:[#allocation1] sm:$0xff pattern:$0x73625140] %v1609_v38  ;;  %v16254_v30 = vld [vmem:[#allocation140_spill] sm:$0xff]  ;;  %v10186_v55 = vld [vmem:[%s10845_s2 + $0x170] sm:$0xff] }
 0x1eb   : > { %v3435_v41 = vpack.c.bf16 %v3224_v48, %v3217_v45  ;;  %v2218_v6 = vsel %vm11119_vm10, %v8814_v42, %v12031_v31  ;;  %v2227_v29 = vsel %vm11119_vm10, %v2225_v35, %v2226_v51  ;;  %v2237_v50 = vrot.slane %v12043_v54, 2  ;;  %v12702_v54 = vpop.f32.mrf.mxu0  ;;  %v12704_v42 = vpop.f32.mrf.mxu1 }
 0x1ec   : > { %v8815_v43 = vrot.slane %v12004_v63, 9  ;;  %v2244_v25 = vrot.slane %v16254_v30, 2  ;;  %v2247_v34 = vrot.slane %v16255_v24, 2  ;;  %v2250_v28 = vrot.slane %v16256_v36, 2 }
 0x1ed   : > { %4191 = vmatmul.bf16.gmra.mxu1 %v3435_v41  ;;  %v2238_v19 = vrot.slane %v1609_v38, 7  ;;  %v2251_v31 = vrot.slane %v10186_v55, 7  ;;  %v2256_v61 = vrot.slane %v16257_v10, 2  ;;  %v2259_v21 = vrot.slane %v16258_v13, 2  ;;  %v12715_v11 = vld [vmem:[#allocation1 + $0x20] ss:$4 sm:$0xff] }
 0x1ee   : > { %v2230_v18 = vsel %vm11119_vm10, %v2228_v15, %v12039_v62  ;;  %v2246_v44 = vsel %vm11119_vm10, %v2244_v25, %v16255_v24  ;;  %v2249_v46 = vsel %vm11119_vm10, %v2247_v34, %v16256_v36  ;;  %v2262_v35 = vrot.slane %v2260_v26, 2  ;;  %v12717_v17 = vld [vmem:[#allocation1 + $0x21] ss:$4 sm:$0xff]  ;;  %v12729_v14 = vld [vmem:[#allocation1 + $0x22] ss:$4 sm:$0xff] }
 0x1ef   : > { %v2243_v60 = vsel %vm11119_vm10, %v8815_v43, %v16254_v30  ;;  %v2253_v51 = vrot.slane %v2251_v31, 2  ;;  %v2258_v62 = vsel %vm11119_vm10, %v2256_v61, %v16258_v13  ;;  %v2261_v39 = vsel %vm11119_vm10, %v2259_v21, %v2260_v26  ;;  %v12731_v4 = vld [vmem:[#allocation1 + $0x23] ss:$4 sm:$0xff] }
 0x1f0   : > { %v2252_v32 = vsel %vm11119_vm10, %v2250_v28, %v2251_v31  ;;  %v2263_v3 = vrot.slane %v12697_v47, 7  ;;  %v3053_v52 = vperm.slane %v2218_v6, 0  ;;  %v3054_v16 = vperm.slane %v12645_v37, 0  ;;  %2349 = vst.sshfl [vmem:[#allocation1 + $0x20] sm:$0xff pattern:$0x73625140] %v12004_v63  ;;  %v12751_v28 = vpop.f32.mrf.mxu3 }
 0x1f1   : > { %v2239_v38 = vsel %vm11119_vm10, %v2237_v50, %v2238_v19  ;;  %v2255_v26 = vsel %vm11119_vm10, %v2253_v51, %v16257_v10  ;;  %v3055_v15 = vperm.slane %v12655_v1, 0  ;;  %v3056_v45 = vperm.slane %v2227_v29, 0  ;;  %v12743_v48 = vld [vmem:[#allocation1] ss:$4 sm:$0xff] }
 0x1f2   : > { %v2264_v41 = vsel %vm11119_vm10, %v2262_v35, %v2263_v3  ;;  %v3057_v43 = vperm.slane %v2230_v18, 0  ;;  %v3058_v6 = vperm.slane %v12679_v7, 0  ;;  %v3061_v30 = vperm.slane %v2243_v60, 0  ;;  %2353 = vst.sshfl [vmem:[#allocation1] sm:$0xff pattern:$0x73625140] %v10186_v55 }
 0x1f3   : > { %v3059_v37 = vperm.slane %v12684_v53, 0  ;;  %v3062_v50 = vperm.slane %v2246_v44, 0  ;;  %v3063_v25 = vperm.slane %v2249_v46, 0  ;;  %v3064_v24 = vperm.slane %v2252_v32, 0  ;;  %v16259_v31 = vld [vmem:[#allocation119_spill] sm:$0xff]  ;;  %v16260_v10 = vld [vmem:[#allocation138_spill] sm:$0xff]  ;;  %v12767_v32 = vpop.f32.mrf.mxu1 }
 0x1f4   : > { %v3060_v34 = vperm.slane %v2239_v38, 0  ;;  %v3065_v36 = vperm.slane %v2255_v26, 0  ;;  %v3066_v1 = vperm.slane %v2258_v62, 0  ;;  %v3111_v29 = vsel %vm16013_vm3, %v3054_v16, %v3053_v52  ;;  %v16261_v61 = vld [vmem:[#allocation137_spill] sm:$0xff]  ;;  %v16262_v53 = vld [vmem:[#allocation66_spill] sm:$0xff]  ;;  %v12765_v62 = vpop.f32.mrf.mxu0 }
 0x1f5   : > { %v3112_v19 = vsel %vm15960_vm0, %v3055_v15, %v3111_v29  ;;  %v3118_v7 = vsel %vm16013_vm3, %v3062_v50, %v3061_v30  ;;  %v3445_v63 = vpack.c.bf16 %v16260_v10, %v16259_v31  ;;  %v3446_v13 = vpack.c.bf16 %v16262_v53, %v16261_v61  ;;  %v12788_v50 = vld [vmem:[%s10845_s2 + $0x180] sm:$0xff]  ;;  %v12801_v10 = vld [vmem:[%s10845_s2 + $0x188] sm:$0xff] }
 0x1f6   : > { %v3067_v21 = vperm.slane %v2261_v39, 0  ;;  %v3068_v18 = vperm.slane %v2264_v41, 0  ;;  %v3113_v44 = vsel %vm15959_vm4, %v3056_v45, %v3112_v19  ;;  %v3119_v46 = vsel %vm15960_vm0, %v3063_v25, %v3118_v7  ;;  %v12777_v41 = vpop.f32.mrf.mxu2  ;;  %v16267_v7 = vld [vmem:[#allocation71_spill] sm:$0xff] }
 0x1f7   : > { %v3114_v35 = vsel %vm15958_vm1, %v3057_v43, %v3113_v44  ;;  %v3120_v55 = vsel %vm15959_vm4, %v3064_v24, %v3119_v46  ;;  %4225 = vmatmul.bf16.gmra.mxu2 %v3445_v63  ;;  %4254 = vmatmul.bf16.gmra.mxu3 %v3446_v13  ;;  %v3165_v60 = vperm.slane %v12496_v20, 0  ;;  %v3166_v51 = vperm.slane %v12498_v22, 0  ;;  %v16263_v20 = vld [vmem:[#allocation95_spill] sm:$0xff]  ;;  %v16264_v22 = vld [vmem:[#allocation68_spill] sm:$0xff]  ;;  %16265 = vst [vmem:[#allocation70_spill] sm:$0xff] %v12777_v41 }
 0x1f8   : > { %v3115_v39 = vsel %vm15957_vm5, %v3058_v6, %v3114_v35  ;;  %v3121_v3 = vsel %vm15958_vm1, %v3065_v36, %v3120_v55  ;;  %v3167_v52 = vperm.slane %v12500_v59, 0  ;;  %v3168_v16 = vperm.slane %v12528_v49, 0  ;;  %v12779_v43 = vld [vmem:[#allocation1 + $0x21] ss:$4 sm:$0xff]  ;;  %v12781_v30 = vld [vmem:[#allocation1 + $0x22] ss:$4 sm:$0xff]  ;;  %v12820_v46 = vpop.f32.mrf.mxu3 }
 0x1f9   : > { %v3116_v38 = vsel %vm15956_vm2, %v3059_v37, %v3115_v39  ;;  %v3122_v26 = vsel %vm15957_vm5, %v3066_v1, %v3121_v3  ;;  %v3169_v15 = vperm.slane %v16263_v20, 0  ;;  %v3170_v45 = vperm.slane %v16264_v22, 0  ;;  %v12790_v25 = vld [vmem:[#allocation1 + $0x23] ss:$4 sm:$0xff]  ;;  %v12803_v63 = vld [vmem:[#allocation1] ss:$4 sm:$0xff] }
 0x1fa   : > { %v3117_v6 = vsel %vm15954_vm6, %v3060_v34, %v3116_v38  ;;  %v3123_v59 = vsel %vm15956_vm2, %v3067_v21, %v3122_v26  ;;  %v3173_v49 = vperm.slane %v12587_v27, 0  ;;  %v3174_v37 = vperm.slane %v12589_v40, 0  ;;  %v16266_v36 = vld [vmem:[#allocation92_spill] sm:$0xff]  ;;  %2354 = vst.sshfl [vmem:[#allocation1 + $0x20] sm:$0xff pattern:$0x73625140] %v12697_v47 }
 0x1fb   : > { %v3124_v24 = vsel %vm15954_vm6, %v3068_v18, %v3123_v59  ;;  %v3171_v1 = vperm.slane %v16266_v36, 0  ;;  %v3175_v29 = vperm.slane %v12595_v0, 0  ;;  %v3176_v19 = vperm.slane %v12606_v2, 0  ;;  %v12809_v53 = vld [vmem:[#allocation1 + $0x1] ss:$4 sm:$0xff]  ;;  %16268 = vst [vmem:[#allocation72_spill] sm:$0xff] %v12820_v46  ;;  %v12836_v59 = vpop.f32.mrf.mxu1 }
 0x1fc   : > { %v3452_v34 = vpack.c.bf16 %v3124_v24, %v3117_v6  ;;  %v3172_v31 = vperm.slane %v16267_v7, 0  ;;  %v3177_v27 = vperm.slane %v12608_v5, 0  ;;  %v3178_v40 = vperm.slane %v12614_v56, 0  ;;  %v12811_v13 = vld [vmem:[#allocation1 + $0x2] ss:$4 sm:$0xff]  ;;  %v12834_v22 = vpop.f32.mrf.mxu0 }
 0x1fd   : > { %v3179_v61 = vperm.slane %v12616_v58, 0  ;;  %v3225_v0 = vsel %vm16013_vm3, %v3166_v51, %v3165_v60  ;;  %v3232_v2 = vsel %vm16013_vm3, %v3174_v37, %v3173_v49  ;;  %v2362_v47 = vrot.slane %v12788_v50, 2  ;;  %v12817_v18 = vld [vmem:[#allocation1 + $0x3] ss:$4 sm:$0xff] }
 0x1fe   : > { %4172 = vmatmul.bf16.gmra.mxu0 %v3452_v34  ;;  %v3226_v5 = vsel %vm15960_vm0, %v3167_v52, %v3225_v0  ;;  %v3233_v56 = vsel %vm15960_vm0, %v3175_v29, %v3232_v2  ;;  %v2363_v21 = vrot.slane %v12788_v50, 4  ;;  %v2364_v58 = vrot.slane %v12788_v50, 6  ;;  %v9677_v44 = vld [vmem:[%s16064_s9 + $0x228] sm:$0xff]  ;;  %v16269_v39 = vld [vmem:[#allocation62_spill] sm:$0xff]  ;;  %v9676_v20 = vld [vmem:[%s16064_s9 + $0x220] sm:$0xff] }
 0x1ff   : > { %v3180_v35 = vperm.slane %v12638_v23, 0  ;;  %v3227_v55 = vsel %vm15959_vm4, %v3168_v16, %v3226_v5  ;;  %v3234_v60 = vsel %vm15959_vm4, %v3176_v19, %v3233_v56  ;;  %v2365_v51 = vrot.slane %v12801_v10, 2  ;;  %2394 = vst.sshfl [vmem:[#allocation1] sm:$0xff pattern:$0x73625140] %v16269_v39  ;;  %4267 = vmatpush.bf16.msra.mxu0 %v9677_v44  ;;  %v16270_v7 = vld [vmem:[#allocation63_spill] sm:$0xff] }
 0x200   : > { %v3228_v3 = vsel %vm15958_vm1, %v3169_v15, %v3227_v55  ;;  %v3235_v52 = vsel %vm15958_vm1, %v3177_v27, %v3234_v60  ;;  %v2366_v38 = vrot.slane %v12801_v10, 4  ;;  %v2367_v26 = vrot.slane %v12801_v10, 6  ;;  %v12847_v27 = vpop.f32.mrf.mxu2  ;;  %v9675_v2 = vld [vmem:[%s16064_s9 + $0x218] sm:$0xff]  ;;  %v12854_v39 = vld [vmem:[%s10845_s2 + $0x190] sm:$0x3]  ;;  %v16273_v46 = vld [vmem:[#allocation80_spill] sm:$0xff] }
 0x201   : > { %v3229_v23 = vsel %vm15957_vm5, %v3170_v45, %v3228_v3  ;;  %v3236_v16 = vsel %vm15957_vm5, %v3178_v40, %v3235_v52  ;;  %v2371_v6 = vrot.slane %v2362_v47, 7  ;;  %v2374_v37 = vrot.slane %v2363_v21, 7  ;;  %v12840_v36 = vld [vmem:[#allocation1 + $0x20] ss:$4 sm:$0xff]  ;;  %v12856_v3 = vpop.f32.mrf.mxu3  ;;  %s16339_s2 = sld [smem:[#allocation26_spill]] }
 0x202   : > { %v3230_v49 = vsel %vm15956_vm2, %v3171_v1, %v3229_v23  ;;  %v3237_v15 = vsel %vm15956_vm2, %v3179_v61, %v3236_v16  ;;  %v2377_v24 = vrot.slane %v2364_v58, 7  ;;  %v12844_v19 = vrot.slane %v2365_v51, 7  ;;  %2395 = vst.sshfl [vmem:[#allocation1 + $0x20] sm:$0xff pattern:$0x73625140] %v16270_v7 }
 0x203   : > { %v3231_v29 = vsel %vm15954_vm6, %v3172_v31, %v3230_v49  ;;  %v3238_v45 = vsel %vm15954_vm6, %v3180_v35, %v3237_v15  ;;  %v2386_v34 = vrot.slane %v2366_v38, 7  ;;  %v2389_v40 = vrot.slane %v2367_v26, 7  ;;  %4268 = vmatpush.bf16.msra.mxu0 %v9676_v20 }
 0x204   : > { %v3444_v1 = vpack.c.bf16 %v3238_v45, %v3231_v29  ;;  %v3261_v61 = vperm.slane %v12788_v50, 0  ;;  %v3262_v0 = vperm.slane %v2362_v47, 0  ;;  %v3263_v5 = vperm.slane %v2363_v21, 0  ;;  %v16271_v29 = vld [vmem:[#allocation69_spill] sm:$0xff] }
 0x205   : > { %v3264_v31 = vperm.slane %v2364_v58, 0  ;;  %v3265_v56 = vperm.slane %v12801_v10, 0  ;;  %v3266_v44 = vperm.slane %v2365_v51, 0  ;;  %v3267_v35 = vperm.slane %v2366_v38, 0  ;;  %v9674_v51 = vld [vmem:[%s16064_s9 + $0x210] sm:$0xff] }
 0x206   : > { %4196 = vmatmul.bf16.gmra.mxu1 %v3444_v1  ;;  %v3268_v55 = vperm.slane %v2367_v26, 0  ;;  %v3269_v60 = vsel %vm16013_vm3, %v3262_v0, %v3261_v61  ;;  %v12858_v52 = vld [vmem:[#allocation1 + $0x1] ss:$4 sm:$0xff]  ;;  %v12860_v47 = vld [vmem:[#allocation1 + $0x2] ss:$4 sm:$0xff]  ;;  %v8816_v58 = vrot.slane %v12788_v50, 9 }
 0x207   : > { %v3270_v21 = vsel %vm15960_vm0, %v3263_v5, %v3269_v60  ;;  %v2373_v20 = vrot.slane %v2371_v6, 2  ;;  %v2376_v23 = vrot.slane %v2374_v37, 2  ;;  %v12865_v16 = vld [vmem:[#allocation1 + $0x3] ss:$4 sm:$0xff]  ;;  %v2379_v26 = vrot.slane %v2377_v24, 2  ;;  %4269 = vmatpush.bf16.msra.mxu0 %v9675_v2 }
 0x208   : > { %v3271_v38 = vsel %vm15959_vm4, %v3264_v31, %v3270_v21  ;;  %v2380_v49 = vrot.slane %v12801_v10, 7  ;;  %v2385_v15 = vrot.slane %v12844_v19, 2  ;;  %2410 = vst.sshfl [vmem:[#allocation1] sm:$0xff pattern:$0x73625140] %v16271_v29  ;;  %v2372_v7 = vsel %vm11119_vm10, %v8816_v58, %v2371_v6  ;;  %v12889_v58 = vpop.f32.mrf.mxu0 }
 0x209   : > { %v3272_v45 = vsel %vm15958_vm1, %v3265_v56, %v3271_v38  ;;  %v2375_v1 = vsel %vm11119_vm10, %v2373_v20, %v2374_v37  ;;  %v2378_v61 = vsel %vm11119_vm10, %v2376_v23, %v2377_v24  ;;  %v12883_v56 = vld [vmem:[#allocation1 + $0x20] ss:$4 sm:$0xff]  ;;  %v12885_v60 = vld [vmem:[#allocation1 + $0x21] ss:$4 sm:$0xff]  ;;  %v2388_v37 = vrot.slane %v2386_v34, 2 }
 0x20a   : > { %v3273_v0 = vsel %vm15957_vm5, %v3266_v44, %v3272_v45  ;;  %v2381_v5 = vsel %vm11119_vm10, %v2379_v26, %v2380_v49  ;;  %v2382_v31 = vrot.slane %v2380_v49, 2  ;;  %v2387_v2 = vsel %vm11119_vm10, %v2385_v15, %v2386_v34  ;;  %v12891_v44 = vpop.f32.mrf.mxu1  ;;  %v12893_v20 = vld [vmem:[#allocation1 + $0x22] ss:$4 sm:$0xff]  ;;  %v12900_v34 = vld [vmem:[#allocation1 + $0x23] ss:$4 sm:$0xff] }
 0x20b   : > { %v3274_v6 = vsel %vm15956_vm2, %v3267_v35, %v3273_v0  ;;  %v2391_v21 = vrot.slane %v2389_v40, 2  ;;  %v2392_v24 = vrot.slane %v12854_v39, 7  ;;  %v3277_v26 = vperm.slane %v2372_v7, 0  ;;  %4270 = vmatpush.bf16.msra.mxu0 %v9674_v51  ;;  %v9673_v35 = vld [vmem:[%s16064_s9 + $0x208] sm:$0xff]  ;;  %v16272_v15 = vld [vmem:[#allocation139_spill] sm:$0xff] }
 0x20c   : > { %v3275_v23 = vsel %vm15954_vm6, %v3268_v55, %v3274_v6  ;;  %v2384_v38 = vsel %vm11119_vm10, %v2382_v31, %v12844_v19  ;;  %v3278_v49 = vperm.slane %v2375_v1, 0  ;;  %v2390_v45 = vsel %vm11119_vm10, %v2388_v37, %v2389_v40  ;;  %v12907_v6 = vpop.f32.mrf.mxu2  ;;  %2412 = vst.sshfl [vmem:[#allocation1 + $0x20] sm:$0xff pattern:$0x73625140] %v16273_v46 }
 0x20d   : > { %v3454_v29 = vpack.c.bf16 %v3275_v23, %v16272_v15  ;;  %v2393_v0 = vsel %vm11119_vm10, %v2391_v21, %v2392_v24  ;;  %v3279_v55 = vperm.slane %v2378_v61, 0  ;;  %v3280_v19 = vperm.slane %v2381_v5, 0  ;;  %v12911_v23 = vpop.f32.mrf.mxu3  ;;  %v9672_v15 = vld [vmem:[%s16064_s9 + $0x200] sm:$0xff] }
 0x20e   : > { %v3281_v7 = vperm.slane %v2384_v38, 0  ;;  %v3282_v51 = vperm.slane %v2387_v2, 0  ;;  %v3283_v1 = vperm.slane %v2390_v45, 0  ;;  %v3284_v31 = vperm.slane %v2393_v0, 0  ;;  %v16274_v5 = vld [vmem:[#allocation83_spill] sm:$0xff] }
 0x20f   : > { %4230 = vmatmul.bf16.gmra.mxu2 %v3454_v29  ;;  %v3285_v41 = vsel %vm16013_vm3, %v3278_v49, %v3277_v26  ;;  %v12914_v40 = vld [vmem:[#allocation1] ss:$4 sm:$0xff]  ;;  %v3181_v61 = vperm.slane %v12663_v8, 0  ;;  %v3182_v21 = vperm.slane %v12665_v9, 0  ;;  %v3183_v46 = vperm.slane %v12672_v12, 0  ;;  %4271 = vmatpush.bf16.msra.mxu0 %v9673_v35 }
 0x210   : > { %v3286_v37 = vsel %vm15960_vm0, %v3279_v55, %v3285_v41  ;;  %2416 = vst.sshfl [vmem:[#allocation1] sm:$0xff pattern:$0x73625140] %v16274_v5  ;;  %v3184_v24 = vperm.slane %v12715_v11, 0  ;;  %v3185_v38 = vperm.slane %v12717_v17, 0  ;;  %v3186_v26 = vperm.slane %v12729_v14, 0  ;;  %v4052_v55 = vpop.f32.mrf.mxu0 }
 0x211   : > { %v3287_v2 = vsel %vm15959_vm4, %v3280_v19, %v3286_v37  ;;  %v3187_v41 = vperm.slane %v12731_v4, 0  ;;  %v3189_v8 = vperm.slane %v12779_v43, 0  ;;  %v3190_v9 = vperm.slane %v12781_v30, 0 }
 0x212   : > { %v3288_v49 = vsel %vm15958_vm1, %v3281_v7, %v3287_v2  ;;  %v3188_v35 = vperm.slane %v12743_v48, 0  ;;  %v3191_v29 = vperm.slane %v12790_v25, 0  ;;  %v3192_v11 = vperm.slane %v12803_v63, 0  ;;  %v4081_v63 = vpop.f32.mrf.mxu1 }
 0x213   : > { %v3289_v12 = vsel %vm15957_vm5, %v3282_v51, %v3288_v49  ;;  %v3193_v14 = vperm.slane %v12809_v53, 0  ;;  %v3194_v45 = vperm.slane %v12811_v13, 0  ;;  %v3195_v4 = vperm.slane %v12817_v18, 0  ;;  %4272 = vmatpush.bf16.msra.mxu0 %v9672_v15  ;;  %v2413_v43 = vld [vmem:[#allocation1 + $0x21] ss:$4 sm:$0xff] }
 0x214   : > { %v3290_v17 = vsel %vm15956_vm2, %v3283_v1, %v3289_v12  ;;  %v3196_v0 = vperm.slane %v12840_v36, 0  ;;  %v3239_v48 = vsel %vm16013_vm3, %v3182_v21, %v3181_v61  ;;  %v3246_v25 = vsel %vm16013_vm3, %v3190_v9, %v3189_v8  ;;  %v2414_v19 = vld [vmem:[#allocation1 + $0x22] ss:$4 sm:$0xff]  ;;  %v2415_v7 = vld [vmem:[#allocation1 + $0x23] ss:$4 sm:$0xff]  ;;  %v4110_v61 = vpop.f32.mrf.mxu2 }
 0x215   : > { %v3291_v30 = vsel %vm15954_vm6, %v3284_v31, %v3290_v17  ;;  %v16275_v51 = vld [vmem:[#allocation67_spill] sm:$0xff]  ;;  %v3240_v13 = vsel %vm15960_vm0, %v3183_v46, %v3239_v48  ;;  %v3247_v18 = vsel %vm15960_vm0, %v3191_v29, %v3246_v25  ;;  %v4077_v1 = vadd.f32 %v12836_v59, %v12834_v22  ;;  %v16276_v31 = vld [vmem:[#allocation84_spill] sm:$0xff]  ;;  %v16277_v12 = vld [vmem:[#allocation85_spill] sm:$0xff]  ;;  %v4139_v29 = vpop.f32.mrf.mxu3 }
 0x216   : > { %v3455_v53 = vpack.c.bf16 %v3291_v30, %v16275_v51  ;;  %2417 = vst.sshfl [vmem:[#allocation1 + $0x20] sm:$0xff pattern:$0x73625140] %v16276_v31  ;;  %v3241_v36 = vsel %vm15959_vm4, %v3184_v24, %v3240_v13  ;;  %v3248_v15 = vsel %vm15959_vm4, %v3192_v11, %v3247_v18  ;;  %v4082_v37 = vadd.f32 %v4081_v63, %v4052_v55  ;;  %v16278_v18 = vld [vmem:[#allocation86_spill] sm:$0xff] }
 0x217   : > { %v2418_v21 = vld [vmem:[#allocation1] ss:$4 sm:$0xff]  ;;  %v2419_v5 = vld [vmem:[#allocation1 + $0x1] ss:$4 sm:$0xff]  ;;  %v2420_v2 = vld [vmem:[#allocation1 + $0x2] ss:$4 sm:$0xff]  ;;  %v3242_v49 = vsel %vm15958_vm1, %v3185_v38, %v3241_v36  ;;  %v3249_v46 = vsel %vm15958_vm1, %v3193_v14, %v3248_v15  ;;  %v4106_v8 = vadd.f32 %v12847_v27, %v4077_v1 }
 0x218   : > { %4259 = vmatmul.bf16.gmra.mxu3 %v3455_v53  ;;  %v2421_v9 = vld [vmem:[#allocation1 + $0x3] ss:$4 sm:$0xff]  ;;  %v3243_v22 = vsel %vm15957_vm5, %v3186_v26, %v3242_v49  ;;  %v3250_v59 = vsel %vm15957_vm5, %v3194_v45, %v3249_v46  ;;  %v4111_v24 = vadd.f32 %v4110_v61, %v4082_v37  ;;  %v3293_v14 = vperm.slane %v12858_v52, 0  ;;  %v4054_v53 = vpop.f32.mrf.mxu0 }
 0x219   : > { %2423 = vst.sshfl [vmem:[#allocation1] sm:$0xff pattern:$0x73625140] %v16277_v12  ;;  %v3244_v11 = vsel %vm15956_vm2, %v3187_v41, %v3243_v22  ;;  %v3251_v17 = vsel %vm15956_vm2, %v3195_v4, %v3250_v59  ;;  %v12958_v30 = vadd.f32 %v12856_v3, %v4106_v8  ;;  %v3294_v26 = vperm.slane %v12860_v47, 0 }
 0x21a   : > { %v3245_v38 = vsel %vm15954_vm6, %v3188_v35, %v3244_v11  ;;  %v3252_v27 = vsel %vm15954_vm6, %v3196_v0, %v3251_v17  ;;  %v3295_v48 = vperm.slane %v12865_v16, 0  ;;  %v3296_v25 = vperm.slane %v12883_v56, 0 }
 0x21b   : > { %v3453_v45 = vpack.c.bf16 %v3252_v27, %v3245_v38  ;;  %v3297_v41 = vperm.slane %v12885_v60, 0  ;;  %v3298_v4 = vperm.slane %v12893_v20, 0  ;;  %v3299_v3 = vperm.slane %v12900_v34, 0  ;;  %v4083_v20 = vpop.f32.mrf.mxu1 }
 0x21c   : > { %v3301_v63 = vperm.slane %v2413_v43, 0  ;;  %v3302_v35 = vperm.slane %v2414_v19, 0  ;;  %v3300_v0 = vperm.slane %v12914_v40, 0  ;;  %v3303_v52 = vperm.slane %v2415_v7, 0  ;;  %v4112_v61 = vpop.f32.mrf.mxu2 }
 0x21d   : > { %v2422_v55 = vld [vmem:[#allocation1 + $0x20] ss:$4 sm:$0xff]  ;;  %4201 = vmatmul.bf16.gmra.mxu1 %v3453_v45  ;;  %v3304_v51 = vperm.slane %v2418_v21, 0  ;;  %v3305_v47 = vperm.slane %v2419_v5, 0  ;;  %v3306_v13 = vperm.slane %v2420_v2, 0  ;;  %v3307_v16 = vperm.slane %v2421_v9, 0  ;;  %v4141_v59 = vpop.f32.mrf.mxu3 }
 0x21e   : > { %v3357_v56 = vsel %vm16013_vm3, %v3294_v26, %v3293_v14  ;;  %v3364_v60 = vsel %vm16013_vm3, %v3302_v35, %v3301_v63  ;;  %2424 = vst.sshfl [vmem:[#allocation1 + $0x20] sm:$0xff pattern:$0x73625140] %v16278_v18  ;;  %v12975_v19 = vadd.f32 %v4139_v29, %v4111_v24  ;;  %v4084_v40 = vadd.f32 %v4083_v20, %v4054_v53  ;;  %v16279_v21 = vld [vmem:[#allocation87_spill] sm:$0xff]  ;;  %v16281_v63 = vld [vmem:[#allocation90_spill] sm:$0xff] }
 0x21f   : > { %v3358_v34 = vsel %vm15960_vm0, %v3295_v48, %v3357_v56  ;;  %v3365_v43 = vsel %vm15960_vm0, %v3303_v52, %v3364_v60  ;;  %v3308_v36 = vperm.slane %v2422_v55, 0  ;;  %v16280_v55 = vld [vmem:[#allocation88_spill] sm:$0xff] }
 0x220   : > { %v2425_v7 = vld [vmem:[#allocation1 + $0x1] ss:$4 sm:$0xff]  ;;  %v2426_v1 = vld [vmem:[#allocation1 + $0x2] ss:$4 sm:$0xff]  ;;  %v2427_v31 = vld [vmem:[#allocation1 + $0x3] ss:$4 sm:$0xff]  ;;  %v3359_v15 = vsel %vm15959_vm4, %v3296_v25, %v3358_v34  ;;  %v3366_v37 = vsel %vm15959_vm4, %v3304_v51, %v3365_v43  ;;  %v4113_v46 = vadd.f32 %v4112_v61, %v4084_v40 }
 0x221   : > { %2432 = vst.sshfl [vmem:[#allocation1] sm:$0xff pattern:$0x73625140] %v16279_v21  ;;  %v3309_v5 = vperm.slane %v2425_v7, 0  ;;  %v3360_v2 = vsel %vm15958_vm1, %v3297_v41, %v3359_v15  ;;  %v3367_v49 = vsel %vm15958_vm1, %v3305_v47, %v3366_v37  ;;  %v3310_v8 = vperm.slane %v2426_v1, 0  ;;  %v16282_v7 = vld [vmem:[#allocation91_spill] sm:$0xff] }
 0x222   : > { %v3361_v9 = vsel %vm15957_vm5, %v3298_v4, %v3360_v2  ;;  %v3368_v22 = vsel %vm15957_vm5, %v3306_v13, %v3367_v49  ;;  %v12986_v29 = vadd.f32 %v4141_v59, %v4113_v46  ;;  %v3311_v38 = vperm.slane %v2427_v31, 0 }
 0x223   : > { %v3362_v24 = vsel %vm15956_vm2, %v3299_v3, %v3361_v9  ;;  %v3369_v12 = vsel %vm15956_vm2, %v3307_v16, %v3368_v22  ;;  %v3371_v48 = vsel %vm16013_vm3, %v3310_v8, %v3309_v5  ;;  %v4057_v3 = vpop.f32.mrf.mxu0  ;;  %v16283_v9 = vld [vmem:[#allocation94_spill] sm:$0xff] }
 0x224   : > { %v3363_v11 = vsel %vm15954_vm6, %v3300_v0, %v3362_v24  ;;  %v3370_v17 = vsel %vm15954_vm6, %v3308_v36, %v3369_v12  ;;  %v3372_v35 = vsel %vm15960_vm0, %v3311_v38, %v3371_v48  ;;  %v4115_v52 = vpop.f32.mrf.mxu2 }
 0x225   : > { %v3429_v27 = vpack.c.bf16 %v3370_v17, %v3363_v11  ;;  %v2428_v14 = vld [vmem:[#allocation1 + $0x20] ss:$4 sm:$0xff]  ;;  %v2429_v26 = vld [vmem:[#allocation1 + $0x21] ss:$4 sm:$0xff]  ;;  %v2430_v45 = vld [vmem:[#allocation1 + $0x22] ss:$4 sm:$0xff]  ;;  %v4144_v13 = vpop.f32.mrf.mxu3 }
 0x226   : > { %v2431_v25 = vld [vmem:[#allocation1 + $0x23] ss:$4 sm:$0xff]  ;;  %v3312_v4 = vperm.slane %v2428_v14, 0  ;;  %v3313_v51 = vperm.slane %v2429_v26, 0  ;;  %v3314_v56 = vperm.slane %v2430_v45, 0 }
 0x227   : > { %4273 = vmatmul.bf16.vlgmr.msra.gmra.mxu0 %v3429_v27  ;;  %2434 = vst.sshfl [vmem:[#allocation1 + $0x20] sm:$0xff pattern:$0x73625140] %v16280_v55  ;;  %v3315_v60 = vperm.slane %v2431_v25, 0 }
 0x228   : > { %v2433_v41 = vld [vmem:[#allocation1] ss:$4 sm:$0xff]  ;;  %v4086_v0 = vpop.f32.mrf.mxu1  ;;  %v3373_v53 = vsel %vm15959_vm4, %v3312_v4, %v3372_v35 }
 0x229   : > { %2438 = vst.sshfl [vmem:[#allocation1] sm:$0xff pattern:$0x73625140] %v16281_v63  ;;  %v4087_v47 = vadd.f32 %v4086_v0, %v4057_v3  ;;  %v3374_v43 = vsel %vm15958_vm1, %v3313_v51, %v3373_v53  ;;  %v3316_v59 = vperm.slane %v2433_v41, 0  ;;  %v16284_v3 = vld [vmem:[#allocation98_spill] sm:$0xff] }
 0x22a   : > { %v3375_v2 = vsel %vm15957_vm5, %v3314_v56, %v3374_v43 }
 0x22b   : > { %v4116_v16 = vadd.f32 %v4115_v52, %v4087_v47  ;;  %v4059_v49 = vpop.f32.mrf.mxu0  ;;  %v3376_v38 = vsel %vm15956_vm2, %v3315_v60, %v3375_v2 }
 0x22c   : > { %v4117_v11 = vpop.f32.mrf.mxu2  ;;  %v3377_v4 = vsel %vm15954_vm6, %v3316_v59, %v3376_v38 }
 0x22d   : > { %v12996_v40 = vadd.f32 %v4144_v13, %v4116_v16  ;;  %v4146_v25 = vpop.f32.mrf.mxu3  ;;  %v16285_v13 = vld [vmem:[#allocation109_spill] sm:$0xff] }
 0x22e   : > { %v2435_v18 = vld [vmem:[#allocation1 + $0x21] ss:$4 sm:$0xff]  ;;  %v2436_v20 = vld [vmem:[#allocation1 + $0x22] ss:$4 sm:$0xff]  ;;  %v2437_v34 = vld [vmem:[#allocation1 + $0x23] ss:$4 sm:$0xff] }
 0x22f   : > { %2439 = vst.sshfl [vmem:[#allocation1 + $0x20] sm:$0xff pattern:$0x73625140] %v16282_v7  ;;  %v3317_v31 = vperm.slane %v2435_v18, 0  ;;  %v3318_v61 = vperm.slane %v2436_v20, 0  ;;  %v3319_v21 = vperm.slane %v2437_v34, 0 }
 0x230   : > { %v2440_v1 = vld [vmem:[#allocation1] ss:$4 sm:$0xff]  ;;  %v2441_v36 = vld [vmem:[#allocation1 + $0x1] ss:$4 sm:$0xff]  ;;  %v2442_v15 = vld [vmem:[#allocation1 + $0x2] ss:$4 sm:$0xff]  ;;  %v4088_v46 = vpop.f32.mrf.mxu1 }
 0x231   : > { %v2443_v37 = vld [vmem:[#allocation1 + $0x3] ss:$4 sm:$0xff]  ;;  %v3320_v5 = vperm.slane %v2440_v1, 0  ;;  %v3321_v8 = vperm.slane %v2441_v36, 0  ;;  %v4089_v22 = vadd.f32 %v4088_v46, %v4059_v49  ;;  %v3322_v24 = vperm.slane %v2442_v15, 0 }
 0x232   : > { %2445 = vst.sshfl [vmem:[#allocation1] sm:$0xff pattern:$0x73625140] %v16283_v9  ;;  %v3378_v12 = vsel %vm16013_vm3, %v3318_v61, %v3317_v31  ;;  %v3323_v17 = vperm.slane %v2443_v37, 0  ;;  %v16286_v31 = vld [vmem:[#allocation113_spill] sm:$0xff]  ;;  %v16287_v61 = vld [vmem:[#allocation116_spill] sm:$0xff] }
 0x233   : > { %v3379_v27 = vsel %vm15960_vm0, %v3319_v21, %v3378_v12  ;;  %v4118_v14 = vadd.f32 %v4117_v11, %v4089_v22 }
 0x234   : > { %v3380_v26 = vsel %vm15959_vm4, %v3320_v5, %v3379_v27 }
 0x235   : > { %v3381_v48 = vsel %vm15958_vm1, %v3321_v8, %v3380_v26  ;;  %v13009_v63 = vadd.f32 %v4146_v25, %v4118_v14 }
 0x236   : > { %v2444_v45 = vld [vmem:[#allocation1 + $0x20] ss:$4 sm:$0xff]  ;;  %v3382_v41 = vsel %vm15957_vm5, %v3322_v24, %v3381_v48 }
 0x237   : > { %v3324_v55 = vperm.slane %v2444_v45, 0  ;;  %2446 = vst.sshfl [vmem:[#allocation1 + $0x20] sm:$0xff pattern:$0x73625140] %v16284_v3  ;;  %v3383_v35 = vsel %vm15956_vm2, %v3323_v17, %v3382_v41  ;;  %v16288_v24 = vld [vmem:[#allocation117_spill] sm:$0xff]  ;;  %v16289_v41 = vld [vmem:[#allocation122_spill] sm:$0xff] }
 0x238   : > { %v13014_v60 = vpop.f32.mrf.mxu0 }
 0x239   : > { %v3384_v0 = vsel %vm15954_vm6, %v3324_v55, %v3383_v35  ;;  %v2447_v52 = vld [vmem:[#allocation1 + $0x1] ss:$4 sm:$0xff]  ;;  %v2448_v51 = vld [vmem:[#allocation1 + $0x2] ss:$4 sm:$0xff]  ;;  %v2449_v47 = vld [vmem:[#allocation1 + $0x3] ss:$4 sm:$0xff] }
 0x23a   : > { %v3438_v53 = vpack.c.bf16 %v3384_v0, %v3377_v4  ;;  %2454 = vst.sshfl [vmem:[#allocation1] sm:$0xff pattern:$0x73625140] %v16285_v13  ;;  %v3325_v16 = vperm.slane %v2447_v52, 0  ;;  %v3326_v56 = vperm.slane %v2448_v51, 0  ;;  %v3327_v18 = vperm.slane %v2449_v47, 0 }
 0x23b   : > { %v4079_v52 = vadd.f32 %v12891_v44, %v12889_v58 }
 0x23c   : > { %4278 = vmatmul.bf16.gmra.mxu0 %v3438_v53  ;;  %v3385_v7 = vsel %vm16013_vm3, %v3326_v56, %v3325_v16 }
 0x23d   : > { %v3386_v37 = vsel %vm15960_vm0, %v3327_v18, %v3385_v7  ;;  %v4108_v7 = vadd.f32 %v12907_v6, %v4079_v52 }
 0x23e   : > { %v2450_v20 = vld [vmem:[#allocation1 + $0x20] ss:$4 sm:$0xff]  ;;  %v2451_v34 = vld [vmem:[#allocation1 + $0x21] ss:$4 sm:$0xff]  ;;  %v2452_v43 = vld [vmem:[#allocation1 + $0x22] ss:$4 sm:$0xff] }
 0x23f   : > { %v2453_v1 = vld [vmem:[#allocation1 + $0x23] ss:$4 sm:$0xff]  ;;  %v3328_v36 = vperm.slane %v2450_v20, 0  ;;  %v3329_v21 = vperm.slane %v2451_v34, 0  ;;  %v3330_v49 = vperm.slane %v2452_v43, 0 }
 0x240   : > { %2456 = vst.sshfl [vmem:[#allocation1 + $0x20] sm:$0xff pattern:$0x73625140] %v16286_v31  ;;  %v13021_v2 = vpop.f32.mrf.mxu0  ;;  %v3331_v46 = vperm.slane %v2453_v1, 0  ;;  %v16290_v43 = vld [vmem:[#allocation123_spill] sm:$0xff] }
 0x241   : > { %v2455_v15 = vld [vmem:[#allocation1] ss:$4 sm:$0xff]  ;;  %v3387_v5 = vsel %vm15959_vm4, %v3328_v36, %v3386_v37 }
 0x242   : > { %2460 = vst.sshfl [vmem:[#allocation1] sm:$0xff pattern:$0x73625140] %v16287_v61  ;;  %v3388_v59 = vsel %vm15958_vm1, %v3329_v21, %v3387_v5  ;;  %v3332_v3 = vperm.slane %v2455_v15, 0  ;;  %v16291_v37 = vld [vmem:[#allocation136_spill] sm:$0xff]  ;;  %v4137_v5 = vadd.f32 %v12911_v23, %v4108_v7 }
 0x243   : > { %v3389_v25 = vsel %vm15957_vm5, %v3330_v49, %v3388_v59 }
 0x244   : > { %v3390_v51 = vsel %vm15956_vm2, %v3331_v46, %v3389_v25 }
 0x245   : > { %v3391_v20 = vsel %vm15954_vm6, %v3332_v3, %v3390_v51 }
 0x247   : > { %v2457_v8 = vld [vmem:[#allocation1 + $0x21] ss:$4 sm:$0xff]  ;;  %v2458_v9 = vld [vmem:[#allocation1 + $0x22] ss:$4 sm:$0xff]  ;;  %v2459_v22 = vld [vmem:[#allocation1 + $0x23] ss:$4 sm:$0xff] }
 0x248   : > { %2461 = vst.sshfl [vmem:[#allocation1 + $0x20] sm:$0xff pattern:$0x73625140] %v16288_v24  ;;  %v3333_v12 = vperm.slane %v2457_v8, 0  ;;  %v3334_v11 = vperm.slane %v2458_v9, 0  ;;  %v3335_v17 = vperm.slane %v2459_v22, 0 }
 0x249   : > { %v2462_v38 = vld [vmem:[#allocation1] ss:$4 sm:$0xff]  ;;  %v2463_v27 = vld [vmem:[#allocation1 + $0x1] ss:$4 sm:$0xff]  ;;  %v2464_v14 = vld [vmem:[#allocation1 + $0x2] ss:$4 sm:$0xff] }
 0x24a   : > { %v2465_v26 = vld [vmem:[#allocation1 + $0x3] ss:$4 sm:$0xff]  ;;  %v3336_v45 = vperm.slane %v2462_v38, 0  ;;  %v3337_v48 = vperm.slane %v2463_v27, 0  ;;  %v3338_v55 = vperm.slane %v2464_v14, 0  ;;  %v3392_v4 = vsel %vm16013_vm3, %v3334_v11, %v3333_v12 }
 0x24b   : > { %2467 = vst.sshfl [vmem:[#allocation1] sm:$0xff pattern:$0x73625140] %v16289_v41  ;;  %v3339_v35 = vperm.slane %v2465_v26, 0  ;;  %v3393_v0 = vsel %vm15960_vm0, %v3335_v17, %v3392_v4 }
 0x24c   : > { %v3394_v47 = vsel %vm15959_vm4, %v3336_v45, %v3393_v0 }
 0x24d   : > { %v3395_v53 = vsel %vm15958_vm1, %v3337_v48, %v3394_v47 }
 0x24e   : > { %v3396_v16 = vsel %vm15957_vm5, %v3338_v55, %v3395_v53 }
 0x24f   : > { %v2466_v13 = vld [vmem:[#allocation1 + $0x20] ss:$4 sm:$0xff]  ;;  %v3397_v34 = vsel %vm15956_vm2, %v3339_v35, %v3396_v16 }
 0x250   : > { %v3340_v18 = vperm.slane %v2466_v13, 0  ;;  %2468 = vst.sshfl [vmem:[#allocation1 + $0x20] sm:$0xff pattern:$0x73625140] %v16290_v43 }
 0x251   : > { %v4163_v56 = vpop.f32.mrf.mxu0 }
 0x252   : > { %v13040_v58 = vadd.f32 %v4163_v56, %v12958_v30  ;;  %v3398_v44 = vsel %vm15954_vm6, %v3340_v18, %v3397_v34  ;;  %v2469_v1 = vld [vmem:[#allocation1 + $0x1] ss:$4 sm:$0xff]  ;;  %v2470_v31 = vld [vmem:[#allocation1 + $0x2] ss:$4 sm:$0xff]  ;;  %v2471_v36 = vld [vmem:[#allocation1 + $0x3] ss:$4 sm:$0xff] }
 0x253   : > { %v3447_v15 = vpack.c.bf16 %v3398_v44, %v3391_v20  ;;  %2476 = vst.sshfl [vmem:[#allocation1] sm:$0xff pattern:$0x73625140] %v16291_v37  ;;  %v3341_v61 = vperm.slane %v2469_v1, 0  ;;  %v3342_v21 = vperm.slane %v2470_v31, 0  ;;  %v3343_v49 = vperm.slane %v2471_v36, 0 }
 0x255   : > { %4283 = vmatmul.bf16.gmra.mxu0 %v3447_v15  ;;  %v3399_v46 = vsel %vm16013_vm3, %v3342_v21, %v3341_v61 }
 0x256   : > { %v3400_v12 = vsel %vm15960_vm0, %v3343_v49, %v3399_v46  ;;  %v4072_v46 = vadd.f32 %v12704_v42, %v12702_v54 }
 0x257   : > { %v2472_v6 = vld [vmem:[#allocation1 + $0x20] ss:$4 sm:$0xff]  ;;  %v2473_v8 = vld [vmem:[#allocation1 + $0x21] ss:$4 sm:$0xff]  ;;  %v2474_v30 = vld [vmem:[#allocation1 + $0x22] ss:$4 sm:$0xff] }
 0x258   : > { %v2475_v22 = vld [vmem:[#allocation1 + $0x23] ss:$4 sm:$0xff]  ;;  %v3344_v59 = vperm.slane %v2472_v6, 0  ;;  %v3345_v23 = vperm.slane %v2473_v8, 0  ;;  %v3346_v38 = vperm.slane %v2474_v30, 0  ;;  %v4101_v6 = vadd.f32 %v12727_v33, %v4072_v46  ;;  %v4187_v30 = vpop.f32.mrf.mxu1 }
 0x259   : > { %v4165_v9 = vpop.f32.mrf.mxu0  ;;  %2478 = vst.sshfl [vmem:[#allocation1 + $0x20] sm:$0xff pattern:$0x73625140] %v12788_v50  ;;  %v3347_v27 = vperm.slane %v2475_v22, 0  ;;  %v4074_v8 = vadd.f32 %v12767_v32, %v12765_v62 }
 0x25a   : > { %v13046_v24 = vadd.f32 %v4165_v9, %v4137_v5  ;;  %v2477_v11 = vld [vmem:[#allocation1] ss:$4 sm:$0xff]  ;;  %v3401_v17 = vsel %vm15959_vm4, %v3344_v59, %v3400_v12  ;;  %v4216_v59 = vpop.f32.mrf.mxu2 }
 0x25b   : > { %2482 = vst.sshfl [vmem:[#allocation1] sm:$0xff pattern:$0x73625140] %v12801_v10  ;;  %v3402_v14 = vsel %vm15958_vm1, %v3345_v23, %v3401_v17  ;;  %v3348_v56 = vperm.slane %v2477_v11, 0  ;;  %v16292_v9 = vld [vmem:[#allocation70_spill] sm:$0xff]  ;;  %v16293_v12 = vld [vmem:[#allocation72_spill] sm:$0xff]  ;;  %v4245_v23 = vpop.f32.mrf.mxu3 }
 0x25c   : > { %v3403_v0 = vsel %vm15957_vm5, %v3346_v38, %v3402_v14  ;;  %v4103_v22 = vadd.f32 %v16292_v9, %v4074_v8  ;;  %v13087_v38 = vld [vmem:[%s10468_s13] ss:$0 sm:$0xff] }
 0x25d   : > { %v13090_v14 = vld [vmem:[%s10473_s17] ss:$0 sm:$0xff] }
 0x25e   : > { %v4132_v11 = vadd.f32 %v16293_v12, %v4103_v22 }
 0x260   : > { %v2479_v26 = vld [vmem:[#allocation1 + $0x21] ss:$4 sm:$0xff]  ;;  %v2480_v45 = vld [vmem:[#allocation1 + $0x22] ss:$4 sm:$0xff]  ;;  %v2481_v48 = vld [vmem:[#allocation1 + $0x23] ss:$4 sm:$0xff]  ;;  %v4189_v42 = vpop.f32.mrf.mxu1  ;;  %v4161_v33 = vadd.f32 %v13021_v2, %v4132_v11 }
 0x261   : > { %2483 = vst.sshfl [vmem:[#allocation1 + $0x20] sm:$0xff pattern:$0x73625140] %v12854_v39  ;;  %v3349_v55 = vperm.slane %v2479_v26, 0  ;;  %v3350_v50 = vperm.slane %v2480_v45, 0  ;;  %v3351_v4 = vperm.slane %v2481_v48, 0 }
 0x262   : > { %v4168_v25 = vpop.f32.mrf.mxu0  ;;  %v2484_v10 = vld [vmem:[#allocation1] ss:$4 sm:$0xff]  ;;  %v2485_v3 = vld [vmem:[#allocation1 + $0x1] ss:$4 sm:$0xff]  ;;  %v2486_v35 = vld [vmem:[#allocation1 + $0x2] ss:$4 sm:$0xff]  ;;  %v4218_v62 = vpop.f32.mrf.mxu2 }
 0x263   : > { %v13055_v41 = vadd.f32 %v4168_v25, %v12975_v19  ;;  %v2487_v52 = vld [vmem:[#allocation1 + $0x3] ss:$4 sm:$0xff]  ;;  %v3352_v51 = vperm.slane %v2484_v10, 0  ;;  %v3353_v47 = vperm.slane %v2485_v3, 0  ;;  %v3354_v53 = vperm.slane %v2486_v35, 0  ;;  %v4247_v45 = vpop.f32.mrf.mxu3 }
 0x264   : > { %v3406_v13 = vsel %vm16013_vm3, %v3350_v50, %v3349_v55  ;;  %v3355_v16 = vperm.slane %v2487_v52, 0  ;;  %v3404_v19 = vsel %vm15956_vm2, %v3347_v27, %v3403_v0  ;;  %v15955_v55 = vmov 0.0  }
 0x265   : > { %v3407_v39 = vsel %vm15960_vm0, %v3351_v4, %v3406_v13  ;;  %v3405_v31 = vsel %vm15954_vm6, %v3348_v56, %v3404_v19  ;;  %4487 = vst [vmem:[#allocation2 + $0x8] sm:$0x3] %v15955_v55 }
 0x266   : > { %v3408_v18 = vsel %vm15959_vm4, %v3352_v51, %v3407_v39  ;;  %4492 = vst [vmem:[#allocation2 + $0x10] sm:$0x1] %v15955_v55 }
 0x267   : > { %v3409_v20 = vsel %vm15958_vm1, %v3353_v47, %v3408_v18  ;;  %4500 = vst [vmem:[#allocation2 + $0x19] sm:$0x1] %v15955_v55 }
 0x268   : > { %v3410_v34 = vsel %vm15957_vm5, %v3354_v53, %v3409_v20  ;;  %v2488_v43 = vld [vmem:[#allocation1 + $0x20] ss:$4 sm:$0xff]  ;;  %4490 = vst [vmem:[#allocation2 + $0x98] sm:$0x3] %v15955_v55 }
 0x269   : > { %v3411_v7 = vsel %vm15956_vm2, %v3355_v16, %v3410_v34  ;;  %v3356_v1 = vperm.slane %v2488_v43, 0  ;;  %4493 = vst [vmem:[#allocation2 + $0x20] sm:$0x1] %v15955_v55 }
 0x26a   : > { %v4170_v44 = vpop.f32.mrf.mxu0  ;;  %v4192_v25 = vpop.f32.mrf.mxu1  ;;  %4494 = vst [vmem:[#allocation2 + $0x30] sm:$0x1] %v15955_v55 }
 0x26b   : > { %v13067_v36 = vadd.f32 %v4170_v44, %v12986_v29  ;;  %v3412_v15 = vsel %vm15954_vm6, %v3356_v1, %v3411_v7  ;;  %v4130_v29 = vadd.f32 %v12751_v28, %v4101_v6  ;;  %v4190_v28 = vadd.f32 %v4189_v42, %v4161_v33  ;;  %v4221_v3 = vpop.f32.mrf.mxu2  ;;  %4495 = vst [vmem:[#allocation2 + $0x40] sm:$0x1] %v15955_v55  ;;  %v4250_v53 = vpop.f32.mrf.mxu3 }
 0x26c   : > { %v3456_v37 = vpack.c.bf16 %v3412_v15, %v3405_v31  ;;  %v4193_v0 = vadd.f32 %v4192_v25, %v13040_v58  ;;  %v13106_v52 = vld [vmem:[#allocation2 + $0x8] sm:$0x3]  ;;  %4496 = vst [vmem:[#allocation2 + $0x50] sm:$0x1] %v15955_v55  ;;  %v13126_v31 = vld [vmem:[%s10478_s21 + $0x1] ss:$0 sm:$0xff] }
 0x26d   : > { %5872 = vst [vmem:[#allocation2 + $0x8] sm:$0x3] %v15955_v55  ;;  %v4556_v8 = vmul.f32 0.0, %v13126_v31 }
 0x26e   : > { %4288 = vmatmul.bf16.gmra.mxu0 %v3456_v37  ;;  %4497 = vst [vmem:[#allocation2 + $0x60] sm:$0x1] %v15955_v55  ;;  %v4222_v16 = vadd.f32 %v4221_v3, %v4193_v0 }
 0x26f   : > { %4498 = vst [vmem:[#allocation2 + $0x70] sm:$0x1] %v15955_v55  ;;  %v4589_v33 = vrot.slane %v4556_v8, 1 }
 0x270   : > { %4499 = vst [vmem:[#allocation2 + $0x80] sm:$0x1] %v15955_v55  ;;  %v4251_v56 = vadd.f32 %v4250_v53, %v4222_v16 }
 0x271   : > { %4501 = vst [vmem:[#allocation2 + $0x29] sm:$0x1] %v15955_v55 }
 0x272   : > { %v4194_v39 = vpop.f32.mrf.mxu1  ;;  %5870 = vst [vmem:[#allocation2 + $0x90] sm:$0xff] %v15955_v55 }
 0x273   : > { %v4195_v18 = vadd.f32 %v4194_v39, %v13046_v24  ;;  %4502 = vst [vmem:[#allocation2 + $0x39] sm:$0x1] %v15955_v55  ;;  %v4223_v19 = vpop.f32.mrf.mxu2  ;;  %v4252_v37 = vpop.f32.mrf.mxu3 }
 0x274   : > { %4503 = vst [vmem:[#allocation2 + $0x49] sm:$0x1] %v15955_v55 }
 0x275   : > { %4504 = vst [vmem:[#allocation2 + $0x59] sm:$0x1] %v15955_v55  ;;  %v4224_v44 = vadd.f32 %v4223_v19, %v4195_v18 }
 0x276   : > { %4505 = vst [vmem:[#allocation2 + $0x69] sm:$0x1] %v15955_v55 }
 0x277   : > { %4506 = vst [vmem:[#allocation2 + $0x79] sm:$0x1] %v15955_v55  ;;  %v4253_v6 = vadd.f32 %v4252_v37, %v4224_v44 }
 0x278   : > { %4507 = vst [vmem:[#allocation2 + $0x89] sm:$0x1] %v15955_v55 }
 0x27b   : > { %v4173_v61 = vpop.f32.mrf.mxu0 }
 0x27c   : > { %v13071_v21 = vadd.f32 %v4173_v61, %v12996_v40  ;;  %v4159_v40 = vadd.f32 %v13014_v60, %v4130_v29  ;;  %v4219_v60 = vadd.f32 %v4218_v62, %v4190_v28  ;;  %v13148_v62 = vld [vmem:[%s10478_s21] ss:$0 sm:$0xff] }
 0x27d   : > { %v4538_v0 = vmul.f32 0.0, %v13148_v62 }
 0x27e   : > { %v4248_v2 = vadd.f32 %v4247_v45, %v4219_v60 }
 0x283   : > { %v4175_v5 = vpop.f32.mrf.mxu0  ;;  %v13123_v1 = vpop.f32.mrf.mxu1 }
 0x284   : > { %v13074_v49 = vadd.f32 %v4175_v5, %v13009_v63  ;;  %v4188_v63 = vadd.f32 %v4187_v30, %v4159_v40  ;;  %v4557_v30 = vmul.f32 %v13126_v31, %v13106_v52 }
 0x286   : > { %v4217_v54 = vadd.f32 %v4216_v59, %v4188_v63  ;;  %v13143_v63 = vld [vmem:[%s10478_s21 + $0x2] ss:$0 sm:$0xff] }
 0x287   : > { %v4631_v45 = vmul.f32 0.0, %v13143_v63  ;;  %v4632_v25 = vmul.f32 %v13143_v63, %v13106_v52 }
 0x288   : > { %v4246_v17 = vadd.f32 %v4245_v23, %v4217_v54  ;;  %v4226_v54 = vpop.f32.mrf.mxu2 }
 0x289   : > { %v4665_v16 = vrot.slane %v4632_v25, 2 }
 0x28b   : > { %v4199_v60 = vpop.f32.mrf.mxu1 }
 0x28c   : > { %v4200_v18 = vadd.f32 %v4199_v60, %v13067_v36  ;;  %v13185_v36 = vld [vmem:[%s10478_s21 + $0x6] ss:$0 sm:$0xff] }
 0x2a4   : > { %v4274_v32 = vpop.f32.mrf.mxu0 }
 0x2a5   : > { %v4275_v27 = vadd.f32 %v4274_v32, %v4246_v17  ;;  %v4590_v32 = vrot.slane %v4557_v30, 1 }
 0x2a7   : > { %v4298_v26 = vmul.f32 %v13087_v38, %v4275_v27  ;;  %v4591_v52 = vsel %vm4588_vm15, %v4589_v33, %v4590_v32 }
 0x2a9   : > { %v13094_v48 = vadd.f32 %v13090_v14, %v4298_v26 }
 0x2ab   : > { %v9105_v50 = vmul.f32 -1.442695, %v13094_v48 }
 0x2ac   : > { %v4276_v4 = vpop.f32.mrf.mxu0 }
 0x2ad   : > { %9964 = vpow2.f32 %v9105_v50  ;;  %v4277_v10 = vadd.f32 %v4276_v4, %v4248_v2 }
 0x2af   : > { %v4299_v35 = vmul.f32 %v13087_v38, %v4277_v10 }
 0x2b1   : > { %v13110_v51 = vadd.f32 %v13090_v14, %v4299_v35 }
 0x2b3   : > { %v9965_v47 = vpop.eup %9964  ;;  %v9106_v13 = vmul.f32 -1.442695, %v13110_v51 }
 0x2b4   : > { %v4342_v58 = vadd.f32 1.0, %v9965_v47 }
 0x2b5   : > { %9966 = vpow2.f32 %v9106_v13  ;;  %v4664_v13 = vrot.slane %v4631_v45, 2 }
 0x2b6   : > { %9968 = vrcp.f32 %v4342_v58  ;;  %v4361_v29 = vand.u32 2147483648, %v4342_v58  ;;  %v4359_v9 = vand.u32 2147483647, %v4342_v58  ;;  %vm4355_vm12 = vweird.f32 %v4342_v58 }
 0x2b7   : > { %v4666_v44 = vsel %vm4663_vm8, %v4664_v13, %v4665_v16 }
 0x2b8   : > { %v4362_v42 = vor.u32 1.1754944e-38, %v4361_v29  ;;  %vm4360_vm14 = vcmp.eq.f32.partialorder %v4359_v9, 8.507059e+37 }
 0x2b9   : > { %v4279_v20 = vpop.f32.mrf.mxu0 }
 0x2ba   : > { %v4280_v34 = vadd.f32 %v4279_v20, %v4251_v56  ;;  %v4255_v56 = vpop.f32.mrf.mxu3  ;;  %v4621_v20 = vadd.f32 %v4591_v52, %v4538_v0 }
 0x2bb   : > { %v9967_v43 = vpop.eup %9966 }
 0x2bc   : > { %v9969_v7 = vpop.eup %9968  ;;  %v13129_v15 = vadd.f32 1.0, %v9967_v43  ;;  %v4300_v24 = vmul.f32 %v13087_v38, %v4280_v34  ;;  %v4228_v43 = vpop.f32.mrf.mxu2  ;;  %v4696_v30 = vadd.f32 %v4666_v44, %v4621_v20 }
 0x2bd   : > { %v4351_v61 = vmul.f32 %v9969_v7, %v4342_v58  ;;  %vm4356_vm11 = vweird.f32 %v9969_v7  ;;  %v4198_v58 = vadd.f32 %v13123_v1, %v13055_v41  ;;  %v13181_v41 = vld [vmem:[%s10478_s21 + $0x5] ss:$0 sm:$0xff] }
 0x2be   : > { %9970 = vrcp.f32 %v13129_v15  ;;  %v13136_v46 = vadd.f32 %v13090_v14, %v4300_v24  ;;  %vm4357_vm13 = vmor %vm4355_vm12, %vm4356_vm11  ;;  %v4376_v10 = vand.u32 2147483648, %v13129_v15  ;;  %v4374_v53 = vand.u32 2147483647, %v13129_v15  ;;  %v13178_v24 = vld [vmem:[%s10478_s21 + $0x4] ss:$0 sm:$0xff] }
 0x2bf   : > { %v4352_v5 = vsub.f32 1.0, %v4351_v61  ;;  %vm4370_vm9 = vweird.f32 %v13129_v15  ;;  %v4227_v61 = vadd.f32 %v4226_v54, %v4198_v58 }
 0x2c0   : > { %v9107_v22 = vmul.f32 -1.442695, %v13136_v46  ;;  %v4377_v19 = vor.u32 1.1754944e-38, %v4376_v10  ;;  %vm4375_vm12 = vcmp.eq.f32.partialorder %v4374_v53, 8.507059e+37 }
 0x2c1   : > { %v4353_v40 = vmul.f32 %v9969_v7, %v4352_v5  ;;  %v4281_v59 = vpop.f32.mrf.mxu0  ;;  %v4229_v5 = vadd.f32 %v4228_v43, %v4200_v18 }
 0x2c2   : > { %v4282_v12 = vadd.f32 %v4281_v59, %v4253_v6  ;;  %9972 = vpow2.f32 %v9107_v22  ;;  %v4257_v45 = vpop.f32.mrf.mxu3 }
 0x2c3   : > { %v4354_v11 = vadd.f32 %v9969_v7, %v4353_v40  ;;  %v4258_v58 = vadd.f32 %v4257_v45, %v4229_v5 }
 0x2c4   : > { %v9971_v23 = vpop.eup %9970  ;;  %v4301_v17 = vmul.f32 %v13087_v38, %v4282_v12 }
 0x2c5   : > { %v4358_v28 = vsel %vm4357_vm13, %v9969_v7, %v4354_v11  ;;  %v4366_v27 = vmul.f32 %v9971_v23, %v13129_v15  ;;  %vm4371_vm7 = vweird.f32 %v9971_v23  ;;  %v4202_v7 = vpop.f32.mrf.mxu1 }
 0x2c6   : > { %v4363_v26 = vsel %vm4360_vm14, %v4362_v42, %v4358_v28  ;;  %v13160_v2 = vadd.f32 %v13090_v14, %v4301_v17  ;;  %vm4372_vm11 = vmor %vm4370_vm9, %vm4371_vm7  ;;  %v4203_v6 = vadd.f32 %v4202_v7, %v13071_v21 }
 0x2c7   : > { %v4470_v50 = vmul.f32 %v4363_v26, %v13094_v48  ;;  %v4367_v4 = vsub.f32 1.0, %v4366_v27 }
 0x2c8   : > { %v9108_v3 = vmul.f32 -1.442695, %v13160_v2  ;;  %v9973_v35 = vpop.eup %9972 }
 0x2c9   : > { %4478 = vst [vmem:[%s13154_s23] sm:$0xff] %v4470_v50  ;;  %v4368_v47 = vmul.f32 %v9971_v23, %v4367_v4  ;;  %v13169_v48 = vadd.f32 1.0, %v9973_v35 }
 0x2ca   : > { %4508 = vst [vmem:[#allocation2 + $0x11] sm:$0xff] %v4470_v50  ;;  %9974 = vpow2.f32 %v9108_v3  ;;  %v4231_v3 = vpop.f32.mrf.mxu2 }
 0x2cb   : > { %v4369_v39 = vadd.f32 %v9971_v23, %v4368_v47  ;;  %9976 = vrcp.f32 %v13169_v48  ;;  %v4391_v60 = vand.u32 2147483648, %v13169_v48  ;;  %v13214_v20 = vadd.f32 %v4231_v3, %v4203_v6  ;;  %v4260_v3 = vpop.f32.mrf.mxu3 }
 0x2cc   : > { %vm4385_vm13 = vweird.f32 %v13169_v48 }
 0x2cd   : > { %v4373_v34 = vsel %vm4372_vm11, %v9971_v23, %v4369_v39  ;;  %v4256_v39 = vadd.f32 %v4255_v56, %v4227_v61 }
 0x2ce   : > { %v4378_v15 = vsel %vm4375_vm12, %v4377_v19, %v4373_v34  ;;  %v13212_v19 = vld [vmem:[%s10478_s21 + $0x9] ss:$0 sm:$0xff] }
 0x2cf   : > { %v4471_v1 = vmul.f32 %v4378_v15, %v13110_v51  ;;  %v4389_v51 = vand.u32 2147483647, %v13169_v48 }
 0x2d0   : > { %v9975_v37 = vpop.eup %9974 }
 0x2d1   : > { %v4518_v29 = vld [vmem:[#allocation2 + $0x10] sm:$0xff]  ;;  %v4519_v8 = vld [vmem:[#allocation2 + $0x18] sm:$0x3]  ;;  %4479 = vst [vmem:[%s13154_s23 + $0x8] sm:$0xff] %v4471_v1  ;;  %v13194_v59 = vpop.eup %9976  ;;  %v13201_v17 = vadd.f32 1.0, %v9975_v37  ;;  %vm13222_vm14 = vcmp.eq.f32.partialorder %v4389_v51, 8.507059e+37 }
 0x2d2   : > { %v4558_v40 = vmul.f32 %v13126_v31, %v4518_v29  ;;  %v4559_v9 = vmul.f32 %v13126_v31, %v4519_v8  ;;  %v4633_v22 = vmul.f32 %v13143_v63, %v4518_v29  ;;  %5873 = vst [vmem:[#allocation2 + $0x18] sm:$0x3] %v15955_v55  ;;  %v4634_v12 = vmul.f32 %v13143_v63, %v4519_v8  ;;  %v4284_v26 = vpop.f32.mrf.mxu0 }
 0x2d3   : > { %v4707_v21 = vmul.f32 %v13178_v24, %v4518_v29  ;;  %v4725_v11 = vmul.f32 %v13181_v41, %v4518_v29  ;;  %v4726_v23 = vmul.f32 %v13181_v41, %v4519_v8  ;;  %4509 = vst [vmem:[#allocation2 + $0x21] sm:$0xff] %v4471_v1  ;;  %v4799_v33 = vmul.f32 %v13185_v36, %v4518_v29 }
 0x2d4   : > { %v4592_v54 = vrot.slane %v4558_v40, 1  ;;  %v4593_v42 = vrot.slane %v4559_v9, 1  ;;  %v4800_v50 = vmul.f32 %v13185_v36, %v4519_v8  ;;  %v4381_v10 = vmul.f32 %v13194_v59, %v13169_v48 }
 0x2d5   : > { %v4715_v28 = vadd.f32 %v4707_v21, %v4696_v30  ;;  %v4757_v32 = vrot.slane %v4725_v11, 1  ;;  %v4758_v27 = vrot.slane %v4726_v23, 1  ;;  %v4831_v4 = vrot.slane %v4799_v33, 2 }
 0x2d6   : > { %v4594_v25 = vsel %vm4588_vm15, %v4592_v54, %v4593_v42  ;;  %v4539_v35 = vmul.f32 %v13148_v62, %v4518_v29  ;;  %v4667_v0 = vrot.slane %v4633_v22, 2  ;;  %v4668_v47 = vrot.slane %v4634_v12, 2 }
 0x2d7   : > { %v4759_v53 = vsel %vm4588_vm15, %v4757_v32, %v4758_v27  ;;  %v4832_v13 = vrot.slane %v4800_v50, 2  ;;  %v4382_v16 = vsub.f32 1.0, %v4381_v10  ;;  %9978 = vrcp.f32 %v13201_v17 }
 0x2d8   : > { %v4789_v52 = vadd.f32 %v4759_v53, %v4715_v28  ;;  %v4622_v18 = vadd.f32 %v4594_v25, %v4539_v35  ;;  %v4392_v37 = vor.u32 1.1754944e-38, %v4391_v60  ;;  %v4669_v61 = vsel %vm4663_vm8, %v4667_v0, %v4668_v47  ;;  %v13267_v60 = vld [vmem:[%s10478_s21 + $0x8] ss:$0 sm:$0xff] }
 0x2d9   : > { %v4833_v34 = vsel %vm4663_vm8, %v4831_v4, %v4832_v13  ;;  %v4383_v1 = vmul.f32 %v13194_v59, %v4382_v16  ;;  %vm4386_vm7 = vweird.f32 %v13194_v59  ;;  %v4285_v40 = vadd.f32 %v4284_v26, %v4256_v39  ;;  %v4204_v39 = vpop.f32.mrf.mxu1 }
 0x2da   : > { %v13217_v43 = vld [vmem:[#allocation2 + $0x20] sm:$0xff]  ;;  %v13219_v7 = vld [vmem:[#allocation2 + $0x28] sm:$0x3]  ;;  %v4863_v15 = vadd.f32 %v4833_v34, %v4789_v52  ;;  %v4697_v8 = vadd.f32 %v4669_v61, %v4622_v18  ;;  %vm4400_vm9 = vweird.f32 %v13201_v17  ;;  %v4404_v51 = vand.u32 2147483647, %v13201_v17  ;;  %v4286_v42 = vpop.f32.mrf.mxu0  ;;  %vm4387_vm11 = vmor %vm4385_vm13, %vm4386_vm7 }
 0x2db   : > { %v13228_v56 = vmul.f32 %v13126_v31, %v13217_v43  ;;  %5874 = vst [vmem:[#allocation2 + $0x28] sm:$0x3] %v15955_v55  ;;  %v13235_v5 = vmul.f32 %v13126_v31, %v13219_v7  ;;  %v4728_v6 = vmul.f32 %v13181_v41, %v13219_v7  ;;  %v13241_v29 = vmul.f32 %v13185_v36, %v13219_v7 }
 0x2dc   : > { %v4893_v30 = vmul.f32 %v13212_v19, %v13219_v7  ;;  %v13248_v22 = vmul.f32 %v13143_v63, %v13217_v43  ;;  %v4406_v12 = vand.u32 2147483648, %v13201_v17  ;;  %v13256_v11 = vmul.f32 %v13143_v63, %v13219_v7 }
 0x2dd   : > { %v9979_v9 = vpop.eup %9978  ;;  %v4595_v21 = vrot.slane %v13228_v56, 1  ;;  %v4384_v23 = vadd.f32 %v13194_v59, %v4383_v1  ;;  %v4596_v33 = vrot.slane %v13235_v5, 1  ;;  %v4761_v28 = vrot.slane %v4728_v6, 1 }
 0x2de   : > { %v4396_v54 = vmul.f32 %v9979_v9, %v13201_v17  ;;  %v4835_v32 = vrot.slane %v13241_v29, 2  ;;  %v4925_v27 = vrot.slane %v4893_v30, 1  ;;  %vm4401_vm12 = vweird.f32 %v9979_v9 }
 0x2df   : > { %v4388_v26 = vsel %vm4387_vm11, %v13194_v59, %v4384_v23  ;;  %v4302_v25 = vmul.f32 %v13087_v38, %v4285_v40  ;;  %vm13273_vm6 = vcmp.eq.f32.partialorder %v4404_v51, 8.507059e+37  ;;  %v4287_v10 = vadd.f32 %v4286_v42, %v4258_v58  ;;  %vm4402_vm13 = vmor %vm4400_vm9, %vm4401_vm12  ;;  %v4233_v40 = vpop.f32.mrf.mxu2 }
 0x2e0   : > { %v4397_v45 = vsub.f32 1.0, %v4396_v54  ;;  %v4393_v50 = vsel %vm13222_vm14, %v4392_v37, %v4388_v26  ;;  %v4708_v48 = vmul.f32 %v13178_v24, %v13217_v43  ;;  %v4727_v47 = vmul.f32 %v13181_v41, %v13217_v43  ;;  %v13319_v26 = vld [vmem:[%s10478_s21 + $0xa] ss:$0 sm:$0xff] }
 0x2e1   : > { %v4472_v35 = vmul.f32 %v4393_v50, %v13136_v46  ;;  %v13281_v0 = vadd.f32 %v13090_v14, %v4302_v25  ;;  %v4303_v53 = vmul.f32 %v13087_v38, %v4287_v10  ;;  %v4801_v13 = vmul.f32 %v13185_v36, %v13217_v43 }
 0x2e2   : > { %v4398_v59 = vmul.f32 %v9979_v9, %v4397_v45  ;;  %v4716_v52 = vadd.f32 %v4708_v48, %v4697_v8  ;;  %v4874_v16 = vmul.f32 %v13267_v60, %v13217_v43  ;;  %v4760_v18 = vrot.slane %v4727_v47, 1  ;;  %v4262_v45 = vpop.f32.mrf.mxu3 }
 0x2e3   : > { %4480 = vst [vmem:[%s13154_s23 + $0x10] sm:$0xff] %v4472_v35  ;;  %v9109_v46 = vmul.f32 -1.442695, %v13281_v0  ;;  %v4892_v34 = vmul.f32 %v13212_v19, %v13217_v43  ;;  %v4407_v44 = vor.u32 1.1754944e-38, %v4406_v12  ;;  %v13298_v56 = vadd.f32 %v13090_v14, %v4303_v53 }
 0x2e4   : > { %v4399_v58 = vadd.f32 %v9979_v9, %v4398_v59  ;;  %4510 = vst [vmem:[#allocation2 + $0x31] sm:$0xff] %v4472_v35  ;;  %v4834_v1 = vrot.slane %v4801_v13, 2  ;;  %v4882_v37 = vadd.f32 %v4874_v16, %v4863_v15  ;;  %v4762_v5 = vsel %vm4588_vm15, %v4760_v18, %v4761_v28 }
 0x2e5   : > { %9980 = vpow2.f32 %v9109_v46  ;;  %v4924_v6 = vrot.slane %v4892_v34, 1  ;;  %v4205_v29 = vadd.f32 %v4204_v39, %v13074_v49  ;;  %v9110_v17 = vmul.f32 -1.442695, %v13298_v56 }
 0x2e6   : > { %v4403_v61 = vsel %vm4402_vm13, %v9979_v9, %v4399_v58  ;;  %v4790_v30 = vadd.f32 %v4762_v5, %v4716_v52  ;;  %v4597_v51 = vsel %vm4588_vm15, %v4595_v21, %v4596_v33  ;;  %v4836_v9 = vsel %vm4663_vm8, %v4834_v1, %v4835_v32 }
 0x2e7   : > { %v4408_v8 = vsel %vm13273_vm6, %v4407_v44, %v4403_v61  ;;  %v4926_v12 = vsel %vm4588_vm15, %v4924_v6, %v4925_v27  ;;  %v4540_v23 = vmul.f32 %v13148_v62, %v13217_v43  ;;  %9982 = vpow2.f32 %v9110_v17 }
 0x2e8   : > { %v4473_v15 = vmul.f32 %v4408_v8, %v13160_v2  ;;  %v13311_v49 = vadd.f32 %v4836_v9, %v4790_v30  ;;  %v13313_v54 = vadd.f32 %v4926_v12, %v4882_v37  ;;  %v4670_v42 = vrot.slane %v13248_v22, 2 }
 0x2e9   : > { %v4671_v28 = vrot.slane %v13256_v11, 2  ;;  %v4234_v33 = vadd.f32 %v4233_v40, %v4205_v29  ;;  %v4623_v2 = vadd.f32 %v4597_v51, %v4540_v23  ;;  %v4261_v27 = vadd.f32 %v4260_v3, %v13214_v20 }
 0x2ea   : > { %4481 = vst [vmem:[%s13154_s23 + $0x18] sm:$0xff] %v4473_v15  ;;  %v13336_v59 = vmul.f32 %v13319_v26, %v13219_v7 }
 0x2eb   : > { %v4289_v21 = vpop.f32.mrf.mxu0  ;;  %4511 = vst [vmem:[#allocation2 + $0x41] sm:$0xff] %v4473_v15  ;;  %v9981_v32 = vpop.eup %9980  ;;  %v13322_v25 = vld [vmem:[#allocation2 + $0x30] sm:$0xff]  ;;  %v4523_v50 = vld [vmem:[#allocation2 + $0x38] sm:$0x3]  ;;  %v4672_v11 = vsel %vm4663_vm8, %v4670_v42, %v4671_v28  ;;  %v4263_v3 = vadd.f32 %v4262_v45, %v4234_v33 }
 0x2ec   : > { %v4562_v4 = vmul.f32 %v13126_v31, %v13322_v25  ;;  %v4563_v22 = vmul.f32 %v13126_v31, %v4523_v50  ;;  %5875 = vst [vmem:[#allocation2 + $0x38] sm:$0x3] %v15955_v55  ;;  %v13330_v10 = vmul.f32 %v13143_v63, %v4523_v50  ;;  %v13332_v48 = vadd.f32 1.0, %v9981_v32 }
 0x2ed   : > { %v4290_v35 = vadd.f32 %v4289_v21, %v4261_v27  ;;  %v9983_v20 = vpop.eup %9982  ;;  %v13338_v47 = vadd.f32 %v4672_v11, %v4623_v2  ;;  %v13341_v53 = vmul.f32 %v13181_v41, %v4523_v50  ;;  %v13344_v52 = vmul.f32 %v13185_v36, %v4523_v50 }
 0x2ee   : > { %v13347_v13 = vmul.f32 %v13212_v19, %v4523_v50  ;;  %9984 = vrcp.f32 %v13332_v48  ;;  %v4598_v16 = vrot.slane %v4562_v4, 1  ;;  %v4599_v39 = vrot.slane %v4563_v22, 1 }
 0x2ef   : > { %v13351_v58 = vmul.f32 %v13319_v26, %v4523_v50  ;;  %v13353_v7 = vadd.f32 1.0, %v9983_v20  ;;  %v4674_v46 = vrot.slane %v13330_v10, 2  ;;  %v4419_v34 = vand.u32 2147483647, %v13332_v48 }
 0x2f0   : > { %v4421_v44 = vand.u32 2147483648, %v13332_v48  ;;  %v4304_v1 = vmul.f32 %v13087_v38, %v4290_v35  ;;  %v4764_v29 = vrot.slane %v13341_v53, 1  ;;  %v4838_v8 = vrot.slane %v13344_v52, 2 }
 0x2f1   : > { %v4928_v17 = vrot.slane %v13347_v13, 1  ;;  %9986 = vrcp.f32 %v13353_v7  ;;  %v4600_v40 = vsel %vm4588_vm15, %v4598_v16, %v4599_v39  ;;  %vm4415_vm6 = vweird.f32 %v13332_v48 }
 0x2f2   : > { %v13356_v18 = vld [vmem:[#allocation2 + $0x48] sm:$0x3]  ;;  %v13381_v51 = vld [vmem:[#allocation2 + $0x40] sm:$0xff]  ;;  %v4541_v15 = vmul.f32 %v13148_v62, %v13322_v25  ;;  %v4637_v9 = vmul.f32 %v13143_v63, %v13322_v25  ;;  %v4709_v12 = vmul.f32 %v13178_v24, %v13322_v25  ;;  %v4422_v21 = vor.u32 1.1754944e-38, %v4421_v44 }
 0x2f3   : > { %v4565_v37 = vmul.f32 %v13126_v31, %v13356_v18  ;;  %v13365_v61 = vmul.f32 %v13143_v63, %v13356_v18  ;;  %v13369_v5 = vmul.f32 %v13181_v41, %v13356_v18  ;;  %v13373_v6 = vmul.f32 %v13185_v36, %v13356_v18  ;;  %5876 = vst [vmem:[#allocation2 + $0x48] sm:$0x3] %v15955_v55  ;;  %v4291_v30 = vpop.f32.mrf.mxu0 }
 0x2f4   : > { %v9985_v23 = vpop.eup %9984  ;;  %v13392_v33 = vadd.f32 %v13090_v14, %v4304_v1  ;;  %vm13397_vm14 = vcmp.eq.f32.partialorder %v4419_v34, 8.507059e+37  ;;  %v4292_v50 = vadd.f32 %v4291_v30, %v4263_v3  ;;  %v4434_v4 = vand.u32 2147483647, %v13353_v7 }
 0x2f5   : > { %v4602_v42 = vrot.slane %v4565_v37, 1  ;;  %v4677_v28 = vrot.slane %v13365_v61, 2  ;;  %v4767_v2 = vrot.slane %v13369_v5, 1  ;;  %v4841_v32 = vrot.slane %v13373_v6, 2 }
 0x2f6   : > { %v4411_v27 = vmul.f32 %v9985_v23, %v13332_v48  ;;  %v4436_v22 = vand.u32 2147483648, %v13353_v7  ;;  %v9111_v11 = vmul.f32 -1.442695, %v13392_v33  ;;  %v4564_v10 = vmul.f32 %v13126_v31, %v13381_v51 }
 0x2f7   : > { %vm4416_vm7 = vweird.f32 %v9985_v23  ;;  %vm4430_vm9 = vweird.f32 %v13353_v7  ;;  %v4305_v20 = vmul.f32 %v13087_v38, %v4292_v50  ;;  %v4624_v16 = vadd.f32 %v4600_v40, %v4541_v15  ;;  %v9987_v39 = vpop.eup %9986 }
 0x2f8   : > { %v4412_v35 = vsub.f32 1.0, %v4411_v27  ;;  %9988 = vpow2.f32 %v9111_v11  ;;  %v4601_v34 = vrot.slane %v4564_v10, 1  ;;  %v4639_v3 = vmul.f32 %v13143_v63, %v13381_v51  ;;  %vm4417_vm12 = vmor %vm4415_vm6, %vm4416_vm7 }
 0x2f9   : > { %v4673_v44 = vrot.slane %v4637_v9, 2  ;;  %v4426_v37 = vmul.f32 %v9987_v39, %v13353_v7  ;;  %v13412_v61 = vadd.f32 %v13090_v14, %v4305_v20  ;;  %v4542_v5 = vmul.f32 %v13148_v62, %v13381_v51 }
 0x2fa   : > { %v4413_v1 = vmul.f32 %v9985_v23, %v4412_v35  ;;  %vm4431_vm11 = vweird.f32 %v9987_v39  ;;  %v4437_v30 = vor.u32 1.1754944e-38, %v4436_v22  ;;  %v4603_v38 = vsel %vm4588_vm15, %v4601_v34, %v4602_v42 }
 0x2fb   : > { %v4710_v40 = vmul.f32 %v13178_v24, %v13381_v51  ;;  %v4427_v27 = vsub.f32 1.0, %v4426_v37  ;;  %v9112_v9 = vmul.f32 -1.442695, %v13412_v61  ;;  %v4675_v50 = vsel %vm4663_vm8, %v4673_v44, %v4674_v46  ;;  %vm4432_vm13 = vmor %vm4430_vm9, %vm4431_vm11 }
 0x2fc   : > { %v4414_v15 = vadd.f32 %v9985_v23, %v4413_v1  ;;  %v4676_v14 = vrot.slane %v4639_v3, 2  ;;  %v4699_v11 = vadd.f32 %v4675_v50, %v4624_v16  ;;  %v4729_v22 = vmul.f32 %v13181_v41, %v13322_v25 }
 0x2fd   : > { %v4731_v42 = vmul.f32 %v13181_v41, %v13381_v51  ;;  %v4428_v35 = vmul.f32 %v9987_v39, %v4427_v27  ;;  %9990 = vpow2.f32 %v9112_v9  ;;  %v4717_v20 = vadd.f32 %v4709_v12, %v13338_v47 }
 0x2fe   : > { %v4418_v10 = vsel %vm4417_vm12, %v9985_v23, %v4414_v15  ;;  %v9989_v34 = vpop.eup %9988  ;;  %v4718_v48 = vadd.f32 %v4710_v40, %v4699_v11  ;;  %v4763_v44 = vrot.slane %v4729_v22, 1  ;;  %v4803_v23 = vmul.f32 %v13185_v36, %v13322_v25 }
 0x2ff   : > { %v4423_v46 = vsel %vm13397_vm14, %v4422_v21, %v4418_v10  ;;  %v4766_v3 = vrot.slane %v4731_v42, 1  ;;  %v4429_v1 = vadd.f32 %v9987_v39, %v4428_v35  ;;  %v13432_v37 = vadd.f32 1.0, %v9989_v34  ;;  %v9686_v34 = vld [vmem:[%s16067_s3 + $0x30] sm:$0xff] }
 0x300   : > { %v4474_v16 = vmul.f32 %v4423_v46, %v13281_v0  ;;  %v4625_v47 = vadd.f32 %v4603_v38, %v4542_v5  ;;  %v4765_v12 = vsel %vm4588_vm15, %v4763_v44, %v4764_v29  ;;  %v4805_v0 = vmul.f32 %v13185_v36, %v13381_v51  ;;  %v13485_v46 = vld [vmem:[#allocation2 + $0x98] sm:$0x3] }
 0x301   : > { %v4768_v21 = vsel %vm4588_vm15, %v4766_v3, %v4767_v2  ;;  %v4433_v45 = vsel %vm4432_vm13, %v9987_v39, %v4429_v1  ;;  %vm4435_vm6 = vcmp.eq.f32.partialorder %v4434_v4, 8.507059e+37  ;;  %9992 = vrcp.f32 %v13432_v37  ;;  %5871 = vst [vmem:[#allocation2 + $0x98] sm:$0x3] %v15955_v55 }
 0x302   : > { %4482 = vst [vmem:[%s13154_s23 + $0x20] sm:$0xff] %v4474_v16  ;;  %v4678_v40 = vsel %vm4663_vm8, %v4676_v14, %v4677_v28  ;;  %v4438_v7 = vsel %vm4435_vm6, %v4437_v30, %v4433_v45  ;;  %v4451_v53 = vand.u32 2147483648, %v13432_v37  ;;  %v4791_v5 = vadd.f32 %v4765_v12, %v4717_v20  ;;  %v9687_v30 = vld [vmem:[%s16067_s3 + $0x38] sm:$0xff] }
 0x303   : > { %4512 = vst [vmem:[#allocation2 + $0x51] sm:$0xff] %v4474_v16  ;;  %v4792_v29 = vadd.f32 %v4768_v21, %v4718_v48  ;;  %v9991_v38 = vpop.eup %9990  ;;  %v4475_v2 = vmul.f32 %v4438_v7, %v13298_v56  ;;  %v4837_v15 = vrot.slane %v4803_v23, 2  ;;  %v4840_v27 = vrot.slane %v4805_v0, 2  ;;  %5309 = vmatpush.bf16.msra.mxu1 %v9687_v30 }
 0x304   : > { %v4875_v4 = vmul.f32 %v13267_v60, %v13322_v25  ;;  %v13454_v39 = vmul.f32 %v13212_v19, %v13356_v18  ;;  %v4449_v28 = vand.u32 2147483647, %v13432_v37  ;;  %v13457_v9 = vadd.f32 1.0, %v9991_v38 }
 0x305   : > { %v13460_v50 = vadd.f32 %v4678_v40, %v4625_v47  ;;  %4483 = vst [vmem:[%s13154_s23 + $0x28] sm:$0xff] %v4475_v2  ;;  %v13463_v14 = vor.u32 1.1754944e-38, %v4451_v53  ;;  %v4876_v56 = vmul.f32 %v13267_v60, %v13381_v51  ;;  %v4894_v11 = vmul.f32 %v13212_v19, %v13322_v25  ;;  %v9685_v53 = vld [vmem:[%s16067_s3 + $0x28] sm:$0xff] }
 0x306   : > { %v13471_v22 = vmul.f32 %v13212_v19, %v13381_v51  ;;  %4513 = vst [vmem:[#allocation2 + $0x61] sm:$0xff] %v4475_v2  ;;  %9994 = vrcp.f32 %v13457_v9  ;;  %v4466_v42 = vand.u32 2147483648, %v13457_v9  ;;  %v4839_v10 = vsel %vm4663_vm8, %v4837_v15, %v4838_v8 }
 0x307   : > { %v4842_v35 = vsel %vm4663_vm8, %v4840_v27, %v4841_v32  ;;  %v13481_v20 = vpop.eup %9992  ;;  %vm4445_vm14 = vweird.f32 %v13432_v37  ;;  %v4865_v48 = vadd.f32 %v4839_v10, %v4791_v5  ;;  %v13490_v3 = vadd.f32 %v4875_v4, %v13311_v49  ;;  %5310 = vmatpush.bf16.msra.mxu1 %v9686_v34 }
 0x308   : > { %v13487_v44 = vadd.f32 %v4842_v35, %v4792_v29  ;;  %v4927_v52 = vrot.slane %v4894_v11, 1  ;;  %v4441_v8 = vmul.f32 %v13481_v20, %v13432_v37  ;;  %vm4446_vm7 = vweird.f32 %v13481_v20 }
 0x309   : > { %v4464_v6 = vand.u32 2147483647, %v13457_v9  ;;  %vm13502_vm9 = vcmp.eq.f32.partialorder %v4449_v28, 8.507059e+37  ;;  %v13506_v23 = vor.u32 1.1754944e-38, %v4466_v42  ;;  %v13508_v47 = vadd.f32 %v4876_v56, %v4865_v48  ;;  %vm4447_vm6 = vmor %vm4445_vm14, %vm4446_vm7 }
 0x30a   : > { %v13498_v16 = vld [vmem:[#allocation2 + $0x50] sm:$0xff]  ;;  %v13500_v1 = vld [vmem:[#allocation2 + $0x58] sm:$0x3]  ;;  %v13513_v12 = vsel %vm4588_vm15, %v4927_v52, %v4928_v17  ;;  %v13527_v13 = vmul.f32 %v13319_v26, %v13217_v43  ;;  %v4442_v7 = vsub.f32 1.0, %v4441_v8  ;;  %vm4460_vm11 = vweird.f32 %v13457_v9 }
 0x30b   : > { %v4567_v0 = vmul.f32 %v13126_v31, %v13500_v1  ;;  %v4642_v45 = vmul.f32 %v13143_v63, %v13500_v1  ;;  %v13522_v40 = vmul.f32 %v13181_v41, %v13500_v1  ;;  %5877 = vst [vmem:[#allocation2 + $0x58] sm:$0x3] %v15955_v55  ;;  %v13531_v17 = vmul.f32 %v13185_v36, %v13500_v1 }
 0x30c   : > { %v4543_v5 = vmul.f32 %v13148_v62, %v13498_v16  ;;  %v4566_v29 = vmul.f32 %v13126_v31, %v13498_v16  ;;  %v9995_v38 = vpop.eup %9994  ;;  %v4641_v27 = vmul.f32 %v13143_v63, %v13498_v16  ;;  %v4443_v30 = vmul.f32 %v13481_v20, %v4442_v7  ;;  %5311 = vmatpush.bf16.msra.mxu1 %v9685_v53 }
 0x30d   : > { %v4605_v2 = vrot.slane %v4567_v0, 1  ;;  %v4680_v15 = vrot.slane %v4642_v45, 2  ;;  %v4770_v43 = vrot.slane %v13522_v40, 1  ;;  %v13542_v4 = vld [vmem:[#allocation2 + $0x60] sm:$0xff]  ;;  %v13544_v28 = vld [vmem:[#allocation2 + $0x68] sm:$0x3]  ;;  %v4456_v56 = vmul.f32 %v9995_v38, %v13457_v9 }
 0x30e   : > { %vm13548_vm12 = vcmp.eq.f32.partialorder %v4464_v6, 8.507059e+37  ;;  %v4604_v42 = vrot.slane %v4566_v29, 1  ;;  %v4711_v10 = vmul.f32 %v13178_v24, %v13498_v16  ;;  %v4569_v35 = vmul.f32 %v13126_v31, %v13544_v28  ;;  %5878 = vst [vmem:[#allocation2 + $0x68] sm:$0x3] %v15955_v55  ;;  %v9684_v6 = vld [vmem:[%s16067_s3 + $0x20] sm:$0xff] }
 0x30f   : > { %v4644_v34 = vmul.f32 %v13143_v63, %v13544_v28  ;;  %v4736_v48 = vmul.f32 %v13181_v41, %v13544_v28  ;;  %vm4461_vm13 = vweird.f32 %v9995_v38  ;;  %v4444_v52 = vadd.f32 %v13481_v20, %v4443_v30 }
 0x310   : > { %v4457_v8 = vsub.f32 1.0, %v4456_v56  ;;  %v4568_v0 = vmul.f32 %v13126_v31, %v13542_v4  ;;  %v4606_v45 = vsel %vm4588_vm15, %v4604_v42, %v4605_v2  ;;  %v4608_v7 = vrot.slane %v4569_v35, 1  ;;  %5312 = vmatpush.bf16.msra.mxu1 %v9684_v6  ;;  %vm4462_vm14 = vmor %vm4460_vm11, %vm4461_vm13 }
 0x311   : > { %v4683_v29 = vrot.slane %v4644_v34, 2  ;;  %v4626_v55 = vadd.f32 %v4606_v45, %v4543_v5  ;;  %v4643_v30 = vmul.f32 %v13143_v63, %v13542_v4  ;;  %v4448_v53 = vsel %vm4447_vm6, %v13481_v20, %v4444_v52  ;;  %v9683_v20 = vld [vmem:[%s16067_s3 + $0x18] sm:$0xff] }
 0x312   : > { %v4458_v56 = vmul.f32 %v9995_v38, %v4457_v8  ;;  %v4607_v32 = vrot.slane %v4568_v0, 1  ;;  %v4679_v21 = vrot.slane %v4641_v27, 2  ;;  %v4453_v2 = vsel %vm13502_vm9, %v13463_v14, %v4448_v53 }
 0x313   : > { %v4544_v42 = vmul.f32 %v13148_v62, %v13542_v4  ;;  %v4682_v35 = vrot.slane %v4643_v30, 2  ;;  %v4712_v37 = vmul.f32 %v13178_v24, %v13542_v4  ;;  %v4476_v5 = vmul.f32 %v4453_v2, %v13392_v33 }
 0x314   : > { %v4459_v34 = vadd.f32 %v9995_v38, %v4458_v56  ;;  %v4609_v52 = vsel %vm4588_vm15, %v4607_v32, %v4608_v7  ;;  %v4681_v27 = vsel %vm4663_vm8, %v4679_v21, %v4680_v15  ;;  %v4719_v0 = vadd.f32 %v4711_v10, %v13460_v50  ;;  %5313 = vmatpush.bf16.msra.mxu1 %v9683_v20 }
 0x315   : > { %v4627_v14 = vadd.f32 %v4609_v52, %v4544_v42  ;;  %v4684_v49 = vsel %vm4663_vm8, %v4682_v35, %v4683_v29  ;;  %v4701_v8 = vadd.f32 %v4681_v27, %v4626_v55  ;;  %4484 = vst [vmem:[%s13154_s23 + $0x30] sm:$0xff] %v4476_v5  ;;  %v4733_v6 = vmul.f32 %v13181_v41, %v13498_v16 }
 0x316   : > { %v4463_v33 = vsel %vm4462_vm14, %v9995_v38, %v4459_v34  ;;  %v4735_v32 = vmul.f32 %v13181_v41, %v13542_v4  ;;  %v4773_v21 = vrot.slane %v4736_v48, 1  ;;  %4514 = vst [vmem:[#allocation2 + $0x71] sm:$0xff] %v4476_v5  ;;  %v4807_v55 = vmul.f32 %v13185_v36, %v13498_v16  ;;  %v9682_v38 = vld [vmem:[%s16067_s3 + $0x10] sm:$0xff]  ;;  %v9681_v5 = vld [vmem:[%s16067_s3 + $0x8] sm:$0xff] }
 0x317   : > { %v4468_v9 = vsel %vm13548_vm12, %v13506_v23, %v4463_v33  ;;  %v4702_v15 = vadd.f32 %v4684_v49, %v4627_v14  ;;  %v4720_v45 = vadd.f32 %v4712_v37, %v4701_v8  ;;  %v4769_v10 = vrot.slane %v4733_v6, 1 }
 0x318   : > { %v4477_v50 = vmul.f32 %v4468_v9, %v13412_v61  ;;  %v4772_v7 = vrot.slane %v4735_v32, 1  ;;  %v4809_v48 = vmul.f32 %v13185_v36, %v13542_v4  ;;  %v4810_v29 = vmul.f32 %v13185_v36, %v13544_v28  ;;  %5314 = vmatpush.bf16.msra.mxu1 %v9682_v38 }
 0x319   : > { %v4843_v11 = vrot.slane %v4807_v55, 2  ;;  %v4844_v23 = vrot.slane %v13531_v17, 2  ;;  %v4877_v30 = vmul.f32 %v13267_v60, %v13498_v16  ;;  %v4771_v61 = vsel %vm4588_vm15, %v4769_v10, %v4770_v43 }
 0x31a   : > { %4485 = vst [vmem:[%s13154_s23 + $0x38] sm:$0xff] %v4477_v50  ;;  %v4774_v53 = vsel %vm4588_vm15, %v4772_v7, %v4773_v21  ;;  %v4846_v56 = vrot.slane %v4809_v48, 2  ;;  %v13615_v2 = vmul.f32 %v13267_v60, %v13542_v4  ;;  %v4793_v42 = vadd.f32 %v4771_v61, %v4719_v0 }
 0x31b   : > { %4515 = vst [vmem:[#allocation2 + $0x81] sm:$0xff] %v4477_v50  ;;  %v4794_v35 = vadd.f32 %v4774_v53, %v4720_v45  ;;  %v4845_v17 = vsel %vm4663_vm8, %v4843_v11, %v4844_v23  ;;  %v4847_v37 = vrot.slane %v4810_v29, 2  ;;  %v13620_v34 = vmul.f32 0.0, %v13267_v60 }
 0x31c   : > { %v13623_v40 = vadd.f32 %v4877_v30, %v13487_v44  ;;  %v13627_v43 = vmul.f32 %v13212_v19, %v13498_v16  ;;  %v13631_v20 = vmul.f32 %v13212_v19, %v13500_v1  ;;  %v4867_v27 = vadd.f32 %v4845_v17, %v4793_v42  ;;  %5315 = vmatpush.bf16.msra.mxu1 %v9681_v5 }
 0x31d   : > { %v4848_v52 = vsel %vm4663_vm8, %v4846_v56, %v4847_v37  ;;  %v13636_v14 = vmul.f32 %v13212_v19, %v13542_v4  ;;  %v13640_v44 = vmul.f32 %v13212_v19, %v13544_v28  ;;  %v13642_v49 = vld [vmem:[#allocation2 + $0x70] sm:$0xff]  ;;  %v13644_v8 = vld [vmem:[#allocation2 + $0x78] sm:$0x3]  ;;  %v13647_v33 = vmul.f32 0.0, %v13212_v19 }
 0x31e   : > { %v4868_v0 = vadd.f32 %v4848_v52, %v4794_v35  ;;  %v13651_v6 = vmul.f32 %v13212_v19, %v13485_v46  ;;  %v16305_v32 = vrot.slane %v13454_v39, 1  ;;  %v16306_v21 = vrot.slane %v13471_v22, 1  ;;  %v9680_v39 = vld [vmem:[%s16067_s3] sm:$0xff]  ;;  %v13688_v52 = vld [vmem:[#allocation2 + $0x90] sm:$0xff] }
 0x31f   : > { %v4571_v45 = vmul.f32 %v13126_v31, %v13644_v8  ;;  %v4646_v55 = vmul.f32 %v13143_v63, %v13644_v8  ;;  %v16307_v50 = vmov 0.0   ;;  %v4545_v38 = vmul.f32 %v13148_v62, %v13642_v49 }
 0x320   : > { %v13658_v9 = vsel %vm4588_vm15, %v16306_v21, %v16305_v32  ;;  %5879 = vst [vmem:[#allocation2 + $0x78] sm:$0x3] %v16307_v50  ;;  %v4570_v10 = vmul.f32 %v13126_v31, %v13642_v49  ;;  %v4645_v22 = vmul.f32 %v13143_v63, %v13642_v49  ;;  %v4713_v7 = vmul.f32 %v13178_v24, %v13642_v49 }
 0x321   : > { %v4737_v48 = vmul.f32 %v13181_v41, %v13642_v49  ;;  %v4738_v29 = vmul.f32 %v13181_v41, %v13644_v8  ;;  %v4611_v11 = vrot.slane %v4571_v45, 1  ;;  %v4686_v62 = vrot.slane %v4646_v55, 2  ;;  %5316 = vmatpush.bf16.msra.mxu1 %v9680_v39 }
 0x322   : > { %v4610_v23 = vrot.slane %v4570_v10, 1  ;;  %v4811_v31 = vmul.f32 %v13185_v36, %v13642_v49  ;;  %v13680_v30 = vld [vmem:[#allocation2 + $0x80] sm:$0xff]  ;;  %v4533_v61 = vld [vmem:[#allocation2 + $0x88] sm:$0x3]  ;;  %v4685_v53 = vrot.slane %v4645_v22, 2  ;;  %v4721_v63 = vadd.f32 %v4713_v7, %v4702_v15 }
 0x323   : > { %v4775_v56 = vrot.slane %v4737_v48, 1  ;;  %v4776_v42 = vrot.slane %v4738_v29, 1  ;;  %v4740_v35 = vmul.f32 %v13181_v41, %v4533_v61  ;;  %v4814_v17 = vmul.f32 %v13185_v36, %v4533_v61  ;;  %5868 = vst [vmem:[#allocation2 + $0x80] sm:$0xff] %v13688_v52 }
 0x324   : > { %v4905_v37 = vmul.f32 %v13212_v19, %v4533_v61  ;;  %v13686_v5 = vmul.f32 %v13319_v26, %v4533_v61  ;;  %5869 = vst [vmem:[#allocation2 + $0x88] sm:$0x3] %v13688_v52  ;;  %v4612_v15 = vsel %vm4588_vm15, %v4610_v23, %v4611_v11  ;;  %v4687_v32 = vsel %vm4663_vm8, %v4685_v53, %v4686_v62 }
 0x325   : > { %v4714_v21 = vmul.f32 %v13178_v24, %v13680_v30  ;;  %v4849_v45 = vrot.slane %v4811_v31, 2  ;;  %v4779_v55 = vrot.slane %v4740_v35, 1  ;;  %v4853_v50 = vrot.slane %v4814_v17, 2 }
 0x326   : > { %v4943_v10 = vrot.slane %v4905_v37, 1  ;;  %v5017_v22 = vrot.slane %v13686_v5, 2  ;;  %v4628_v7 = vadd.f32 %v4612_v15, %v4545_v38  ;;  %v4739_v48 = vmul.f32 %v13181_v41, %v13680_v30 }
 0x327   : > { %v4777_v29 = vsel %vm4588_vm15, %v4775_v56, %v4776_v42  ;;  %v4812_v39 = vmul.f32 %v13185_v36, %v13644_v8  ;;  %v4813_v23 = vmul.f32 %v13185_v36, %v13680_v30  ;;  %v4879_v24 = vmul.f32 %v13267_v60, %v13642_v49 }
 0x328   : > { %v4795_v11 = vadd.f32 %v4777_v29, %v4721_v63  ;;  %v4880_v62 = vmul.f32 %v13267_v60, %v13680_v30  ;;  %v4703_v31 = vadd.f32 %v4687_v32, %v4628_v7  ;;  %v4778_v38 = vrot.slane %v4739_v48, 1 }
 0x329   : > { %v4850_v61 = vrot.slane %v4812_v39, 2  ;;  %v4886_v41 = vadd.f32 %v13615_v2, %v4867_v27  ;;  %v4852_v53 = vrot.slane %v4813_v23, 2  ;;  %v4887_v56 = vadd.f32 %v4879_v24, %v4868_v0 }
 0x32a   : > { %v4902_v42 = vmul.f32 %v13212_v19, %v13642_v49  ;;  %v4903_v63 = vmul.f32 %v13212_v19, %v13644_v8  ;;  %v4722_v36 = vadd.f32 %v4714_v21, %v4703_v31  ;;  %v4780_v35 = vsel %vm4588_vm15, %v4778_v38, %v4779_v55 }
 0x32b   : > { %v4851_v17 = vsel %vm4663_vm8, %v4849_v45, %v4850_v61  ;;  %v4904_v60 = vmul.f32 %v13212_v19, %v13680_v30  ;;  %v4854_v37 = vsel %vm4663_vm8, %v4852_v53, %v4853_v50  ;;  %v4933_v2 = vrot.slane %v13627_v43, 1 }
 0x32c   : > { %v4869_v15 = vadd.f32 %v4851_v17, %v4795_v11  ;;  %v4934_v27 = vrot.slane %v13631_v20, 1  ;;  %v4796_v0 = vadd.f32 %v4780_v35, %v4722_v36  ;;  %v4936_v32 = vrot.slane %v13636_v14, 1  ;;  %v9928_v35 = vld [vmem:[%s10483_s25] ss:$0 sm:$0xff] }
 0x32d   : > { %v4937_v7 = vrot.slane %v13640_v44, 1  ;;  %v4939_v21 = vrot.slane %v4902_v42, 1  ;;  %v4940_v45 = vrot.slane %v4903_v63, 1  ;;  %v4942_v29 = vrot.slane %v4904_v60, 1 }
 0x32e   : > { %v4888_v48 = vadd.f32 %v4880_v62, %v4869_v15  ;;  %v4935_v55 = vsel %vm4588_vm15, %v4933_v2, %v4934_v27  ;;  %v4870_v39 = vadd.f32 %v4854_v37, %v4796_v0  ;;  %v4945_v50 = vrot.slane %v13647_v33, 1 }
 0x32f   : > { %v4938_v19 = vsel %vm4588_vm15, %v4936_v32, %v4937_v7  ;;  %v4946_v43 = vrot.slane %v13651_v6, 1  ;;  %v4941_v20 = vsel %vm4588_vm15, %v4939_v21, %v4940_v45  ;;  %v4944_v11 = vsel %vm4588_vm15, %v4942_v29, %v4943_v10  ;;  %v9929_v32 = vld [vmem:[%s10488_s29] ss:$0 sm:$0xff] }
 0x330   : > { %v4957_v14 = vadd.f32 %v13513_v12, %v13490_v3  ;;  %v4958_v44 = vadd.f32 %v13658_v9, %v13508_v47  ;;  %v4889_v23 = vadd.f32 %v13620_v34, %v4870_v39  ;;  %v4959_v62 = vadd.f32 %v4935_v55, %v13623_v40 }
 0x331   : > { %v4947_v24 = vsel %vm4588_vm15, %v4945_v50, %v4946_v43  ;;  %v4960_v31 = vadd.f32 %v4938_v19, %v4886_v41  ;;  %v4961_v33 = vadd.f32 %v4941_v20, %v4887_v56  ;;  %v4962_v38 = vadd.f32 %v4944_v11, %v4888_v48 }
 0x332   : > { %v4968_v6 = vmul.f32 %v13319_v26, %v13322_v25  ;;  %v4970_v10 = vmul.f32 %v13319_v26, %v13381_v51  ;;  %v4963_v61 = vadd.f32 %v4947_v24, %v4889_v23  ;;  %v4971_v3 = vmul.f32 %v13319_v26, %v13356_v18 }
 0x333   : > { %v4972_v47 = vmul.f32 %v13319_v26, %v13498_v16  ;;  %v4973_v12 = vmul.f32 %v13319_v26, %v13500_v1  ;;  %v4974_v34 = vmul.f32 %v13319_v26, %v13542_v4  ;;  %v4975_v40 = vmul.f32 %v13319_v26, %v13544_v28 }
 0x334   : > { %v4976_v25 = vmul.f32 %v13319_v26, %v13642_v49  ;;  %v4977_v51 = vmul.f32 %v13319_v26, %v13644_v8  ;;  %v4978_v18 = vmul.f32 %v13319_v26, %v13680_v30  ;;  %v4980_v16 = vmul.f32 %v13688_v52, %v13319_v26 }
 0x335   : > { %v4981_v1 = vmul.f32 %v13319_v26, %v13485_v46  ;;  %v4998_v4 = vrot.slane %v13527_v13, 2  ;;  %v4999_v9 = vrot.slane %v13336_v59, 2  ;;  %v5001_v28 = vrot.slane %v4968_v6, 2 }
 0x336   : > { %v5002_v49 = vrot.slane %v13351_v58, 2  ;;  %v5004_v41 = vrot.slane %v4970_v10, 2  ;;  %v5005_v53 = vrot.slane %v4971_v3, 2  ;;  %v5007_v8 = vrot.slane %v4972_v47, 2 }
 0x337   : > { %v5008_v56 = vrot.slane %v4973_v12, 2  ;;  %v5010_v42 = vrot.slane %v4974_v34, 2  ;;  %v5000_v30 = vsel %vm4663_vm8, %v4998_v4, %v4999_v9  ;;  %v5011_v63 = vrot.slane %v4975_v40, 2 }
 0x338   : > { %v5003_v52 = vsel %vm4663_vm8, %v5001_v28, %v5002_v49  ;;  %v5013_v26 = vrot.slane %v4976_v25, 2  ;;  %v5006_v46 = vsel %vm4663_vm8, %v5004_v41, %v5005_v53  ;;  %v5014_v13 = vrot.slane %v4977_v51, 2 }
 0x339   : > { %v5009_v59 = vsel %vm4663_vm8, %v5007_v8, %v5008_v56  ;;  %v5016_v36 = vrot.slane %v4978_v18, 2  ;;  %v5012_v58 = vsel %vm4663_vm8, %v5010_v42, %v5011_v63  ;;  %v5019_v17 = vrot.slane %v4980_v16, 2 }
 0x33a   : > { %v5020_v60 = vrot.slane %v4981_v1, 2  ;;  %v5030_v37 = vadd.f32 %v5000_v30, %v13313_v54  ;;  %v5015_v15 = vsel %vm4663_vm8, %v5013_v26, %v5014_v13  ;;  %v5031_v27 = vadd.f32 %v5003_v52, %v4957_v14 }
 0x33b   : > { %v5018_v2 = vsel %vm4663_vm8, %v5016_v36, %v5017_v22  ;;  %v5032_v0 = vadd.f32 %v5006_v46, %v4958_v44  ;;  %v5033_v21 = vadd.f32 %v5009_v59, %v4959_v62  ;;  %v5034_v48 = vadd.f32 %v5012_v58, %v4960_v31 }
 0x33c   : > { %v5021_v7 = vsel %vm4663_vm8, %v5019_v17, %v5020_v60  ;;  %v5035_v55 = vadd.f32 %v5015_v15, %v4961_v33  ;;  %v5036_v45 = vadd.f32 %v5018_v2, %v4962_v38  ;;  %v5042_v39 = vmul.f32 %v9928_v35, %v5030_v37 }
 0x33d   : > { %v5037_v29 = vadd.f32 %v5021_v7, %v4963_v61  ;;  %v5043_v19 = vmul.f32 %v9928_v35, %v5031_v27  ;;  %v5044_v50 = vmul.f32 %v9928_v35, %v5032_v0  ;;  %v5045_v54 = vmul.f32 %v9928_v35, %v5033_v21  ;;  %v9703_v21 = vld [vmem:[%s16333_s1 + $0x38] sm:$0xff] }
 0x33e   : > { %v5046_v43 = vmul.f32 %v9928_v35, %v5034_v48  ;;  %v5047_v20 = vmul.f32 %v9928_v35, %v5035_v55  ;;  %v5048_v11 = vmul.f32 %v9928_v35, %v5036_v45  ;;  %v13775_v5 = vadd.f32 %v9929_v32, %v5042_v39  ;;  %5517 = vmatpush.bf16.msra.mxu3 %v9703_v21  ;;  %v9705_v21 = vld [vmem:[%s16335_s26 + $0x8] sm:$0xff] }
 0x33f   : > { %v13777_v22 = vadd.f32 %v9929_v32, %v5043_v19  ;;  %v13779_v14 = vadd.f32 %v9929_v32, %v5044_v50  ;;  %v13781_v44 = vadd.f32 %v9929_v32, %v5045_v54  ;;  %v5049_v33 = vmul.f32 %v9928_v35, %v5037_v29 }
 0x340   : > { %v13783_v23 = vadd.f32 %v9929_v32, %v5046_v43  ;;  %v13785_v24 = vadd.f32 %v9929_v32, %v5047_v20  ;;  %v9119_v62 = vmul.f32 -1.442695, %v13775_v5  ;;  %v13791_v10 = vadd.f32 %v9929_v32, %v5048_v11 }
 0x341   : > { %v9120_v31 = vmul.f32 -1.442695, %v13777_v22  ;;  %v9121_v38 = vmul.f32 -1.442695, %v13779_v14  ;;  %v9122_v6 = vmul.f32 -1.442695, %v13781_v44  ;;  %v13795_v47 = vadd.f32 %v9929_v32, %v5049_v33 }
 0x342   : > { %9996 = vpow2.f32 %v9119_v62  ;;  %v9123_v61 = vmul.f32 -1.442695, %v13783_v23  ;;  %v9124_v3 = vmul.f32 -1.442695, %v13785_v24  ;;  %v9125_v12 = vmul.f32 -1.442695, %v13791_v10 }
 0x343   : > { %9998 = vpow2.f32 %v9120_v31  ;;  %v9126_v25 = vmul.f32 -1.442695, %v13795_v47 }
 0x344   : > { %10000 = vpow2.f32 %v9121_v38 }
 0x345   : > { %10002 = vpow2.f32 %v9122_v6 }
 0x346   : > { %10004 = vpow2.f32 %v9123_v61 }
 0x347   : > { %10006 = vpow2.f32 %v9124_v3 }
 0x348   : > { %v9997_v34 = vpop.eup %9996  ;;  %10008 = vpow2.f32 %v9125_v12 }
 0x349   : > { %v9999_v40 = vpop.eup %9998  ;;  %v13799_v51 = vadd.f32 1.0, %v9997_v34 }
 0x34a   : > { %v10001_v18 = vpop.eup %10000  ;;  %v13801_v16 = vadd.f32 1.0, %v9999_v40 }
 0x34b   : > { %v10003_v1 = vpop.eup %10002  ;;  %v13803_v4 = vadd.f32 1.0, %v10001_v18  ;;  %10010 = vrcp.f32 %v13799_v51  ;;  %v5105_v53 = vand.u32 2147483648, %v13799_v51  ;;  %vm5099_vm15 = vweird.f32 %v13799_v51 }
 0x34c   : > { %v10005_v9 = vpop.eup %10004  ;;  %v13806_v28 = vadd.f32 1.0, %v10003_v1  ;;  %10012 = vrcp.f32 %v13801_v16  ;;  %v5120_v30 = vand.u32 2147483648, %v13801_v16  ;;  %v5118_v26 = vand.u32 2147483647, %v13801_v16 }
 0x34d   : > { %v10007_v49 = vpop.eup %10006  ;;  %10014 = vpow2.f32 %v9126_v25  ;;  %v13809_v41 = vadd.f32 1.0, %v10005_v9  ;;  %v5103_v59 = vand.u32 2147483647, %v13799_v51  ;;  %v13827_v13 = vor.u32 1.1754944e-38, %v5105_v53 }
 0x34e   : > { %10016 = vrcp.f32 %v13803_v4  ;;  %v10009_v8 = vpop.eup %10008  ;;  %v13813_v56 = vadd.f32 1.0, %v10007_v49  ;;  %vm5114_vm8 = vweird.f32 %v13801_v16  ;;  %vm5129_vm7 = vweird.f32 %v13803_v4 }
 0x34f   : > { %10018 = vrcp.f32 %v13806_v28  ;;  %v5133_v17 = vand.u32 2147483647, %v13803_v4  ;;  %v5135_v60 = vand.u32 2147483648, %v13803_v4  ;;  %v13838_v37 = vadd.f32 1.0, %v10009_v8 }
 0x350   : > { %10020 = vrcp.f32 %v13809_v41  ;;  %v5121_v2 = vor.u32 1.1754944e-38, %v5120_v30  ;;  %vm13847_vm9 = vcmp.eq.f32.partialorder %v5118_v26, 8.507059e+37  ;;  %vm5144_vm11 = vweird.f32 %v13806_v28 }
 0x351   : > { %v13816_v42 = vpop.eup %10010  ;;  %10022 = vrcp.f32 %v13813_v56  ;;  %v5148_v48 = vand.u32 2147483647, %v13806_v28  ;;  %v5150_v19 = vand.u32 2147483648, %v13806_v28  ;;  %vm13860_vm13 = vcmp.eq.f32.partialorder %v5103_v59, 8.507059e+37 }
 0x352   : > { %v13820_v52 = vpop.eup %10012  ;;  %v5095_v63 = vmul.f32 %v13816_v42, %v13799_v51  ;;  %vm5100_vm12 = vweird.f32 %v13816_v42  ;;  %vm13865_vm14 = vcmp.eq.f32.partialorder %v5133_v17, 8.507059e+37  ;;  %v5136_v43 = vor.u32 1.1754944e-38, %v5135_v60 }
 0x353   : > { %v10015_v46 = vpop.eup %10014  ;;  %v5110_v36 = vmul.f32 %v13820_v52, %v13801_v16  ;;  %vm5115_vm6 = vweird.f32 %v13820_v52  ;;  %vm5159_vm2 = vweird.f32 %v13809_v41  ;;  %vm13878_vm1 = vcmp.eq.f32.partialorder %v5148_v48, 8.507059e+37  ;;  %vm13896_vm0 = vmor %vm5099_vm15, %vm5100_vm12 }
 0x354   : > { %v13832_v35 = vpop.eup %10016  ;;  %v5096_v58 = vsub.f32 1.0, %v5095_v63  ;;  %v13844_v32 = vadd.f32 1.0, %v10015_v46  ;;  %10024 = vrcp.f32 %v13838_v37  ;;  %vm13885_vm4 = vmor %vm5114_vm8, %vm5115_vm6  ;;  %v5151_v40 = vor.u32 1.1754944e-38, %v5150_v19  ;;  %v9695_v19 = vld [vmem:[%s10503_s14 + $0x38] sm:$0xff] }
 0x355   : > { %v5111_v15 = vsub.f32 1.0, %v5110_v36  ;;  %v5125_v27 = vmul.f32 %v13832_v35, %v13803_v4  ;;  %v13842_v0 = vpop.eup %10018  ;;  %vm5130_vm5 = vweird.f32 %v13832_v35  ;;  %v5163_v25 = vand.u32 2147483647, %v13809_v41  ;;  %5408 = vmatpush.bf16.msra.mxu2 %v9695_v19  ;;  %v9688_v19 = vld [vmem:[%s10503_s14] sm:$0xff] }
 0x356   : > { %v5097_v7 = vmul.f32 %v13816_v42, %v5096_v58  ;;  %v13853_v55 = vpop.eup %10020  ;;  %v5140_v39 = vmul.f32 %v13842_v0, %v13806_v28  ;;  %vm5145_vm8 = vweird.f32 %v13842_v0  ;;  %vm13909_vm6 = vmor %vm5129_vm7, %vm5130_vm5  ;;  %v5165_v53 = vand.u32 2147483648, %v13809_v41 }
 0x357   : > { %v5112_v45 = vmul.f32 %v13820_v52, %v5111_v15  ;;  %v5126_v29 = vsub.f32 1.0, %v5125_v27  ;;  %v5155_v20 = vmul.f32 %v13853_v55, %v13809_v41  ;;  %v13874_v33 = vpop.eup %10022  ;;  %vm5160_vm15 = vweird.f32 %v13853_v55 }
 0x358   : > { %v5141_v31 = vsub.f32 1.0, %v5140_v39  ;;  %v5098_v38 = vadd.f32 %v13816_v42, %v5097_v7  ;;  %v5170_v9 = vmul.f32 %v13874_v33, %v13813_v56  ;;  %v5178_v8 = vand.u32 2147483647, %v13813_v56 }
 0x359   : > { %v5113_v11 = vadd.f32 %v13820_v52, %v5112_v45  ;;  %v5127_v62 = vmul.f32 %v13832_v35, %v5126_v29  ;;  %v5156_v61 = vsub.f32 1.0, %v5155_v20  ;;  %vm5174_vm5 = vweird.f32 %v13813_v56 }
 0x35a   : > { %v5142_v34 = vmul.f32 %v13842_v0, %v5141_v31  ;;  %v5102_v30 = vsel %vm13896_vm0, %v13816_v42, %v5098_v38  ;;  %v5171_v63 = vsub.f32 1.0, %v5170_v9  ;;  %v5180_v42 = vand.u32 2147483648, %v13813_v56  ;;  %v10025_v59 = vpop.eup %10024 }
 0x35b   : > { %v5128_v12 = vadd.f32 %v13832_v35, %v5127_v62  ;;  %v5117_v16 = vsel %vm13885_vm4, %v13820_v52, %v5113_v11  ;;  %v5157_v1 = vmul.f32 %v13853_v55, %v5156_v61  ;;  %vm13928_vm4 = vmor %vm5144_vm11, %vm5145_vm8  ;;  %10026 = vrcp.f32 %v13844_v32 }
 0x35c   : > { %v5143_v51 = vadd.f32 %v13842_v0, %v5142_v34  ;;  %v5122_v26 = vsel %vm13847_vm9, %v5121_v2, %v5117_v16  ;;  %vm13938_vm0 = vcmp.eq.f32.partialorder %v5163_v25, 8.507059e+37  ;;  %v5172_v28 = vmul.f32 %v13874_v33, %v5171_v63  ;;  %vm13953_vm9 = vmor %vm5159_vm2, %vm5160_vm15  ;;  %v9693_v16 = vld [vmem:[%s10503_s14 + $0x28] sm:$0xff] }
 0x35d   : > { %v5132_v4 = vsel %vm13909_vm6, %v13832_v35, %v5128_v12  ;;  %v5158_v52 = vadd.f32 %v13853_v55, %v5157_v1  ;;  %vm5175_vm7 = vweird.f32 %v13874_v33  ;;  %v5107_v58 = vsel %vm13860_vm13, %v13827_v13, %v5102_v30  ;;  %v9692_v30 = vld [vmem:[%s10503_s14 + $0x20] sm:$0xff] }
 0x35e   : > { %v5147_v36 = vsel %vm13928_vm4, %v13842_v0, %v5143_v51  ;;  %v5137_v17 = vsel %vm13865_vm14, %v5136_v43, %v5132_v4  ;;  %v5166_v15 = vor.u32 1.1754944e-38, %v5165_v53  ;;  %v5185_v2 = vmul.f32 %v10025_v59, %v13838_v37  ;;  %vm13973_vm2 = vmor %vm5174_vm5, %vm5175_vm7 }
 0x35f   : > { %v5162_v27 = vsel %vm13953_vm9, %v13853_v55, %v5158_v52  ;;  %v5173_v13 = vadd.f32 %v13874_v33, %v5172_v28  ;;  %vm13962_vm11 = vcmp.eq.f32.partialorder %v5178_v8, 8.507059e+37  ;;  %v13967_v41 = vmul.f32 %v5122_v26, %v13777_v22 }
 0x360   : > { %v5152_v7 = vsel %vm13878_vm1, %v5151_v40, %v5147_v36  ;;  %v5181_v48 = vor.u32 1.1754944e-38, %v5180_v42  ;;  %v5186_v55 = vsub.f32 1.0, %v5185_v2  ;;  %v5193_v45 = vand.u32 2147483647, %v13838_v37 }
 0x361   : > { %v5177_v29 = vsel %vm13973_vm2, %v13874_v33, %v5173_v13  ;;  %v5195_v22 = vand.u32 2147483648, %v13838_v37  ;;  %v13983_v39 = vmul.f32 %v5107_v58, %v13775_v5  ;;  %v13986_v56 = vmul.f32 %v5137_v17, %v13779_v14  ;;  %v10027_v50 = vpop.eup %10026  ;;  %v9694_v14 = vld [vmem:[%s10503_s14 + $0x30] sm:$0xff]  ;;  %v9691_v13 = vld [vmem:[%s10503_s14 + $0x18] sm:$0xff] }
 0x362   : > { %v5167_v54 = vsel %vm13938_vm0, %v5166_v15, %v5162_v27  ;;  %v5187_v43 = vmul.f32 %v10025_v59, %v5186_v55  ;;  %vm5190_vm1 = vweird.f32 %v10025_v59  ;;  %vm5189_vm12 = vweird.f32 %v13838_v37  ;;  %5409 = vmatpush.bf16.msra.mxu2 %v9694_v14  ;;  %v5260_v15 = vld [vmem:[%s16332_s8] sm:$0x1]  ;;  %v9689_v55 = vld [vmem:[%s10503_s14 + $0x8] sm:$0xff]  ;;  %s16468_s8 = sld [smem:[#allocation28_spill]] }
 0x363   : > { %v5200_v20 = vmul.f32 %v10027_v50, %v13844_v32  ;;  %v13994_v11 = vmul.f32 %v5152_v7, %v13781_v44  ;;  %v5222_v5 = vadd.f32 %v13967_v41, %v13983_v39  ;;  %v5182_v62 = vsel %vm13962_vm11, %v5181_v48, %v5177_v29  ;;  %vm5191_vm14 = vmor %vm5189_vm12, %vm5190_vm1  ;;  %v9690_v7 = vld [vmem:[%s10503_s14 + $0x10] sm:$0xff]  ;;  %v9701_v29 = vld [vmem:[%s16333_s1 + $0x28] sm:$0xff] }
 0x364   : > { %v5188_v31 = vadd.f32 %v10025_v59, %v5187_v43  ;;  %vm5194_vm13 = vcmp.eq.f32.partialorder %v5193_v45, 8.507059e+37  ;;  %v10448_v33 = vmov 64.0   ;;  %v5196_v37 = vor.u32 1.1754944e-38, %v5195_v22  ;;  %v9702_v48 = vld [vmem:[%s16333_s1 + $0x30] sm:$0xff] }
 0x365   : > { %10028 = vrcp.f32 %v10448_v33  ;;  %v5201_v38 = vsub.f32 1.0, %v5200_v20  ;;  %v14002_v6 = vmul.f32 %v5167_v54, %v13783_v23  ;;  %v5223_v44 = vadd.f32 %v5222_v5, %v13986_v56  ;;  %5518 = vmatpush.bf16.msra.mxu3 %v9702_v48  ;;  %v9700_v54 = vld [vmem:[%s16333_s1 + $0x20] sm:$0xff] }
 0x366   : > { %v5192_v61 = vsel %vm5191_vm14, %v10025_v59, %v5188_v31  ;;  %vm5205_vm8 = vweird.f32 %v10027_v50  ;;  %v5208_v3 = vand.u32 2147483647, %v13844_v32  ;;  %v5210_v12 = vand.u32 2147483648, %v13844_v32  ;;  %5410 = vmatpush.bf16.msra.mxu2 %v9693_v16  ;;  %v9698_v16 = vld [vmem:[%s16333_s1 + $0x10] sm:$0xff]  ;;  %v9704_v48 = vld [vmem:[%s16335_s26] sm:$0xff] }
 0x367   : > { %v5197_v34 = vsel %vm5194_vm13, %v5196_v37, %v5192_v61  ;;  %v5202_v40 = vmul.f32 %v10027_v50, %v5201_v38  ;;  %v14008_v25 = vmul.f32 %v5182_v62, %v13785_v24  ;;  %v5224_v18 = vadd.f32 %v5223_v44, %v13994_v11 }
 0x368   : > { %vm5204_vm6 = vweird.f32 %v13844_v32  ;;  %v14014_v1 = vmul.f32 %v5197_v34, %v13791_v10  ;;  %v5211_v51 = vor.u32 1.1754944e-38, %v5210_v12  ;;  %vm5209_vm4 = vcmp.eq.f32.partialorder %v5208_v3, 8.507059e+37  ;;  %v5359_v12 = vld [vmem:[%s16334_s7] sm:$0x1]  ;;  %v9699_v34 = vld [vmem:[%s16333_s1 + $0x18] sm:$0xff]  ;;  %s16471_s7 = sld [smem:[#allocation29_spill]] }
 0x369   : > { %v5203_v23 = vadd.f32 %v10027_v50, %v5202_v40  ;;  %v5225_v9 = vadd.f32 %v5224_v18, %v14002_v6  ;;  %vm5206_vm15 = vmor %vm5204_vm6, %vm5205_vm8  ;;  %5519 = vmatpush.bf16.msra.mxu3 %v9701_v29 }
 0x36a   : > { %5411 = vmatpush.bf16.msra.mxu2 %v9692_v30 }
 0x36b   : > { %v10029_v49 = vpop.eup %10028  ;;  %v5207_v53 = vsel %vm5206_vm15, %v10027_v50, %v5203_v23  ;;  %v5226_v24 = vadd.f32 %v5225_v9, %v14008_v25  ;;  %v9697_v9 = vld [vmem:[%s16333_s1 + $0x8] sm:$0xff] }
 0x36c   : > { %v5236_v8 = vmul.f32 64.0, %v10029_v49  ;;  %v5212_v4 = vsel %vm5209_vm4, %v5211_v51, %v5207_v53  ;;  %vm5240_vm5 = vweird.f32 %v10029_v49  ;;  %v9696_v51 = vld [vmem:[%s16333_s1] sm:$0xff]  ;;  %s16570_s1 = sld [smem:[#allocation40_spill]] }
 0x36d   : > { %v14020_v52 = vmul.f32 %v5212_v4, %v13795_v47  ;;  %v5227_v32 = vadd.f32 %v5226_v24, %v14014_v1  ;;  %5520 = vmatpush.bf16.msra.mxu3 %v9700_v54 }
 0x36e   : > { %v5237_v10 = vsub.f32 1.0, %v5236_v8  ;;  %5412 = vmatpush.bf16.msra.mxu2 %v9691_v13  ;;  %v9708_v13 = vld [vmem:[%s16335_s26 + $0x20] sm:$0xff] }
 0x36f   : > { %v5228_v63 = vadd.f32 %v5227_v32, %v14020_v52 }
 0x370   : > { %v5238_v46 = vmul.f32 %v10029_v49, %v5237_v10 }
 0x371   : > { %v5229_v26 = vrot.slane %v5228_v63, 4  ;;  %5521 = vmatpush.bf16.msra.mxu3 %v9699_v34 }
 0x372   : > { %v5239_v36 = vadd.f32 %v10029_v49, %v5238_v46  ;;  %5413 = vmatpush.bf16.msra.mxu2 %v9690_v7 }
 0x373   : > { %v5230_v42 = vadd.f32 %v5229_v26, %v5228_v63 }
 0x374   : > { %v5241_v47 = vsel %vm5240_vm5, %v10029_v49, %v5239_v36 }
 0x375   : > { %v5231_v59 = vrot.slane %v5230_v42, 2  ;;  %5522 = vmatpush.bf16.msra.mxu3 %v9698_v16 }
 0x376   : > { %5414 = vmatpush.bf16.msra.mxu2 %v9689_v55  ;;  %v9930_v55 = vld [vmem:[%s16336_s15] ss:$0 sm:$0xff]  ;;  %s16529_s15 = sld [smem:[#allocation32_spill]] }
 0x377   : > { %v5232_v35 = vadd.f32 %v5231_v59, %v5230_v42 }
 0x379   : > { %v5233_v28 = vrot.slane %v5232_v35, 1  ;;  %5523 = vmatpush.bf16.msra.mxu3 %v9697_v9  ;;  %v10192_v9 = vld [vmem:[%s13154_s23 + $0x20] sm:$0xff] }
 0x37a   : > { %5415 = vmatpush.bf16.msra.mxu2 %v9688_v19 }
 0x37b   : > { %v5234_v58 = vadd.f32 %v5233_v28, %v5232_v35 }
 0x37d   : > { %v5242_v17 = vmul.f32 %v5241_v47, %v5234_v58  ;;  %5524 = vmatpush.bf16.msra.mxu3 %v9696_v51 }
 0x37f   : > { %v5243_v60 = vpack.c.bf16 %v5242_v17, %v5242_v17 }
 0x381   : > { %5317 = vmatmul.bf16.vlgmr.msra.gmra.mxu1 %v5243_v60 }
 0x3fe   : > { %v5318_v2 = vpop.f32.mrf.mxu1 }
 0x3ff   : > { %v5319_v27 = vadd.f32 %v5318_v2, %v5260_v15  ;;  %v9711_v15 = vld [vmem:[%s16335_s26 + $0x38] sm:$0xff]  ;;  %v9710_v2 = vld [vmem:[%s16335_s26 + $0x30] sm:$0xff] }
 0x400   : > { %5654 = vmatpush.bf16.msrb.mxu1 %v9711_v15 }
 0x401   : > { %v9159_v0 = vmul.f32 -1.442695, %v5319_v27 }
 0x403   : > { %10030 = vpow2.f32 %v9159_v0 }
 0x404   : > { %5655 = vmatpush.bf16.msrb.mxu1 %v9710_v2 }
 0x406   : > { %v5320_v45 = vpop.f32.mrf.mxu1 }
 0x407   : > { %v9931_v45 = vld [vmem:[%s16337_s16] ss:$0 sm:$0xff]  ;;  %s16530_s16 = smov %s16529_s15 }
 0x409   : > { %v10031_v22 = vpop.eup %10030 }
 0x40a   : > { %v5325_v50 = vadd.f32 1.0, %v10031_v22 }
 0x40c   : > { %10032 = vrcp.f32 %v5325_v50  ;;  %v5337_v14 = vand.u32 2147483648, %v5325_v50  ;;  %v5335_v31 = vand.u32 2147483647, %v5325_v50  ;;  %vm5331_vm7 = vweird.f32 %v5325_v50 }
 0x40e   : > { %v5338_v37 = vor.u32 1.1754944e-38, %v5337_v14  ;;  %vm5336_vm11 = vcmp.eq.f32.partialorder %v5335_v31, 8.507059e+37 }
 0x412   : > { %v10033_v43 = vpop.eup %10032 }
 0x413   : > { %v5327_v20 = vmul.f32 %v10033_v43, %v5325_v50  ;;  %vm5332_vm0 = vweird.f32 %v10033_v43 }
 0x414   : > { %vm5333_vm9 = vmor %vm5331_vm7, %vm5332_vm0 }
 0x415   : > { %v5328_v5 = vsub.f32 1.0, %v5327_v20  ;;  %v10189_v20 = vld [vmem:[%s13154_s23 + $0x8] sm:$0xff] }
 0x417   : > { %v5329_v62 = vmul.f32 %v10033_v43, %v5328_v5 }
 0x419   : > { %v5330_v33 = vadd.f32 %v10033_v43, %v5329_v62 }
 0x41b   : > { %v5334_v38 = vsel %vm5333_vm9, %v10033_v43, %v5330_v33 }
 0x41c   : > { %v5339_v44 = vsel %vm5336_vm11, %v5338_v37, %v5334_v38  ;;  %v10190_v37 = vld [vmem:[%s13154_s23 + $0x10] sm:$0xff] }
 0x41d   : > { %v5341_v61 = vmul.f32 %v5339_v44, %v5319_v27  ;;  %v9709_v27 = vld [vmem:[%s16335_s26 + $0x28] sm:$0xff] }
 0x41e   : > { %5656 = vmatpush.bf16.msrb.mxu1 %v9709_v27  ;;  %v5889_v27 = vld [vmem:[#allocation2 + $0x8] sm:$0x3] }
 0x41f   : > { %v5342_v3 = vpack.c.bf16 %v5341_v61, %v5341_v61  ;;  %6091 = vst.sshfl [vmem:[#allocation1 + $0x20] sm:$0xff pattern:$0x73625140] %v5889_v27 }
 0x421   : > { %5416 = vmatmul.bf16.vlgmr.msra.gmra.mxu2 %v5342_v3 }
 0x422   : > { %5657 = vmatpush.bf16.msrb.mxu1 %v9708_v13 }
 0x4a4   : > { %v5417_v40 = vpop.f32.mrf.mxu2 }
 0x4a5   : > { %v5418_v18 = vadd.f32 %v5417_v40, %v5359_v12  ;;  %v10191_v12 = vld [vmem:[%s13154_s23 + $0x18] sm:$0xff] }
 0x4a7   : > { %v9192_v23 = vmul.f32 -1.442695, %v5418_v18 }
 0x4a9   : > { %10034 = vpow2.f32 %v9192_v23 }
 0x4ac   : > { %v5419_v49 = vpop.f32.mrf.mxu2 }
 0x4af   : > { %v10035_v53 = vpop.eup %10034 }
 0x4b0   : > { %v5424_v24 = vadd.f32 1.0, %v10035_v53 }
 0x4b2   : > { %10036 = vrcp.f32 %v5424_v24  ;;  %v5436_v32 = vand.u32 2147483648, %v5424_v24  ;;  %v5434_v63 = vand.u32 2147483647, %v5424_v24  ;;  %vm5430_vm1 = vweird.f32 %v5424_v24 }
 0x4b4   : > { %v5437_v46 = vor.u32 1.1754944e-38, %v5436_v32  ;;  %vm5435_vm13 = vcmp.eq.f32.partialorder %v5434_v63, 8.507059e+37 }
 0x4b8   : > { %v10037_v8 = vpop.eup %10036 }
 0x4b9   : > { %v5426_v30 = vmul.f32 %v10037_v8, %v5424_v24  ;;  %vm5431_vm2 = vweird.f32 %v10037_v8 }
 0x4ba   : > { %vm5432_vm12 = vmor %vm5430_vm1, %vm5431_vm2 }
 0x4bb   : > { %v5427_v4 = vsub.f32 1.0, %v5426_v30 }
 0x4bd   : > { %v5428_v10 = vmul.f32 %v10037_v8, %v5427_v4 }
 0x4bf   : > { %v5429_v26 = vadd.f32 %v10037_v8, %v5428_v10 }
 0x4c1   : > { %v5433_v42 = vsel %vm5432_vm12, %v10037_v8, %v5429_v26  ;;  %v10193_v8 = vld [vmem:[%s13154_s23 + $0x28] sm:$0xff]  ;;  %v10194_v26 = vld [vmem:[%s13154_s23 + $0x30] sm:$0xff] }
 0x4c2   : > { %v5438_v59 = vsel %vm5435_vm13, %v5437_v46, %v5433_v42 }
 0x4c3   : > { %v5440_v36 = vperm.slane %v5438_v59, 0 }
 0x4c5   : > { %v5441_v35 = vmul.f32 %v5440_v36, %v13983_v39  ;;  %v5442_v28 = vmul.f32 %v5440_v36, %v13967_v41  ;;  %v5443_v58 = vmul.f32 %v5440_v36, %v13986_v56  ;;  %v5444_v17 = vmul.f32 %v5440_v36, %v13994_v11 }
 0x4c6   : > { %v5445_v39 = vmul.f32 %v5440_v36, %v14002_v6  ;;  %v5446_v41 = vmul.f32 %v5440_v36, %v14008_v25  ;;  %v5447_v11 = vmul.f32 %v5440_v36, %v14014_v1  ;;  %v5448_v0 = vmul.f32 %v5440_v36, %v14020_v52  ;;  %v9707_v6 = vld [vmem:[%s16335_s26 + $0x18] sm:$0xff]  ;;  %v9706_v25 = vld [vmem:[%s16335_s26 + $0x10] sm:$0xff]  ;;  %v10188_v52 = vld [vmem:[%s13154_s23] sm:$0xff] }
 0x4c7   : > { %v5449_v47 = vpack.c.bf16 %v5442_v28, %v5441_v35  ;;  %v5450_v60 = vpack.c.bf16 %v5444_v17, %v5443_v58  ;;  %5658 = vmatpush.bf16.msrb.mxu1 %v9707_v6  ;;  %v10195_v35 = vld [vmem:[%s13154_s23 + $0x38] sm:$0xff]  ;;  %v14078_v58 = vld [vmem:[%s16338_s18] ss:$0 sm:$0xff]  ;;  %s16348_s23 = sld [smem:[#allocation30_spill]] }
 0x4c8   : > { %v5451_v56 = vpack.c.bf16 %v5446_v41, %v5445_v39  ;;  %v5452_v7 = vpack.c.bf16 %v5448_v0, %v5447_v11  ;;  %v14081_v17 = vld [vmem:[%s16339_s2] ss:$0 sm:$0xff]  ;;  %s16549_s18 = sld [smem:[#allocation33_spill]] }
 0x4c9   : > { %5525 = vmatmul.bf16.vlgmr.msra.gmra.mxu3 %v5449_v47  ;;  %s16550_s2 = sld [smem:[#allocation34_spill]] }
 0x4cb   : > { %5659 = vmatpush.bf16.msrb.mxu1 %v9706_v25 }
 0x4cf   : > { %5660 = vmatpush.bf16.msrb.mxu1 %v9705_v21  ;;  %v14090_v21 = vld [vmem:[#allocation2 + $0x28] sm:$0x3] }
 0x4d3   : > { %5661 = vmatpush.bf16.msrb.mxu1 %v9704_v48 }
 0x4d9   : > { %5530 = vmatmul.bf16.gmra.mxu3 %v5450_v60 }
 0x4e9   : > { %5535 = vmatmul.bf16.gmra.mxu3 %v5451_v56 }
 0x4f9   : > { %5540 = vmatmul.bf16.gmra.mxu3 %v5452_v7 }
 0x54c   : > { %v5526_v29 = vpop.f32.mrf.mxu3 }
 0x54d   : > { %v5550_v1 = vmul.f32 %v9930_v55, %v5526_v29 }
 0x54f   : > { %v5562_v22 = vadd.f32 %v9931_v45, %v5550_v1 }
 0x551   : > { %v5570_v19 = vadd.f32 %v10188_v52, %v5562_v22  ;;  %v14092_v22 = vld [vmem:[#allocation1 + $0x20] ss:$4 sm:$0xff] }
 0x552   : > { %6101 = vst.sshfl [vmem:[#allocation1 + $0x20] sm:$0xff pattern:$0x73625140] %v14090_v21 }
 0x553   : > { %5578 = vst [vmem:[%s14059_s22] sm:$0xff] %v5570_v19 }
 0x554   : > { %v5528_v50 = vpop.f32.mrf.mxu3 }
 0x555   : > { %v5551_v54 = vmul.f32 %v9930_v55, %v5528_v50 }
 0x557   : > { %v5563_v43 = vadd.f32 %v9931_v45, %v5551_v54 }
 0x559   : > { %v5571_v5 = vadd.f32 %v10189_v20, %v5563_v43 }
 0x55b   : > { %5579 = vst [vmem:[%s14059_s22 + $0x8] sm:$0xff] %v5571_v5  ;;  %v5586_v14 = vpack.c.bf16 %v5571_v5, %v5570_v19 }
 0x55c   : > { %v5531_v62 = vpop.f32.mrf.mxu3 }
 0x55d   : > { %v5552_v31 = vmul.f32 %v9930_v55, %v5531_v62  ;;  %5662 = vmatmul.bf16.vlgmr.msrb.gmra.mxu1 %v5586_v14 }
 0x55f   : > { %v5564_v33 = vadd.f32 %v9931_v45, %v5552_v31 }
 0x561   : > { %v5572_v38 = vadd.f32 %v10190_v37, %v5564_v33  ;;  %v14105_v37 = vld [vmem:[#allocation2 + $0x48] sm:$0x3] }
 0x562   : > { %16340 = vst [vmem:[#allocation65_spill] sm:$0xff] %v14105_v37 }
 0x563   : > { %5580 = vst [vmem:[%s14059_s22 + $0x10] sm:$0xff] %v5572_v38 }
 0x564   : > { %v5533_v44 = vpop.f32.mrf.mxu3 }
 0x565   : > { %v5553_v61 = vmul.f32 %v9930_v55, %v5533_v44 }
 0x567   : > { %v5565_v3 = vadd.f32 %v9931_v45, %v5553_v61  ;;  %v14110_v61 = vld [vmem:[#allocation1 + $0x20] ss:$4 sm:$0xff] }
 0x568   : > { %6107 = vst.sshfl [vmem:[#allocation1 + $0x20] sm:$0xff pattern:$0x73625140] %v14105_v37 }
 0x569   : > { %v5573_v34 = vadd.f32 %v10191_v12, %v5565_v3  ;;  %v5991_v12 = vrot.slane %v5889_v27, 7 }
 0x56b   : > { %5581 = vst [vmem:[%s14059_s22 + $0x18] sm:$0xff] %v5573_v34  ;;  %v5587_v40 = vpack.c.bf16 %v5573_v34, %v5572_v38  ;;  %v14107_v38 = vld [vmem:[#allocation2 + $0x90] sm:$0xff] }
 0x56c   : > { %v5536_v18 = vpop.f32.mrf.mxu3 }
 0x56d   : > { %v5554_v16 = vmul.f32 %v9930_v55, %v5536_v18  ;;  %5667 = vmatmul.bf16.gmra.mxu1 %v5587_v40 }
 0x56f   : > { %v5566_v23 = vadd.f32 %v9931_v45, %v5554_v16 }
 0x571   : > { %v5574_v49 = vadd.f32 %v10192_v9, %v5566_v23 }
 0x573   : > { %5582 = vst [vmem:[%s14059_s22 + $0x20] sm:$0xff] %v5574_v49 }
 0x574   : > { %v5538_v51 = vpop.f32.mrf.mxu3 }
 0x575   : > { %v5555_v53 = vmul.f32 %v9930_v55, %v5538_v51 }
 0x577   : > { %v5567_v24 = vadd.f32 %v9931_v45, %v5555_v53  ;;  %v14126_v53 = vld [vmem:[#allocation2 + $0x68] sm:$0x3] }
 0x579   : > { %v5575_v30 = vadd.f32 %v10193_v8, %v5567_v24  ;;  %v14128_v8 = vld [vmem:[#allocation1 + $0x20] ss:$4 sm:$0xff] }
 0x57a   : > { %16341 = vst [vmem:[#allocation74_spill] sm:$0xff] %v14128_v8  ;;  %v6030_v8 = vrot.slane %v14126_v53, 7 }
 0x57b   : > { %5583 = vst [vmem:[%s14059_s22 + $0x28] sm:$0xff] %v5575_v30  ;;  %v5588_v4 = vpack.c.bf16 %v5575_v30, %v5574_v49 }
 0x57c   : > { %v5541_v32 = vpop.f32.mrf.mxu3  ;;  %6113 = vst.sshfl [vmem:[#allocation1 + $0x20] sm:$0xff pattern:$0x73625140] %v14126_v53 }
 0x57d   : > { %v5556_v10 = vmul.f32 %v9930_v55, %v5541_v32  ;;  %5672 = vmatmul.bf16.gmra.mxu1 %v5588_v4 }
 0x57f   : > { %v5568_v63 = vadd.f32 %v9931_v45, %v5556_v10 }
 0x581   : > { %v5576_v46 = vadd.f32 %v10194_v26, %v5568_v63 }
 0x583   : > { %5584 = vst [vmem:[%s14059_s22 + $0x30] sm:$0xff] %v5576_v46 }
 0x584   : > { %v5543_v42 = vpop.f32.mrf.mxu3 }
 0x585   : > { %v5557_v59 = vmul.f32 %v9930_v55, %v5543_v42 }
 0x587   : > { %v5569_v36 = vadd.f32 %v9931_v45, %v5557_v59 }
 0x589   : > { %v5577_v28 = vadd.f32 %v10195_v35, %v5569_v36 }
 0x58b   : > { %5585 = vst [vmem:[%s14059_s22 + $0x38] sm:$0xff] %v5577_v28  ;;  %v5589_v47 = vpack.c.bf16 %v5577_v28, %v5576_v46  ;;  %s16548_s22 = sld [smem:[#allocation31_spill]] }
 0x58d   : > { %5677 = vmatmul.bf16.gmra.mxu1 %v5589_v47 }
 0x5da   : > { %v5663_v60 = vpop.f32.mrf.mxu1 }
 0x5db   : > { %v5687_v15 = vmul.f32 %v14078_v58, %v5663_v60 }
 0x5dd   : > { %v5699_v2 = vadd.f32 %v14081_v17, %v5687_v15 }
 0x5df   : > { %v9257_v39 = vmul.f32 -1.442695, %v5699_v2 }
 0x5e1   : > { %10038 = vpow2.f32 %v9257_v39 }
 0x5e2   : > { %v5665_v56 = vpop.f32.mrf.mxu1 }
 0x5e3   : > { %v5688_v11 = vmul.f32 %v14078_v58, %v5665_v56 }
 0x5e5   : > { %v14087_v7 = vadd.f32 %v14081_v17, %v5688_v11  ;;  %v14143_v11 = vld [vmem:[#allocation1 + $0x20] ss:$4 sm:$0xff] }
 0x5e6   : > { %16344 = vst [vmem:[#allocation93_spill] sm:$0xff] %v14143_v11 }
 0x5e7   : > { %v10039_v41 = vpop.eup %10038  ;;  %v9258_v25 = vmul.f32 -1.442695, %v14087_v7 }
 0x5e8   : > { %v5731_v13 = vadd.f32 1.0, %v10039_v41 }
 0x5ea   : > { %10040 = vrcp.f32 %v5731_v13  ;;  %v5750_v55 = vand.u32 2147483648, %v5731_v13  ;;  %v5748_v29 = vand.u32 2147483647, %v5731_v13  ;;  %v5668_v1 = vpop.f32.mrf.mxu1  ;;  %vm5744_vm8 = vweird.f32 %v5731_v13 }
 0x5eb   : > { %10042 = vpow2.f32 %v9258_v25  ;;  %v5689_v52 = vmul.f32 %v14078_v58, %v5668_v1  ;;  %v14147_v25 = vld [vmem:[%s16342_s28] ss:$0 sm:$0xff] }
 0x5ec   : > { %v5751_v50 = vor.u32 1.1754944e-38, %v5750_v55  ;;  %vm5749_vm15 = vcmp.eq.f32.partialorder %v5748_v29, 8.507059e+37 }
 0x5ed   : > { %v14097_v54 = vadd.f32 %v14081_v17, %v5689_v52 }
 0x5ef   : > { %v9259_v14 = vmul.f32 -1.442695, %v14097_v54 }
 0x5f0   : > { %v10041_v0 = vpop.eup %10040 }
 0x5f1   : > { %v5740_v6 = vmul.f32 %v10041_v0, %v5731_v13  ;;  %vm5745_vm14 = vweird.f32 %v10041_v0  ;;  %v10043_v20 = vpop.eup %10042  ;;  %10044 = vpow2.f32 %v9259_v14  ;;  %v14140_v13 = vld [vmem:[#allocation2 + $0x18] sm:$0x3] }
 0x5f2   : > { %vm5746_vm6 = vmor %vm5744_vm8, %vm5745_vm14  ;;  %v5732_v31 = vadd.f32 1.0, %v10043_v20  ;;  %v5670_v44 = vpop.f32.mrf.mxu1  ;;  %16343 = vst [vmem:[#allocation73_spill] sm:$0xff] %v14140_v13 }
 0x5f3   : > { %v5741_v48 = vsub.f32 1.0, %v5740_v6  ;;  %v5690_v18 = vmul.f32 %v14078_v58, %v5670_v44  ;;  %6362 = vst.sshfl [vmem:[#allocation1 + $0x20] sm:$0xff pattern:$0x73625140] %v14140_v13 }
 0x5f4   : > { %10046 = vrcp.f32 %v5732_v31  ;;  %v5763_v30 = vand.u32 2147483647, %v5732_v31  ;;  %v5765_v4 = vand.u32 2147483648, %v5732_v31  ;;  %vm5759_vm5 = vweird.f32 %v5732_v31 }
 0x5f5   : > { %v5742_v45 = vmul.f32 %v10041_v0, %v5741_v48  ;;  %v14124_v51 = vadd.f32 %v14081_v17, %v5690_v18  ;;  %v14181_v18 = vld [vmem:[%s16342_s28 + $0x2] ss:$0 sm:$0xff] }
 0x5f6   : > { %v5766_v59 = vor.u32 1.1754944e-38, %v5765_v4  ;;  %vm5764_vm7 = vcmp.eq.f32.partialorder %v5763_v30, 8.507059e+37 }
 0x5f7   : > { %v5743_v19 = vadd.f32 %v10041_v0, %v5742_v45  ;;  %v10045_v34 = vpop.eup %10044  ;;  %v9260_v10 = vmul.f32 -1.442695, %v14124_v51 }
 0x5f8   : > { %v5733_v16 = vadd.f32 1.0, %v10045_v34 }
 0x5f9   : > { %v5747_v43 = vsel %vm5746_vm6, %v10041_v0, %v5743_v19 }
 0x5fa   : > { %v5752_v5 = vsel %vm5749_vm15, %v5751_v50, %v5747_v43  ;;  %v10047_v23 = vpop.eup %10046  ;;  %10048 = vrcp.f32 %v5733_v16  ;;  %v5673_v26 = vpop.f32.mrf.mxu1  ;;  %v5780_v60 = vand.u32 2147483648, %v5733_v16  ;;  %v5778_v39 = vand.u32 2147483647, %v5733_v16 }
 0x5fb   : > { %v14100_v62 = vmul.f32 %v5752_v5, %v5699_v2  ;;  %v5755_v49 = vmul.f32 %v10047_v23, %v5732_v31  ;;  %vm5760_vm4 = vweird.f32 %v10047_v23  ;;  %10050 = vpow2.f32 %v9260_v10  ;;  %v14164_v5 = vld [vmem:[%s16342_s28 + $0x1] ss:$0 sm:$0xff] }
 0x5fc   : > { %vm5761_vm0 = vmor %vm5759_vm5, %vm5760_vm4  ;;  %v5691_v36 = vmul.f32 %v14078_v58, %v5673_v26  ;;  %vm5774_vm11 = vweird.f32 %v5733_v16  ;;  %vm5779_vm1 = vcmp.eq.f32.partialorder %v5778_v39, 8.507059e+37  ;;  %v14158_v50 = vrot.slane %v14147_v25, 2 }
 0x5fd   : > { %5880 = vst [vmem:[#allocation2] sm:$0xff] %v14100_v62  ;;  %v5912_v33 = vrot.slane %v14100_v62, 6  ;;  %v5756_v24 = vsub.f32 1.0, %v5755_v49  ;;  %v5910_v6 = vrot.slane %v14100_v62, 2  ;;  %v5911_v52 = vrot.slane %v14100_v62, 4 }
 0x5fe   : > { %6090 = vst.sshfl [vmem:[#allocation1] sm:$0xff pattern:$0x73625140] %v14100_v62  ;;  %v14134_v15 = vadd.f32 %v14081_v17, %v5691_v36  ;;  %v14189_v49 = vrot.slane %v14158_v50, 1  ;;  %v14197_v26 = vrot.slane %v14164_v5, 1 }
 0x5ff   : > { %7623 = vst [vmem:[#allocation2] sm:$0x3f] %v14107_v38  ;;  %v14114_v3 = vrot.slane %v5912_v33, 7  ;;  %v5757_v32 = vmul.f32 %v10047_v23, %v5756_v24  ;;  %v5982_v20 = vrot.slane %v5910_v6, 7  ;;  %v9265_v24 = vrot.slane %v14100_v62, 9 }
 0x600   : > { %v10049_v63 = vpop.eup %10048  ;;  %v9261_v41 = vmul.f32 -1.442695, %v14134_v15  ;;  %v5947_v39 = vmul.f32 %v14189_v49, %v5912_v33 }
 0x601   : > { %v5990_v40 = vrot.slane %v14114_v3, 2  ;;  %v5758_v46 = vadd.f32 %v10047_v23, %v5757_v32  ;;  %v5770_v42 = vmul.f32 %v10049_v63, %v5733_v16  ;;  %vm5775_vm9 = vweird.f32 %v10049_v63  ;;  %v10051_v0 = vpop.eup %10050 }
 0x602   : > { %vm5776_vm2 = vmor %vm5774_vm11, %vm5775_vm9  ;;  %10052 = vpow2.f32 %v9261_v41  ;;  %v5675_v48 = vpop.f32.mrf.mxu1  ;;  %v5734_v45 = vadd.f32 1.0, %v10051_v0  ;;  %v5984_v30 = vrot.slane %v5982_v20, 2 }
 0x603   : > { %v14121_v9 = vsel %vm11119_vm10, %v5990_v40, %v5991_v12  ;;  %v5762_v35 = vsel %vm5761_vm0, %v10047_v23, %v5758_v46  ;;  %v5771_v28 = vsub.f32 1.0, %v5770_v42  ;;  %v5692_v29 = vmul.f32 %v14078_v58, %v5675_v48 }
 0x604   : > { %v5767_v47 = vsel %vm5764_vm7, %v5766_v59, %v5762_v35  ;;  %10054 = vrcp.f32 %v5734_v45  ;;  %v5985_v12 = vrot.slane %v5911_v52, 7  ;;  %v14185_v23 = vrot.slane %v14147_v25, 1 }
 0x605   : > { %v14137_v2 = vmul.f32 %v5767_v47, %v14087_v7  ;;  %v5772_v27 = vmul.f32 %v10049_v63, %v5771_v28  ;;  %v5781_v7 = vor.u32 1.1754944e-38, %v5780_v60  ;;  %v14161_v43 = vadd.f32 %v14081_v17, %v5692_v29  ;;  %v14166_v14 = vld [vmem:[#allocation1 + $0x1] ss:$4 sm:$0xff]  ;;  %v14169_v44 = vld [vmem:[#allocation1 + $0x2] ss:$4 sm:$0xff] }
 0x606   : > { %v14175_v34 = vld [vmem:[#allocation1 + $0x3] ss:$4 sm:$0xff]  ;;  %v5987_v10 = vrot.slane %v5985_v12, 2  ;;  %v5983_v46 = vsel %vm11119_vm10, %v9265_v24, %v5982_v20  ;;  %v14202_v42 = vrot.slane %v14181_v18, 2  ;;  %v14205_v59 = vrot.slane %v14181_v18, 1 }
 0x607   : > { %5881 = vst [vmem:[#allocation2 + $0x10] sm:$0xff] %v14137_v2  ;;  %v5773_v56 = vadd.f32 %v10049_v63, %v5772_v27  ;;  %v5944_v35 = vmul.f32 %v14147_v25, %v14100_v62  ;;  %v5945_v28 = vmul.f32 %v14185_v23, %v5910_v6  ;;  %v5793_v47 = vand.u32 2147483647, %v5734_v45 }
 0x608   : > { %7626 = vst [vmem:[#allocation2 + $0x10] sm:$0x1] %v14107_v38  ;;  %v10053_v31 = vpop.eup %10052  ;;  %v5795_v60 = vand.u32 2147483648, %v5734_v45  ;;  %v5986_v41 = vsel %vm11119_vm10, %v5984_v30, %v5985_v12  ;;  %v6058_v48 = vmul.f32 %v14164_v5, %v5983_v46  ;;  %vm5789_vm13 = vweird.f32 %v5734_v45  ;;  %v14235_v46 = vld [vmem:[#allocation2 + $0x58] sm:$0x3] }
 0x609   : > { %7630 = vst [vmem:[#allocation2 + $0x15] sm:$0x1] %v14107_v38  ;;  %v5777_v55 = vsel %vm5776_vm2, %v10049_v63, %v5773_v56  ;;  %v14178_v40 = vadd.f32 1.0, %v10053_v31  ;;  %v14194_v63 = vrot.slane %v14164_v5, 2  ;;  %v6059_v31 = vmul.f32 %v14197_v26, %v5986_v41 }
 0x60a   : > { %v5782_v1 = vsel %vm5779_vm1, %v5781_v7, %v5777_v55  ;;  %v10055_v16 = vpop.eup %10054  ;;  %v5989_v7 = vsel %vm11119_vm10, %v5987_v10, %v14114_v3  ;;  %v5678_v55 = vpop.f32.mrf.mxu1  ;;  %vm5794_vm8 = vcmp.eq.f32.partialorder %v5793_v47, 8.507059e+37  ;;  %16346 = vst [vmem:[#allocation77_spill] sm:$0xff] %v14235_v46  ;;  %v6145_v62 = vmul.f32 %v14205_v59, %v14169_v44 }
 0x60b   : > { %v14155_v19 = vmul.f32 %v5782_v1, %v14097_v54  ;;  %v9262_v54 = vmul.f32 -1.442695, %v14161_v43  ;;  %v5785_v4 = vmul.f32 %v10055_v16, %v5734_v45  ;;  %vm5790_vm12 = vweird.f32 %v10055_v16 }
 0x60c   : > { %v14222_v29 = vrot.slane %v14194_v63, 1  ;;  %v5693_v20 = vmul.f32 %v14078_v58, %v5678_v55  ;;  %vm5791_vm14 = vmor %vm5789_vm13, %vm5790_vm12  ;;  %v5810_v10 = vand.u32 2147483648, %v14178_v40  ;;  %v6060_v41 = vmul.f32 %v14194_v63, %v5989_v7 }
 0x60d   : > { %16345 = vst [vmem:[#allocation75_spill] sm:$0xff] %v14155_v19  ;;  %10056 = vpow2.f32 %v9262_v54  ;;  %v5786_v36 = vsub.f32 1.0, %v5785_v4  ;;  %v5796_v54 = vor.u32 1.1754944e-38, %v5795_v60  ;;  %v5808_v4 = vand.u32 2147483647, %v14178_v40 }
 0x60e   : > { %5882 = vst [vmem:[#allocation2 + $0x20] sm:$0xff] %v14155_v19  ;;  %10058 = vrcp.f32 %v14178_v40  ;;  %v14229_v24 = vadd.f32 %v14081_v17, %v5693_v20  ;;  %v6061_v30 = vmul.f32 %v14222_v29, %v14121_v9  ;;  %v5946_v9 = vmul.f32 %v14158_v50, %v5911_v52 }
 0x60f   : > { %7627 = vst [vmem:[#allocation2 + $0x20] sm:$0x1] %v14107_v38  ;;  %v5787_v56 = vmul.f32 %v10055_v16, %v5786_v36  ;;  %v6075_v55 = vadd.f32 %v6059_v31, %v5945_v28  ;;  %vm5804_vm15 = vweird.f32 %v14178_v40  ;;  %vm5809_vm5 = vcmp.eq.f32.partialorder %v5808_v4, 8.507059e+37  ;;  %v14266_v31 = vld [vmem:[%s16342_s28 + $0x4] ss:$0 sm:$0xff] }
 0x610   : > { %7631 = vst [vmem:[#allocation2 + $0x25] sm:$0x1] %v14107_v38  ;;  %v14241_v60 = vadd.f32 %v6061_v30, %v5947_v39  ;;  %v6144_v39 = vmul.f32 %v14181_v18, %v14166_v14  ;;  %v5811_v52 = vor.u32 1.1754944e-38, %v5810_v10  ;;  %v14260_v14 = vrot.slane %v14202_v42, 1 }
 0x611   : > { %6100 = vst.sshfl [vmem:[#allocation1] sm:$0xff pattern:$0x73625140] %v14155_v19  ;;  %v5788_v1 = vadd.f32 %v10055_v16, %v5787_v56  ;;  %v6074_v56 = vadd.f32 %v6058_v48, %v5944_v35  ;;  %v6076_v48 = vadd.f32 %v6060_v41, %v5946_v9  ;;  %v6146_v44 = vmul.f32 %v14202_v42, %v14175_v34 }
 0x612   : > { %v5680_v35 = vpop.f32.mrf.mxu1  ;;  %16349 = vst [vmem:[#allocation78_spill] sm:$0xff] %v14266_v31  ;;  %v14282_v34 = vrot.slane %v14266_v31, 1  ;;  %v15962_v41 = vrot.slane %v14137_v2, 2 }
 0x613   : > { %v10057_v27 = vpop.eup %10056  ;;  %v5792_v3 = vsel %vm5791_vm14, %v10055_v16, %v5788_v1  ;;  %v9263_v16 = vmul.f32 -1.442695, %v14229_v24  ;;  %v5694_v7 = vmul.f32 %v14078_v58, %v5680_v35  ;;  %v14276_v30 = vadd.f32 %v6144_v39, %v6074_v56 }
 0x614   : > { %v10059_v0 = vpop.eup %10058  ;;  %v14219_v6 = vadd.f32 1.0, %v10057_v27  ;;  %v5797_v45 = vsel %vm5794_vm8, %v5796_v54, %v5792_v3  ;;  %16353 = vst [vmem:[#allocation114_spill] sm:$0xff] %v14282_v34  ;;  %v14298_v56 = vrot.slane %v14266_v31, 2  ;;  %v14314_v35 = vrot.slane %v14155_v19, 2  ;;  %v9716_v27 = vld [vmem:[%s16348_s23 + $0x20] sm:$0xff] }
 0x615   : > { %v5800_v33 = vmul.f32 %v10059_v0, %v14178_v40  ;;  %vm5805_vm6 = vweird.f32 %v10059_v0  ;;  %v14238_v36 = vmul.f32 %v5797_v45, %v14124_v51  ;;  %v14273_v58 = vadd.f32 %v14081_v17, %v5694_v7  ;;  %16351 = vst [vmem:[#allocation79_spill] sm:$0xff] %v14276_v30  ;;  %v9718_v17 = vld [vmem:[%s16348_s23 + $0x30] sm:$0xff] }
 0x616   : > { %10060 = vrcp.f32 %v14219_v6  ;;  %vm5806_vm4 = vmor %vm5804_vm15, %vm5805_vm6  ;;  %v5823_v20 = vand.u32 2147483647, %v14219_v6  ;;  %v5825_v3 = vand.u32 2147483648, %v14219_v6  ;;  %v14278_v45 = vadd.f32 %v6145_v62, %v6075_v55  ;;  %16356 = vst [vmem:[#allocation89_spill] sm:$0xff] %v14298_v56  ;;  %v9717_v62 = vld [vmem:[%s16348_s23 + $0x28] sm:$0xff] }
 0x617   : > { %v5801_v12 = vsub.f32 1.0, %v5800_v33  ;;  %16347 = vst [vmem:[#allocation76_spill] sm:$0xff] %v14238_v36  ;;  %10062 = vpow2.f32 %v9263_v16  ;;  %vm5819_vm0 = vweird.f32 %v14219_v6  ;;  %v9264_v10 = vmul.f32 -1.442695, %v14273_v58 }
 0x618   : > { %5883 = vst [vmem:[#allocation2 + $0x30] sm:$0xff] %v14238_v36  ;;  %vm14290_vm9 = vcmp.eq.f32.partialorder %v5823_v20, 8.507059e+37  ;;  %v14320_v7 = vadd.f32 %v6146_v44, %v6076_v48  ;;  %v14326_v20 = vld [vmem:[#allocation1 + $0x2] ss:$4 sm:$0xff]  ;;  %v14340_v44 = vrot.slane %v14155_v19, 6  ;;  %v14383_v32 = vmul.f32 %v14185_v23, %v14314_v35 }
 0x619   : > { %v5802_v47 = vmul.f32 %v10059_v0, %v5801_v12  ;;  %7628 = vst [vmem:[#allocation2 + $0x30] sm:$0x1] %v14107_v38  ;;  %v9719_v12 = vld [vmem:[%s16348_s23 + $0x38] sm:$0xff]  ;;  %10064 = vpow2.f32 %v9264_v10 }
 0x61a   : > { %7632 = vst [vmem:[#allocation2 + $0x35] sm:$0x1] %v14107_v38  ;;  %7160 = vmatpush.bf16.msrb.mxu2 %v9719_v12  ;;  %v14335_v12 = vmul.f32 %v14266_v31, %v14137_v2 }
 0x61b   : > { %v5803_v1 = vadd.f32 %v10059_v0, %v5802_v47  ;;  %16352 = vst [vmem:[#allocation82_spill] sm:$0xff] %v14278_v45  ;;  %v6147_v47 = vmul.f32 %v14260_v14, %v14092_v22  ;;  %v15961_v22 = vrot.slane %v14137_v2, 4  ;;  %v9715_v45 = vld [vmem:[%s16348_s23 + $0x18] sm:$0xff] }
 0x61c   : > { %v10061_v51 = vpop.eup %10060  ;;  %16360 = vst [vmem:[#allocation99_spill] sm:$0xff] %v14314_v35 }
 0x61d   : > { %v5807_v40 = vsel %vm5806_vm4, %v10059_v0, %v5803_v1  ;;  %v5815_v28 = vmul.f32 %v10061_v51, %v14219_v6  ;;  %v10063_v4 = vpop.eup %10062  ;;  %vm5820_vm7 = vweird.f32 %v10061_v51  ;;  %v5826_v1 = vor.u32 1.1754944e-38, %v5825_v3  ;;  %16362 = vst [vmem:[#allocation101_spill] sm:$0xff] %v14320_v7 }
 0x61e   : > { %v5812_v33 = vsel %vm5809_vm5, %v5811_v52, %v5807_v40  ;;  %v14294_v9 = vadd.f32 1.0, %v10063_v4  ;;  %vm14305_vm11 = vmor %vm5819_vm0, %vm5820_vm7  ;;  %v14311_v52 = vld [vmem:[#allocation2 + $0x38] sm:$0x3]  ;;  %v14317_v40 = vrot.slane %v14155_v19, 4  ;;  %7161 = vmatpush.bf16.msrb.mxu2 %v9718_v17  ;;  %v14331_v3 = vadd.f32 %v6147_v47, %v14241_v60  ;;  %16364 = vst [vmem:[#allocation103_spill] sm:$0xff] %v14335_v12 }
 0x61f   : > { %v14269_v54 = vmul.f32 %v5812_v33, %v14134_v15  ;;  %v5816_v0 = vsub.f32 1.0, %v5815_v28  ;;  %16359 = vst [vmem:[#allocation97_spill] sm:$0xff] %v14311_v52  ;;  %v14324_v33 = vld [vmem:[#allocation1 + $0x1] ss:$4 sm:$0xff]  ;;  %v14349_v60 = vmul.f32 %v14282_v34, %v15962_v41  ;;  %v14363_v17 = vmul.f32 %v14298_v56, %v15961_v22  ;;  %v14365_v47 = vld [vmem:[#allocation1 + $0x20] ss:$4 sm:$0xff]  ;;  %v10065_v39 = vpop.eup %10064 }
 0x620   : > { %10066 = vrcp.f32 %v14294_v9  ;;  %16361 = vst [vmem:[#allocation100_spill] sm:$0xff] %v14317_v40  ;;  %v14387_v22 = vmul.f32 %v14158_v50, %v14317_v40  ;;  %v5840_v28 = vand.u32 2147483648, %v14294_v9  ;;  %vm5834_vm2 = vweird.f32 %v14294_v9 }
 0x621   : > { %16350 = vst [vmem:[#allocation81_spill] sm:$0xff] %v14269_v54  ;;  %v5817_v15 = vmul.f32 %v10061_v51, %v5816_v0  ;;  %v14328_v0 = vld [vmem:[#allocation1 + $0x3] ss:$4 sm:$0xff]  ;;  %v14358_v10 = vrot.slane %v14269_v54, 4  ;;  %v14368_v16 = vrot.slane %v14269_v54, 6  ;;  %v5998_v12 = vrot.slane %v14317_v40, 7 }
 0x622   : > { %5884 = vst [vmem:[#allocation2 + $0x40] sm:$0xff] %v14269_v54  ;;  %7162 = vmatpush.bf16.msrb.mxu2 %v9717_v62  ;;  %v14395_v62 = vmul.f32 %v14189_v49, %v14340_v44  ;;  %v5841_v13 = vor.u32 1.1754944e-38, %v5840_v28 }
 0x623   : > { %7629 = vst [vmem:[#allocation2 + $0x40] sm:$0x1] %v14107_v38  ;;  %v5818_v55 = vadd.f32 %v10061_v51, %v5817_v15  ;;  %v14355_v15 = vrot.slane %v14269_v54, 2 }
 0x624   : > { %7633 = vst [vmem:[#allocation2 + $0x45] sm:$0x1] %v14107_v38 }
 0x625   : > { %v5822_v6 = vsel %vm14305_vm11, %v10061_v51, %v5818_v55  ;;  %16363 = vst [vmem:[#allocation102_spill] sm:$0xff] %v14331_v3  ;;  %v14344_v51 = vrot.slane %v14298_v56, 1  ;;  %v9266_v55 = vrot.slane %v14155_v19, 9  ;;  %v6004_v56 = vrot.slane %v14090_v21, 7 }
 0x626   : > { %v5827_v48 = vsel %vm14290_vm9, %v5826_v1, %v5822_v6  ;;  %16365 = vst [vmem:[#allocation104_spill] sm:$0xff] %v14340_v44  ;;  %v5995_v1 = vrot.slane %v14314_v35, 7  ;;  %v10067_v41 = vpop.eup %10066  ;;  %v14399_v35 = vmul.f32 %v14147_v25, %v14269_v54  ;;  %7163 = vmatpush.bf16.msrb.mxu2 %v9716_v27 }
 0x627   : > { %6106 = vst.sshfl [vmem:[#allocation1] sm:$0xff pattern:$0x73625140] %v14269_v54  ;;  %v14352_v4 = vmul.f32 %v5827_v48, %v14161_v43  ;;  %v14372_v43 = vmul.f32 %v14147_v25, %v14155_v19  ;;  %v5838_v48 = vand.u32 2147483647, %v14294_v9  ;;  %v5830_v19 = vmul.f32 %v10067_v41, %v14294_v9 }
 0x628   : > { %16366 = vst [vmem:[#allocation105_spill] sm:$0xff] %v14344_v51  ;;  %v5997_v3 = vrot.slane %v5995_v1, 2  ;;  %v14427_v30 = vsel %vm11119_vm10, %v9266_v55, %v5995_v1  ;;  %v6001_v51 = vrot.slane %v14340_v44, 7  ;;  %vm5835_vm12 = vweird.f32 %v10067_v41  ;;  %v9714_v44 = vld [vmem:[%s16348_s23 + $0x10] sm:$0xff] }
 0x629   : > { %16367 = vst [vmem:[#allocation120_spill] sm:$0xff] %v14349_v60  ;;  %v6186_v6 = vrot.slane %v14352_v4, 2  ;;  %v5831_v7 = vsub.f32 1.0, %v5830_v19  ;;  %vm14419_vm1 = vcmp.eq.f32.partialorder %v5838_v48, 8.507059e+37  ;;  %v9272_v19 = vrot.slane %v14352_v4, 9  ;;  %vm5836_vm13 = vmor %vm5834_vm2, %vm5835_vm12 }
 0x62a   : > { %16368 = vst [vmem:[#allocation106_spill] sm:$0xff] %v14352_v4  ;;  %v9267_v48 = vrot.slane %v14269_v54, 9  ;;  %v14437_v28 = vmul.f32 %v14266_v31, %v14352_v4  ;;  %v16380_v55 = vrot.slane %v14352_v4, 4  ;;  %v14446_v40 = vsel %vm11119_vm10, %v5997_v3, %v5998_v12  ;;  %7164 = vmatpush.bf16.msrb.mxu2 %v9715_v45  ;;  %v14483_v45 = vld [vmem:[#allocation2 + $0x78] sm:$0x3] }
 0x62b   : > { %16369 = vst [vmem:[#allocation107_spill] sm:$0xff] %v14355_v15  ;;  %v5832_v36 = vmul.f32 %v10067_v41, %v5831_v7  ;;  %v6008_v7 = vrot.slane %v14355_v15, 7  ;;  %v14455_v31 = vmul.f32 %v14282_v34, %v6186_v6 }
 0x62c   : > { %16370 = vst [vmem:[#allocation108_spill] sm:$0xff] %v14358_v10  ;;  %v14441_v1 = vrot.slane %v16380_v55, 7 }
 0x62d   : > { %16371 = vst [vmem:[#allocation110_spill] sm:$0xff] %v14363_v17  ;;  %v14417_v17 = vrot.slane %v6186_v6, 7  ;;  %v6010_v6 = vrot.slane %v6008_v7, 2 }
 0x62e   : > { %16372 = vst [vmem:[#allocation111_spill] sm:$0xff] %v14365_v47  ;;  %v14391_v47 = vadd.f32 1.0, %v10065_v39  ;;  %v14409_v39 = vmul.f32 %v14158_v50, %v14358_v10  ;;  %7165 = vmatpush.bf16.msrb.mxu2 %v9714_v44 }
 0x62f   : > { %16373 = vst [vmem:[#allocation112_spill] sm:$0xff] %v14368_v16  ;;  %v6280_v54 = vsel %vm11119_vm10, %v9272_v19, %v14417_v17  ;;  %v6011_v19 = vrot.slane %v14358_v10, 7 }
 0x630   : > { %6372 = vst.sshfl [vmem:[#allocation1 + $0x20] sm:$0xff pattern:$0x73625140] %v14311_v52  ;;  %10068 = vrcp.f32 %v14391_v47  ;;  %v14415_v52 = vmul.f32 %v14189_v49, %v14368_v16  ;;  %v5853_v11 = vand.u32 2147483647, %v14391_v47  ;;  %v5855_v3 = vand.u32 2147483648, %v14391_v47 }
 0x631   : > { %5885 = vst [vmem:[#allocation2 + $0x50] sm:$0xff] %v14352_v4  ;;  %v14458_v4 = vld [vmem:[%s16342_s28 + $0x5] ss:$0 sm:$0xff]  ;;  %vm5849_vm14 = vweird.f32 %v14391_v47 }
 0x632   : > { %7625 = vst [vmem:[#allocation2 + $0x50] sm:$0x3f] %v14107_v38  ;;  %v14405_v38 = vmul.f32 %v14185_v23, %v14355_v15  ;;  %vm14478_vm8 = vcmp.eq.f32.partialorder %v5853_v11, 8.507059e+37  ;;  %v5856_v60 = vor.u32 1.1754944e-38, %v5855_v3 }
 0x633   : > { %16374 = vst [vmem:[#allocation121_spill] sm:$0xff] %v14417_v17 }
 0x634   : > { %16377 = vst [vmem:[#allocation96_spill] sm:$0xff] %v14427_v30 }
 0x635   : > { %16379 = vst [vmem:[#allocation124_spill] sm:$0xff] %v14437_v28  ;;  %v6000_v28 = vrot.slane %v5998_v12, 2 }
 0x636   : > { %16381 = vst [vmem:[#allocation125_spill] sm:$0xff] %v14441_v1  ;;  %v10069_v55 = vpop.eup %10068 }
 0x637   : > { %v14433_v27 = vld [vmem:[#allocation1 + $0x20] ss:$4 sm:$0xff]  ;;  %16382 = vst [vmem:[#allocation126_spill] sm:$0xff] %v14446_v40  ;;  %v5845_v15 = vmul.f32 %v10069_v55, %v14391_v47  ;;  %vm5850_vm6 = vweird.f32 %v10069_v55  ;;  %v14504_v3 = vsel %vm11119_vm10, %v6000_v28, %v6001_v51 }
 0x638   : > { %16378 = vst [vmem:[#allocation118_spill] sm:$0xff] %v14433_v27  ;;  %v5833_v27 = vadd.f32 %v10067_v41, %v5832_v36  ;;  %v6003_v36 = vrot.slane %v6001_v51, 2  ;;  %v6062_v51 = vmul.f32 %v14164_v5, %v14427_v30  ;;  %vm5851_vm15 = vmor %vm5849_vm14, %vm5850_vm6 }
 0x639   : > { %6378 = vst.sshfl [vmem:[#allocation1 + $0x20] sm:$0xff pattern:$0x73625140] %v14235_v46  ;;  %v14470_v46 = vmul.f32 %v14458_v4, %v6280_v54  ;;  %v5846_v10 = vsub.f32 1.0, %v5845_v15  ;;  %v14485_v54 = vld [vmem:[#allocation1 + $0x1] ss:$4 sm:$0xff] }
 0x63a   : > { %16383 = vst [vmem:[#allocation127_spill] sm:$0xff] %v14455_v31  ;;  %v5837_v12 = vsel %vm5836_vm13, %v10067_v41, %v5833_v27  ;;  %v6014_v31 = vrot.slane %v14368_v16, 7  ;;  %v9713_v27 = vld [vmem:[%s16348_s23 + $0x8] sm:$0xff] }
 0x63b   : > { %16384 = vst [vmem:[#allocation128_spill] sm:$0xff] %v14458_v4  ;;  %v5842_v9 = vsel %vm14419_vm1, %v5841_v13, %v5837_v12  ;;  %v6013_v13 = vrot.slane %v6011_v19, 2  ;;  %v6017_v12 = vrot.slane %v14105_v37, 7  ;;  %v5847_v11 = vmul.f32 %v10069_v55, %v5846_v10  ;;  %v14500_v16 = vld [vmem:[#allocation1 + $0x3] ss:$4 sm:$0xff]  ;;  %7166 = vmatpush.bf16.msrb.mxu2 %v9713_v27 }
 0x63c   : > { %16385 = vst [vmem:[#allocation129_spill] sm:$0xff] %v14470_v46  ;;  %v14476_v34 = vmul.f32 %v5842_v9, %v14229_v24  ;;  %v14488_v24 = vld [vmem:[#allocation1 + $0x2] ss:$4 sm:$0xff]  ;;  %v14508_v46 = vsel %vm11119_vm10, %v6003_v36, %v6004_v56  ;;  %v14512_v10 = vsel %vm11119_vm10, %v9267_v48, %v6008_v7  ;;  %v6016_v37 = vrot.slane %v6014_v31, 2 }
 0x63d   : > { %16392 = vst [vmem:[#allocation134_spill] sm:$0xff] %v14504_v3  ;;  %v5848_v1 = vadd.f32 %v10069_v55, %v5847_v11  ;;  %v9712_v4 = vld [vmem:[%s16348_s23] sm:$0xff]  ;;  %v6063_v56 = vmul.f32 %v14197_v26, %v14446_v40  ;;  %v14528_v48 = vsel %vm11119_vm10, %v6010_v6, %v6011_v19  ;;  %v14536_v11 = vsel %vm11119_vm10, %v6013_v13, %v6014_v31 }
 0x63e   : > { %16386 = vst [vmem:[#allocation130_spill] sm:$0xff] %v14476_v34  ;;  %v14492_v15 = vrot.slane %v14476_v34, 2  ;;  %v14495_v44 = vrot.slane %v14476_v34, 4  ;;  %v14498_v9 = vrot.slane %v14476_v34, 6  ;;  %v9268_v47 = vrot.slane %v14476_v34, 9 }
 0x63f   : > { %5886 = vst [vmem:[#allocation2 + $0x60] sm:$0xff] %v14476_v34  ;;  %v5852_v27 = vsel %vm5851_vm15, %v10069_v55, %v5848_v1  ;;  %v6064_v40 = vmul.f32 %v14194_v63, %v14504_v3  ;;  %v14545_v6 = vsel %vm11119_vm10, %v6016_v37, %v6017_v12  ;;  %7167 = vmatpush.bf16.msrb.mxu2 %v9712_v4 }
 0x640   : > { %16389 = vst [vmem:[#allocation131_spill] sm:$0xff] %v14492_v15  ;;  %v14515_v17 = vld [vmem:[#allocation1 + $0x20] ss:$4 sm:$0xff]  ;;  %v6021_v28 = vrot.slane %v14492_v15, 7  ;;  %v6024_v7 = vrot.slane %v14495_v44, 7  ;;  %v6027_v36 = vrot.slane %v14498_v9, 7  ;;  %v5857_v19 = vsel %vm14478_vm8, %v5856_v60, %v5852_v27 }
 0x641   : > { %16390 = vst [vmem:[#allocation132_spill] sm:$0xff] %v14495_v44  ;;  %v14548_v1 = vmul.f32 %v5857_v19, %v14273_v58  ;;  %v6065_v13 = vmul.f32 %v14222_v29, %v14508_v46  ;;  %v6066_v58 = vmul.f32 %v14164_v5, %v14512_v10  ;;  %v6067_v4 = vmul.f32 %v14197_v26, %v14528_v48 }
 0x642   : > { %16391 = vst [vmem:[#allocation133_spill] sm:$0xff] %v14498_v9  ;;  %v6023_v30 = vrot.slane %v6021_v28, 2  ;;  %v14552_v31 = vsel %vm11119_vm10, %v9268_v47, %v6021_v28  ;;  %v6029_v55 = vrot.slane %v6027_v36, 2  ;;  %v5956_v60 = vmul.f32 %v14147_v25, %v14476_v34 }
 0x643   : > { %16393 = vst [vmem:[#allocation135_spill] sm:$0xff] %v14508_v46  ;;  %v6070_v27 = vmul.f32 %v14164_v5, %v14552_v31  ;;  %v5958_v19 = vmul.f32 %v14158_v50, %v14495_v44  ;;  %v6082_v50 = vadd.f32 %v6066_v58, %v14399_v35  ;;  %v6150_v35 = vmul.f32 %v14202_v42, %v14328_v0  ;;  %v16403_v0 = vld [vmem:[#allocation74_spill] sm:$0xff] }
 0x644   : > { %16394 = vst [vmem:[#allocation115_spill] sm:$0xff] %v14512_v10  ;;  %v14558_v41 = vsel %vm11119_vm10, %v6023_v30, %v6024_v7  ;;  %v14573_v12 = vsel %vm11119_vm10, %v6029_v55, %v6030_v8  ;;  %v6068_v30 = vmul.f32 %v14194_v63, %v14536_v11  ;;  %v5959_v55 = vmul.f32 %v14189_v49, %v14498_v9  ;;  %v16436_v9 = vld [vmem:[#allocation65_spill] sm:$0xff] }
 0x645   : > { %6112 = vst.sshfl [vmem:[#allocation1] sm:$0xff pattern:$0x73625140] %v14476_v34  ;;  %v6071_v25 = vmul.f32 %v14197_v26, %v14558_v41  ;;  %v6073_v26 = vmul.f32 %v14222_v29, %v14573_v12  ;;  %v6083_v49 = vadd.f32 %v6067_v4, %v14405_v38  ;;  %v6153_v38 = vmul.f32 %v14205_v59, %v14488_v24 }
 0x646   : > { %16395 = vst [vmem:[#allocation64_spill] sm:$0xff] %v14515_v17  ;;  %v6026_v17 = vrot.slane %v6024_v7, 2 }
 0x647   : > { %16396 = vst [vmem:[#allocation140_spill] sm:$0xff] %v14528_v48 }
 0x648   : > { %6384 = vst.sshfl [vmem:[#allocation1 + $0x20] sm:$0xff pattern:$0x73625140] %v14483_v45  ;;  %v14562_v37 = vsel %vm11119_vm10, %v6026_v17, %v6027_v36  ;;  %v6069_v17 = vmul.f32 %v14222_v29, %v14545_v6  ;;  %v5957_v36 = vmul.f32 %v14185_v23, %v14492_v15  ;;  %v6079_v23 = vadd.f32 %v6063_v56, %v14383_v32 }
 0x649   : > { %16397 = vst [vmem:[#allocation141_spill] sm:$0xff] %v14536_v11  ;;  %v6072_v8 = vmul.f32 %v14194_v63, %v14562_v37  ;;  %v6078_v11 = vadd.f32 %v6062_v51, %v14372_v43  ;;  %v6080_v63 = vadd.f32 %v6064_v40, %v14387_v22  ;;  %v6084_v43 = vadd.f32 %v6068_v30, %v14409_v39 }
 0x64a   : > { %16398 = vst [vmem:[#allocation142_spill] sm:$0xff] %v14545_v6  ;;  %v6081_v6 = vadd.f32 %v6065_v13, %v14395_v62  ;;  %v6085_v32 = vadd.f32 %v6069_v17, %v14415_v52  ;;  %v6148_v51 = vmul.f32 %v14181_v18, %v14324_v33  ;;  %v6086_v56 = vadd.f32 %v6070_v27, %v5956_v60 }
 0x64b   : > { %16399 = vst [vmem:[#allocation143_spill] sm:$0xff] %v14552_v31  ;;  %v6087_v48 = vadd.f32 %v6071_v25, %v5957_v36  ;;  %v6088_v29 = vadd.f32 %v6072_v8, %v5958_v19  ;;  %v6149_v22 = vmul.f32 %v14205_v59, %v14326_v20  ;;  %v6089_v52 = vadd.f32 %v6073_v26, %v5959_v55  ;;  %v16408_v55 = vld [vmem:[#allocation105_spill] sm:$0xff] }
 0x64c   : > { %16400 = vst [vmem:[#allocation144_spill] sm:$0xff] %v14558_v41  ;;  %v6114_v28 = vld [vmem:[#allocation1 + $0x1] ss:$4 sm:$0xff]  ;;  %v6115_v7 = vld [vmem:[#allocation1 + $0x2] ss:$4 sm:$0xff]  ;;  %v6152_v33 = vmul.f32 %v14181_v18, %v14485_v54  ;;  %v6154_v20 = vmul.f32 %v14202_v42, %v14500_v16  ;;  %v6155_v13 = vmul.f32 %v14260_v14, %v16403_v0  ;;  %v6164_v4 = vadd.f32 %v6148_v51, %v6078_v11 }
 0x64d   : > { %16401 = vst [vmem:[#allocation119_spill] sm:$0xff] %v14562_v37  ;;  %v6116_v47 = vld [vmem:[#allocation1 + $0x3] ss:$4 sm:$0xff]  ;;  %v6156_v40 = vmul.f32 %v14181_v18, %v6114_v28  ;;  %v6157_v62 = vmul.f32 %v14205_v59, %v6115_v7  ;;  %v6165_v60 = vadd.f32 %v6149_v22, %v6079_v23  ;;  %v6189_v30 = vrot.slane %v14548_v1, 2 }
 0x64e   : > { %5887 = vst [vmem:[#allocation2 + $0x70] sm:$0xff] %v14548_v1  ;;  %v6158_v39 = vmul.f32 %v14202_v42, %v6116_v47  ;;  %v15999_v18 = vrot.slane %v14548_v1, 4  ;;  %v15998_v54 = vrot.slane %v14548_v1, 6  ;;  %v6166_v24 = vadd.f32 %v6150_v35, %v6080_v63  ;;  %v16406_v47 = vld [vmem:[#allocation114_spill] sm:$0xff]  ;;  %v16466_v57 = vld [vmem:[#allocation140_spill] sm:$0xff] }
 0x64f   : > { %16402 = vst [vmem:[#allocation138_spill] sm:$0xff] %v14573_v12  ;;  %v14594_v5 = vld [vmem:[#allocation1 + $0x20] ss:$4 sm:$0xff]  ;;  %v6172_v28 = vadd.f32 %v6156_v40, %v6086_v56  ;;  %v6173_v42 = vadd.f32 %v6157_v62, %v6087_v48  ;;  %v6168_v26 = vadd.f32 %v6152_v33, %v6082_v50  ;;  %v6169_v63 = vadd.f32 %v6153_v38, %v6083_v49 }
 0x650   : > { %6361 = vst.sshfl [vmem:[#allocation1] sm:$0xff pattern:$0x73625140] %v14137_v2  ;;  %v6174_v36 = vadd.f32 %v6158_v39, %v6088_v29  ;;  %v16407_v48 = vld [vmem:[#allocation89_spill] sm:$0xff]  ;;  %v6230_v23 = vmul.f32 %v16408_v55, %v15998_v54  ;;  %v16409_v51 = vld [vmem:[#allocation106_spill] sm:$0xff]  ;;  %v14651_v35 = vadd.f32 %v6154_v20, %v6084_v43  ;;  %v16411_v40 = vrot.slane %v14137_v2, 6 }
 0x651   : > { %6558 = vst.sshfl [vmem:[#allocation1 + $0x20] sm:$0xff pattern:$0x73625140] %v14090_v21  ;;  %v6151_v21 = vmul.f32 %v14260_v14, %v14110_v61  ;;  %v16404_v61 = vld [vmem:[#allocation93_spill] sm:$0xff]  ;;  %v6229_v19 = vmul.f32 %v16407_v48, %v15999_v18  ;;  %v6188_v56 = vrot.slane %v16409_v51, 6  ;;  %v16410_v29 = vld [vmem:[#allocation78_spill] sm:$0xff] }
 0x652   : > { %v6159_v58 = vmul.f32 %v14260_v14, %v16404_v61  ;;  %v16405_v14 = vld [vmem:[#allocation76_spill] sm:$0xff]  ;;  %v6227_v22 = vmul.f32 %v16410_v29, %v14548_v1  ;;  %v6218_v62 = vmul.f32 %v16408_v55, %v16411_v40  ;;  %v16412_v43 = vrot.slane %v16409_v51, 4  ;;  %v16413_v61 = vld [vmem:[#allocation79_spill] sm:$0xff]  ;;  %v16417_v40 = vld [vmem:[#allocation101_spill] sm:$0xff] }
 0x653   : > { %v6167_v17 = vadd.f32 %v6151_v21, %v6081_v6  ;;  %v6183_v11 = vrot.slane %v16405_v14, 2  ;;  %v6184_v27 = vrot.slane %v16405_v14, 4  ;;  %v6185_v25 = vrot.slane %v16405_v14, 6 }
 0x654   : > { %v6175_v8 = vadd.f32 %v6159_v58, %v6089_v52  ;;  %v6228_v6 = vmul.f32 %v16406_v47, %v6189_v30  ;;  %v14653_v21 = vadd.f32 %v6155_v13, %v6085_v32  ;;  %v6219_v52 = vmul.f32 %v16410_v29, %v16405_v14  ;;  %v16414_v58 = vld [vmem:[#allocation103_spill] sm:$0xff]  ;;  %v16416_v29 = vld [vmem:[#allocation120_spill] sm:$0xff] }
 0x655   : > { %v6220_v39 = vmul.f32 %v16406_v47, %v6183_v11  ;;  %v6221_v50 = vmul.f32 %v16407_v48, %v6184_v27  ;;  %v6222_v49 = vmul.f32 %v16408_v55, %v6185_v25  ;;  %v14663_v33 = vadd.f32 %v6227_v22, %v6172_v28  ;;  %v16415_v28 = vld [vmem:[#allocation82_spill] sm:$0xff] }
 0x656   : > { %v14668_v32 = vmul.f32 %v16407_v48, %v16412_v43  ;;  %v14670_v38 = vadd.f32 %v6228_v6, %v6173_v42  ;;  %v14672_v20 = vadd.f32 %v6229_v19, %v6174_v36  ;;  %v14674_v0 = vadd.f32 %v6230_v23, %v6175_v8  ;;  %v16418_v48 = vld [vmem:[#allocation110_spill] sm:$0xff] }
 0x657   : > { %v14629_v59 = vld [vmem:[#allocation1 + $0x1] ss:$4 sm:$0xff]  ;;  %v14631_v16 = vld [vmem:[#allocation1 + $0x2] ss:$4 sm:$0xff]  ;;  %v14633_v7 = vld [vmem:[#allocation1 + $0x3] ss:$4 sm:$0xff]  ;;  %v14677_v13 = vmul.f32 %v16408_v55, %v6188_v56  ;;  %v14681_v47 = vadd.f32 %v16414_v58, %v16413_v61  ;;  %v14685_v22 = vadd.f32 %v16416_v29, %v16415_v28  ;;  %v14689_v43 = vadd.f32 %v16418_v48, %v16417_v40 }
 0x658   : > { %6371 = vst.sshfl [vmem:[#allocation1] sm:$0xff pattern:$0x73625140] %v16405_v14  ;;  %v16419_v42 = vld [vmem:[#allocation102_spill] sm:$0xff]  ;;  %v16420_v8 = vrot.slane %v14137_v2, 2  ;;  %v6272_v19 = vrot.slane %v6185_v25, 7  ;;  %v14699_v61 = vadd.f32 %v6219_v52, %v6164_v4  ;;  %v14701_v58 = vadd.f32 %v6220_v39, %v6165_v60 }
 0x659   : > { %v14692_v36 = vadd.f32 %v6218_v62, %v16419_v42  ;;  %v16421_v55 = vld [vmem:[#allocation97_spill] sm:$0xff]  ;;  %v14703_v28 = vadd.f32 %v6221_v50, %v6166_v24  ;;  %v16422_v29 = vrot.slane %v14137_v2, 4  ;;  %v14709_v62 = vadd.f32 %v6222_v49, %v6167_v17  ;;  %v16423_v42 = vld [vmem:[#allocation124_spill] sm:$0xff]  ;;  %v16425_v60 = vld [vmem:[#allocation127_spill] sm:$0xff] }
 0x65a   : > { %v6253_v6 = vrot.slane %v16420_v8, 7  ;;  %v6275_v23 = vrot.slane %v16421_v55, 7  ;;  %v14712_v8 = vadd.f32 %v16423_v42, %v6168_v26  ;;  %v16424_v25 = vrot.slane %v14137_v2, 6 }
 0x65b   : > { %v6256_v40 = vrot.slane %v16422_v29, 7  ;;  %v6274_v18 = vrot.slane %v6272_v19, 2  ;;  %v14719_v52 = vadd.f32 %v16425_v60, %v6169_v63  ;;  %v9270_v24 = vrot.slane %v14137_v2, 9 }
 0x65c   : > { %v6259_v55 = vrot.slane %v16424_v25, 7  ;;  %v9271_v39 = vrot.slane %v16405_v14, 9  ;;  %v6266_v50 = vrot.slane %v6183_v11, 7  ;;  %v6255_v17 = vrot.slane %v6253_v6, 2 }
 0x65d   : > { %v6269_v49 = vrot.slane %v6184_v27, 7  ;;  %v6276_v26 = vsel %vm11119_vm10, %v6274_v18, %v6275_v23  ;;  %v6285_v29 = vrot.slane %v6188_v56, 7  ;;  %v6258_v42 = vrot.slane %v6256_v40, 2  ;;  %v16428_v27 = vld [vmem:[#allocation128_spill] sm:$0xff] }
 0x65e   : > { %v6292_v25 = vrot.slane %v6189_v30, 7  ;;  %v16426_v63 = vrot.slane %v14548_v1, 4  ;;  %v16427_v2 = vrot.slane %v14548_v1, 6  ;;  %v6261_v14 = vrot.slane %v6259_v55, 2 }
 0x65f   : > { %v14697_v54 = vld [vmem:[#allocation1 + $0x1] ss:$4 sm:$0xff]  ;;  %v14707_v48 = vld [vmem:[#allocation1 + $0x2] ss:$4 sm:$0xff]  ;;  %v14716_v4 = vld [vmem:[#allocation1 + $0x3] ss:$4 sm:$0xff]  ;;  %v6254_v44 = vsel %vm11119_vm10, %v9270_v24, %v6253_v6  ;;  %v6257_v15 = vsel %vm11119_vm10, %v6255_v17, %v6256_v40 }
 0x660   : > { %6377 = vst.sshfl [vmem:[#allocation1] sm:$0xff pattern:$0x73625140] %v16409_v51  ;;  %v6295_v60 = vrot.slane %v16426_v63, 7  ;;  %v6298_v46 = vrot.slane %v16427_v2, 7  ;;  %v9273_v11 = vrot.slane %v14548_v1, 9 }
 0x661   : > { %v6301_v51 = vrot.slane %v14483_v45, 7  ;;  %v6322_v10 = vrot.slane %v16428_v27, 2  ;;  %v6268_v37 = vrot.slane %v6266_v50, 2  ;;  %v6294_v18 = vrot.slane %v6292_v25, 2  ;;  %v16432_v24 = vld [vmem:[#allocation125_spill] sm:$0xff] }
 0x662   : > { %v6297_v56 = vrot.slane %v6295_v60, 2  ;;  %v6300_v23 = vrot.slane %v6298_v46, 2  ;;  %v6271_v41 = vrot.slane %v6269_v49, 2  ;;  %v6287_v31 = vrot.slane %v6285_v29, 2  ;;  %v16433_v17 = vld [vmem:[#allocation121_spill] sm:$0xff] }
 0x663   : > { %v6293_v30 = vsel %vm11119_vm10, %v9273_v11, %v6292_v25  ;;  %v6323_v63 = vrot.slane %v16428_v27, 1  ;;  %v6296_v2 = vsel %vm11119_vm10, %v6294_v18, %v6295_v60  ;;  %v6324_v3 = vrot.slane %v6322_v10, 1 }
 0x664   : > { %v6299_v12 = vsel %vm11119_vm10, %v6297_v56, %v6298_v46  ;;  %v6302_v45 = vsel %vm11119_vm10, %v6300_v23, %v6301_v51  ;;  %v6260_v25 = vsel %vm11119_vm10, %v6258_v42, %v6259_v55  ;;  %v6267_v11 = vsel %vm11119_vm10, %v9271_v39, %v6266_v50  ;;  %v16430_v56 = vld [vmem:[#allocation73_spill] sm:$0xff] }
 0x665   : > { %v16431_v51 = vrot.slane %v16430_v56, 7  ;;  %v6270_v40 = vsel %vm11119_vm10, %v6268_v37, %v6269_v49  ;;  %v16434_v55 = vrot.slane %v16433_v17, 2  ;;  %v6336_v50 = vmul.f32 %v6324_v3, %v6276_v26  ;;  %v14768_v42 = vld [vmem:[#allocation1 + $0x20] ss:$4 sm:$0xff] }
 0x666   : > { %16435 = vst [vmem:[#allocation66_spill] sm:$0xff] %v14768_v42  ;;  %v6273_v23 = vsel %vm11119_vm10, %v6271_v41, %v6272_v19  ;;  %v6341_v56 = vmul.f32 %v16428_v27, %v6293_v30  ;;  %v16437_v37 = vrot.slane %v16432_v24, 2  ;;  %v16438_v17 = vld [vmem:[#allocation77_spill] sm:$0xff]  ;;  %v6344_v42 = vmul.f32 %v6324_v3, %v6302_v45  ;;  %v9945_v41 = vld [vmem:[%s16342_s28 + $0x6] ss:$0 sm:$0xff] }
 0x667   : > { %v6379_v60 = vld [vmem:[#allocation1 + $0x1] ss:$4 sm:$0xff]  ;;  %v14752_v18 = vld [vmem:[#allocation1 + $0x2] ss:$4 sm:$0xff]  ;;  %v14754_v46 = vld [vmem:[#allocation1 + $0x3] ss:$4 sm:$0xff]  ;;  %v6263_v6 = vsel %vm11119_vm10, %v6261_v14, %v16431_v51  ;;  %v6283_v39 = vsel %vm11119_vm10, %v16434_v55, %v16432_v24  ;;  %v6342_v14 = vmul.f32 %v6323_v63, %v6296_v2  ;;  %v6343_v51 = vmul.f32 %v6322_v10, %v6299_v12 }
 0x668   : > { %16429 = vst [vmem:[#allocation137_spill] sm:$0xff] %v14754_v46  ;;  %v6286_v49 = vsel %vm11119_vm10, %v16437_v37, %v6285_v29  ;;  %v16439_v26 = vrot.slane %v16438_v17, 7  ;;  %v6329_v55 = vmul.f32 %v16428_v27, %v6254_v44  ;;  %v6330_v19 = vmul.f32 %v6323_v63, %v6257_v15 }
 0x669   : > { %6383 = vst.sshfl [vmem:[#allocation1] sm:$0xff pattern:$0x73625140] %v14548_v1  ;;  %v6331_v30 = vmul.f32 %v6322_v10, %v6260_v25  ;;  %v6332_v2 = vmul.f32 %v6324_v3, %v6263_v6  ;;  %v6333_v12 = vmul.f32 %v16428_v27, %v6267_v11  ;;  %v6335_v34 = vmul.f32 %v6322_v10, %v6273_v23 }
 0x66a   : > { %6568 = vst.sshfl [vmem:[#allocation1 + $0x20] sm:$0xff pattern:$0x73625140] %v16436_v9  ;;  %v6289_v1 = vsel %vm11119_vm10, %v6287_v31, %v16439_v26  ;;  %v6334_v9 = vmul.f32 %v6323_v63, %v6270_v40  ;;  %v6338_v24 = vmul.f32 %v6323_v63, %v6283_v39  ;;  %v6352_v46 = vadd.f32 %v6336_v50, %v14709_v62  ;;  %v16440_v39 = vld [vmem:[#allocation75_spill] sm:$0xff]  ;;  %v16442_v50 = vld [vmem:[#allocation118_spill] sm:$0xff] }
 0x66b   : > { %v6339_v29 = vmul.f32 %v6322_v10, %v6286_v49  ;;  %v14787_v37 = vadd.f32 %v6341_v56, %v14663_v33  ;;  %v14790_v31 = vadd.f32 %v6342_v14, %v14670_v38  ;;  %v14793_v44 = vadd.f32 %v6343_v51, %v14672_v20  ;;  %v9946_v56 = vld [vmem:[%s16342_s28 + $0x8] ss:$0 sm:$0xff] }
 0x66c   : > { %v6340_v15 = vmul.f32 %v6324_v3, %v6289_v1  ;;  %v6360_v45 = vadd.f32 %v6344_v42, %v14674_v0  ;;  %v6408_v25 = vrot.slane %v9945_v41, 2  ;;  %v6409_v27 = vrot.slane %v9945_v41, 1  ;;  %v16443_v42 = vld [vmem:[#allocation64_spill] sm:$0xff] }
 0x66d   : > { %v6241_v63 = vadd.f32 %v14668_v32, %v14651_v35  ;;  %v6242_v10 = vadd.f32 %v14677_v13, %v14653_v21  ;;  %v6345_v33 = vadd.f32 %v6329_v55, %v14681_v47  ;;  %v6346_v62 = vadd.f32 %v6330_v19, %v14685_v22  ;;  %v16441_v13 = vld [vmem:[#allocation129_spill] sm:$0xff] }
 0x66e   : > { %v6347_v3 = vadd.f32 %v6331_v30, %v14689_v43  ;;  %v6348_v20 = vadd.f32 %v6332_v2, %v14692_v36  ;;  %v6349_v0 = vadd.f32 %v6333_v12, %v14699_v61  ;;  %v6410_v40 = vrot.slane %v6408_v25, 1  ;;  %v14831_v30 = vld [vmem:[#allocation2 + $0x88] sm:$0x3] }
 0x66f   : > { %v6350_v21 = vadd.f32 %v6334_v9, %v14701_v58  ;;  %v6351_v32 = vadd.f32 %v6335_v34, %v14703_v28  ;;  %v6353_v47 = vadd.f32 %v16441_v13, %v14712_v8  ;;  %v6354_v22 = vadd.f32 %v6338_v24, %v14719_v52  ;;  %v16444_v52 = vld [vmem:[#allocation111_spill] sm:$0xff]  ;;  %v16448_v13 = vld [vmem:[#allocation133_spill] sm:$0xff] }
 0x670   : > { %v6385_v38 = vld [vmem:[#allocation1 + $0x1] ss:$4 sm:$0xff]  ;;  %v6386_v11 = vld [vmem:[#allocation1 + $0x2] ss:$4 sm:$0xff]  ;;  %v6387_v6 = vld [vmem:[#allocation1 + $0x3] ss:$4 sm:$0xff]  ;;  %v6355_v43 = vadd.f32 %v6339_v29, %v6241_v63  ;;  %v6356_v36 = vadd.f32 %v6340_v15, %v6242_v10  ;;  %v6422_v61 = vmul.f32 %v6410_v40, %v16442_v50  ;;  %v6426_v23 = vmul.f32 %v6410_v40, %v16443_v42 }
 0x671   : > { %6557 = vst.sshfl [vmem:[#allocation1] sm:$0xff pattern:$0x73625140] %v16440_v39  ;;  %v14806_v35 = vld [vmem:[#allocation1 + $0x20] ss:$4 sm:$0xff]  ;;  %v6415_v14 = vmul.f32 %v9945_v41, %v14629_v59  ;;  %v6419_v58 = vmul.f32 %v9945_v41, %v14697_v54  ;;  %v6423_v51 = vmul.f32 %v9945_v41, %v6379_v60  ;;  %v6430_v34 = vmul.f32 %v6410_v40, %v14594_v5 }
 0x672   : > { %6574 = vst.sshfl [vmem:[#allocation1 + $0x20] sm:$0xff pattern:$0x73625140] %v14126_v53  ;;  %v6416_v28 = vmul.f32 %v6409_v27, %v14631_v16  ;;  %v6417_v8 = vmul.f32 %v6408_v25, %v14633_v7  ;;  %v6418_v53 = vmul.f32 %v6410_v40, %v16444_v52  ;;  %v6465_v49 = vmul.f32 %v9946_v56, %v16440_v39  ;;  %v16445_v59 = vld [vmem:[#allocation81_spill] sm:$0xff] }
 0x673   : > { %v6420_v17 = vmul.f32 %v6409_v27, %v14707_v48  ;;  %v6421_v26 = vmul.f32 %v6408_v25, %v14716_v4  ;;  %v14826_v1 = vadd.f32 %v6422_v61, %v6352_v46  ;;  %v6469_v55 = vmul.f32 %v9946_v56, %v16445_v59  ;;  %v16446_v60 = vld [vmem:[#allocation137_spill] sm:$0xff]  ;;  %v16451_v61 = vld [vmem:[#allocation99_spill] sm:$0xff] }
 0x674   : > { %v6424_v54 = vmul.f32 %v6409_v27, %v14752_v18  ;;  %v6425_v5 = vmul.f32 %v6408_v25, %v16446_v60  ;;  %v6427_v19 = vmul.f32 %v9945_v41, %v6385_v38  ;;  %v6442_v16 = vadd.f32 %v6426_v23, %v6356_v36  ;;  %v16450_v36 = vld [vmem:[#allocation132_spill] sm:$0xff] }
 0x675   : > { %v6428_v7 = vmul.f32 %v6409_v27, %v6386_v11  ;;  %v6429_v2 = vmul.f32 %v6408_v25, %v6387_v6  ;;  %v6431_v12 = vadd.f32 %v6415_v14, %v6345_v33  ;;  %v14833_v9 = vadd.f32 %v6430_v34, %v6360_v45 }
 0x676   : > { %v6432_v46 = vadd.f32 %v6416_v28, %v6346_v62  ;;  %v6433_v24 = vadd.f32 %v6417_v8, %v6347_v3  ;;  %v6434_v29 = vadd.f32 %v6418_v53, %v6348_v20  ;;  %v6458_v15 = vrot.slane %v9946_v56, 2  ;;  %v14848_v20 = vld [vmem:[#allocation2 + $0x90] sm:$0xff]  ;;  %v16453_v53 = vld [vmem:[#allocation104_spill] sm:$0xff] }
 0x677   : > { %v6435_v63 = vadd.f32 %v6419_v58, %v6349_v0  ;;  %v6436_v41 = vadd.f32 %v6420_v17, %v6350_v21  ;;  %v6437_v10 = vadd.f32 %v6421_v26, %v6351_v32  ;;  %v6439_v38 = vadd.f32 %v6423_v51, %v6353_v47  ;;  %v16447_v21 = vld [vmem:[#allocation130_spill] sm:$0xff]  ;;  %v16452_v51 = vld [vmem:[#allocation100_spill] sm:$0xff]  ;;  %v16454_v26 = vld [vmem:[#allocation107_spill] sm:$0xff] }
 0x678   : > { %v14835_v48 = vld [vmem:[#allocation1 + $0x1] ss:$4 sm:$0xff]  ;;  %v14837_v4 = vld [vmem:[#allocation1 + $0x2] ss:$4 sm:$0xff]  ;;  %v14839_v18 = vld [vmem:[#allocation1 + $0x3] ss:$4 sm:$0xff]  ;;  %v6440_v45 = vadd.f32 %v6424_v54, %v6354_v22  ;;  %v6441_v27 = vadd.f32 %v6425_v5, %v6355_v43  ;;  %v6443_v62 = vadd.f32 %v6427_v19, %v14787_v37  ;;  %v6444_v6 = vadd.f32 %v6428_v7, %v14790_v31 }
 0x679   : > { %6567 = vst.sshfl [vmem:[#allocation1] sm:$0xff pattern:$0x73625140] %v16445_v59  ;;  %v14842_v25 = vld [vmem:[#allocation1 + $0x20] ss:$4 sm:$0xff]  ;;  %v6459_v33 = vrot.slane %v9946_v56, 1  ;;  %v6445_v3 = vadd.f32 %v6429_v2, %v14793_v44  ;;  %v6473_v32 = vmul.f32 %v9946_v56, %v16447_v21  ;;  %v6475_v37 = vmul.f32 %v6458_v15, %v16450_v36 }
 0x67a   : > { %v6460_v11 = vrot.slane %v6458_v15, 1  ;;  %6580 = vst.sshfl [vmem:[#allocation1 + $0x20] sm:$0xff pattern:$0x73625140] %v14831_v30  ;;  %v6448_v0 = vrot.slane %v14848_v20, 2  ;;  %v6449_v40 = vrot.slane %v14848_v20, 4  ;;  %v6477_v31 = vmul.f32 %v14848_v20, %v9946_v56 }
 0x67b   : > { %v6450_v39 = vrot.slane %v14848_v20, 6  ;;  %v16449_v22 = vld [vmem:[#allocation131_spill] sm:$0xff]  ;;  %v14858_v50 = vadd.f32 %v6465_v49, %v6431_v12  ;;  %v14861_v44 = vld [vmem:[%s16342_s28 + $0x9] ss:$0 sm:$0xff]  ;;  %v6466_v42 = vmul.f32 %v6459_v33, %v16451_v61  ;;  %v14864_v23 = vadd.f32 %v6469_v55, %v6435_v63 }
 0x67c   : > { %v6476_v47 = vmul.f32 %v6460_v11, %v16448_v13  ;;  %v6474_v43 = vmul.f32 %v6459_v33, %v16449_v22  ;;  %v6489_v14 = vadd.f32 %v6473_v32, %v6439_v38  ;;  %v9277_v58 = vrot.slane %v14848_v20, 9  ;;  %v16455_v49 = vld [vmem:[#allocation112_spill] sm:$0xff] }
 0x67d   : > { %v6467_v34 = vmul.f32 %v6458_v15, %v16452_v51  ;;  %v6491_v8 = vadd.f32 %v6475_v37, %v6441_v27  ;;  %v6468_v17 = vmul.f32 %v6460_v11, %v16453_v53  ;;  %v6470_v56 = vmul.f32 %v6459_v33, %v16454_v26  ;;  %v16461_v53 = vld [vmem:[#allocation144_spill] sm:$0xff]  ;;  %v16463_v26 = vld [vmem:[#allocation126_spill] sm:$0xff] }
 0x67e   : > { %v6490_v28 = vadd.f32 %v6474_v43, %v6440_v45  ;;  %v6492_v52 = vadd.f32 %v6476_v47, %v6442_v16  ;;  %v6472_v59 = vmul.f32 %v6460_v11, %v16455_v49  ;;  %v6500_v54 = vrot.slane %v6448_v0, 7  ;;  %v16456_v16 = vld [vmem:[#allocation108_spill] sm:$0xff]  ;;  %v16464_v49 = vld [vmem:[#allocation115_spill] sm:$0xff] }
 0x67f   : > { %v6503_v55 = vrot.slane %v6449_v40, 7  ;;  %v6506_v19 = vrot.slane %v6450_v39, 7  ;;  %v6509_v7 = vrot.slane %v14831_v30, 7  ;;  %v6518_v2 = vrot.slane %v14861_v44, 2 }
 0x680   : > { %v14871_v60 = vld [vmem:[#allocation1 + $0x1] ss:$4 sm:$0xff]  ;;  %v14873_v5 = vld [vmem:[#allocation1 + $0x2] ss:$4 sm:$0xff]  ;;  %v14877_v12 = vld [vmem:[#allocation1 + $0x3] ss:$4 sm:$0xff]  ;;  %v6471_v63 = vmul.f32 %v6458_v15, %v16456_v16  ;;  %v6478_v38 = vmul.f32 %v6459_v33, %v6448_v0  ;;  %v6479_v45 = vmul.f32 %v6458_v15, %v6449_v40  ;;  %v6480_v27 = vmul.f32 %v6460_v11, %v6450_v39 }
 0x681   : > { %6573 = vst.sshfl [vmem:[#allocation1] sm:$0xff pattern:$0x73625140] %v16447_v21  ;;  %v6482_v32 = vadd.f32 %v6466_v42, %v6432_v46  ;;  %v6483_v13 = vadd.f32 %v6467_v34, %v6433_v24  ;;  %v6486_v47 = vadd.f32 %v6470_v56, %v6436_v41  ;;  %v6508_v22 = vrot.slane %v6506_v19, 2  ;;  %v16458_v41 = vld [vmem:[#allocation134_spill] sm:$0xff]  ;;  %v16460_v42 = vld [vmem:[#allocation143_spill] sm:$0xff] }
 0x682   : > { %v6484_v43 = vadd.f32 %v6468_v17, %v6434_v29  ;;  %v6487_v36 = vadd.f32 %v6471_v63, %v6437_v10  ;;  %v6488_v37 = vadd.f32 %v6472_v59, %v14826_v1  ;;  %v6502_v30 = vrot.slane %v6500_v54, 2  ;;  %v16457_v29 = vld [vmem:[#allocation96_spill] sm:$0xff]  ;;  %v16459_v39 = vld [vmem:[#allocation138_spill] sm:$0xff]  ;;  %v16465_v63 = vld [vmem:[#allocation135_spill] sm:$0xff] }
 0x683   : > { %v6505_v61 = vrot.slane %v6503_v55, 2  ;;  %v6510_v51 = vsel %vm11119_vm10, %v6508_v22, %v6509_v7  ;;  %v6519_v33 = vrot.slane %v14861_v44, 1  ;;  %v6520_v15 = vrot.slane %v6518_v2, 1 }
 0x684   : > { %v6493_v11 = vadd.f32 %v6477_v31, %v6443_v62  ;;  %v6494_v0 = vadd.f32 %v6478_v38, %v6444_v6  ;;  %v6495_v40 = vadd.f32 %v6479_v45, %v6445_v3  ;;  %v6496_v46 = vadd.f32 %v6480_v27, %v14833_v9  ;;  %v16462_v62 = vld [vmem:[#allocation119_spill] sm:$0xff]  ;;  %v9948_v31 = vld [vmem:[%s16342_s28 + $0xa] ss:$0 sm:$0xff] }
 0x685   : > { %v6501_v24 = vsel %vm11119_vm10, %v9277_v58, %v6500_v54  ;;  %v6525_v1 = vmul.f32 %v14861_v44, %v16457_v29  ;;  %v6527_v10 = vmul.f32 %v6518_v2, %v16458_v41  ;;  %v6536_v21 = vmul.f32 %v6520_v15, %v16459_v39  ;;  %v16469_v29 = vld [vmem:[#allocation141_spill] sm:$0xff] }
 0x686   : > { %v6533_v34 = vmul.f32 %v14861_v44, %v16460_v42  ;;  %v6534_v17 = vmul.f32 %v6519_v33, %v16461_v53  ;;  %v6535_v6 = vmul.f32 %v6518_v2, %v16462_v62  ;;  %v6540_v3 = vmul.f32 %v6520_v15, %v6510_v51 }
 0x687   : > { %v6504_v9 = vsel %vm11119_vm10, %v6502_v30, %v6503_v55  ;;  %v6507_v58 = vsel %vm11119_vm10, %v6505_v61, %v6506_v19  ;;  %v6526_v56 = vmul.f32 %v6519_v33, %v16463_v26  ;;  %v6529_v59 = vmul.f32 %v14861_v44, %v16464_v49  ;;  %v16467_v19 = vld [vmem:[#allocation142_spill] sm:$0xff] }
 0x688   : > { %v6575_v54 = vld [vmem:[#allocation1 + $0x1] ss:$4 sm:$0xff]  ;;  %v6576_v7 = vld [vmem:[#allocation1 + $0x2] ss:$4 sm:$0xff]  ;;  %v6577_v16 = vld [vmem:[#allocation1 + $0x3] ss:$4 sm:$0xff]  ;;  %v6528_v38 = vmul.f32 %v6520_v15, %v16465_v63  ;;  %v14905_v45 = vadd.f32 %v6533_v34, %v6489_v14  ;;  %v14907_v27 = vadd.f32 %v6534_v17, %v6490_v28  ;;  %v14909_v22 = vadd.f32 %v6535_v6, %v6491_v8 }
 0x689   : > { %6579 = vst.sshfl [vmem:[#allocation1] sm:$0xff pattern:$0x73625140] %v14848_v20  ;;  %v6530_v55 = vmul.f32 %v6519_v33, %v16466_v57  ;;  %v6532_v30 = vmul.f32 %v6520_v15, %v16467_v19  ;;  %v6537_v61 = vmul.f32 %v14861_v44, %v6501_v24  ;;  %v6552_v51 = vadd.f32 %v6536_v21, %v6492_v52  ;;  %v14921_v15 = vld [vmem:[%s16468_s8] ss:$0 sm:$0xff]  ;;  %s16551_s8 = sld [smem:[#allocation37_spill]] }
 0x68a   : > { %v6531_v41 = vmul.f32 %v6518_v2, %v16469_v29  ;;  %v6538_v39 = vmul.f32 %v6519_v33, %v6504_v9  ;;  %v14916_v42 = vadd.f32 %v6540_v3, %v6496_v46  ;;  %v6604_v14 = vrot.slane %v9948_v31, 2  ;;  %v16470_v46 = vld [vmem:[#allocation66_spill] sm:$0xff] }
 0x68b   : > { %v6539_v28 = vmul.f32 %v6518_v2, %v6507_v58  ;;  %v6541_v8 = vadd.f32 %v6525_v1, %v14858_v50  ;;  %v6542_v34 = vadd.f32 %v6526_v56, %v6482_v32  ;;  %v6605_v53 = vrot.slane %v9948_v31, 1 }
 0x68c   : > { %v6543_v20 = vadd.f32 %v6527_v10, %v6483_v13  ;;  %v6544_v17 = vadd.f32 %v6528_v38, %v6484_v43  ;;  %v6545_v62 = vadd.f32 %v6529_v59, %v14864_v23  ;;  %v6606_v6 = vrot.slane %v6604_v14, 1  ;;  %v9950_v38 = vld [vmem:[%s16471_s7] ss:$0 sm:$0xff]  ;;  %s16560_s7 = sld [smem:[#allocation35_spill]] }
 0x68d   : > { %v6546_v44 = vadd.f32 %v6530_v55, %v6486_v47  ;;  %v6547_v52 = vadd.f32 %v6531_v41, %v6487_v36  ;;  %v6548_v24 = vadd.f32 %v6532_v30, %v6488_v37  ;;  %v6553_v21 = vadd.f32 %v6537_v61, %v6493_v11  ;;  %v6584_v11 = vld [vmem:[#allocation1 + $0x20] ss:$4 sm:$0xff] }
 0x68e   : > { %v6611_v33 = vmul.f32 %v9948_v31, %v14835_v48  ;;  %v6614_v3 = vmul.f32 %v6606_v6, %v16470_v46  ;;  %v6618_v2 = vmul.f32 %v6606_v6, %v14806_v35  ;;  %v6622_v50 = vmul.f32 %v6606_v6, %v14842_v25 }
 0x68f   : > { %v6554_v32 = vadd.f32 %v6538_v39, %v6494_v0  ;;  %v6555_v13 = vadd.f32 %v6539_v28, %v6495_v40  ;;  %v6612_v43 = vmul.f32 %v6605_v53, %v14837_v4  ;;  %v6613_v23 = vmul.f32 %v6604_v14, %v14839_v18 }
 0x690   : > { %v6615_v1 = vmul.f32 %v9948_v31, %v14871_v60  ;;  %v6619_v47 = vmul.f32 %v9948_v31, %v6575_v54  ;;  %v6630_v36 = vadd.f32 %v6614_v3, %v6544_v17  ;;  %v14931_v37 = vrot.slane %v14921_v15, 2  ;;  %v6581_v48 = vld [vmem:[#allocation1 + $0x1] ss:$4 sm:$0xff]  ;;  %v6582_v4 = vld [vmem:[#allocation1 + $0x2] ss:$4 sm:$0xff] }
 0x691   : > { %v6616_v10 = vmul.f32 %v6605_v53, %v14873_v5  ;;  %v6617_v35 = vmul.f32 %v6604_v14, %v14877_v12  ;;  %v6634_v25 = vadd.f32 %v6618_v2, %v6548_v24  ;;  %v14936_v0 = vrot.slane %v14921_v15, 4  ;;  %v6583_v18 = vld [vmem:[#allocation1 + $0x3] ss:$4 sm:$0xff] }
 0x692   : > { %v6620_v40 = vmul.f32 %v6605_v53, %v6576_v7  ;;  %v6621_v60 = vmul.f32 %v6604_v14, %v6577_v16  ;;  %v6627_v9 = vadd.f32 %v6611_v33, %v6541_v8  ;;  %v6638_v58 = vadd.f32 %v6622_v50, %v6552_v51 }
 0x693   : > { %v6628_v26 = vadd.f32 %v6612_v43, %v6542_v34  ;;  %v6629_v56 = vadd.f32 %v6613_v23, %v6543_v20  ;;  %v14939_v49 = vrot.slane %v14921_v15, 6  ;;  %v6649_v5 = vrot.slane %v14921_v15, 1 }
 0x694   : > { %v6623_v59 = vmul.f32 %v9948_v31, %v6581_v48  ;;  %v6626_v12 = vmul.f32 %v6606_v6, %v6584_v11  ;;  %v6631_v54 = vadd.f32 %v6615_v1, %v6545_v62  ;;  %v6650_v63 = vrot.slane %v14931_v37, 1 }
 0x695   : > { %v6624_v57 = vmul.f32 %v6605_v53, %v6582_v4  ;;  %v6625_v55 = vmul.f32 %v6604_v14, %v6583_v18  ;;  %v6632_v19 = vadd.f32 %v6616_v10, %v6546_v44  ;;  %v6651_v7 = vrot.slane %v14936_v0, 1 }
 0x696   : > { %v6633_v16 = vadd.f32 %v6617_v35, %v6547_v52  ;;  %v6635_v30 = vadd.f32 %v6619_v47, %v14905_v45  ;;  %v6652_v61 = vrot.slane %v14939_v49, 1  ;;  %v6661_v51 = vmul.f32 %v14921_v15, %v6627_v9 }
 0x697   : > { %v6636_v29 = vadd.f32 %v6620_v40, %v14907_v27  ;;  %v6637_v31 = vadd.f32 %v6621_v60, %v14909_v22  ;;  %v6662_v41 = vmul.f32 %v6649_v5, %v6628_v26  ;;  %v6663_v39 = vmul.f32 %v14931_v37, %v6629_v56 }
 0x698   : > { %v6639_v28 = vadd.f32 %v6623_v59, %v6553_v21  ;;  %v6664_v8 = vmul.f32 %v6650_v63, %v6630_v36  ;;  %v6665_v14 = vmul.f32 %v14936_v0, %v6631_v54  ;;  %v6680_v34 = vrot.slane %v9950_v38, 2 }
 0x699   : > { %v6666_v53 = vmul.f32 %v6651_v7, %v6632_v19  ;;  %v6681_v20 = vrot.slane %v9950_v38, 4  ;;  %v6682_v17 = vrot.slane %v9950_v38, 6  ;;  %v6683_v45 = vrot.slane %v9950_v38, 1 }
 0x69a   : > { %v6667_v62 = vmul.f32 %v14939_v49, %v6633_v16  ;;  %v6668_v6 = vmul.f32 %v6652_v61, %v6634_v25  ;;  %v6684_v44 = vrot.slane %v6680_v34, 1  ;;  %v14953_v52 = vadd.f32 %v9950_v38, %v6661_v51 }
 0x69b   : > { %v6685_v27 = vrot.slane %v6681_v20, 1  ;;  %v6686_v22 = vrot.slane %v6682_v17, 1  ;;  %v14955_v24 = vadd.f32 %v6683_v45, %v6662_v41  ;;  %v14957_v33 = vadd.f32 %v6680_v34, %v6663_v39 }
 0x69c   : > { %v6640_v21 = vadd.f32 %v6624_v57, %v6554_v32  ;;  %v6669_v46 = vmul.f32 %v14921_v15, %v6635_v30  ;;  %v14960_v3 = vadd.f32 %v6684_v44, %v6664_v8  ;;  %v14962_v2 = vadd.f32 %v6681_v20, %v6665_v14 }
 0x69d   : > { %v6641_v50 = vadd.f32 %v6625_v55, %v6555_v13  ;;  %v6642_v43 = vadd.f32 %v6626_v12, %v14916_v42  ;;  %v6670_v23 = vmul.f32 %v6649_v5, %v6636_v29  ;;  %v14965_v1 = vadd.f32 %v6685_v27, %v6666_v53 }
 0x69e   : > { %v6671_v47 = vmul.f32 %v14931_v37, %v6637_v31  ;;  %v14968_v36 = vadd.f32 %v6682_v17, %v6667_v62  ;;  %v9280_v48 = vmul.f32 -1.442695, %v14953_v52  ;;  %v9281_v32 = vmul.f32 -1.442695, %v14955_v24 }
 0x69f   : > { %v6672_v11 = vmul.f32 %v6650_v63, %v6638_v58  ;;  %v14972_v15 = vadd.f32 %v6686_v22, %v6668_v6  ;;  %v9282_v10 = vmul.f32 -1.442695, %v14957_v33  ;;  %v9283_v13 = vmul.f32 -1.442695, %v14960_v3 }
 0x6a0   : > { %v6673_v42 = vmul.f32 %v14936_v0, %v6639_v28  ;;  %v14977_v35 = vadd.f32 %v9950_v38, %v6669_v46  ;;  %10070 = vpow2.f32 %v9280_v48  ;;  %v9284_v37 = vmul.f32 -1.442695, %v14962_v2 }
 0x6a1   : > { %v6674_v25 = vmul.f32 %v6651_v7, %v6640_v21  ;;  %v14980_v4 = vadd.f32 %v6683_v45, %v6670_v23  ;;  %10072 = vpow2.f32 %v9281_v32  ;;  %v9285_v18 = vmul.f32 -1.442695, %v14965_v1 }
 0x6a2   : > { %v6675_v40 = vmul.f32 %v14939_v49, %v6641_v50  ;;  %v14984_v60 = vadd.f32 %v6680_v34, %v6671_v47  ;;  %10074 = vpow2.f32 %v9282_v10  ;;  %v9286_v9 = vmul.f32 -1.442695, %v14968_v36 }
 0x6a3   : > { %v6676_v58 = vmul.f32 %v6652_v61, %v6642_v43  ;;  %v14987_v0 = vadd.f32 %v6684_v44, %v6672_v11  ;;  %10076 = vpow2.f32 %v9283_v13  ;;  %v9287_v26 = vmul.f32 -1.442695, %v14972_v15 }
 0x6a4   : > { %v14990_v56 = vadd.f32 %v6681_v20, %v6673_v42  ;;  %10078 = vpow2.f32 %v9284_v37  ;;  %v9288_v5 = vmul.f32 -1.442695, %v14977_v35  ;;  %v14993_v59 = vadd.f32 %v6685_v27, %v6674_v25 }
 0x6a5   : > { %10080 = vpow2.f32 %v9285_v18  ;;  %v9289_v49 = vmul.f32 -1.442695, %v14980_v4  ;;  %v14996_v54 = vadd.f32 %v6682_v17, %v6675_v40  ;;  %v9290_v63 = vmul.f32 -1.442695, %v14984_v60 }
 0x6a6   : > { %v10071_v12 = vpop.eup %10070  ;;  %10082 = vpow2.f32 %v9286_v9  ;;  %v14999_v57 = vadd.f32 %v6686_v22, %v6676_v58  ;;  %v9291_v55 = vmul.f32 -1.442695, %v14987_v0  ;;  %v9292_v7 = vmul.f32 -1.442695, %v14990_v56 }
 0x6a7   : > { %v10073_v38 = vpop.eup %10072  ;;  %10084 = vpow2.f32 %v9287_v26  ;;  %v9293_v30 = vmul.f32 -1.442695, %v14993_v59  ;;  %v9294_v51 = vmul.f32 -1.442695, %v14996_v54  ;;  %v15006_v39 = vadd.f32 1.0, %v10071_v12 }
 0x6a8   : > { %16472 = vst [vmem:[#allocation95_spill] sm:$0xff] %v14999_v57  ;;  %v10075_v19 = vpop.eup %10074  ;;  %10086 = vpow2.f32 %v9288_v5  ;;  %v9295_v31 = vmul.f32 -1.442695, %v14999_v57  ;;  %v15008_v8 = vadd.f32 1.0, %v10073_v38 }
 0x6a9   : > { %v10077_v16 = vpop.eup %10076  ;;  %10088 = vpow2.f32 %v9289_v49  ;;  %v15010_v34 = vadd.f32 1.0, %v10075_v19  ;;  %v6786_v44 = vand.u32 2147483648, %v15006_v39  ;;  %v6784_v47 = vand.u32 2147483647, %v15006_v39 }
 0x6aa   : > { %v10079_v61 = vpop.eup %10078  ;;  %10090 = vpow2.f32 %v9290_v63  ;;  %v15012_v20 = vadd.f32 1.0, %v10077_v16  ;;  %v6801_v21 = vand.u32 2147483648, %v15008_v8  ;;  %v6799_v32 = vand.u32 2147483647, %v15008_v8 }
 0x6ab   : > { %v10081_v29 = vpop.eup %10080  ;;  %10092 = vpow2.f32 %v9291_v55  ;;  %v15014_v45 = vadd.f32 1.0, %v10079_v61  ;;  %v6816_v43 = vand.u32 2147483648, %v15010_v34  ;;  %v15029_v48 = vor.u32 1.1754944e-38, %v6786_v44 }
 0x6ac   : > { %v10083_v41 = vpop.eup %10082  ;;  %10094 = vpow2.f32 %v9292_v7  ;;  %v15017_v6 = vadd.f32 1.0, %v10081_v29  ;;  %v15037_v13 = vor.u32 1.1754944e-38, %v6801_v21  ;;  %v6831_v42 = vand.u32 2147483648, %v15012_v20 }
 0x6ad   : > { %v10085_v28 = vpop.eup %10084  ;;  %10096 = vpow2.f32 %v9293_v30  ;;  %v15021_v22 = vadd.f32 1.0, %v10083_v41  ;;  %v6814_v9 = vand.u32 2147483647, %v15010_v34  ;;  %vm6780_vm10 = vweird.f32 %v15006_v39 }
 0x6ae   : > { %v10087_v14 = vpop.eup %10086  ;;  %10098 = vpow2.f32 %v9294_v51  ;;  %v15035_v10 = vadd.f32 1.0, %v10085_v28  ;;  %v15057_v49 = vor.u32 1.1754944e-38, %v6816_v43  ;;  %v6829_v12 = vand.u32 2147483647, %v15012_v20 }
 0x6af   : > { %v10089_v53 = vpop.eup %10088  ;;  %10100 = vpow2.f32 %v9295_v31  ;;  %v15043_v25 = vadd.f32 1.0, %v10087_v14  ;;  %vm6795_vm4 = vweird.f32 %v15008_v8  ;;  %vm6810_vm5 = vweird.f32 %v15010_v34 }
 0x6b0   : > { %v10091_v17 = vpop.eup %10090  ;;  %10102 = vrcp.f32 %v15006_v39  ;;  %v15045_v18 = vadd.f32 1.0, %v10089_v53  ;;  %v15074_v51 = vor.u32 1.1754944e-38, %v6831_v42  ;;  %v6844_v29 = vand.u32 2147483647, %v15014_v45 }
 0x6b1   : > { %v10093_v62 = vpop.eup %10092  ;;  %10104 = vrcp.f32 %v15008_v8  ;;  %v15052_v26 = vadd.f32 1.0, %v10091_v17  ;;  %vm6825_vm0 = vweird.f32 %v15012_v20  ;;  %v6846_v53 = vand.u32 2147483648, %v15014_v45 }
 0x6b2   : > { %v10095_v27 = vpop.eup %10094  ;;  %10106 = vrcp.f32 %v15010_v34  ;;  %v15062_v38 = vadd.f32 1.0, %v10093_v62  ;;  %vm6840_vm7 = vweird.f32 %v15014_v45  ;;  %v6859_v42 = vand.u32 2147483647, %v15017_v6 }
 0x6b3   : > { %v10097_v46 = vpop.eup %10096  ;;  %10108 = vrcp.f32 %v15012_v20  ;;  %v15064_v55 = vadd.f32 1.0, %v10095_v27  ;;  %vm15099_vm2 = vcmp.eq.f32.partialorder %v6784_v47, 8.507059e+37  ;;  %vm15108_vm12 = vcmp.eq.f32.partialorder %v6799_v32, 8.507059e+37 }
 0x6b4   : > { %v10099_v50 = vpop.eup %10098  ;;  %10110 = vrcp.f32 %v15014_v45  ;;  %v15079_v41 = vadd.f32 1.0, %v10097_v46  ;;  %vm15115_vm14 = vcmp.eq.f32.partialorder %v6814_v9, 8.507059e+37  ;;  %vm15119_vm8 = vcmp.eq.f32.partialorder %v6829_v12, 8.507059e+37 }
 0x6b5   : > { %v10101_v23 = vpop.eup %10100  ;;  %10112 = vrcp.f32 %v15017_v6  ;;  %v15087_v62 = vadd.f32 1.0, %v10099_v50  ;;  %vm15134_vm3 = vcmp.eq.f32.partialorder %v6844_v29, 8.507059e+37  ;;  %v6874_v29 = vand.u32 2147483647, %v15021_v22 }
 0x6b6   : > { %v15033_v11 = vpop.eup %10102  ;;  %10114 = vrcp.f32 %v15021_v22 }
 0x6b7   : > { %v15041_v37 = vpop.eup %10104  ;;  %v6776_v40 = vmul.f32 %v15033_v11, %v15006_v39  ;;  %vm6781_vm11 = vweird.f32 %v15033_v11  ;;  %10116 = vrcp.f32 %v15035_v10 }
 0x6b8   : > { %v15050_v58 = vpop.eup %10106  ;;  %v6791_v5 = vmul.f32 %v15041_v37, %v15008_v8  ;;  %vm6796_vm1 = vweird.f32 %v15041_v37  ;;  %vm15128_vm6 = vmor %vm6780_vm10, %vm6781_vm11  ;;  %10118 = vrcp.f32 %v15043_v25 }
 0x6b9   : > { %v15060_v63 = vpop.eup %10108  ;;  %v6777_v19 = vsub.f32 1.0, %v6776_v40  ;;  %v6806_v7 = vmul.f32 %v15050_v58, %v15010_v34  ;;  %vm6811_vm13 = vweird.f32 %v15050_v58  ;;  %vm15144_vm10 = vmor %vm6795_vm4, %vm6796_vm1  ;;  %vm15175_vm1 = vcmp.eq.f32.partialorder %v6859_v42, 8.507059e+37 }
 0x6ba   : > { %v15069_v16 = vpop.eup %10110  ;;  %v6792_v30 = vsub.f32 1.0, %v6791_v5  ;;  %v6821_v61 = vmul.f32 %v15060_v63, %v15012_v20  ;;  %vm6826_vm15 = vweird.f32 %v15060_v63  ;;  %vm15156_vm9 = vmor %vm6810_vm5, %vm6811_vm13  ;;  %v6876_v42 = vand.u32 2147483648, %v15021_v22 }
 0x6bb   : > { %v15077_v31 = vpop.eup %10112  ;;  %v6807_v28 = vsub.f32 1.0, %v6806_v7  ;;  %v6836_v14 = vmul.f32 %v15069_v16, %v15014_v45  ;;  %v6778_v44 = vmul.f32 %v15033_v11, %v6777_v19  ;;  %vm6841_vm11 = vweird.f32 %v15069_v16  ;;  %vm15171_vm5 = vmor %vm6825_vm0, %vm6826_vm15 }
 0x6bc   : > { %v15085_v17 = vpop.eup %10114  ;;  %v6822_v27 = vsub.f32 1.0, %v6821_v61  ;;  %v6851_v21 = vmul.f32 %v15077_v31, %v15017_v6  ;;  %v6793_v46 = vmul.f32 %v15041_v37, %v6792_v30  ;;  %v15105_v30 = vadd.f32 1.0, %v10101_v23 }
 0x6bd   : > { %v6837_v43 = vsub.f32 1.0, %v6836_v14  ;;  %v6866_v40 = vmul.f32 %v15085_v17, %v15021_v22  ;;  %v6808_v5 = vmul.f32 %v15050_v58, %v6807_v28  ;;  %v6779_v47 = vadd.f32 %v15033_v11, %v6778_v44 }
 0x6be   : > { %v6823_v19 = vmul.f32 %v15060_v63, %v6822_v27  ;;  %v6852_v7 = vsub.f32 1.0, %v6851_v21  ;;  %v6847_v27 = vor.u32 1.1754944e-38, %v6846_v53  ;;  %v6794_v9 = vadd.f32 %v15041_v37, %v6793_v46 }
 0x6bf   : > { %v6838_v14 = vmul.f32 %v15069_v16, %v6837_v43  ;;  %v6867_v57 = vsub.f32 1.0, %v6866_v40  ;;  %v6861_v53 = vand.u32 2147483648, %v15017_v6  ;;  %v6809_v46 = vadd.f32 %v15050_v58, %v6808_v5 }
 0x6c0   : > { %v6853_v32 = vmul.f32 %v15077_v31, %v6852_v7  ;;  %v6824_v43 = vadd.f32 %v15060_v63, %v6823_v19  ;;  %vm6856_vm4 = vweird.f32 %v15077_v31  ;;  %v6783_v5 = vsel %vm15128_vm6, %v15033_v11, %v6779_v47  ;;  %vm15186_vm6 = vmor %vm6840_vm7, %vm6841_vm11 }
 0x6c1   : > { %v6868_v44 = vmul.f32 %v15085_v17, %v6867_v57  ;;  %v6839_v8 = vadd.f32 %v15069_v16, %v6838_v14  ;;  %vm6871_vm13 = vweird.f32 %v15085_v17  ;;  %v6798_v11 = vsel %vm15144_vm10, %v15041_v37, %v6794_v9 }
 0x6c2   : > { %v6854_v40 = vadd.f32 %v15077_v31, %v6853_v32  ;;  %vm6870_vm0 = vweird.f32 %v15021_v22  ;;  %v6813_v14 = vsel %vm15156_vm9, %v15050_v58, %v6809_v46  ;;  %v6828_v37 = vsel %vm15171_vm5, %v15060_v63, %v6824_v43 }
 0x6c3   : > { %v6869_v7 = vadd.f32 %v15085_v17, %v6868_v44  ;;  %vm16495_vm15 = vweird.f32 %v15017_v6  ;;  %v6862_v47 = vor.u32 1.1754944e-38, %v6861_v53  ;;  %vm15205_vm10 = vcmp.eq.f32.partialorder %v6874_v29, 8.507059e+37  ;;  %vm15220_vm9 = vmor %vm6870_vm0, %vm6871_vm13 }
 0x6c4   : > { %vm15201_vm7 = vmor %vm16495_vm15, %vm6856_vm4  ;;  %v15212_v22 = vsel %vm15099_vm2, %v15029_v48, %v6783_v5  ;;  %v6843_v58 = vsel %vm15186_vm6, %v15069_v16, %v6839_v8  ;;  %10120 = vrcp.f32 %v15045_v18  ;;  %v15228_v50 = vsel %vm15108_vm12, %v15037_v13, %v6798_v11 }
 0x6c5   : > { %v6858_v6 = vsel %vm15201_vm7, %v15077_v31, %v6854_v40  ;;  %v6873_v48 = vsel %vm15220_vm9, %v15085_v17, %v6869_v7  ;;  %v6891_v16 = vand.u32 2147483648, %v15035_v10  ;;  %10122 = vrcp.f32 %v15052_v26  ;;  %v15235_v31 = vpop.eup %10116 }
 0x6c6   : > { %v15240_v21 = vsel %vm15115_vm14, %v15057_v49, %v6813_v14  ;;  %v15245_v13 = vsel %vm15119_vm8, %v15074_v51, %v6828_v37  ;;  %v6877_v61 = vor.u32 1.1754944e-38, %v6876_v42  ;;  %v6906_v9 = vand.u32 2147483648, %v15043_v25  ;;  %v15259_v44 = vpop.eup %10118 }
 0x6c7   : > { %v15250_v17 = vsel %vm15134_vm3, %v6847_v27, %v6843_v58  ;;  %v15254_v53 = vsel %vm15175_vm1, %v6862_v47, %v6858_v6  ;;  %v6881_v49 = vmul.f32 %v15235_v31, %v15035_v10  ;;  %v6889_v28 = vand.u32 2147483647, %v15035_v10 }
 0x6c8   : > { %v15263_v51 = vsel %vm15205_vm10, %v6877_v61, %v6873_v48  ;;  %vm6885_vm2 = vweird.f32 %v15035_v10  ;;  %v6921_v23 = vand.u32 2147483648, %v15045_v18  ;;  %v6936_v27 = vand.u32 2147483648, %v15052_v26 }
 0x6c9   : > { %10124 = vrcp.f32 %v15062_v38  ;;  %v6882_v12 = vsub.f32 1.0, %v6881_v49  ;;  %v15269_v39 = vor.u32 1.1754944e-38, %v6891_v16  ;;  %v6896_v46 = vmul.f32 %v15259_v44, %v15043_v25 }
 0x6ca   : > { %vm6900_vm3 = vweird.f32 %v15043_v25  ;;  %v6904_v43 = vand.u32 2147483647, %v15043_v25  ;;  %v15275_v29 = vpop.eup %10120  ;;  %v15277_v57 = vor.u32 1.1754944e-38, %v6906_v9  ;;  %vm6915_vm12 = vweird.f32 %v15045_v18 }
 0x6cb   : > { %v6919_v8 = vand.u32 2147483647, %v15045_v18  ;;  %10126 = vrcp.f32 %v15064_v55  ;;  %v15282_v40 = vpop.eup %10122  ;;  %v6883_v5 = vmul.f32 %v15235_v31, %v6882_v12  ;;  %v6897_v34 = vsub.f32 1.0, %v6896_v46 }
 0x6cc   : > { %v6911_v19 = vmul.f32 %v15275_v29, %v15045_v18  ;;  %vm6930_vm14 = vweird.f32 %v15052_v26  ;;  %v6934_v7 = vand.u32 2147483647, %v15052_v26  ;;  %vm6886_vm8 = vweird.f32 %v15235_v31 }
 0x6cd   : > { %v15290_v11 = vor.u32 1.1754944e-38, %v6921_v23  ;;  %v6926_v20 = vmul.f32 %v15282_v40, %v15052_v26  ;;  %v15294_v42 = vor.u32 1.1754944e-38, %v6936_v27  ;;  %vm15296_vm11 = vcmp.eq.f32.partialorder %v6889_v28, 8.507059e+37  ;;  %vm15334_vm10 = vmor %vm6885_vm2, %vm6886_vm8 }
 0x6ce   : > { %v6898_v37 = vmul.f32 %v15259_v44, %v6897_v34  ;;  %vm15301_vm4 = vcmp.eq.f32.partialorder %v6904_v43, 8.507059e+37  ;;  %v6912_v47 = vsub.f32 1.0, %v6911_v19  ;;  %vm6945_vm5 = vweird.f32 %v15062_v38 }
 0x6cf   : > { %v6949_v32 = vand.u32 2147483647, %v15062_v38  ;;  %v6951_v58 = vand.u32 2147483648, %v15062_v38  ;;  %v15308_v6 = vpop.eup %10124  ;;  %v6884_v63 = vadd.f32 %v15235_v31, %v6883_v5  ;;  %v6927_v48 = vsub.f32 1.0, %v6926_v20 }
 0x6d0   : > { %v6964_v16 = vand.u32 2147483647, %v15064_v55  ;;  %10128 = vrcp.f32 %v15079_v41  ;;  %v6899_v61 = vadd.f32 %v15259_v44, %v6898_v37  ;;  %vm6901_vm1 = vweird.f32 %v15259_v44 }
 0x6d1   : > { %v6913_v9 = vmul.f32 %v15275_v29, %v6912_v47  ;;  %vm15316_vm13 = vcmp.eq.f32.partialorder %v6919_v8, 8.507059e+37  ;;  %vm15320_vm6 = vcmp.eq.f32.partialorder %v6934_v7, 8.507059e+37  ;;  %v6941_v23 = vmul.f32 %v15308_v6, %v15062_v38  ;;  %v10127_v27 = vpop.eup %10126  ;;  %vm15351_vm2 = vmor %vm6900_vm3, %vm6901_vm1 }
 0x6d2   : > { %vm6916_vm0 = vweird.f32 %v15275_v29  ;;  %v6928_v12 = vmul.f32 %v15282_v40, %v6927_v48  ;;  %vm6931_vm15 = vweird.f32 %v15282_v40  ;;  %vm15339_vm9 = vcmp.eq.f32.partialorder %v6949_v32, 8.507059e+37 }
 0x6d3   : > { %v6914_v43 = vadd.f32 %v15275_v29, %v6913_v9  ;;  %v6942_v8 = vsub.f32 1.0, %v6941_v23  ;;  %v6952_v34 = vor.u32 1.1754944e-38, %v6951_v58  ;;  %v6956_v19 = vmul.f32 %v10127_v27, %v15064_v55  ;;  %vm15369_vm3 = vmor %vm6915_vm12, %vm6916_vm0 }
 0x6d4   : > { %v6888_v7 = vsel %vm15334_vm10, %v15235_v31, %v6884_v63  ;;  %v6929_v20 = vadd.f32 %v15282_v40, %v6928_v12  ;;  %vm6946_vm8 = vweird.f32 %v15308_v6  ;;  %vm15357_vm7 = vcmp.eq.f32.partialorder %v6964_v16, 8.507059e+37 }
 0x6d5   : > { %v6966_v47 = vand.u32 2147483648, %v15064_v55  ;;  %v6903_v31 = vsel %vm15351_vm2, %v15259_v44, %v6899_v61  ;;  %v6943_v32 = vmul.f32 %v15308_v6, %v6942_v8  ;;  %v6957_v58 = vsub.f32 1.0, %v6956_v19  ;;  %vm15382_vm2 = vmor %vm6930_vm14, %vm6931_vm15 }
 0x6d6   : > { %vm6961_vm1 = vweird.f32 %v10127_v27  ;;  %vm6975_vm10 = vweird.f32 %v15079_v41  ;;  %v10129_v63 = vpop.eup %10128  ;;  %v6918_v48 = vsel %vm15369_vm3, %v15275_v29, %v6914_v43  ;;  %v6979_v44 = vand.u32 2147483647, %v15079_v41  ;;  %vm15404_vm12 = vmor %vm6945_vm5, %vm6946_vm8 }
 0x6d7   : > { %v6981_v16 = vand.u32 2147483648, %v15079_v41  ;;  %10130 = vrcp.f32 %v15087_v62  ;;  %v6933_v61 = vsel %vm15382_vm2, %v15282_v40, %v6929_v20  ;;  %v6944_v29 = vadd.f32 %v15308_v6, %v6943_v32 }
 0x6d8   : > { %v6958_v9 = vmul.f32 %v10127_v27, %v6957_v58  ;;  %v6971_v23 = vmul.f32 %v10129_v63, %v15079_v41  ;;  %v6893_v26 = vsel %vm15296_vm11, %v15269_v39, %v6888_v7  ;;  %v6908_v12 = vsel %vm15301_vm4, %v15277_v57, %v6903_v31 }
 0x6d9   : > { %v6967_v40 = vor.u32 1.1754944e-38, %v6966_v47  ;;  %v6994_v43 = vand.u32 2147483647, %v15087_v62  ;;  %v6948_v14 = vsel %vm15404_vm12, %v15308_v6, %v6944_v29  ;;  %v6996_v45 = vand.u32 2147483648, %v15087_v62 }
 0x6da   : > { %v6959_v39 = vadd.f32 %v10127_v27, %v6958_v9  ;;  %v6972_v8 = vsub.f32 1.0, %v6971_v23  ;;  %v6923_v57 = vsel %vm15316_vm13, %v15290_v11, %v6918_v48  ;;  %v6938_v38 = vsel %vm15320_vm6, %v15294_v42, %v6933_v61 }
 0x6db   : > { %vm16524_vm14 = vweird.f32 %v15064_v55  ;;  %vm15422_vm4 = vcmp.eq.f32.partialorder %v6979_v44, 8.507059e+37  ;;  %10132 = vrcp.f32 %v15105_v30  ;;  %vm6976_vm5 = vweird.f32 %v10129_v63  ;;  %v9726_v44 = vld [vmem:[%s16530_s16 + $0x30] sm:$0xff] }
 0x6dc   : > { %vm6962_vm11 = vmor %vm16524_vm14, %vm6961_vm1  ;;  %v6973_v7 = vmul.f32 %v10129_v63, %v6972_v8  ;;  %v6982_v10 = vor.u32 1.1754944e-38, %v6981_v16  ;;  %v6953_v11 = vsel %vm15339_vm9, %v6952_v34, %v6948_v14  ;;  %vm6990_vm13 = vweird.f32 %v15087_v62  ;;  %v9725_v8 = vld [vmem:[%s16530_s16 + $0x28] sm:$0xff] }
 0x6dd   : > { %v6963_v6 = vsel %vm6962_vm11, %v10127_v27, %v6959_v39  ;;  %v10131_v49 = vpop.eup %10130  ;;  %v6997_v42 = vor.u32 1.1754944e-38, %v6996_v45  ;;  %v7011_v55 = vand.u32 2147483648, %v15105_v30  ;;  %vm15434_vm6 = vcmp.eq.f32.partialorder %v6994_v43, 8.507059e+37  ;;  %vm6977_vm0 = vmor %vm6975_vm10, %vm6976_vm5 }
 0x6de   : > { %v6968_v28 = vsel %vm15357_vm7, %v6967_v40, %v6963_v6  ;;  %v6974_v20 = vadd.f32 %v10129_v63, %v6973_v7  ;;  %v6986_v47 = vmul.f32 %v10131_v49, %v15087_v62  ;;  %v7009_v31 = vand.u32 2147483647, %v15105_v30 }
 0x6df   : > { %vm6991_vm15 = vweird.f32 %v10131_v49  ;;  %v7012_v5 = vor.u32 1.1754944e-38, %v7011_v55  ;;  %v15443_v34 = vmul.f32 %v15212_v22, %v14953_v52  ;;  %v15447_v37 = vmul.f32 %v15228_v50, %v14955_v24 }
 0x6e0   : > { %v6978_v25 = vsel %vm6977_vm0, %v10129_v63, %v6974_v20  ;;  %v6987_v32 = vsub.f32 1.0, %v6986_v47  ;;  %vm7005_vm7 = vweird.f32 %v15105_v30  ;;  %v15452_v58 = vmul.f32 %v15240_v21, %v14957_v33  ;;  %vm6992_vm3 = vmor %vm6990_vm13, %vm6991_vm15  ;;  %v9724_v47 = vld [vmem:[%s16530_s16 + $0x20] sm:$0xff] }
 0x6e1   : > { %v15456_v41 = vmul.f32 %v15245_v13, %v14960_v3  ;;  %v10133_v48 = vpop.eup %10132  ;;  %v6983_v52 = vsel %vm15422_vm4, %v6982_v10, %v6978_v25  ;;  %v15462_v24 = vmul.f32 %v15250_v17, %v14962_v2  ;;  %v15466_v22 = vmul.f32 %v15254_v53, %v14965_v1  ;;  %v9727_v53 = vld [vmem:[%s16529_s15 + $0x38] sm:$0xff]  ;;  %s16563_s15 = sld [smem:[#allocation36_spill]] }
 0x6e2   : > { %v15470_v33 = vmul.f32 %v15263_v51, %v14968_v36  ;;  %v6988_v50 = vmul.f32 %v10131_v49, %v6987_v32  ;;  %v7001_v3 = vmul.f32 %v10133_v48, %v15105_v30  ;;  %vm15473_vm9 = vcmp.eq.f32.partialorder %v7009_v31, 8.507059e+37  ;;  %7259 = vmatpush.bf16.msrb.mxu0 %v9727_v53  ;;  %v16539_v10 = vld [vmem:[#allocation95_spill] sm:$0xff] }
 0x6e3   : > { %v15478_v13 = vmul.f32 %v6893_v26, %v14972_v15  ;;  %v15481_v2 = vmul.f32 %v6908_v12, %v14977_v35  ;;  %vm7006_vm8 = vweird.f32 %v10133_v48  ;;  %v15484_v1 = vmul.f32 %v6923_v57, %v14980_v4 }
 0x6e4   : > { %v15487_v36 = vmul.f32 %v6938_v38, %v14984_v60  ;;  %v15490_v17 = vmul.f32 %v6953_v11, %v14987_v0  ;;  %v6989_v51 = vadd.f32 %v10131_v49, %v6988_v50  ;;  %v7002_v63 = vsub.f32 1.0, %v7001_v3  ;;  %vm7007_vm1 = vmor %vm7005_vm7, %vm7006_vm8 }
 0x6e5   : > { %v15494_v15 = vmul.f32 %v6968_v28, %v14990_v56  ;;  %v15497_v35 = vmul.f32 %v6983_v52, %v14993_v59  ;;  %v7047_v4 = vperm.slane %v15443_v34, 0  ;;  %v7048_v60 = vperm.slane %v15447_v37, 0 }
 0x6e6   : > { %v7049_v0 = vperm.slane %v15452_v58, 0  ;;  %v7050_v18 = vperm.slane %v15456_v41, 0  ;;  %v6993_v16 = vsel %vm6992_vm3, %v10131_v49, %v6989_v51  ;;  %v7003_v56 = vmul.f32 %v10133_v48, %v7002_v63  ;;  %7260 = vmatpush.bf16.msrb.mxu0 %v9726_v44 }
 0x6e7   : > { %v7051_v59 = vperm.slane %v15462_v24, 0  ;;  %v7055_v61 = vperm.slane %v15481_v2, 0  ;;  %v6998_v62 = vsel %vm15434_vm6, %v6997_v42, %v6993_v16  ;;  %v7052_v29 = vperm.slane %v15466_v22, 0 }
 0x6e8   : > { %v7056_v9 = vperm.slane %v15484_v1, 0  ;;  %v7057_v23 = vperm.slane %v15487_v36, 0  ;;  %v7004_v26 = vadd.f32 %v10133_v48, %v7003_v56  ;;  %v15515_v12 = vmul.f32 %v6998_v62, %v14996_v54 }
 0x6e9   : > { %v7058_v46 = vperm.slane %v15490_v17, 0  ;;  %v7059_v40 = vperm.slane %v15494_v15, 0  ;;  %v7060_v43 = vperm.slane %v15497_v35, 0  ;;  %vm16533_vm10 = vcmask 1041409  }
 0x6ea   : > { %v7063_v14 = vsel %vm16533_vm10, %v7048_v60, %v7047_v4  ;;  %vm16534_vm2 = vmmov %vm16533_vm10  ;;  %v7008_v45 = vsel %vm7007_vm1, %v10133_v48, %v7004_v26  ;;  %v7053_v54 = vperm.slane %v15470_v33, 0  ;;  %vm16535_vm12 = vcmask 1042434   ;;  %7261 = vmatpush.bf16.msrb.mxu0 %v9725_v8  ;;  %v9722_v26 = vld [vmem:[%s16530_s16 + $0x10] sm:$0xff] }
 0x6eb   : > { %v7070_v39 = vsel %vm16534_vm2, %v7056_v9, %v7055_v61  ;;  %v7064_v57 = vsel %vm16535_vm12, %v7049_v0, %v7063_v14  ;;  %vm16536_vm14 = vmmov %vm16535_vm12  ;;  %v7013_v30 = vsel %vm15473_vm9, %v7012_v5, %v7008_v45  ;;  %vm16537_vm11 = vcmask 1043459   ;;  %v7111_v61 = vld [vmem:[%s16548_s22] sm:$0x1]  ;;  %v9723_v9 = vld [vmem:[%s16530_s16 + $0x18] sm:$0xff]  ;;  %s16568_s22 = sld [smem:[#allocation38_spill]] }
 0x6ec   : > { %v7071_v38 = vsel %vm16536_vm14, %v7057_v23, %v7070_v39  ;;  %v7065_v19 = vsel %vm16537_vm11, %v7050_v18, %v7064_v57  ;;  %vm16538_vm4 = vmmov %vm16537_vm11  ;;  %v10449_v7 = vmov 16.0   ;;  %v15534_v49 = vmul.f32 %v7013_v30, %v16539_v10  ;;  %v9720_v14 = vld [vmem:[%s16530_s16] sm:$0xff] }
 0x6ed   : > { %v7072_v6 = vsel %vm16538_vm4, %v7058_v46, %v7071_v38  ;;  %10134 = vrcp.f32 %v10449_v7  ;;  %v7061_v11 = vperm.slane %v15515_v12, 0  ;;  %vm16540_vm5 = vcmask 1044484   ;;  %v9721_v46 = vld [vmem:[%s16530_s16 + $0x8] sm:$0xff] }
 0x6ee   : > { %v7066_v42 = vsel %vm16540_vm5, %v7051_v59, %v7065_v19  ;;  %vm16541_vm13 = vmmov %vm16540_vm5  ;;  %vm16542_vm6 = vcmask 1045509   ;;  %v7054_v27 = vperm.slane %v15478_v13, 0  ;;  %v7062_v31 = vperm.slane %v15534_v49, 0  ;;  %7262 = vmatpush.bf16.msrb.mxu0 %v9724_v47 }
 0x6ef   : > { %v7073_v55 = vsel %vm16541_vm13, %v7059_v40, %v7072_v6  ;;  %v7067_v28 = vsel %vm16542_vm6, %v7052_v29, %v7066_v42  ;;  %vm16543_vm0 = vmmov %vm16542_vm6  ;;  %vm16544_vm15 = vcmask 1046534   ;;  %vm16546_vm9 = vcmask 1047559  }
 0x6f0   : > { %v7074_v20 = vsel %vm16543_vm0, %v7060_v43, %v7073_v55  ;;  %v7068_v5 = vsel %vm16544_vm15, %v7053_v54, %v7067_v28  ;;  %vm16545_vm7 = vmmov %vm16544_vm15  ;;  %v7210_v55 = vld [vmem:[%s16549_s18] sm:$0x1]  ;;  %v9735_v28 = vld [vmem:[%s16550_s2 + $0x38] sm:$0xff]  ;;  %vm16552_vm13 = vcmask 1041409   ;;  %vm16553_vm6 = vcmask 1042434   ;;  %s16569_s18 = sld [smem:[#allocation39_spill]] }
 0x6f1   : > { %v7075_v25 = vsel %vm16545_vm7, %v7061_v11, %v7074_v20  ;;  %v7069_v32 = vsel %vm16546_vm9, %v7054_v27, %v7068_v5  ;;  %vm16547_vm8 = vmmov %vm16546_vm9  ;;  %7466 = vmatpush.bf16.msra.mxu2 %v9735_v28  ;;  %v9734_v27 = vld [vmem:[%s16550_s2 + $0x30] sm:$0xff]  ;;  %v9733_v5 = vld [vmem:[%s16550_s2 + $0x28] sm:$0xff]  ;;  %vm16554_vm0 = vcmask 1043459   ;;  %vm16556_vm7 = vcmask 1044484  }
 0x6f2   : > { %v7076_v48 = vsel %vm16547_vm8, %v7062_v31, %v7075_v25  ;;  %7263 = vmatpush.bf16.msrb.mxu0 %v9723_v9  ;;  %vm16555_vm15 = vmmov %vm16552_vm13  ;;  %vm16558_vm8 = vcmask 1045509  }
 0x6f3   : > { %v10135_v52 = vpop.eup %10134  ;;  %v7079_v50 = vadd.f32 %v7076_v48, %v7069_v32  ;;  %v9732_v32 = vld [vmem:[%s16550_s2 + $0x20] sm:$0xff]  ;;  %vm16557_vm9 = vmmov %vm16553_vm6 }
 0x6f4   : > { %v7087_v3 = vmul.f32 16.0, %v10135_v52  ;;  %vm7091_vm3 = vweird.f32 %v10135_v52 }
 0x6f5   : > { %v7080_v21 = vrot.slane %v7079_v50, 4  ;;  %7467 = vmatpush.bf16.msra.mxu2 %v9734_v27  ;;  %v9739_v27 = vld [vmem:[%s16551_s8 + $0x18] sm:$0xff] }
 0x6f6   : > { %v7088_v53 = vsub.f32 1.0, %v7087_v3  ;;  %7264 = vmatpush.bf16.msrb.mxu0 %v9722_v26  ;;  %v9730_v3 = vld [vmem:[%s16550_s2 + $0x10] sm:$0xff] }
 0x6f7   : > { %v7081_v51 = vadd.f32 %v7080_v21, %v7079_v50  ;;  %v9731_v50 = vld [vmem:[%s16550_s2 + $0x18] sm:$0xff] }
 0x6f8   : > { %v7089_v63 = vmul.f32 %v10135_v52, %v7088_v53 }
 0x6f9   : > { %v7082_v4 = vrot.slane %v7081_v51, 2  ;;  %7468 = vmatpush.bf16.msra.mxu2 %v9733_v5 }
 0x6fa   : > { %v7090_v60 = vadd.f32 %v10135_v52, %v7089_v63  ;;  %7265 = vmatpush.bf16.msrb.mxu0 %v9721_v46 }
 0x6fb   : > { %v7083_v0 = vadd.f32 %v7082_v4, %v7081_v51  ;;  %v9729_v51 = vld [vmem:[%s16550_s2 + $0x8] sm:$0xff] }
 0x6fc   : > { %v15548_v44 = vsel %vm7091_vm3, %v10135_v52, %v7090_v60  ;;  %vm16559_vm3 = vmmov %vm16554_vm0 }
 0x6fd   : > { %v7084_v18 = vrot.slane %v7083_v0, 1  ;;  %7469 = vmatpush.bf16.msra.mxu2 %v9732_v32 }
 0x6fe   : > { %7266 = vmatpush.bf16.msrb.mxu0 %v9720_v14 }
 0x6ff   : > { %v7085_v16 = vadd.f32 %v7084_v18, %v7083_v0  ;;  %v9728_v18 = vld [vmem:[%s16550_s2] sm:$0xff]  ;;  %s16579_s2 = sld [smem:[#allocation49_spill]] }
 0x701   : > { %v7093_v56 = vmul.f32 %v15548_v44, %v7085_v16  ;;  %7470 = vmatpush.bf16.msra.mxu2 %v9731_v50 }
 0x703   : > { %v7094_v59 = vpack.c.bf16 %v7093_v56, %v7093_v56 }
 0x705   : > { %7168 = vmatmul.bf16.vlgmr.msrb.gmra.mxu2 %v7094_v59  ;;  %v9743_v59 = vld [vmem:[%s16551_s8 + $0x38] sm:$0xff] }
 0x706   : > { %7471 = vmatpush.bf16.msra.mxu2 %v9730_v3  ;;  %7557 = vmatpush.bf16.msrb.mxu3 %v9743_v59 }
 0x70a   : > { %7472 = vmatpush.bf16.msra.mxu2 %v9729_v51 }
 0x70e   : > { %7473 = vmatpush.bf16.msra.mxu2 %v9728_v18 }
 0x788   : > { %v7169_v62 = vpop.f32.mrf.mxu2 }
 0x789   : > { %v7170_v29 = vadd.f32 %v7169_v62, %v7111_v61 }
 0x78b   : > { %v9328_v23 = vmul.f32 -1.442695, %v7170_v29 }
 0x78d   : > { %10136 = vpow2.f32 %v9328_v23 }
 0x790   : > { %v7171_v40 = vpop.f32.mrf.mxu2 }
 0x793   : > { %v10137_v43 = vpop.eup %10136 }
 0x794   : > { %v7176_v39 = vadd.f32 1.0, %v10137_v43  ;;  %v9741_v43 = vld [vmem:[%s16551_s8 + $0x28] sm:$0xff] }
 0x796   : > { %10138 = vrcp.f32 %v7176_v39  ;;  %v7188_v57 = vand.u32 2147483648, %v7176_v39  ;;  %v7186_v30 = vand.u32 2147483647, %v7176_v39  ;;  %vm7182_vm10 = vweird.f32 %v7176_v39 }
 0x798   : > { %v7189_v6 = vor.u32 1.1754944e-38, %v7188_v57  ;;  %vm7187_vm12 = vcmp.eq.f32.partialorder %v7186_v30, 8.507059e+37 }
 0x79c   : > { %v10139_v8 = vpop.eup %10138 }
 0x79d   : > { %v7178_v45 = vmul.f32 %v10139_v8, %v7176_v39  ;;  %vm7183_vm1 = vweird.f32 %v10139_v8 }
 0x79e   : > { %vm7184_vm2 = vmor %vm7182_vm10, %vm7183_vm1  ;;  %vm16561_vm1 = vcmask 1046534  }
 0x79f   : > { %v7179_v54 = vsub.f32 1.0, %v7178_v45  ;;  %vm16562_vm10 = vmmov %vm16556_vm7 }
 0x7a1   : > { %v7180_v38 = vmul.f32 %v10139_v8, %v7179_v54 }
 0x7a3   : > { %v7181_v19 = vadd.f32 %v10139_v8, %v7180_v38 }
 0x7a5   : > { %v7185_v7 = vsel %vm7184_vm2, %v10139_v8, %v7181_v19  ;;  %vm16564_vm2 = vcmask 1047559  }
 0x7a6   : > { %v7190_v10 = vsel %vm7187_vm12, %v7189_v6, %v7185_v7  ;;  %vm16565_vm12 = vmmov %vm16558_vm8 }
 0x7a7   : > { %v7192_v11 = vmul.f32 %v7190_v10, %v7170_v29  ;;  %v9742_v29 = vld [vmem:[%s16551_s8 + $0x30] sm:$0xff] }
 0x7a8   : > { %7558 = vmatpush.bf16.msrb.mxu3 %v9742_v29 }
 0x7a9   : > { %v7193_v42 = vpack.c.bf16 %v7192_v11, %v7192_v11  ;;  %v9740_v11 = vld [vmem:[%s16551_s8 + $0x20] sm:$0xff] }
 0x7ab   : > { %7267 = vmatmul.bf16.vlgmr.msrb.gmra.mxu0 %v7193_v42 }
 0x7ac   : > { %7559 = vmatpush.bf16.msrb.mxu3 %v9741_v43  ;;  %v9737_v43 = vld [vmem:[%s16551_s8 + $0x8] sm:$0xff] }
 0x7b0   : > { %7560 = vmatpush.bf16.msrb.mxu3 %v9740_v11 }
 0x7b4   : > { %7561 = vmatpush.bf16.msrb.mxu3 %v9739_v27 }
 0x828   : > { %v7268_v20 = vpop.f32.mrf.mxu0 }
 0x829   : > { %v7269_v47 = vadd.f32 %v7268_v20, %v7210_v55 }
 0x82b   : > { %v9361_v31 = vmul.f32 -1.442695, %v7269_v47 }
 0x82d   : > { %10140 = vpow2.f32 %v9361_v31 }
 0x830   : > { %v7270_v25 = vpop.f32.mrf.mxu0 }
 0x833   : > { %v10141_v48 = vpop.eup %10140 }
 0x834   : > { %v7275_v52 = vadd.f32 1.0, %v10141_v48 }
 0x836   : > { %10142 = vrcp.f32 %v7275_v52  ;;  %v7287_v4 = vand.u32 2147483648, %v7275_v52  ;;  %v7285_v0 = vand.u32 2147483647, %v7275_v52  ;;  %vm7281_vm11 = vweird.f32 %v7275_v52 }
 0x838   : > { %v7288_v56 = vor.u32 1.1754944e-38, %v7287_v4  ;;  %vm7286_vm5 = vcmp.eq.f32.partialorder %v7285_v0, 8.507059e+37 }
 0x83c   : > { %v10143_v21 = vpop.eup %10142 }
 0x83d   : > { %v7277_v53 = vmul.f32 %v10143_v21, %v7275_v52  ;;  %vm7282_vm14 = vweird.f32 %v10143_v21 }
 0x83e   : > { %vm7283_vm4 = vmor %vm7281_vm11, %vm7282_vm14 }
 0x83f   : > { %v7278_v63 = vsub.f32 1.0, %v7277_v53  ;;  %vm16566_vm14 = vmmov %vm16561_vm1 }
 0x840   : > { %vm16567_vm11 = vmmov %vm16564_vm2 }
 0x841   : > { %v7279_v60 = vmul.f32 %v10143_v21, %v7278_v63  ;;  %v9738_v63 = vld [vmem:[%s16551_s8 + $0x10] sm:$0xff] }
 0x842   : > { %7562 = vmatpush.bf16.msrb.mxu3 %v9738_v63 }
 0x843   : > { %v7280_v16 = vadd.f32 %v10143_v21, %v7279_v60 }
 0x845   : > { %v7284_v61 = vsel %vm7283_vm4, %v10143_v21, %v7280_v16 }
 0x846   : > { %v7289_v62 = vsel %vm7286_vm5, %v7288_v56, %v7284_v61  ;;  %7563 = vmatpush.bf16.msrb.mxu3 %v9737_v43  ;;  %v15635_v43 = vld [vmem:[%s16570_s1 + $0x5] ss:$0 sm:$0xff] }
 0x847   : > { %v7291_v9 = vperm.slane %v7289_v62, 0 }
 0x849   : > { %v7293_v23 = vrot.slane %v7291_v9, 2  ;;  %v7294_v26 = vrot.slane %v7291_v9, 4  ;;  %v7295_v46 = vrot.slane %v7291_v9, 6  ;;  %v7296_v40 = vrot.slane %v7291_v9, 1 }
 0x84a   : > { %v7308_v19 = vmul.f32 %v7291_v9, %v15443_v34 }
 0x84b   : > { %v7297_v14 = vrot.slane %v7293_v23, 1  ;;  %v7298_v39 = vrot.slane %v7294_v26, 1  ;;  %v7299_v8 = vrot.slane %v7295_v46, 1  ;;  %v7309_v45 = vmul.f32 %v7296_v40, %v15447_v37 }
 0x84c   : > { %v7310_v54 = vmul.f32 %v7293_v23, %v15452_v58  ;;  %v7317_v38 = vmul.f32 %v7296_v40, %v15484_v1  ;;  %v7318_v30 = vmul.f32 %v7293_v23, %v15487_v36  ;;  %v7312_v6 = vmul.f32 %v7294_v26, %v15462_v24 }
 0x84d   : > { %v7311_v57 = vmul.f32 %v7297_v14, %v15456_v41  ;;  %v7313_v7 = vmul.f32 %v7298_v39, %v15466_v22  ;;  %v7319_v10 = vmul.f32 %v7297_v14, %v15490_v17  ;;  %v7314_v37 = vmul.f32 %v7295_v46, %v15470_v33 }
 0x84e   : > { %v7315_v58 = vmul.f32 %v7299_v8, %v15478_v13  ;;  %v7325_v41 = vpack.c.bf16 %v7309_v45, %v7309_v45  ;;  %v7326_v42 = vpack.c.bf16 %v7310_v54, %v7310_v54  ;;  %v7316_v1 = vmul.f32 %v7291_v9, %v15481_v2 }
 0x84f   : > { %v7320_v36 = vmul.f32 %v7294_v26, %v15494_v15  ;;  %v7321_v34 = vmul.f32 %v7298_v39, %v15497_v35  ;;  %v7327_v24 = vpack.c.bf16 %v7311_v57, %v7311_v57  ;;  %v7322_v22 = vmul.f32 %v7295_v46, %v15515_v12 }
 0x850   : > { %v7323_v17 = vmul.f32 %v7299_v8, %v15534_v49  ;;  %v7333_v55 = vpack.c.bf16 %v7317_v38, %v7317_v38  ;;  %v7334_v28 = vpack.c.bf16 %v7318_v30, %v7318_v30  ;;  %v7324_v20 = vpack.c.bf16 %v7308_v19, %v7308_v19 }
 0x851   : > { %v7328_v33 = vpack.c.bf16 %v7312_v6, %v7312_v6  ;;  %v7329_v47 = vpack.c.bf16 %v7313_v7, %v7313_v7  ;;  %v7335_v13 = vpack.c.bf16 %v7319_v10, %v7319_v10  ;;  %v7330_v31 = vpack.c.bf16 %v7314_v37, %v7314_v37 }
 0x852   : > { %v7331_v5 = vpack.c.bf16 %v7315_v58, %v7315_v58  ;;  %v7373_v2 = vunpack.c.l.b16 %v7325_v41  ;;  %v7374_v15 = vunpack.c.l.b16 %v7326_v42  ;;  %v7332_v25 = vpack.c.bf16 %v7316_v1, %v7316_v1 }
 0x853   : > { %v7336_v35 = vpack.c.bf16 %v7320_v36, %v7320_v36  ;;  %v7337_v32 = vpack.c.bf16 %v7321_v34, %v7321_v34  ;;  %v7375_v48 = vunpack.c.l.b16 %v7327_v24  ;;  %v7338_v12 = vpack.c.bf16 %v7322_v22, %v7322_v22  ;;  %v9736_v22 = vld [vmem:[%s16551_s8] sm:$0xff] }
 0x854   : > { %v7339_v52 = vpack.c.bf16 %v7323_v17, %v7323_v17  ;;  %v7381_v49 = vunpack.c.l.b16 %v7333_v55  ;;  %v7382_v50 = vunpack.c.l.b16 %v7334_v28  ;;  %v7372_v3 = vunpack.c.l.b16 %v7324_v20  ;;  %7564 = vmatpush.bf16.msrb.mxu3 %v9736_v22  ;;  %v9951_v55 = vld [vmem:[%s16560_s7] ss:$0 sm:$0xff]  ;;  %s16571_s7 = sld [smem:[#allocation41_spill]] }
 0x855   : > { %v7376_v21 = vunpack.c.l.b16 %v7328_v33  ;;  %v7377_v53 = vunpack.c.l.b16 %v7329_v47  ;;  %v7383_v51 = vunpack.c.l.b16 %v7335_v13  ;;  %v7378_v4 = vunpack.c.l.b16 %v7330_v31  ;;  %v9952_v20 = vld [vmem:[%s16563_s15] ss:$0 sm:$0xff]  ;;  %s16572_s15 = sld [smem:[#allocation42_spill]] }
 0x856   : > { %v7388_v60 = vrot.slane %v7373_v2, 7  ;;  %v7390_v0 = vrot.slane %v7374_v15, 6  ;;  %v7392_v18 = vrot.slane %v7375_v48, 5  ;;  %v7379_v16 = vunpack.c.l.b16 %v7331_v5  ;;  %v15612_v5 = vld [vmem:[%s16568_s22] ss:$0 sm:$0xff]  ;;  %s16573_s22 = sld [smem:[#allocation43_spill]] }
 0x857   : > { %v7380_v56 = vunpack.c.l.b16 %v7332_v25  ;;  %v7384_v59 = vunpack.c.l.b16 %v7336_v35  ;;  %v7385_v61 = vunpack.c.l.b16 %v7337_v32  ;;  %v7402_v29 = vrot.slane %v7381_v49, 7  ;;  %v15615_v2 = vld [vmem:[%s16569_s18] ss:$0 sm:$0xff]  ;;  %s16574_s18 = sld [smem:[#allocation45_spill]] }
 0x858   : > { %v7389_v62 = vsel %vm16552_vm13, %v7388_v60, %v7372_v3  ;;  %v7404_v9 = vrot.slane %v7382_v50, 6  ;;  %v7406_v23 = vrot.slane %v7383_v51, 5  ;;  %v7386_v26 = vunpack.c.l.b16 %v7338_v12  ;;  %v15620_v3 = vld [vmem:[%s16570_s1 + $0x1] ss:$0 sm:$0xff]  ;;  %v15623_v60 = vld [vmem:[%s16570_s1] ss:$0 sm:$0xff] }
 0x859   : > { %v7391_v46 = vsel %vm16553_vm6, %v7390_v0, %v7389_v62  ;;  %v7394_v40 = vrot.slane %v7376_v21, 4  ;;  %v7387_v14 = vunpack.c.l.b16 %v7339_v52  ;;  %v7396_v8 = vrot.slane %v7377_v53, 3  ;;  %v7644_v53 = vld [vmem:[#allocation2] sm:$0x3f] }
 0x85a   : > { %v7393_v39 = vsel %vm16554_vm0, %v7392_v18, %v7391_v46  ;;  %v7403_v45 = vsel %vm16555_vm15, %v7402_v29, %v7380_v56  ;;  %v7398_v57 = vrot.slane %v7378_v4, 2  ;;  %v7408_v30 = vrot.slane %v7384_v59, 4  ;;  %v15627_v18 = vld [vmem:[%s16570_s1 + $0x2] ss:$0 sm:$0xff] }
 0x85b   : > { %v7395_v54 = vsel %vm16556_vm7, %v7394_v40, %v7393_v39  ;;  %v7405_v38 = vsel %vm16557_vm9, %v7404_v9, %v7403_v45  ;;  %v7400_v6 = vrot.slane %v7379_v16, 1  ;;  %v7410_v10 = vrot.slane %v7385_v61, 3  ;;  %v15632_v40 = vld [vmem:[%s16570_s1 + $0x4] ss:$0 sm:$0xff] }
 0x85c   : > { %v7397_v19 = vsel %vm16558_vm8, %v7396_v8, %v7395_v54  ;;  %v7407_v7 = vsel %vm16559_vm3, %v7406_v23, %v7405_v38  ;;  %v7412_v58 = vrot.slane %v7386_v26, 2  ;;  %v7414_v1 = vrot.slane %v7387_v14, 1  ;;  %v15638_v14 = vld [vmem:[%s16570_s1 + $0x6] ss:$0 sm:$0xff] }
 0x85d   : > { %v7399_v11 = vsel %vm16561_vm1, %v7398_v57, %v7397_v19  ;;  %v7409_v37 = vsel %vm16562_vm10, %v7408_v30, %v7407_v7  ;;  %v7662_v0 = vmul.f32 %v15620_v3, %v7644_v53  ;;  %v7652_v62 = vmul.f32 %v15623_v60, %v7644_v53  ;;  %v15643_v57 = vld [vmem:[%s16570_s1 + $0x9] ss:$0 sm:$0xff]  ;;  %v15652_v7 = vld [vmem:[%s16570_s1 + $0xa] ss:$0 sm:$0xff] }
 0x85e   : > { %v7401_v41 = vsel %vm16564_vm2, %v7400_v6, %v7399_v11  ;;  %v7411_v42 = vsel %vm16565_vm12, %v7410_v10, %v7409_v37  ;;  %v7684_v9 = vmul.f32 %v15627_v18, %v7644_v53  ;;  %v15649_v6 = vld [vmem:[%s16570_s1 + $0x8] ss:$0 sm:$0xff] }
 0x85f   : > { %v7413_v36 = vsel %vm16566_vm14, %v7412_v58, %v7411_v42  ;;  %v7670_v29 = vrot.slane %v7662_v0, 1 }
 0x860   : > { %v7415_v34 = vsel %vm16567_vm11, %v7414_v1, %v7413_v36  ;;  %v7692_v46 = vrot.slane %v7684_v9, 2 }
 0x861   : > { %v7416_v24 = vpack.c.b16 %v7415_v34, %v7401_v41  ;;  %v7678_v26 = vadd.f32 %v7670_v29, %v7652_v62 }
 0x863   : > { %7474 = vmatmul.bf16.vlgmr.msra.gmra.mxu2 %v7416_v24  ;;  %v7700_v39 = vadd.f32 %v7692_v46, %v7678_v26 }
 0x8e6   : > { %v7475_v17 = vpop.f32.mrf.mxu2 }
 0x8e7   : > { %v7484_v28 = vmul.f32 %v9951_v55, %v7475_v17  ;;  %v15661_v17 = vld [vmem:[%s16571_s7] ss:$0 sm:$0xff]  ;;  %s16575_s7 = sld [smem:[#allocation44_spill]] }
 0x8e9   : > { %v15605_v13 = vadd.f32 %v9952_v20, %v7484_v28  ;;  %v15664_v28 = vld [vmem:[%s16572_s15] ss:$0 sm:$0xff]  ;;  %s16576_s15 = sld [smem:[#allocation46_spill]] }
 0x8ee   : > { %v7477_v33 = vpop.f32.mrf.mxu2 }
 0x8ef   : > { %v7485_v47 = vmul.f32 %v9951_v55, %v7477_v33 }
 0x8f1   : > { %v15607_v27 = vadd.f32 %v9952_v20, %v7485_v47 }
 0x8f3   : > { %v7492_v31 = vpack.c.bf16 %v15607_v27, %v15605_v13 }
 0x8f5   : > { %7565 = vmatmul.bf16.vlgmr.msrb.gmra.mxu3 %v7492_v31 }
 0x978   : > { %v7566_v15 = vpop.f32.mrf.mxu3 }
 0x979   : > { %v7575_v25 = vmul.f32 %v15612_v5, %v7566_v15 }
 0x97b   : > { %v7581_v35 = vadd.f32 %v15615_v2, %v7575_v25 }
 0x97d   : > { %v9426_v32 = vmul.f32 -1.442695, %v7581_v35 }
 0x97f   : > { %10144 = vpow2.f32 %v9426_v32 }
 0x980   : > { %v7568_v20 = vpop.f32.mrf.mxu3 }
 0x981   : > { %v7576_v33 = vmul.f32 %v15612_v5, %v7568_v20 }
 0x983   : > { %v7582_v31 = vadd.f32 %v15615_v2, %v7576_v33 }
 0x985   : > { %v10145_v48 = vpop.eup %10144  ;;  %v9427_v25 = vmul.f32 -1.442695, %v7582_v31 }
 0x986   : > { %v7589_v12 = vadd.f32 1.0, %v10145_v48 }
 0x988   : > { %10146 = vrcp.f32 %v7589_v12  ;;  %v7602_v21 = vand.u32 2147483648, %v7589_v12  ;;  %v7600_v63 = vand.u32 2147483647, %v7589_v12  ;;  %vm7596_vm5 = vweird.f32 %v7589_v12 }
 0x989   : > { %10148 = vpow2.f32 %v9427_v25 }
 0x98a   : > { %v7603_v16 = vor.u32 1.1754944e-38, %v7602_v21  ;;  %vm7601_vm6 = vcmp.eq.f32.partialorder %v7600_v63, 8.507059e+37 }
 0x98e   : > { %v10147_v52 = vpop.eup %10146 }
 0x98f   : > { %v7592_v49 = vmul.f32 %v10147_v52, %v7589_v12  ;;  %vm7597_vm4 = vweird.f32 %v10147_v52  ;;  %v10149_v32 = vpop.eup %10148 }
 0x990   : > { %vm7598_vm13 = vmor %vm7596_vm5, %vm7597_vm4  ;;  %v7590_v12 = vadd.f32 1.0, %v10149_v32  ;;  %v7649_v32 = vld [vmem:[#allocation2 + $0x50] sm:$0x3f] }
 0x991   : > { %v7593_v50 = vsub.f32 1.0, %v7592_v49 }
 0x992   : > { %v7615_v62 = vand.u32 2147483647, %v7590_v12  ;;  %vm7611_vm7 = vweird.f32 %v7590_v12 }
 0x993   : > { %v7594_v51 = vmul.f32 %v10147_v52, %v7593_v50 }
 0x994   : > { %vm7616_vm1 = vcmp.eq.f32.partialorder %v7615_v62, 8.507059e+37 }
 0x995   : > { %v7595_v4 = vadd.f32 %v10147_v52, %v7594_v51 }
 0x997   : > { %v7599_v56 = vsel %vm7598_vm13, %v10147_v52, %v7595_v4 }
 0x998   : > { %v7604_v59 = vsel %vm7601_vm6, %v7603_v16, %v7599_v56  ;;  %v7617_v56 = vand.u32 2147483648, %v7590_v12 }
 0x999   : > { %v7621_v61 = vmul.f32 %v7604_v59, %v7581_v35 }
 0x99b   : > { %v7636_v23 = vrot.slane %v7621_v61, 4  ;;  %7640 = vst [vmem:[#allocation2 + $0x11] sm:$0xf] %v7621_v61 }
 0x99d   : > { %7641 = vst [vmem:[#allocation2 + $0x21] sm:$0xf] %v7636_v23 }
 0x9a2   : > { %v7645_v8 = vld [vmem:[#allocation2 + $0x10] sm:$0x3f] }
 0x9a3   : > { %v7707_v45 = vmul.f32 %v15632_v40, %v7645_v8  ;;  %v7717_v54 = vmul.f32 %v15635_v43, %v7645_v8  ;;  %v7739_v38 = vmul.f32 %v15638_v14, %v7645_v8  ;;  %v7663_v49 = vmul.f32 %v15620_v3, %v7645_v8 }
 0x9a4   : > { %v15646_v30 = vld [vmem:[#allocation2 + $0x20] sm:$0x3f]  ;;  %v7653_v2 = vmul.f32 %v15623_v60, %v7645_v8  ;;  %v7685_v63 = vmul.f32 %v15627_v18, %v7645_v8  ;;  %v7618_v8 = vor.u32 1.1754944e-38, %v7617_v56 }
 0x9a5   : > { %v7711_v19 = vadd.f32 %v7707_v45, %v7700_v39  ;;  %v7725_v10 = vrot.slane %v7717_v54, 1  ;;  %v7747_v37 = vrot.slane %v7739_v38, 2  ;;  %v7772_v58 = vmul.f32 %v15643_v57, %v15646_v30 }
 0x9a6   : > { %v7762_v42 = vmul.f32 %v15649_v6, %v15646_v30  ;;  %v7794_v1 = vmul.f32 %v15652_v7, %v15646_v30  ;;  %v7671_v5 = vrot.slane %v7663_v49, 1  ;;  %v7664_v23 = vmul.f32 %v15620_v3, %v15646_v30 }
 0x9a7   : > { %v7733_v11 = vadd.f32 %v7725_v10, %v7711_v19  ;;  %v7780_v34 = vrot.slane %v7772_v58, 1  ;;  %v7693_v26 = vrot.slane %v7685_v63, 2  ;;  %v7708_v19 = vmul.f32 %v15632_v40, %v15646_v30 }
 0x9a8   : > { %v7802_v22 = vrot.slane %v7794_v1, 2  ;;  %v7679_v0 = vadd.f32 %v7671_v5, %v7653_v2  ;;  %v7718_v58 = vmul.f32 %v15635_v43, %v15646_v30  ;;  %v7740_v20 = vmul.f32 %v15638_v14, %v15646_v30 }
 0x9a9   : > { %v7755_v41 = vadd.f32 %v7747_v37, %v7733_v11  ;;  %v7672_v37 = vrot.slane %v7664_v23, 1 }
 0x9aa   : > { %v7701_v45 = vadd.f32 %v7693_v26, %v7679_v0 }
 0x9ab   : > { %v7766_v36 = vadd.f32 %v7762_v42, %v7755_v41 }
 0x9ad   : > { %v7788_v24 = vadd.f32 %v7780_v34, %v7766_v36  ;;  %v7654_v36 = vmul.f32 %v15623_v60, %v15646_v30  ;;  %v7686_v34 = vmul.f32 %v15627_v18, %v15646_v30 }
 0x9af   : > { %v7810_v55 = vadd.f32 %v7802_v22, %v7788_v24  ;;  %v7712_v24 = vadd.f32 %v7708_v19, %v7701_v45  ;;  %v7680_v33 = vadd.f32 %v7672_v37, %v7654_v36  ;;  %v7818_v19 = vrot.slane %v15661_v17, 4 }
 0x9b1   : > { %v7820_v47 = vmul.f32 %v15661_v17, %v7810_v55  ;;  %v7726_v55 = vrot.slane %v7718_v58, 1 }
 0x9b3   : > { %v7830_v15 = vadd.f32 %v15664_v28, %v7820_v47  ;;  %v7694_v47 = vrot.slane %v7686_v34, 2 }
 0x9b5   : > { %v9434_v35 = vmul.f32 -1.442695, %v7830_v15  ;;  %v7702_v25 = vadd.f32 %v7694_v47, %v7680_v33 }
 0x9b7   : > { %10150 = vpow2.f32 %v9434_v35 }
 0x9b8   : > { %10152 = vrcp.f32 %v7590_v12 }
 0x9bd   : > { %v10151_v48 = vpop.eup %10150 }
 0x9be   : > { %v7846_v52 = vadd.f32 1.0, %v10151_v48  ;;  %v10153_v50 = vpop.eup %10152 }
 0x9bf   : > { %v7607_v53 = vmul.f32 %v10153_v50, %v7590_v12  ;;  %vm7612_vm0 = vweird.f32 %v10153_v50 }
 0x9c0   : > { %10154 = vrcp.f32 %v7846_v52  ;;  %v7861_v59 = vand.u32 2147483648, %v7846_v52  ;;  %v7859_v9 = vand.u32 2147483647, %v7846_v52  ;;  %vm7855_vm9 = vweird.f32 %v7846_v52  ;;  %vm7613_vm8 = vmor %vm7611_vm7, %vm7612_vm0 }
 0x9c1   : > { %v7608_v4 = vsub.f32 1.0, %v7607_v53 }
 0x9c2   : > { %v7862_v54 = vor.u32 1.1754944e-38, %v7861_v59  ;;  %vm7860_vm10 = vcmp.eq.f32.partialorder %v7859_v9, 8.507059e+37 }
 0x9c3   : > { %v7609_v61 = vmul.f32 %v10153_v50, %v7608_v4  ;;  %v7775_v4 = vmul.f32 %v15643_v57, %v7649_v32 }
 0x9c5   : > { %v7610_v46 = vadd.f32 %v10153_v50, %v7609_v61  ;;  %v7783_v34 = vrot.slane %v7775_v4, 1 }
 0x9c6   : > { %v10155_v21 = vpop.eup %10154 }
 0x9c7   : > { %v7851_v51 = vmul.f32 %v10155_v21, %v7846_v52  ;;  %vm7856_vm15 = vweird.f32 %v10155_v21  ;;  %v7614_v38 = vsel %vm7613_vm8, %v10153_v50, %v7610_v46 }
 0x9c8   : > { %vm7857_vm3 = vmor %vm7855_vm9, %vm7856_vm15  ;;  %v7619_v11 = vsel %vm7616_vm1, %v7618_v8, %v7614_v38 }
 0x9c9   : > { %v7852_v16 = vsub.f32 1.0, %v7851_v51  ;;  %v7622_v42 = vmul.f32 %v7619_v11, %v7582_v31  ;;  %v7734_v31 = vadd.f32 %v7726_v55, %v7712_v24 }
 0x9cb   : > { %v7853_v29 = vmul.f32 %v10155_v21, %v7852_v16  ;;  %v7637_v22 = vrot.slane %v7622_v42, 4  ;;  %7642 = vst [vmem:[#allocation2 + $0x31] sm:$0xf] %v7622_v42 }
 0x9cd   : > { %v7854_v39 = vadd.f32 %v10155_v21, %v7853_v29  ;;  %7643 = vst [vmem:[#allocation2 + $0x41] sm:$0xf] %v7637_v22 }
 0x9cf   : > { %v7858_v10 = vsel %vm7857_vm3, %v10155_v21, %v7854_v39 }
 0x9d0   : > { %v7863_v41 = vsel %vm7860_vm10, %v7862_v54, %v7858_v10  ;;  %v7797_v10 = vmul.f32 %v15652_v7, %v7649_v32 }
 0x9d1   : > { %v15679_v1 = vmul.f32 %v7863_v41, %v7830_v15  ;;  %v7748_v15 = vrot.slane %v7740_v20, 2  ;;  %v7828_v41 = vrot.slane %v15664_v28, 4 }
 0x9d2   : > { %v7647_v35 = vld [vmem:[#allocation2 + $0x30] sm:$0x3f]  ;;  %v7805_v20 = vrot.slane %v7797_v10, 2 }
 0x9d3   : > { %7918 = vst [vmem:[#allocation1] ss:$2 sm:$0xff] %v15679_v1  ;;  %v7756_v48 = vadd.f32 %v7748_v15, %v7734_v31  ;;  %v7665_v12 = vmul.f32 %v15620_v3, %v7647_v35  ;;  %v7687_v52 = vmul.f32 %v15627_v18, %v7647_v35  ;;  %v7709_v49 = vmul.f32 %v15632_v40, %v7647_v35 }
 0x9d4   : > { %v7648_v50 = vld [vmem:[#allocation2 + $0x40] sm:$0x3f]  ;;  %v7719_v5 = vmul.f32 %v15635_v43, %v7647_v35  ;;  %v7741_v30 = vmul.f32 %v15638_v14, %v7647_v35  ;;  %v7773_v21 = vmul.f32 %v15643_v57, %v7647_v35  ;;  %v7655_v53 = vmul.f32 %v15623_v60, %v7647_v35 }
 0x9d5   : > { %v7673_v2 = vrot.slane %v7665_v12, 1  ;;  %v7713_v51 = vadd.f32 %v7709_v49, %v7702_v25  ;;  %v7763_v63 = vmul.f32 %v15649_v6, %v7647_v35  ;;  %v7695_v18 = vrot.slane %v7687_v52, 2  ;;  %v9751_v12 = vld [vmem:[%s16573_s22 + $0x38] sm:$0xff] }
 0x9d6   : > { %v7727_v3 = vrot.slane %v7719_v5, 1  ;;  %v7720_v16 = vmul.f32 %v15635_v43, %v7648_v50  ;;  %v7749_v61 = vrot.slane %v7741_v30, 2  ;;  %v7774_v62 = vmul.f32 %v15643_v57, %v7648_v50  ;;  %8003 = vmatpush.bf16.msra.mxu0 %v9751_v12  ;;  %v9749_v30 = vld [vmem:[%s16573_s22 + $0x28] sm:$0xff] }
 0x9d7   : > { %v7681_v0 = vadd.f32 %v7673_v2, %v7655_v53  ;;  %v7767_v56 = vadd.f32 %v7763_v63, %v7756_v48  ;;  %v7781_v29 = vrot.slane %v7773_v21, 1  ;;  %v7710_v60 = vmul.f32 %v15632_v40, %v7648_v50  ;;  %v9748_v53 = vld [vmem:[%s16573_s22 + $0x20] sm:$0xff] }
 0x9d8   : > { %v7735_v59 = vadd.f32 %v7727_v3, %v7713_v51  ;;  %v7742_v23 = vmul.f32 %v15638_v14, %v7648_v50  ;;  %v7795_v26 = vmul.f32 %v15652_v7, %v7647_v35  ;;  %v7764_v39 = vmul.f32 %v15649_v6, %v7648_v50 }
 0x9d9   : > { %v7703_v9 = vadd.f32 %v7695_v18, %v7681_v0  ;;  %v7789_v8 = vadd.f32 %v7781_v29, %v7767_v56  ;;  %v7796_v45 = vmul.f32 %v15652_v7, %v7648_v50  ;;  %v7728_v54 = vrot.slane %v7720_v16, 1  ;;  %v9747_v0 = vld [vmem:[%s16573_s22 + $0x18] sm:$0xff] }
 0x9da   : > { %v7757_v46 = vadd.f32 %v7749_v61, %v7735_v59  ;;  %v7803_v38 = vrot.slane %v7795_v26, 2  ;;  %v7765_v57 = vmul.f32 %v15649_v6, %v7649_v32  ;;  %v7782_v11 = vrot.slane %v7774_v62, 1 }
 0x9db   : > { %v7714_v43 = vadd.f32 %v7710_v60, %v7703_v9  ;;  %v7750_v37 = vrot.slane %v7742_v23, 2  ;;  %v7804_v36 = vrot.slane %v7796_v45, 2  ;;  %v9746_v9 = vld [vmem:[%s16573_s22 + $0x10] sm:$0xff] }
 0x9dc   : > { %v7768_v40 = vadd.f32 %v7764_v39, %v7757_v46  ;;  %v7811_v58 = vadd.f32 %v7803_v38, %v7789_v8 }
 0x9dd   : > { %v7736_v14 = vadd.f32 %v7728_v54, %v7714_v43 }
 0x9de   : > { %v7790_v42 = vadd.f32 %v7782_v11, %v7768_v40  ;;  %v7821_v22 = vmul.f32 %v7818_v19, %v7811_v58 }
 0x9df   : > { %v7758_v24 = vadd.f32 %v7750_v37, %v7736_v14 }
 0x9e0   : > { %v7812_v55 = vadd.f32 %v7804_v36, %v7790_v42  ;;  %v7831_v6 = vadd.f32 %v7828_v41, %v7821_v22  ;;  %v9744_v42 = vld [vmem:[%s16573_s22] sm:$0xff]  ;;  %v9759_v36 = vld [vmem:[%s16574_s18 + $0x38] sm:$0xff]  ;;  %v9758_v22 = vld [vmem:[%s16574_s18 + $0x30] sm:$0xff] }
 0x9e1   : > { %v7769_v33 = vadd.f32 %v7765_v57, %v7758_v24  ;;  %v9745_v57 = vld [vmem:[%s16573_s22 + $0x8] sm:$0xff]  ;;  %8102 = vmatpush.bf16.msra.mxu1 %v9759_v36 }
 0x9e2   : > { %v7822_v7 = vmul.f32 %v15661_v17, %v7812_v55  ;;  %v9435_v31 = vmul.f32 -1.442695, %v7831_v6  ;;  %v9750_v17 = vld [vmem:[%s16573_s22 + $0x30] sm:$0xff]  ;;  %v9773_v36 = vld [vmem:[%s16579_s2 + $0x28] sm:$0xff] }
 0x9e3   : > { %v7791_v47 = vadd.f32 %v7783_v34, %v7769_v33  ;;  %8004 = vmatpush.bf16.msra.mxu0 %v9750_v17  ;;  %v9757_v33 = vld [vmem:[%s16574_s18 + $0x28] sm:$0xff]  ;;  %v7954_v17 = vld [vmem:[%s16575_s7] sm:$0x1]  ;;  %s16577_s7 = sld [smem:[#allocation47_spill]] }
 0x9e4   : > { %v15710_v15 = vadd.f32 %v15664_v28, %v7822_v7  ;;  %10156 = vpow2.f32 %v9435_v31 }
 0x9e5   : > { %v7813_v25 = vadd.f32 %v7805_v20, %v7791_v47  ;;  %8103 = vmatpush.bf16.msra.mxu1 %v9758_v22 }
 0x9e6   : > { %v9436_v35 = vmul.f32 -1.442695, %v15710_v15 }
 0x9e7   : > { %v7823_v32 = vmul.f32 %v7818_v19, %v7813_v25  ;;  %8005 = vmatpush.bf16.msra.mxu0 %v9749_v30 }
 0x9e8   : > { %10158 = vpow2.f32 %v9436_v35 }
 0x9e9   : > { %v15713_v48 = vadd.f32 %v7828_v41, %v7823_v32  ;;  %8104 = vmatpush.bf16.msra.mxu1 %v9757_v33  ;;  %s16578_s1 = smov %s16577_s7 }
 0x9ea   : > { %v10157_v52 = vpop.eup %10156  ;;  %v9762_v22 = vld [vmem:[%s16578_s1 + $0x10] sm:$0xff] }
 0x9eb   : > { %v9437_v49 = vmul.f32 -1.442695, %v15713_v48  ;;  %v7847_v50 = vadd.f32 1.0, %v10157_v52  ;;  %8006 = vmatpush.bf16.msra.mxu0 %v9748_v53  ;;  %v9753_v53 = vld [vmem:[%s16574_s18 + $0x8] sm:$0xff] }
 0x9ed   : > { %10160 = vpow2.f32 %v9437_v49  ;;  %v7876_v18 = vand.u32 2147483648, %v7847_v50  ;;  %v7874_v59 = vand.u32 2147483647, %v7847_v50  ;;  %vm7870_vm12 = vweird.f32 %v7847_v50 }
 0x9ee   : > { %v10159_v28 = vpop.eup %10158  ;;  %10162 = vrcp.f32 %v7847_v50 }
 0x9ef   : > { %v7848_v5 = vadd.f32 1.0, %v10159_v28  ;;  %8007 = vmatpush.bf16.msra.mxu0 %v9747_v0  ;;  %v7877_v23 = vor.u32 1.1754944e-38, %v7876_v18  ;;  %vm7875_vm4 = vcmp.eq.f32.partialorder %v7874_v59, 8.507059e+37 }
 0x9f1   : > { %10164 = vrcp.f32 %v7848_v5  ;;  %v7891_v29 = vand.u32 2147483648, %v7848_v5  ;;  %v7889_v46 = vand.u32 2147483647, %v7848_v5  ;;  %vm7885_vm5 = vweird.f32 %v7848_v5 }
 0x9f3   : > { %v10161_v21 = vpop.eup %10160  ;;  %v7892_v54 = vor.u32 1.1754944e-38, %v7891_v29  ;;  %8008 = vmatpush.bf16.msra.mxu0 %v9746_v9  ;;  %vm7890_vm6 = vcmp.eq.f32.partialorder %v7889_v46, 8.507059e+37 }
 0x9f4   : > { %v10163_v2 = vpop.eup %10162  ;;  %v7849_v51 = vadd.f32 1.0, %v10161_v21  ;;  %v9754_v21 = vld [vmem:[%s16574_s18 + $0x10] sm:$0xff] }
 0x9f5   : > { %v7866_v63 = vmul.f32 %v10163_v2, %v7847_v50  ;;  %vm7871_vm2 = vweird.f32 %v10163_v2 }
 0x9f6   : > { %10166 = vrcp.f32 %v7849_v51  ;;  %vm7872_vm14 = vmor %vm7870_vm12, %vm7871_vm2  ;;  %v7906_v40 = vand.u32 2147483648, %v7849_v51  ;;  %v7904_v37 = vand.u32 2147483647, %v7849_v51  ;;  %vm7900_vm15 = vweird.f32 %v7849_v51 }
 0x9f7   : > { %v10165_v4 = vpop.eup %10164  ;;  %v7867_v3 = vsub.f32 1.0, %v7866_v63  ;;  %8009 = vmatpush.bf16.msra.mxu0 %v9745_v57  ;;  %v9752_v63 = vld [vmem:[%s16574_s18] sm:$0xff] }
 0x9f8   : > { %v7881_v16 = vmul.f32 %v10165_v4, %v7848_v5  ;;  %vm7886_vm11 = vweird.f32 %v10165_v4  ;;  %v7907_v34 = vor.u32 1.1754944e-38, %v7906_v40  ;;  %vm7905_vm9 = vcmp.eq.f32.partialorder %v7904_v37, 8.507059e+37  ;;  %v9755_v5 = vld [vmem:[%s16574_s18 + $0x18] sm:$0xff]  ;;  %v9764_v40 = vld [vmem:[%s16578_s1 + $0x20] sm:$0xff] }
 0x9f9   : > { %v7868_v56 = vmul.f32 %v10163_v2, %v7867_v3  ;;  %vm7887_vm13 = vmor %vm7885_vm5, %vm7886_vm11 }
 0x9fa   : > { %v7882_v61 = vsub.f32 1.0, %v7881_v16 }
 0x9fb   : > { %v7869_v62 = vadd.f32 %v10163_v2, %v7868_v56  ;;  %8010 = vmatpush.bf16.msra.mxu0 %v9744_v42 }
 0x9fc   : > { %v10167_v60 = vpop.eup %10166  ;;  %v7883_v26 = vmul.f32 %v10165_v4, %v7882_v61 }
 0x9fd   : > { %v7873_v39 = vsel %vm7872_vm14, %v10163_v2, %v7869_v62  ;;  %v7896_v8 = vmul.f32 %v10167_v60, %v7849_v51  ;;  %vm7901_vm0 = vweird.f32 %v10167_v60 }
 0x9fe   : > { %v7878_v45 = vsel %vm7875_vm4, %v7877_v23, %v7873_v39  ;;  %v7884_v43 = vadd.f32 %v10165_v4, %v7883_v26  ;;  %vm7902_vm7 = vmor %vm7900_vm15, %vm7901_vm0  ;;  %v8053_v26 = vld [vmem:[%s16576_s15] sm:$0x1]  ;;  %s16580_s15 = sld [smem:[#allocation48_spill]] }
 0x9ff   : > { %v7897_v38 = vsub.f32 1.0, %v7896_v8  ;;  %v15722_v19 = vmul.f32 %v7878_v45, %v7831_v6  ;;  %v9756_v6 = vld [vmem:[%s16574_s18 + $0x20] sm:$0xff]  ;;  %v9767_v45 = vld [vmem:[%s16577_s7 + $0x38] sm:$0xff]  ;;  %s9606_s7 = sshll.u32 %s10831_s11, 4  ;;  %s16583_s11 = sld [smem:[#allocation54_spill]] }
 0xa00   : > { %v7888_v10 = vsel %vm7887_vm13, %v10165_v4, %v7884_v43  ;;  %8105 = vmatpush.bf16.msra.mxu1 %v9756_v6  ;;  %8222 = vmatpush.bf16.msrb.mxu2 %v9767_v45  ;;  %v9772_v6 = vld [vmem:[%s16579_s2 + $0x20] sm:$0xff] }
 0xa01   : > { %v7893_v11 = vsel %vm7890_vm6, %v7892_v54, %v7888_v10  ;;  %v7898_v14 = vmul.f32 %v10167_v60, %v7897_v38  ;;  %7920 = vst [vmem:[#allocation1 + $0x1] ss:$2 sm:$0xff] %v15722_v19  ;;  %v9766_v54 = vld [vmem:[%s16578_s1 + $0x30] sm:$0xff]  ;;  %v9765_v10 = vld [vmem:[%s16578_s1 + $0x28] sm:$0xff] }
 0xa02   : > { %v15727_v58 = vmul.f32 %v7893_v11, %v15710_v15  ;;  %v9775_v11 = vld [vmem:[%s16579_s2 + $0x38] sm:$0xff] }
 0xa03   : > { %v7899_v41 = vadd.f32 %v10167_v60, %v7898_v14  ;;  %8325 = vmatpush.bf16.msra.mxu3 %v9775_v11  ;;  %v9774_v14 = vld [vmem:[%s16579_s2 + $0x30] sm:$0xff] }
 0xa04   : > { %7922 = vst [vmem:[#allocation1 + $0x10] ss:$2 sm:$0xff] %v15727_v58  ;;  %8106 = vmatpush.bf16.msra.mxu1 %v9755_v5  ;;  %8223 = vmatpush.bf16.msrb.mxu2 %v9766_v54 }
 0xa05   : > { %v7903_v24 = vsel %vm7902_vm7, %v10167_v60, %v7899_v41  ;;  %v9763_v41 = vld [vmem:[%s16578_s1 + $0x18] sm:$0xff]  ;;  %s16584_s3 = smov %s16583_s11  ;;  %s8530_s4 = scalar_lea.hbm %s16583_s11, %s10726_s0 }
 0xa06   : > { %v7908_v55 = vsel %vm7905_vm9, %v7907_v34, %v7903_v24  ;;  %s8534_s6 = sshll.u32 %s8530_s4, 4  ;;  %s10338_s0 = scalar_lea.hbm %s16584_s3, 2  ;;  %s8535_s6 = int_to_ptr.hbm [resolvable:$true] %s8534_s6 }
 0xa07   : > { %v15734_v20 = vmul.f32 %v7908_v55, %v15713_v48  ;;  %8326 = vmatpush.bf16.msra.mxu3 %v9774_v14  ;;  %s10332_s8 = sshra.s32 %s8535_s6, 4  ;;  %s10333_s8 = int_to_ptr.hbm [resolvable:$true] %s10332_s8 }
 0xa08   : > { %v7925_v7 = vld.sshfl [vmem:[#allocation1] sm:$0xff pattern:$0x75316420]  ;;  %8107 = vmatpush.bf16.msra.mxu1 %v9754_v21  ;;  %8224 = vmatpush.bf16.msrb.mxu2 %v9765_v10  ;;  %v9961_v21 = vld [vmem:[#allocation3] ss:$0 sm:$0xff]  ;;  %s10334_s9 = scalar_lea.hbm %s10333_s8, 1  ;;  %p10339_p4 = scmp.lt.s32.totalorder %s10333_s8, %s16584_s3 }
 0xa09   : > { %7924 = vst [vmem:[#allocation1 + $0x11] ss:$2 sm:$0xff] %v15734_v20  ;;  %p10335_p9 = scmp.ne.s32.totalorder %s10333_s8, %s10334_s9  ;;  %p10340_p7 = scmp.lt.s32.totalorder %s10338_s0, %s10334_s9 }
 0xa0b   : > { %8327 = vmatpush.bf16.msra.mxu3 %v9773_v36  ;;  %p10336_p12 = pnand %p10335_p9, %p10743_p5  ;;  %p10341_p8 = por %p10340_p7, %p10339_p4 }
 0xa0c   : > { %8108 = vmatpush.bf16.msra.mxu1 %v9753_v53  ;;  %8225 = vmatpush.bf16.msrb.mxu2 %v9764_v40 }
 0xa0d   : > { %p10337_p0 = pneg %p10336_p12 }
 0xa0f   : > { %8328 = vmatpush.bf16.msra.mxu3 %v9772_v6  ;;  %p10342_p11 = pnand %p10341_p8, %p10337_p0 }
 0xa10   : > { %v7926_v47 = vld.sshfl [vmem:[#allocation1 + $0x10] sm:$0xff pattern:$0x75316420]  ;;  %8109 = vmatpush.bf16.msra.mxu1 %v9752_v63  ;;  %8226 = vmatpush.bf16.msrb.mxu2 %v9763_v41 }
 0xa11   : > { %v7929_v31 = vadd.f32 %v7926_v47, %v7925_v7 }
 0xa13   : > { %v7930_v15 = vrot.slane %v7929_v31, 4 }
 0xa14   : > { %8227 = vmatpush.bf16.msrb.mxu2 %v9762_v22 }
 0xa15   : > { %v7931_v25 = vadd.f32 %v7930_v15, %v7929_v31  ;;  %v9761_v31 = vld [vmem:[%s16578_s1 + $0x8] sm:$0xff] }
 0xa17   : > { %v7932_v35 = vrot.slane %v7931_v25, 2 }
 0xa18   : > { %8228 = vmatpush.bf16.msrb.mxu2 %v9761_v31 }
 0xa19   : > { %v7933_v32 = vadd.f32 %v7932_v35, %v7931_v25 }
 0xa1b   : > { %v7934_v48 = vrot.slane %v7933_v32, 1 }
 0xa1d   : > { %v7935_v12 = vadd.f32 %v7934_v48, %v7933_v32  ;;  %v9760_v32 = vld [vmem:[%s16578_s1] sm:$0xff]  ;;  %s1562_s1 = scalar_lea.vmem %s10693_s30, %s9606_s7 }
 0xa1e   : > { %8229 = vmatpush.bf16.msrb.mxu2 %v9760_v32 }
 0xa1f   : > { %v7936_v52 = vmul.f32 %v7935_v12, %v15548_v44 }
 0xa21   : > { %v7937_v49 = vpack.c.bf16 %v7936_v52, %v7936_v52 }
 0xa23   : > { %8011 = vmatmul.bf16.vlgmr.msra.gmra.mxu0 %v7937_v49 }
 0xaa0   : > { %v8012_v50 = vpop.f32.mrf.mxu0 }
 0xaa1   : > { %v8013_v28 = vadd.f32 %v8012_v50, %v7954_v17 }
 0xaa3   : > { %v9470_v30 = vmul.f32 -1.442695, %v8013_v28 }
 0xaa5   : > { %10168 = vpow2.f32 %v9470_v30  ;;  %v9960_v30 = vld [vmem:[%s16580_s15] ss:$0 sm:$0xff]  ;;  %s16581_s15 = sld [smem:[#allocation52_spill]] }
 0xaa8   : > { %v8014_v2 = vpop.f32.mrf.mxu0 }
 0xaab   : > { %v10169_v51 = vpop.eup %10168 }
 0xaac   : > { %v8019_v4 = vadd.f32 1.0, %v10169_v51 }
 0xaae   : > { %10170 = vrcp.f32 %v8019_v4  ;;  %v8031_v16 = vand.u32 2147483648, %v8019_v4  ;;  %v8029_v59 = vand.u32 2147483647, %v8019_v4  ;;  %vm8025_vm3 = vweird.f32 %v8019_v4 }
 0xab0   : > { %v8032_v62 = vor.u32 1.1754944e-38, %v8031_v16  ;;  %vm8030_vm10 = vcmp.eq.f32.partialorder %v8029_v59, 8.507059e+37 }
 0xab4   : > { %v10171_v3 = vpop.eup %10170 }
 0xab5   : > { %v8021_v0 = vmul.f32 %v10171_v3, %v8019_v4  ;;  %vm8026_vm8 = vweird.f32 %v10171_v3 }
 0xab6   : > { %vm8027_vm1 = vmor %vm8025_vm3, %vm8026_vm8 }
 0xab7   : > { %v8022_v18 = vsub.f32 1.0, %v8021_v0 }
 0xab9   : > { %v8023_v56 = vmul.f32 %v10171_v3, %v8022_v18 }
 0xabb   : > { %v8024_v61 = vadd.f32 %v10171_v3, %v8023_v56 }
 0xabd   : > { %v8028_v29 = vsel %vm8027_vm1, %v10171_v3, %v8024_v61  ;;  %v9962_v61 = vld [vmem:[#allocation6] ss:$0 sm:$0xff] }
 0xabe   : > { %v8033_v9 = vsel %vm8030_vm10, %v8032_v62, %v8028_v29  ;;  %v9963_v62 = vld [vmem:[#allocation8] ss:$0 sm:$0xff] }
 0xabf   : > { %v8035_v60 = vmul.f32 %v8033_v9, %v8013_v28 }
 0xac1   : > { %v8036_v23 = vpack.c.bf16 %v8035_v60, %v8035_v60 }
 0xac3   : > { %8110 = vmatmul.bf16.vlgmr.msra.gmra.mxu1 %v8036_v23 }
 0xb40   : > { %v8111_v46 = vpop.f32.mrf.mxu1 }
 0xb41   : > { %v8112_v39 = vadd.f32 %v8111_v46, %v8053_v26 }
 0xb43   : > { %v9503_v8 = vmul.f32 -1.442695, %v8112_v39 }
 0xb45   : > { %10172 = vpow2.f32 %v9503_v8 }
 0xb48   : > { %v8113_v43 = vpop.f32.mrf.mxu1 }
 0xb49   : > { %v9783_v43 = vld [vmem:[%s16581_s15 + $0x38] sm:$0xff] }
 0xb4a   : > { %8475 = vmatpush.bf16.msrb.mxu0 %v9783_v43 }
 0xb4b   : > { %v10173_v38 = vpop.eup %10172 }
 0xb4c   : > { %v8118_v57 = vadd.f32 1.0, %v10173_v38 }
 0xb4e   : > { %10174 = vrcp.f32 %v8118_v57  ;;  %v8130_v24 = vand.u32 2147483648, %v8118_v57  ;;  %v8128_v33 = vand.u32 2147483647, %v8118_v57  ;;  %vm8124_vm12 = vweird.f32 %v8118_v57 }
 0xb50   : > { %v8131_v47 = vor.u32 1.1754944e-38, %v8130_v24  ;;  %vm8129_vm11 = vcmp.eq.f32.partialorder %v8128_v33, 8.507059e+37 }
 0xb54   : > { %v10175_v37 = vpop.eup %10174 }
 0xb55   : > { %v8120_v42 = vmul.f32 %v10175_v37, %v8118_v57  ;;  %vm8125_vm2 = vweird.f32 %v10175_v37 }
 0xb56   : > { %vm8126_vm14 = vmor %vm8124_vm12, %vm8125_vm2 }
 0xb57   : > { %v8121_v34 = vsub.f32 1.0, %v8120_v42 }
 0xb59   : > { %v8122_v55 = vmul.f32 %v10175_v37, %v8121_v34 }
 0xb5b   : > { %v8123_v7 = vadd.f32 %v10175_v37, %v8122_v55 }
 0xb5d   : > { %v8127_v15 = vsel %vm8126_vm14, %v10175_v37, %v8123_v7 }
 0xb5e   : > { %v8132_v25 = vsel %vm8129_vm11, %v8131_v47, %v8127_v15 }
 0xb5f   : > { %v8134_v35 = vperm.slane %v8132_v25, 0 }
 0xb61   : > { %v8136_v48 = vrot.slane %v8134_v35, 4  ;;  %v8138_v12 = vmul.f32 %v8134_v35, %v15679_v1  ;;  %v8140_v52 = vmul.f32 %v8134_v35, %v15727_v58  ;;  %v9771_v1 = vld [vmem:[%s16579_s2 + $0x18] sm:$0xff]  ;;  %v9770_v58 = vld [vmem:[%s16579_s2 + $0x10] sm:$0xff] }
 0xb62   : > { %8329 = vmatpush.bf16.msra.mxu3 %v9771_v1 }
 0xb63   : > { %v8139_v49 = vmul.f32 %v8136_v48, %v15722_v19  ;;  %v8141_v17 = vmul.f32 %v8136_v48, %v15734_v20  ;;  %8146 = vst [vmem:[#allocation1] ss:$2 sm:$0xff] %v8138_v12  ;;  %v9769_v19 = vld [vmem:[%s16579_s2 + $0x8] sm:$0xff]  ;;  %v9768_v20 = vld [vmem:[%s16579_s2] sm:$0xff]  ;;  %s16582_s2 = smov %s16581_s15 }
 0xb64   : > { %8150 = vst [vmem:[#allocation1 + $0x10] ss:$2 sm:$0xff] %v8140_v52  ;;  %v9782_v10 = vld [vmem:[%s16582_s2 + $0x30] sm:$0xff]  ;;  %v9781_v41 = vld [vmem:[%s16582_s2 + $0x28] sm:$0xff]  ;;  %v9780_v55 = vld [vmem:[%s16582_s2 + $0x20] sm:$0xff] }
 0xb65   : > { %8148 = vst [vmem:[#allocation1 + $0x1] ss:$2 sm:$0xff] %v8139_v49  ;;  %8476 = vmatpush.bf16.msrb.mxu0 %v9782_v10  ;;  %v9779_v35 = vld [vmem:[%s16582_s2 + $0x18] sm:$0xff]  ;;  %v9778_v52 = vld [vmem:[%s16582_s2 + $0x10] sm:$0xff] }
 0xb66   : > { %8152 = vst [vmem:[#allocation1 + $0x11] ss:$2 sm:$0xff] %v8141_v17  ;;  %8330 = vmatpush.bf16.msra.mxu3 %v9770_v58 }
 0xb69   : > { %8477 = vmatpush.bf16.msrb.mxu0 %v9781_v41 }
 0xb6a   : > { %8331 = vmatpush.bf16.msra.mxu3 %v9769_v19  ;;  %v9776_v19 = vld [vmem:[%s16582_s2] sm:$0xff] }
 0xb6c   : > { %v8153_v50 = vld.sshfl [vmem:[#allocation1] sm:$0xff pattern:$0x75316420] }
 0xb6d   : > { %v8154_v28 = vld.sshfl [vmem:[#allocation1 + $0x10] sm:$0xff pattern:$0x75316420]  ;;  %8478 = vmatpush.bf16.msrb.mxu0 %v9780_v55 }
 0xb6e   : > { %v8157_v5 = vpack.c.bf16 %v8154_v28, %v8153_v50  ;;  %8332 = vmatpush.bf16.msra.mxu3 %v9768_v20 }
 0xb70   : > { %8230 = vmatmul.bf16.vlgmr.msrb.gmra.mxu2 %v8157_v5  ;;  %v9777_v5 = vld [vmem:[%s16582_s2 + $0x8] sm:$0xff] }
 0xb71   : > { %8479 = vmatpush.bf16.msrb.mxu0 %v9779_v35 }
 0xb75   : > { %8480 = vmatpush.bf16.msrb.mxu0 %v9778_v52 }
 0xb79   : > { %8481 = vmatpush.bf16.msrb.mxu0 %v9777_v5 }
 0xb7d   : > { %8482 = vmatpush.bf16.msrb.mxu0 %v9776_v19 }
 0xbf3   : > { %v8231_v53 = vpop.f32.mrf.mxu2 }
 0xbf4   : > { %v8240_v2 = vmul.f32 %v9960_v30, %v8231_v53 }
 0xbf6   : > { %v8246_v51 = vadd.f32 %v9961_v21, %v8240_v2 }
 0xbf8   : > { %v8248_v63 = vadd.f32 %v8246_v51, %v15605_v13 }
 0xbfa   : > { %v8252_v4 = vrot.slane %v8248_v63, 4  ;;  %8256 = vst [vmem:[%s1562_s1] sm:$0xf] %v8248_v63 }
 0xbfb   : > { %v8233_v3 = vpop.f32.mrf.mxu2 }
 0xbfc   : > { %8257 = vst [vmem:[%s1562_s1 + $0x4] sm:$0xf] %v8252_v4  ;;  %v8241_v0 = vmul.f32 %v9960_v30, %v8233_v3 }
 0xbfe   : > { %v8247_v18 = vadd.f32 %v9961_v21, %v8241_v0 }
 0xc00   : > { %v8249_v16 = vadd.f32 %v8247_v18, %v15607_v27 }
 0xc02   : > { %v8253_v56 = vrot.slane %v8249_v16, 4  ;;  %8258 = vst [vmem:[%s1562_s1 + $0x8] sm:$0xf] %v8249_v16  ;;  %v8260_v59 = vpack.c.bf16 %v8249_v16, %v8248_v63  ;;  %v8426_v63 = vld [vmem:[#allocation9] sm:$0x1] }
 0xc04   : > { %8259 = vst [vmem:[%s1562_s1 + $0xc] sm:$0xf] %v8253_v56  ;;  %8333 = vmatmul.bf16.vlgmr.msra.gmra.mxu3 %v8260_v59  ;;  %s1567_s1 = scalar_lea.vmem %s10698_s24, %s9606_s7  ;;  %s1541_s7 = sand.u32 1, %s10384_s10  }
 0xc05   : > { %s1542_s5 = scalar_lea.vmem [#allocation11], %s1541_s7  ;;  %s8510_s2 = scalar_lea.sflag [#allocation5], %s1541_s7 }
 0xc87   : > { %v8334_v29 = vpop.f32.mrf.mxu3 }
 0xc88   : > { %v8343_v9 = vmul.f32 %v9962_v61, %v8334_v29 }
 0xc8a   : > { %v8349_v60 = vadd.f32 %v9963_v62, %v8343_v9 }
 0xc8c   : > { %v9568_v13 = vmul.f32 -1.442695, %v8349_v60 }
 0xc8e   : > { %10176 = vpow2.f32 %v9568_v13 }
 0xc8f   : > { %v8336_v23 = vpop.f32.mrf.mxu3 }
 0xc90   : > { %v8344_v26 = vmul.f32 %v9962_v61, %v8336_v23 }
 0xc92   : > { %v8350_v46 = vadd.f32 %v9963_v62, %v8344_v26 }
 0xc94   : > { %v10177_v39 = vpop.eup %10176  ;;  %v9569_v8 = vmul.f32 -1.442695, %v8350_v46 }
 0xc95   : > { %v8357_v27 = vadd.f32 1.0, %v10177_v39 }
 0xc96   : > { %10178 = vpow2.f32 %v9569_v8 }
 0xc97   : > { %10180 = vrcp.f32 %v8357_v27  ;;  %v8370_v11 = vand.u32 2147483648, %v8357_v27  ;;  %v8368_v37 = vand.u32 2147483647, %v8357_v27  ;;  %vm8364_vm5 = vweird.f32 %v8357_v27 }
 0xc99   : > { %v8371_v34 = vor.u32 1.1754944e-38, %v8370_v11  ;;  %vm8369_vm6 = vcmp.eq.f32.partialorder %v8368_v37, 8.507059e+37 }
 0xc9c   : > { %v10179_v45 = vpop.eup %10178 }
 0xc9d   : > { %v10181_v54 = vpop.eup %10180  ;;  %v8358_v38 = vadd.f32 1.0, %v10179_v45 }
 0xc9e   : > { %v8360_v57 = vmul.f32 %v10181_v54, %v8357_v27  ;;  %vm8365_vm4 = vweird.f32 %v10181_v54 }
 0xc9f   : > { %10182 = vrcp.f32 %v8358_v38  ;;  %vm8366_vm13 = vmor %vm8364_vm5, %vm8365_vm4  ;;  %v8385_v47 = vand.u32 2147483648, %v8358_v38  ;;  %v8383_v25 = vand.u32 2147483647, %v8358_v38  ;;  %vm8379_vm15 = vweird.f32 %v8358_v38 }
 0xca0   : > { %v8361_v40 = vsub.f32 1.0, %v8360_v57 }
 0xca1   : > { %v8386_v48 = vor.u32 1.1754944e-38, %v8385_v47  ;;  %vm8384_vm9 = vcmp.eq.f32.partialorder %v8383_v25, 8.507059e+37 }
 0xca2   : > { %v8362_v14 = vmul.f32 %v10181_v54, %v8361_v40 }
 0xca4   : > { %v8363_v42 = vadd.f32 %v10181_v54, %v8362_v14 }
 0xca5   : > { %v10183_v36 = vpop.eup %10182 }
 0xca6   : > { %v8367_v24 = vsel %vm8366_vm13, %v10181_v54, %v8363_v42  ;;  %v8375_v22 = vmul.f32 %v10183_v36, %v8358_v38  ;;  %vm8380_vm0 = vweird.f32 %v10183_v36 }
 0xca7   : > { %v8372_v33 = vsel %vm8369_vm6, %v8371_v34, %v8367_v24  ;;  %vm8381_vm7 = vmor %vm8379_vm15, %vm8380_vm0 }
 0xca8   : > { %v8389_v6 = vmul.f32 %v8372_v33, %v8349_v60  ;;  %v8376_v7 = vsub.f32 1.0, %v8375_v22 }
 0xcaa   : > { %v8393_v31 = vrot.slane %v8389_v6, 4  ;;  %8397 = vst [vmem:[%s1567_s1] sm:$0xf] %v8389_v6  ;;  %v8377_v15 = vmul.f32 %v10183_v36, %v8376_v7 }
 0xcac   : > { %8398 = vst [vmem:[%s1567_s1 + $0x4] sm:$0xf] %v8393_v31  ;;  %v8378_v32 = vadd.f32 %v10183_v36, %v8377_v15 }
 0xcae   : > { %v8382_v12 = vsel %vm8381_vm7, %v10183_v36, %v8378_v32 }
 0xcaf   : > { %v8387_v49 = vsel %vm8384_vm9, %v8386_v48, %v8382_v12 }
 0xcb0   : > { %v8390_v17 = vmul.f32 %v8387_v49, %v8350_v46 }
 0xcb2   : > { %v8394_v50 = vrot.slane %v8390_v17, 4  ;;  %8399 = vst [vmem:[%s1567_s1 + $0x8] sm:$0xf] %v8390_v17  ;;  %v8401_v28 = vadd.f32 %v8390_v17, %v8389_v6 }
 0xcb4   : > { %8400 = vst [vmem:[%s1567_s1 + $0xc] sm:$0xf] %v8394_v50  ;;  %v8402_v1 = vrot.slane %v8401_v28, 4  ;;  %s8532_s1 = sshll.u32 %s1542_s5, 4  ;;  %s8533_s1 = int_to_ptr.vmem [resolvable:$true] %s8532_s1 }
 0xcb6   : > { %v8403_v58 = vadd.f32 %v8402_v1, %v8401_v28 }
 0xcb8   : > { %v8404_v20 = vrot.slane %v8403_v58, 2 }
 0xcba   : > { %v8405_v30 = vadd.f32 %v8404_v20, %v8403_v58 }
 0xcbc   : > { %v8406_v21 = vrot.slane %v8405_v30, 1 }
 0xcbe   : > { %v8407_v53 = vadd.f32 %v8406_v21, %v8405_v30 }
 0xcc0   : > { %v8408_v2 = vmul.f32 %v8407_v53, %v15548_v44 }
 0xcc2   : > { %v8409_v51 = vpack.c.bf16 %v8408_v2, %v8408_v2 }
 0xcc4   : > { %8483 = vmatmul.bf16.vlgmr.msrb.gmra.mxu0 %v8409_v51 }
 0xd41   : > { %v8484_v4 = vpop.f32.mrf.mxu0 }
 0xd42   : > { %v8485_v3 = vadd.f32 %v8484_v4, %v8426_v63 }
 0xd44   : > { %8488 = vst [vmem:[%s1542_s5] sm:$0x1] %v8485_v3 }
 0xd45   : > { %10345 = shalt.err (!%p10342_p11)
}
 0xd46   : > { %9801 = dma.vmem_to_hbm [thread:$0]  (%p10743_p5), %s8533_s1, 16, %s8535_s6, %s8510_s2  }
 0xd49   : > { %v8486_v44 = vpop.f32.mrf.mxu0 }
 0xd4a PF: > { %s16586_s5 = sld [smem:[#allocation57_spill]] }
 0xd4b   : > { %s16587_s4 = sld [smem:[#allocation55_spill]] }
 0xd50   : > { %p9828_p13 = scmp.ge.s32.totalorder %s16586_s5, 2 }
 0xd51   : > { %s8578_s7 = sand.u32 1, %s16587_s4  }
 0xd52   : > { %p9817_p1 = pnand %p9828_p13, %p10747_p6  ;;  %s8579_s12 = scalar_lea.sflag [#allocation5], %s8578_s7 }
 0xd54   : > { %p9818_p2 = pneg %p9817_p1 }
 0xd56   : > { %10375 = dma.done.wait (%p9818_p2), %s8579_s12, 16  }
 0xd57   : > { %10377 = vsyncadd (%p9818_p2), %s8579_s12, 4294967280  ;;  %s16589_s15 = sld [smem:[#allocation58_spill]]  ;;  %s16592_s7 = smov %s10384_s10 }
 0xd58   : > { %s16590_s9 = sld [smem:[#allocation56_spill]] }
 0xd59   : > { %s16591_s11 = sld [smem:[#allocation59_spill]] }
 0xd5d   : > { %p113_p3 = scmp.ge.s32.totalorder %s16589_s15, 4  }
 0xd5e   : > { %s16593_s10 = smov %s16590_s9 }
 0xd5f   :  { %115 = sbr.rel (!%p113_p3) target bundleno = 105 (0x69), region = 398 }
 0xd64   :  { %8584 = vsyncpa [#allocation4], 1 }
 0xd65   :  { %8586 = vsyncpa [#allocation4 + $0x1], 1 }
 0xd66   :  { %8587 = vsyncpa [#allocation7], 1 }
 0xd67   :  { %8588 = vsyncpa [#allocation10], 1 }
 0xd68   :  { %8589 = vsyncpa [#allocation5], 1 }
 0xd69   :  { %8591 = vsyncpa [#allocation5 + $0x1], 1 }

</bundles_post_ra>
